<compile_context>
chip_gen: v6e
topology: v6e:2x2x1
jax: 0.10.0
libtpu: 0.0.40
codegen_flags: <defaults>
</compile_context>

<pallas_src>
import numpy as np
import jax
import jax.numpy as jnp
from jax import lax
from jax.experimental import pallas as pl
from jax.experimental.pallas import tpu as pltpu

# ---------------- static problem sizes (consistent with the module) ----------
B = 2            # batch
F = 8            # feature_vec length  (Config.DESC_OBS_SPLIT[0])
M = 16           # each map is (M, M)
A = 4            # np.prod(action_shape['a'].shape)
PAD = 2          # conv padding
EXTRA = 8        # guard rows so shifted tap loads never run off the buffer
CH = (3, 16, 32, 64)
BN_EPS = 1e-5
NOUT = A + 1     # fused policy(A) + value(1) head width


def cnn_geoms():
    geoms = []
    h, w = M, M
    for _ in range(3):
        hp, wp = h + 2 * PAD, w + 2 * PAD          # padded input
        ho, wo = hp - 2, wp - 2                    # conv output (k=3, stride 1)
        hq, wq = ho // 2, wo // 2                  # after MaxPool2d(2), floor
        geoms.append((hp, wp, ho, wo, hq, wq))
        h, w = hq, wq
    return geoms, (h, w)


GEOMS, (H_FIN, W_FIN) = cnn_geoms()
(HP1, WP1, HO1, WO1, HQ1, WQ1) = GEOMS[0]          # 20,20,18,18,9,9
(HP2, WP2, HO2, WO2, HQ2, WQ2) = GEOMS[1]          # 13,13,11,11,5,5
(HP3, WP3, HO3, WO3, HQ3, WQ3) = GEOMS[2]          # 9,9,7,7,3,3
CNN_FLAT = HQ3 * WQ3 * CH[3]                       # 3*3*64 = 576
D_IN = F + CNN_FLAT                                # 584
L1_ROWS = HP1 * WP1 + EXTRA                        # 408


# ------------------------------- fused kernel --------------------------------
def fused_kernel(x_ref, fv_ref,
                 cw1, cs1, cb1, cw2, cs2, cb2, cw3, cs3, cb3,
                 w1a, w1b3, b1, w2, b2, wh, bh,
                 out_ref,
                 y1, buf2, y2, buf3, y3):
    """One grid step = one image end-to-end (CNN stack + MLP head)."""

    def conv_bn_relu(read, w_ref, scale_ref, shift_ref, wp, ho):
        # 3x3 conv over the flattened padded image as 9 shifted matmuls,
        # accumulated in registers (the caller stores the result once).
        n = ho * wp
        acc = None
        for dy in range(3):
            for dx in range(3):
                patch = read(dy * wp + dx, n)                  # (n, cin)
                t = jnp.dot(patch, w_ref[dy, dx],
                            preferred_element_type=jnp.float32)
                acc = t if acc is None else acc + t
        # folded conv-bias + BatchNorm (eval) + ReLU
        return jnp.maximum(acc * scale_ref[...] + shift_ref[...], 0.0)

    def pool_row(y_scr, wp, wq, i):
        # MaxPool2d(2,2) for pooled output row i: 4 sublane-strided loads and
        # 3 elementwise maxes -> (wq, cout).  Only valid columns are touched.
        a = y_scr[pl.ds(2 * i * wp, wq, stride=2), :]
        b_ = y_scr[pl.ds(2 * i * wp + 1, wq, stride=2), :]
        c = y_scr[pl.ds((2 * i + 1) * wp, wq, stride=2), :]
        d = y_scr[pl.ds((2 * i + 1) * wp + 1, wq, stride=2), :]
        return jnp.maximum(jnp.maximum(a, b_), jnp.maximum(c, d))

    # ---------------- layer 1: conv(3->16) + BN + ReLU + pool ----------------
    y1[...] = conv_bn_relu(lambda off, n: x_ref[0, pl.ds(off, n), :],
                           cw1, cs1, cb1, WP1, HO1)
    buf2[...] = jnp.zeros(buf2.shape, buf2.dtype)     # zero padding border once
    for i in range(HQ1):
        buf2[pl.ds((i + PAD) * WP2 + PAD, WQ1), :] = pool_row(y1, WP1, WQ1, i)

    # ---------------- layer 2: conv(16->32) + BN + ReLU + pool ---------------
    y2[...] = conv_bn_relu(lambda off, n: buf2[pl.ds(off, n), :],
                           cw2, cs2, cb2, WP2, HO2)
    buf3[...] = jnp.zeros(buf3.shape, buf3.dtype)
    for i in range(HQ2):
        buf3[pl.ds((i + PAD) * WP3 + PAD, WQ2), :] = pool_row(y2, WP2, WQ2, i)

    # ---------------- layer 3: conv(32->64) + BN + ReLU + pool ---------------
    y3[...] = conv_bn_relu(lambda off, n: buf3[pl.ds(off, n), :],
                           cw3, cs3, cb3, WP3, HO3)

    # ---------------- MLP head (concat folded into matmuls) ------------------
    # concat([fv, cnn_flat]) @ W1 == fv @ W1a + sum_p pooled3[p] @ W1b[p]
    h1 = jnp.dot(fv_ref[0], w1a[...], preferred_element_type=jnp.float32)
    for i in range(HQ3):
        pr = pool_row(y3, WP3, WQ3, i)                         # (WQ3, 64)
        for j in range(WQ3):
            h1 = h1 + jnp.dot(pr[j:j + 1, :], w1b3[i * WQ3 + j],
                              preferred_element_type=jnp.float32)
    h1 = jnp.maximum(h1 + b1[...], 0.0)
    h2 = jnp.maximum(jnp.dot(h1, w2[...], preferred_element_type=jnp.float32)
                     + b2[...], 0.0)                            # _mid (1, 128)
    out_ref[0] = (jnp.dot(h2, wh[...], preferred_element_type=jnp.float32)
                  + bh[...])                                    # (1, A+1)


def fused_forward(xflat, fv, p):
    def im3(b): return (b, 0, 0)
    def w2d(b): return (0, 0)
    def w3d(b): return (0, 0, 0)
    def w4d(b): return (0, 0, 0, 0)

    (cw1, cs1, cb1), (cw2, cs2, cb2), (cw3, cs3, cb3) = p["conv"]
    in_specs = [
        pl.BlockSpec((1, L1_ROWS, CH[0]), im3),       # padded+flattened image
        pl.BlockSpec((1, 1, F), im3),                 # feature vector
        pl.BlockSpec((3, 3, CH[0], CH[1]), w4d),      # conv1 w / scale / shift
        pl.BlockSpec((1, CH[1]), w2d),
        pl.BlockSpec((1, CH[1]), w2d),
        pl.BlockSpec((3, 3, CH[1], CH[2]), w4d),      # conv2
        pl.BlockSpec((1, CH[2]), w2d),
        pl.BlockSpec((1, CH[2]), w2d),
        pl.BlockSpec((3, 3, CH[2], CH[3]), w4d),      # conv3
        pl.BlockSpec((1, CH[3]), w2d),
        pl.BlockSpec((1, CH[3]), w2d),
        pl.BlockSpec((F, 256), w2d),                  # w1a
        pl.BlockSpec((HQ3 * WQ3, CH[3], 256), w3d),   # w1b reshaped (9,64,256)
        pl.BlockSpec((1, 256), w2d),                  # b1
        pl.BlockSpec((256, 128), w2d),                # w2
        pl.BlockSpec((1, 128), w2d),                  # b2
        pl.BlockSpec((128, NOUT), w2d),               # fused policy+value W
        pl.BlockSpec((1, NOUT), w2d),                 # fused policy+value b
    ]
    return pl.pallas_call(
        fused_kernel,
        out_shape=jax.ShapeDtypeStruct((B, 1, NOUT), jnp.float32),
        grid=(B,),
        in_specs=in_specs,
        out_specs=pl.BlockSpec((1, 1, NOUT), im3),
        scratch_shapes=[
            pltpu.VMEM((HO1 * WP1, CH[1]), jnp.float32),          # conv1 out
            pltpu.VMEM((HP2 * WP2 + EXTRA, CH[1]), jnp.float32),  # padded in2
            pltpu.VMEM((HO2 * WP2, CH[2]), jnp.float32),          # conv2 out
            pltpu.VMEM((HP3 * WP3 + EXTRA, CH[2]), jnp.float32),  # padded in3
            pltpu.VMEM((HO3 * WP3, CH[3]), jnp.float32),          # conv3 out
        ],
        compiler_params=pltpu.CompilerParams(
            dimension_semantics=("parallel",)),
    )(xflat, fv, cw1, cs1, cb1, cw2, cs2, cb2, cw3, cs3, cb3,
      p["w1a"], p["w1b3"], p["b1"], p["w2"], p["b2"], p["wh"], p["bh"])


# ------------------------------ parameters -----------------------------------
def init_params(key):
    ks = jax.random.split(key, 4)
    conv = []
    for li, (cin, cout) in enumerate(zip(CH[:-1], CH[1:])):
        kw, kb, kg, kbt, km, kv = jax.random.split(ks[li], 6)
        w = jax.random.normal(kw, (3, 3, cin, cout), jnp.float32) * np.sqrt(2.0 / (9 * cin))
        bias = 0.05 * jax.random.normal(kb, (cout,), jnp.float32)
        gamma = 1.0 + 0.1 * jax.random.normal(kg, (cout,), jnp.float32)
        beta = 0.05 * jax.random.normal(kbt, (cout,), jnp.float32)
        mean = 0.02 * jax.random.normal(km, (cout,), jnp.float32)
        var = jax.random.uniform(kv, (cout,), jnp.float32, 0.5, 1.5)
        scale = gamma / jnp.sqrt(var + BN_EPS)
        shift = (bias - mean) * scale + beta
        conv.append((w, scale.reshape(1, cout), shift.reshape(1, cout)))

    kf = jax.random.split(ks[3], 8)
    w1 = jax.random.normal(kf[0], (D_IN, 256), jnp.float32) * np.sqrt(2.0 / D_IN)
    b1 = 0.01 * jax.random.normal(kf[1], (1, 256), jnp.float32)
    w2 = jax.random.normal(kf[2], (256, 128), jnp.float32) * np.sqrt(2.0 / 256)
    b2 = 0.01 * jax.random.normal(kf[3], (1, 128), jnp.float32)
    wpol = jax.random.normal(kf[4], (128, A), jnp.float32) / np.sqrt(128)
    bpol = 0.01 * jax.random.normal(kf[5], (1, A), jnp.float32)
    wval = jax.random.normal(kf[6], (128, 1), jnp.float32) / np.sqrt(128)
    bval = 0.01 * jax.random.normal(kf[7], (1, 1), jnp.float32)
    return {
        "conv": conv,
        "w1a": w1[:F],
        # w1b pre-reshaped to (spatial pos, channel, out) for the in-kernel
        # "concat-free" FC1 accumulation (HWC flatten order).
        "w1b3": w1[F:].reshape(HQ3 * WQ3, CH[3], 256),
        "b1": b1, "w2": w2, "b2": b2,
        # policy and value heads fused column-wise: (128, A+1)
        "wh": jnp.concatenate([wpol, wval], axis=1),
        "bh": jnp.concatenate([bpol, bval], axis=1),
    }


# ------------------------------ forward (Pallas) ------------------------------
@jax.jit
def actor_critic_forward(s, params):
    # __split_ndarray with DESC_OBS_SPLIT = [F, (M,M), (M,M), (M,M)]
    fv = s[:, :F].reshape(B, 1, F)
    maps = s[:, F:].reshape(B, 3, M, M)                 # stacked obstacle/end/memory
    x = jnp.transpose(maps, (0, 2, 3, 1))               # NCHW -> NHWC
    xp = jnp.pad(x, ((0, 0), (PAD, PAD), (PAD, PAD), (0, 0)))
    xflat = xp.reshape(B, HP1 * WP1, CH[0])
    xflat = jnp.pad(xflat, ((0, 0), (0, EXTRA), (0, 0)))
    out = fused_forward(xflat, fv, params)[:, 0, :]     # (B, A+1)
    return out[:, :A], out[:, A:]                       # policy logits, value


# ------------------------------ pure-JAX reference ----------------------------
def reference_forward(s, params):
    fv = s[:, :F]
    maps = s[:, F:].reshape(B, 3, M, M)
    x = jnp.transpose(maps, (0, 2, 3, 1))
    for (w, scale, shift) in params["conv"]:
        x = lax.conv_general_dilated(
            x, w, window_strides=(1, 1), padding=[(PAD, PAD), (PAD, PAD)],
            dimension_numbers=("NHWC", "HWIO", "NHWC"),
            precision=lax.Precision.HIGHEST)
        x = jnp.maximum(x * scale.reshape(1, 1, 1, -1) + shift.reshape(1, 1, 1, -1), 0.0)
        x = lax.reduce_window(x, -jnp.inf, lax.max, (1, 2, 2, 1), (1, 2, 2, 1), "VALID")
    flat = x.reshape(B, -1)                              # HWC flatten order
    h = jnp.concatenate([fv, flat], axis=1)
    w1 = jnp.concatenate([params["w1a"], params["w1b3"].reshape(CNN_FLAT, 256)], axis=0)
    h = jnp.maximum(h @ w1 + params["b1"], 0.0)
    h = jnp.maximum(h @ params["w2"] + params["b2"], 0.0)
    out = h @ params["wh"] + params["bh"]
    return out[:, :A], out[:, A:]


# ----------------------------------- main -------------------------------------
if __name__ == "__main__":
    key = jax.random.PRNGKey(0)
    pkey, skey = jax.random.split(key)
    params = init_params(pkey)
    s = jax.random.normal(skey, (B, F + 3 * M * M), jnp.float32)

    logits, value = actor_critic_forward(s, params)
    (logits, value) = jax.block_until_ready((logits, value))

    ref_logits, ref_value = reference_forward(s, params)
    assert logits.shape == (B, A) and value.shape == (B, 1)
    assert np.allclose(np.asarray(logits), np.asarray(ref_logits), atol=5e-2, rtol=5e-2), (
        "logits mismatch", np.max(np.abs(np.asarray(logits) - np.asarray(ref_logits))))
    assert np.allclose(np.asarray(value), np.asarray(ref_value), atol=5e-2, rtol=5e-2), (
        "value mismatch", np.max(np.abs(np.asarray(value) - np.asarray(ref_value))))

    print("KERNEL_OK")
</pallas_src>

<mosaic_0001>
module attributes {stable_mosaic.version = 11 : i64} {
  func.func @fused_kernel(%arg0: i32, %arg1: memref<1x408x3xf32, #tpu.memory_space<vmem>>, %arg2: memref<1x1x8xf32, #tpu.memory_space<vmem>>, %arg3: memref<3x3x3x16xf32, #tpu.memory_space<vmem>>, %arg4: memref<1x16xf32, #tpu.memory_space<vmem>>, %arg5: memref<1x16xf32, #tpu.memory_space<vmem>>, %arg6: memref<3x3x16x32xf32, #tpu.memory_space<vmem>>, %arg7: memref<1x32xf32, #tpu.memory_space<vmem>>, %arg8: memref<1x32xf32, #tpu.memory_space<vmem>>, %arg9: memref<3x3x32x64xf32, #tpu.memory_space<vmem>>, %arg10: memref<1x64xf32, #tpu.memory_space<vmem>>, %arg11: memref<1x64xf32, #tpu.memory_space<vmem>>, %arg12: memref<8x256xf32, #tpu.memory_space<vmem>>, %arg13: memref<9x64x256xf32, #tpu.memory_space<vmem>>, %arg14: memref<1x256xf32, #tpu.memory_space<vmem>>, %arg15: memref<256x128xf32, #tpu.memory_space<vmem>>, %arg16: memref<1x128xf32, #tpu.memory_space<vmem>>, %arg17: memref<128x5xf32, #tpu.memory_space<vmem>>, %arg18: memref<1x5xf32, #tpu.memory_space<vmem>>, %arg19: memref<1x1x5xf32, #tpu.memory_space<vmem>>, %arg20: memref<360x16xf32, #tpu.memory_space<vmem>>, %arg21: memref<177x16xf32, #tpu.memory_space<vmem>>, %arg22: memref<143x32xf32, #tpu.memory_space<vmem>>, %arg23: memref<89x32xf32, #tpu.memory_space<vmem>>, %arg24: memref<63x64xf32, #tpu.memory_space<vmem>>) attributes {dimension_semantics = [#tpu.dimension_semantics<parallel>], iteration_bounds = array<i64: 2>, scalar_prefetch = 0 : i64, scratch_operands = 5 : i64, tpu.core_type = #tpu.core_type<tc>, window_params = [{transform_indices = @transform_0, window_bounds = array<i64: 1, 408, 3>}, {transform_indices = @transform_1, window_bounds = array<i64: 1, 1, 8>}, {pipeline_mode = #tpu.pipeline_mode<synchronous>, transform_indices = @transform_2, window_bounds = array<i64: 3, 3, 3, 16>}, {pipeline_mode = #tpu.pipeline_mode<synchronous>, transform_indices = @transform_3, window_bounds = array<i64: 1, 16>}, {pipeline_mode = #tpu.pipeline_mode<synchronous>, transform_indices = @transform_4, window_bounds = array<i64: 1, 16>}, {pipeline_mode = #tpu.pipeline_mode<synchronous>, transform_indices = @transform_5, window_bounds = array<i64: 3, 3, 16, 32>}, {pipeline_mode = #tpu.pipeline_mode<synchronous>, transform_indices = @transform_6, window_bounds = array<i64: 1, 32>}, {pipeline_mode = #tpu.pipeline_mode<synchronous>, transform_indices = @transform_7, window_bounds = array<i64: 1, 32>}, {pipeline_mode = #tpu.pipeline_mode<synchronous>, transform_indices = @transform_8, window_bounds = array<i64: 3, 3, 32, 64>}, {pipeline_mode = #tpu.pipeline_mode<synchronous>, transform_indices = @transform_9, window_bounds = array<i64: 1, 64>}, {pipeline_mode = #tpu.pipeline_mode<synchronous>, transform_indices = @transform_10, window_bounds = array<i64: 1, 64>}, {pipeline_mode = #tpu.pipeline_mode<synchronous>, transform_indices = @transform_11, window_bounds = array<i64: 8, 256>}, {pipeline_mode = #tpu.pipeline_mode<synchronous>, transform_indices = @transform_12, window_bounds = array<i64: 9, 64, 256>}, {pipeline_mode = #tpu.pipeline_mode<synchronous>, transform_indices = @transform_13, window_bounds = array<i64: 1, 256>}, {pipeline_mode = #tpu.pipeline_mode<synchronous>, transform_indices = @transform_14, window_bounds = array<i64: 256, 128>}, {pipeline_mode = #tpu.pipeline_mode<synchronous>, transform_indices = @transform_15, window_bounds = array<i64: 1, 128>}, {pipeline_mode = #tpu.pipeline_mode<synchronous>, transform_indices = @transform_16, window_bounds = array<i64: 128, 5>}, {pipeline_mode = #tpu.pipeline_mode<synchronous>, transform_indices = @transform_17, window_bounds = array<i64: 1, 5>}, {transform_indices = @transform_18, window_bounds = array<i64: 1, 1, 5>}]} {
    %c0 = arith.constant 0 : index
    %c0_0 = arith.constant 0 : index
    %c0_1 = arith.constant 0 : index
    %0 = vector.load %arg1[%c0, %c0_0, %c0_1] : memref<1x408x3xf32, #tpu.memory_space<vmem>>, vector<1x360x3xf32>
    %1 = vector.shape_cast %0 : vector<1x360x3xf32> to vector<360x3xf32>
    %c0_2 = arith.constant 0 : index
    %c0_3 = arith.constant 0 : index
    %c0_4 = arith.constant 0 : index
    %c0_5 = arith.constant 0 : index
    %2 = vector.load %arg3[%c0_2, %c0_3, %c0_4, %c0_5] : memref<3x3x3x16xf32, #tpu.memory_space<vmem>>, vector<1x1x3x16xf32>
    %3 = vector.shape_cast %2 : vector<1x1x3x16xf32> to vector<3x16xf32>
    %cst = arith.constant dense<0.000000e+00> : vector<360x16xf32>
    %4 = tpu.matmul %1, %3, %cst {dimension_numbers = #tpu.dot_dimension_numbers<[1], [0], [0], [1], [0, 0, 1, 1], [], []>} : vector<360x3xf32>, vector<3x16xf32>, vector<360x16xf32> -> vector<360x16xf32>
    %c0_6 = arith.constant 0 : index
    %c1 = arith.constant 1 : index
    %c0_7 = arith.constant 0 : index
    %5 = vector.load %arg1[%c0_6, %c1, %c0_7] : memref<1x408x3xf32, #tpu.memory_space<vmem>>, vector<1x360x3xf32>
    %6 = vector.shape_cast %5 : vector<1x360x3xf32> to vector<360x3xf32>
    %c0_8 = arith.constant 0 : index
    %c1_9 = arith.constant 1 : index
    %c0_10 = arith.constant 0 : index
    %c0_11 = arith.constant 0 : index
    %7 = vector.load %arg3[%c0_8, %c1_9, %c0_10, %c0_11] : memref<3x3x3x16xf32, #tpu.memory_space<vmem>>, vector<1x1x3x16xf32>
    %8 = vector.shape_cast %7 : vector<1x1x3x16xf32> to vector<3x16xf32>
    %cst_12 = arith.constant dense<0.000000e+00> : vector<360x16xf32>
    %9 = tpu.matmul %6, %8, %cst_12 {dimension_numbers = #tpu.dot_dimension_numbers<[1], [0], [0], [1], [0, 0, 1, 1], [], []>} : vector<360x3xf32>, vector<3x16xf32>, vector<360x16xf32> -> vector<360x16xf32>
    %10 = arith.addf %4, %9 : vector<360x16xf32>
    %c0_13 = arith.constant 0 : index
    %c2 = arith.constant 2 : index
    %c0_14 = arith.constant 0 : index
    %11 = vector.load %arg1[%c0_13, %c2, %c0_14] : memref<1x408x3xf32, #tpu.memory_space<vmem>>, vector<1x360x3xf32>
    %12 = vector.shape_cast %11 : vector<1x360x3xf32> to vector<360x3xf32>
    %c0_15 = arith.constant 0 : index
    %c2_16 = arith.constant 2 : index
    %c0_17 = arith.constant 0 : index
    %c0_18 = arith.constant 0 : index
    %13 = vector.load %arg3[%c0_15, %c2_16, %c0_17, %c0_18] : memref<3x3x3x16xf32, #tpu.memory_space<vmem>>, vector<1x1x3x16xf32>
    %14 = vector.shape_cast %13 : vector<1x1x3x16xf32> to vector<3x16xf32>
    %cst_19 = arith.constant dense<0.000000e+00> : vector<360x16xf32>
    %15 = tpu.matmul %12, %14, %cst_19 {dimension_numbers = #tpu.dot_dimension_numbers<[1], [0], [0], [1], [0, 0, 1, 1], [], []>} : vector<360x3xf32>, vector<3x16xf32>, vector<360x16xf32> -> vector<360x16xf32>
    %16 = arith.addf %10, %15 : vector<360x16xf32>
    %c0_20 = arith.constant 0 : index
    %c20 = arith.constant 20 : index
    %c0_21 = arith.constant 0 : index
    %17 = vector.load %arg1[%c0_20, %c20, %c0_21] : memref<1x408x3xf32, #tpu.memory_space<vmem>>, vector<1x360x3xf32>
    %18 = vector.shape_cast %17 : vector<1x360x3xf32> to vector<360x3xf32>
    %c1_22 = arith.constant 1 : index
    %c0_23 = arith.constant 0 : index
    %c0_24 = arith.constant 0 : index
    %c0_25 = arith.constant 0 : index
    %19 = vector.load %arg3[%c1_22, %c0_23, %c0_24, %c0_25] : memref<3x3x3x16xf32, #tpu.memory_space<vmem>>, vector<1x1x3x16xf32>
    %20 = vector.shape_cast %19 : vector<1x1x3x16xf32> to vector<3x16xf32>
    %cst_26 = arith.constant dense<0.000000e+00> : vector<360x16xf32>
    %21 = tpu.matmul %18, %20, %cst_26 {dimension_numbers = #tpu.dot_dimension_numbers<[1], [0], [0], [1], [0, 0, 1, 1], [], []>} : vector<360x3xf32>, vector<3x16xf32>, vector<360x16xf32> -> vector<360x16xf32>
    %22 = arith.addf %16, %21 : vector<360x16xf32>
    %c0_27 = arith.constant 0 : index
    %c21 = arith.constant 21 : index
    %c0_28 = arith.constant 0 : index
    %23 = vector.load %arg1[%c0_27, %c21, %c0_28] : memref<1x408x3xf32, #tpu.memory_space<vmem>>, vector<1x360x3xf32>
    %24 = vector.shape_cast %23 : vector<1x360x3xf32> to vector<360x3xf32>
    %c1_29 = arith.constant 1 : index
    %c1_30 = arith.constant 1 : index
    %c0_31 = arith.constant 0 : index
    %c0_32 = arith.constant 0 : index
    %25 = vector.load %arg3[%c1_29, %c1_30, %c0_31, %c0_32] : memref<3x3x3x16xf32, #tpu.memory_space<vmem>>, vector<1x1x3x16xf32>
    %26 = vector.shape_cast %25 : vector<1x1x3x16xf32> to vector<3x16xf32>
    %cst_33 = arith.constant dense<0.000000e+00> : vector<360x16xf32>
    %27 = tpu.matmul %24, %26, %cst_33 {dimension_numbers = #tpu.dot_dimension_numbers<[1], [0], [0], [1], [0, 0, 1, 1], [], []>} : vector<360x3xf32>, vector<3x16xf32>, vector<360x16xf32> -> vector<360x16xf32>
    %28 = arith.addf %22, %27 : vector<360x16xf32>
    %c0_34 = arith.constant 0 : index
    %c22 = arith.constant 22 : index
    %c0_35 = arith.constant 0 : index
    %29 = vector.load %arg1[%c0_34, %c22, %c0_35] : memref<1x408x3xf32, #tpu.memory_space<vmem>>, vector<1x360x3xf32>
    %30 = vector.shape_cast %29 : vector<1x360x3xf32> to vector<360x3xf32>
    %c1_36 = arith.constant 1 : index
    %c2_37 = arith.constant 2 : index
    %c0_38 = arith.constant 0 : index
    %c0_39 = arith.constant 0 : index
    %31 = vector.load %arg3[%c1_36, %c2_37, %c0_38, %c0_39] : memref<3x3x3x16xf32, #tpu.memory_space<vmem>>, vector<1x1x3x16xf32>
    %32 = vector.shape_cast %31 : vector<1x1x3x16xf32> to vector<3x16xf32>
    %cst_40 = arith.constant dense<0.000000e+00> : vector<360x16xf32>
    %33 = tpu.matmul %30, %32, %cst_40 {dimension_numbers = #tpu.dot_dimension_numbers<[1], [0], [0], [1], [0, 0, 1, 1], [], []>} : vector<360x3xf32>, vector<3x16xf32>, vector<360x16xf32> -> vector<360x16xf32>
    %34 = arith.addf %28, %33 : vector<360x16xf32>
    %c0_41 = arith.constant 0 : index
    %c40 = arith.constant 40 : index
    %c0_42 = arith.constant 0 : index
    %35 = vector.load %arg1[%c0_41, %c40, %c0_42] : memref<1x408x3xf32, #tpu.memory_space<vmem>>, vector<1x360x3xf32>
    %36 = vector.shape_cast %35 : vector<1x360x3xf32> to vector<360x3xf32>
    %c2_43 = arith.constant 2 : index
    %c0_44 = arith.constant 0 : index
    %c0_45 = arith.constant 0 : index
    %c0_46 = arith.constant 0 : index
    %37 = vector.load %arg3[%c2_43, %c0_44, %c0_45, %c0_46] : memref<3x3x3x16xf32, #tpu.memory_space<vmem>>, vector<1x1x3x16xf32>
    %38 = vector.shape_cast %37 : vector<1x1x3x16xf32> to vector<3x16xf32>
    %cst_47 = arith.constant dense<0.000000e+00> : vector<360x16xf32>
    %39 = tpu.matmul %36, %38, %cst_47 {dimension_numbers = #tpu.dot_dimension_numbers<[1], [0], [0], [1], [0, 0, 1, 1], [], []>} : vector<360x3xf32>, vector<3x16xf32>, vector<360x16xf32> -> vector<360x16xf32>
    %40 = arith.addf %34, %39 : vector<360x16xf32>
    %c0_48 = arith.constant 0 : index
    %c41 = arith.constant 41 : index
    %c0_49 = arith.constant 0 : index
    %41 = vector.load %arg1[%c0_48, %c41, %c0_49] : memref<1x408x3xf32, #tpu.memory_space<vmem>>, vector<1x360x3xf32>
    %42 = vector.shape_cast %41 : vector<1x360x3xf32> to vector<360x3xf32>
    %c2_50 = arith.constant 2 : index
    %c1_51 = arith.constant 1 : index
    %c0_52 = arith.constant 0 : index
    %c0_53 = arith.constant 0 : index
    %43 = vector.load %arg3[%c2_50, %c1_51, %c0_52, %c0_53] : memref<3x3x3x16xf32, #tpu.memory_space<vmem>>, vector<1x1x3x16xf32>
    %44 = vector.shape_cast %43 : vector<1x1x3x16xf32> to vector<3x16xf32>
    %cst_54 = arith.constant dense<0.000000e+00> : vector<360x16xf32>
    %45 = tpu.matmul %42, %44, %cst_54 {dimension_numbers = #tpu.dot_dimension_numbers<[1], [0], [0], [1], [0, 0, 1, 1], [], []>} : vector<360x3xf32>, vector<3x16xf32>, vector<360x16xf32> -> vector<360x16xf32>
    %46 = arith.addf %40, %45 : vector<360x16xf32>
    %c0_55 = arith.constant 0 : index
    %c42 = arith.constant 42 : index
    %c0_56 = arith.constant 0 : index
    %47 = vector.load %arg1[%c0_55, %c42, %c0_56] : memref<1x408x3xf32, #tpu.memory_space<vmem>>, vector<1x360x3xf32>
    %48 = vector.shape_cast %47 : vector<1x360x3xf32> to vector<360x3xf32>
    %c2_57 = arith.constant 2 : index
    %c2_58 = arith.constant 2 : index
    %c0_59 = arith.constant 0 : index
    %c0_60 = arith.constant 0 : index
    %49 = vector.load %arg3[%c2_57, %c2_58, %c0_59, %c0_60] : memref<3x3x3x16xf32, #tpu.memory_space<vmem>>, vector<1x1x3x16xf32>
    %50 = vector.shape_cast %49 : vector<1x1x3x16xf32> to vector<3x16xf32>
    %cst_61 = arith.constant dense<0.000000e+00> : vector<360x16xf32>
    %51 = tpu.matmul %48, %50, %cst_61 {dimension_numbers = #tpu.dot_dimension_numbers<[1], [0], [0], [1], [0, 0, 1, 1], [], []>} : vector<360x3xf32>, vector<3x16xf32>, vector<360x16xf32> -> vector<360x16xf32>
    %52 = arith.addf %46, %51 : vector<360x16xf32>
    %c0_62 = arith.constant 0 : index
    %c0_63 = arith.constant 0 : index
    %53 = vector.load %arg4[%c0_62, %c0_63] : memref<1x16xf32, #tpu.memory_space<vmem>>, vector<1x16xf32>
    %54 = vector.broadcast %53 : vector<1x16xf32> to vector<360x16xf32>
    %55 = arith.mulf %52, %54 : vector<360x16xf32>
    %c0_64 = arith.constant 0 : index
    %c0_65 = arith.constant 0 : index
    %56 = vector.load %arg5[%c0_64, %c0_65] : memref<1x16xf32, #tpu.memory_space<vmem>>, vector<1x16xf32>
    %57 = vector.broadcast %56 : vector<1x16xf32> to vector<360x16xf32>
    %58 = arith.addf %55, %57 : vector<360x16xf32>
    %cst_66 = arith.constant 0.000000e+00 : f32
    %59 = vector.broadcast %cst_66 : f32 to vector<360x16xf32>
    %60 = arith.maximumf %58, %59 : vector<360x16xf32>
    %c0_67 = arith.constant 0 : index
    %c0_68 = arith.constant 0 : index
    %61 = vector.load %arg20[%c0_67, %c0_68] : memref<360x16xf32, #tpu.memory_space<vmem>>, vector<360x16xf32>
    tpu.vector_store %arg20[%c0_67, %c0_68], %60 {strides = array<i32>} : memref<360x16xf32, #tpu.memory_space<vmem>>, vector<360x16xf32>,
    %cst_69 = arith.constant 0.000000e+00 : f32
    %62 = vector.broadcast %cst_69 : f32 to vector<177x16xf32>
    %c0_70 = arith.constant 0 : index
    %c0_71 = arith.constant 0 : index
    %63 = vector.load %arg21[%c0_70, %c0_71] : memref<177x16xf32, #tpu.memory_space<vmem>>, vector<177x16xf32>
    tpu.vector_store %arg21[%c0_70, %c0_71], %62 {strides = array<i32>} : memref<177x16xf32, #tpu.memory_space<vmem>>, vector<177x16xf32>,
    %c0_72 = arith.constant 0 : index
    %c0_73 = arith.constant 0 : index
    %64 = tpu.strided_load %arg20[%c0_72, %c0_73] {strides = array<i32: 2, 1>} : memref<360x16xf32, #tpu.memory_space<vmem>>, vector<9x16xf32>
    %c1_74 = arith.constant 1 : index
    %c0_75 = arith.constant 0 : index
    %65 = tpu.strided_load %arg20[%c1_74, %c0_75] {strides = array<i32: 2, 1>} : memref<360x16xf32, #tpu.memory_space<vmem>>, vector<9x16xf32>
    %c20_76 = arith.constant 20 : index
    %c0_77 = arith.constant 0 : index
    %66 = tpu.strided_load %arg20[%c20_76, %c0_77] {strides = array<i32: 2, 1>} : memref<360x16xf32, #tpu.memory_space<vmem>>, vector<9x16xf32>
    %c21_78 = arith.constant 21 : index
    %c0_79 = arith.constant 0 : index
    %67 = tpu.strided_load %arg20[%c21_78, %c0_79] {strides = array<i32: 2, 1>} : memref<360x16xf32, #tpu.memory_space<vmem>>, vector<9x16xf32>
    %68 = arith.maximumf %64, %65 : vector<9x16xf32>
    %69 = arith.maximumf %66, %67 : vector<9x16xf32>
    %70 = arith.maximumf %68, %69 : vector<9x16xf32>
    %c28 = arith.constant 28 : index
    %c0_80 = arith.constant 0 : index
    %71 = vector.load %arg21[%c28, %c0_80] : memref<177x16xf32, #tpu.memory_space<vmem>>, vector<9x16xf32>
    tpu.vector_store %arg21[%c28, %c0_80], %70 {strides = array<i32>} : memref<177x16xf32, #tpu.memory_space<vmem>>, vector<9x16xf32>,
    %c40_81 = arith.constant 40 : index
    %c0_82 = arith.constant 0 : index
    %72 = tpu.strided_load %arg20[%c40_81, %c0_82] {strides = array<i32: 2, 1>} : memref<360x16xf32, #tpu.memory_space<vmem>>, vector<9x16xf32>
    %c41_83 = arith.constant 41 : index
    %c0_84 = arith.constant 0 : index
    %73 = tpu.strided_load %arg20[%c41_83, %c0_84] {strides = array<i32: 2, 1>} : memref<360x16xf32, #tpu.memory_space<vmem>>, vector<9x16xf32>
    %c60 = arith.constant 60 : index
    %c0_85 = arith.constant 0 : index
    %74 = tpu.strided_load %arg20[%c60, %c0_85] {strides = array<i32: 2, 1>} : memref<360x16xf32, #tpu.memory_space<vmem>>, vector<9x16xf32>
    %c61 = arith.constant 61 : index
    %c0_86 = arith.constant 0 : index
    %75 = tpu.strided_load %arg20[%c61, %c0_86] {strides = array<i32: 2, 1>} : memref<360x16xf32, #tpu.memory_space<vmem>>, vector<9x16xf32>
    %76 = arith.maximumf %72, %73 : vector<9x16xf32>
    %77 = arith.maximumf %74, %75 : vector<9x16xf32>
    %78 = arith.maximumf %76, %77 : vector<9x16xf32>
    %c41_87 = arith.constant 41 : index
    %c0_88 = arith.constant 0 : index
    %79 = vector.load %arg21[%c41_87, %c0_88] : memref<177x16xf32, #tpu.memory_space<vmem>>, vector<9x16xf32>
    tpu.vector_store %arg21[%c41_87, %c0_88], %78 {strides = array<i32>} : memref<177x16xf32, #tpu.memory_space<vmem>>, vector<9x16xf32>,
    %c80 = arith.constant 80 : index
    %c0_89 = arith.constant 0 : index
    %80 = tpu.strided_load %arg20[%c80, %c0_89] {strides = array<i32: 2, 1>} : memref<360x16xf32, #tpu.memory_space<vmem>>, vector<9x16xf32>
    %c81 = arith.constant 81 : index
    %c0_90 = arith.constant 0 : index
    %81 = tpu.strided_load %arg20[%c81, %c0_90] {strides = array<i32: 2, 1>} : memref<360x16xf32, #tpu.memory_space<vmem>>, vector<9x16xf32>
    %c100 = arith.constant 100 : index
    %c0_91 = arith.constant 0 : index
    %82 = tpu.strided_load %arg20[%c100, %c0_91] {strides = array<i32: 2, 1>} : memref<360x16xf32, #tpu.memory_space<vmem>>, vector<9x16xf32>
    %c101 = arith.constant 101 : index
    %c0_92 = arith.constant 0 : index
    %83 = tpu.strided_load %arg20[%c101, %c0_92] {strides = array<i32: 2, 1>} : memref<360x16xf32, #tpu.memory_space<vmem>>, vector<9x16xf32>
    %84 = arith.maximumf %80, %81 : vector<9x16xf32>
    %85 = arith.maximumf %82, %83 : vector<9x16xf32>
    %86 = arith.maximumf %84, %85 : vector<9x16xf32>
    %c54 = arith.constant 54 : index
    %c0_93 = arith.constant 0 : index
    %87 = vector.load %arg21[%c54, %c0_93] : memref<177x16xf32, #tpu.memory_space<vmem>>, vector<9x16xf32>
    tpu.vector_store %arg21[%c54, %c0_93], %86 {strides = array<i32>} : memref<177x16xf32, #tpu.memory_space<vmem>>, vector<9x16xf32>,
    %c120 = arith.constant 120 : index
    %c0_94 = arith.constant 0 : index
    %88 = tpu.strided_load %arg20[%c120, %c0_94] {strides = array<i32: 2, 1>} : memref<360x16xf32, #tpu.memory_space<vmem>>, vector<9x16xf32>
    %c121 = arith.constant 121 : index
    %c0_95 = arith.constant 0 : index
    %89 = tpu.strided_load %arg20[%c121, %c0_95] {strides = array<i32: 2, 1>} : memref<360x16xf32, #tpu.memory_space<vmem>>, vector<9x16xf32>
    %c140 = arith.constant 140 : index
    %c0_96 = arith.constant 0 : index
    %90 = tpu.strided_load %arg20[%c140, %c0_96] {strides = array<i32: 2, 1>} : memref<360x16xf32, #tpu.memory_space<vmem>>, vector<9x16xf32>
    %c141 = arith.constant 141 : index
    %c0_97 = arith.constant 0 : index
    %91 = tpu.strided_load %arg20[%c141, %c0_97] {strides = array<i32: 2, 1>} : memref<360x16xf32, #tpu.memory_space<vmem>>, vector<9x16xf32>
    %92 = arith.maximumf %88, %89 : vector<9x16xf32>
    %93 = arith.maximumf %90, %91 : vector<9x16xf32>
    %94 = arith.maximumf %92, %93 : vector<9x16xf32>
    %c67 = arith.constant 67 : index
    %c0_98 = arith.constant 0 : index
    %95 = vector.load %arg21[%c67, %c0_98] : memref<177x16xf32, #tpu.memory_space<vmem>>, vector<9x16xf32>
    tpu.vector_store %arg21[%c67, %c0_98], %94 {strides = array<i32>} : memref<177x16xf32, #tpu.memory_space<vmem>>, vector<9x16xf32>,
    %c160 = arith.constant 160 : index
    %c0_99 = arith.constant 0 : index
    %96 = tpu.strided_load %arg20[%c160, %c0_99] {strides = array<i32: 2, 1>} : memref<360x16xf32, #tpu.memory_space<vmem>>, vector<9x16xf32>
    %c161 = arith.constant 161 : index
    %c0_100 = arith.constant 0 : index
    %97 = tpu.strided_load %arg20[%c161, %c0_100] {strides = array<i32: 2, 1>} : memref<360x16xf32, #tpu.memory_space<vmem>>, vector<9x16xf32>
    %c180 = arith.constant 180 : index
    %c0_101 = arith.constant 0 : index
    %98 = tpu.strided_load %arg20[%c180, %c0_101] {strides = array<i32: 2, 1>} : memref<360x16xf32, #tpu.memory_space<vmem>>, vector<9x16xf32>
    %c181 = arith.constant 181 : index
    %c0_102 = arith.constant 0 : index
    %99 = tpu.strided_load %arg20[%c181, %c0_102] {strides = array<i32: 2, 1>} : memref<360x16xf32, #tpu.memory_space<vmem>>, vector<9x16xf32>
    %100 = arith.maximumf %96, %97 : vector<9x16xf32>
    %101 = arith.maximumf %98, %99 : vector<9x16xf32>
    %102 = arith.maximumf %100, %101 : vector<9x16xf32>
    %c80_103 = arith.constant 80 : index
    %c0_104 = arith.constant 0 : index
    %103 = vector.load %arg21[%c80_103, %c0_104] : memref<177x16xf32, #tpu.memory_space<vmem>>, vector<9x16xf32>
    tpu.vector_store %arg21[%c80_103, %c0_104], %102 {strides = array<i32>} : memref<177x16xf32, #tpu.memory_space<vmem>>, vector<9x16xf32>,
    %c200 = arith.constant 200 : index
    %c0_105 = arith.constant 0 : index
    %104 = tpu.strided_load %arg20[%c200, %c0_105] {strides = array<i32: 2, 1>} : memref<360x16xf32, #tpu.memory_space<vmem>>, vector<9x16xf32>
    %c201 = arith.constant 201 : index
    %c0_106 = arith.constant 0 : index
    %105 = tpu.strided_load %arg20[%c201, %c0_106] {strides = array<i32: 2, 1>} : memref<360x16xf32, #tpu.memory_space<vmem>>, vector<9x16xf32>
    %c220 = arith.constant 220 : index
    %c0_107 = arith.constant 0 : index
    %106 = tpu.strided_load %arg20[%c220, %c0_107] {strides = array<i32: 2, 1>} : memref<360x16xf32, #tpu.memory_space<vmem>>, vector<9x16xf32>
    %c221 = arith.constant 221 : index
    %c0_108 = arith.constant 0 : index
    %107 = tpu.strided_load %arg20[%c221, %c0_108] {strides = array<i32: 2, 1>} : memref<360x16xf32, #tpu.memory_space<vmem>>, vector<9x16xf32>
    %108 = arith.maximumf %104, %105 : vector<9x16xf32>
    %109 = arith.maximumf %106, %107 : vector<9x16xf32>
    %110 = arith.maximumf %108, %109 : vector<9x16xf32>
    %c93 = arith.constant 93 : index
    %c0_109 = arith.constant 0 : index
    %111 = vector.load %arg21[%c93, %c0_109] : memref<177x16xf32, #tpu.memory_space<vmem>>, vector<9x16xf32>
    tpu.vector_store %arg21[%c93, %c0_109], %110 {strides = array<i32>} : memref<177x16xf32, #tpu.memory_space<vmem>>, vector<9x16xf32>,
    %c240 = arith.constant 240 : index
    %c0_110 = arith.constant 0 : index
    %112 = tpu.strided_load %arg20[%c240, %c0_110] {strides = array<i32: 2, 1>} : memref<360x16xf32, #tpu.memory_space<vmem>>, vector<9x16xf32>
    %c241 = arith.constant 241 : index
    %c0_111 = arith.constant 0 : index
    %113 = tpu.strided_load %arg20[%c241, %c0_111] {strides = array<i32: 2, 1>} : memref<360x16xf32, #tpu.memory_space<vmem>>, vector<9x16xf32>
    %c260 = arith.constant 260 : index
    %c0_112 = arith.constant 0 : index
    %114 = tpu.strided_load %arg20[%c260, %c0_112] {strides = array<i32: 2, 1>} : memref<360x16xf32, #tpu.memory_space<vmem>>, vector<9x16xf32>
    %c261 = arith.constant 261 : index
    %c0_113 = arith.constant 0 : index
    %115 = tpu.strided_load %arg20[%c261, %c0_113] {strides = array<i32: 2, 1>} : memref<360x16xf32, #tpu.memory_space<vmem>>, vector<9x16xf32>
    %116 = arith.maximumf %112, %113 : vector<9x16xf32>
    %117 = arith.maximumf %114, %115 : vector<9x16xf32>
    %118 = arith.maximumf %116, %117 : vector<9x16xf32>
    %c106 = arith.constant 106 : index
    %c0_114 = arith.constant 0 : index
    %119 = vector.load %arg21[%c106, %c0_114] : memref<177x16xf32, #tpu.memory_space<vmem>>, vector<9x16xf32>
    tpu.vector_store %arg21[%c106, %c0_114], %118 {strides = array<i32>} : memref<177x16xf32, #tpu.memory_space<vmem>>, vector<9x16xf32>,
    %c280 = arith.constant 280 : index
    %c0_115 = arith.constant 0 : index
    %120 = tpu.strided_load %arg20[%c280, %c0_115] {strides = array<i32: 2, 1>} : memref<360x16xf32, #tpu.memory_space<vmem>>, vector<9x16xf32>
    %c281 = arith.constant 281 : index
    %c0_116 = arith.constant 0 : index
    %121 = tpu.strided_load %arg20[%c281, %c0_116] {strides = array<i32: 2, 1>} : memref<360x16xf32, #tpu.memory_space<vmem>>, vector<9x16xf32>
    %c300 = arith.constant 300 : index
    %c0_117 = arith.constant 0 : index
    %122 = tpu.strided_load %arg20[%c300, %c0_117] {strides = array<i32: 2, 1>} : memref<360x16xf32, #tpu.memory_space<vmem>>, vector<9x16xf32>
    %c301 = arith.constant 301 : index
    %c0_118 = arith.constant 0 : index
    %123 = tpu.strided_load %arg20[%c301, %c0_118] {strides = array<i32: 2, 1>} : memref<360x16xf32, #tpu.memory_space<vmem>>, vector<9x16xf32>
    %124 = arith.maximumf %120, %121 : vector<9x16xf32>
    %125 = arith.maximumf %122, %123 : vector<9x16xf32>
    %126 = arith.maximumf %124, %125 : vector<9x16xf32>
    %c119 = arith.constant 119 : index
    %c0_119 = arith.constant 0 : index
    %127 = vector.load %arg21[%c119, %c0_119] : memref<177x16xf32, #tpu.memory_space<vmem>>, vector<9x16xf32>
    tpu.vector_store %arg21[%c119, %c0_119], %126 {strides = array<i32>} : memref<177x16xf32, #tpu.memory_space<vmem>>, vector<9x16xf32>,
    %c320 = arith.constant 320 : index
    %c0_120 = arith.constant 0 : index
    %128 = tpu.strided_load %arg20[%c320, %c0_120] {strides = array<i32: 2, 1>} : memref<360x16xf32, #tpu.memory_space<vmem>>, vector<9x16xf32>
    %c321 = arith.constant 321 : index
    %c0_121 = arith.constant 0 : index
    %129 = tpu.strided_load %arg20[%c321, %c0_121] {strides = array<i32: 2, 1>} : memref<360x16xf32, #tpu.memory_space<vmem>>, vector<9x16xf32>
    %c340 = arith.constant 340 : index
    %c0_122 = arith.constant 0 : index
    %130 = tpu.strided_load %arg20[%c340, %c0_122] {strides = array<i32: 2, 1>} : memref<360x16xf32, #tpu.memory_space<vmem>>, vector<9x16xf32>
    %c341 = arith.constant 341 : index
    %c0_123 = arith.constant 0 : index
    %131 = tpu.strided_load %arg20[%c341, %c0_123] {strides = array<i32: 2, 1>} : memref<360x16xf32, #tpu.memory_space<vmem>>, vector<9x16xf32>
    %132 = arith.maximumf %128, %129 : vector<9x16xf32>
    %133 = arith.maximumf %130, %131 : vector<9x16xf32>
    %134 = arith.maximumf %132, %133 : vector<9x16xf32>
    %c132 = arith.constant 132 : index
    %c0_124 = arith.constant 0 : index
    %135 = vector.load %arg21[%c132, %c0_124] : memref<177x16xf32, #tpu.memory_space<vmem>>, vector<9x16xf32>
    tpu.vector_store %arg21[%c132, %c0_124], %134 {strides = array<i32>} : memref<177x16xf32, #tpu.memory_space<vmem>>, vector<9x16xf32>,
    %c0_125 = arith.constant 0 : index
    %c0_126 = arith.constant 0 : index
    %136 = vector.load %arg21[%c0_125, %c0_126] : memref<177x16xf32, #tpu.memory_space<vmem>>, vector<143x16xf32>
    %c0_127 = arith.constant 0 : index
    %c0_128 = arith.constant 0 : index
    %c0_129 = arith.constant 0 : index
    %c0_130 = arith.constant 0 : index
    %137 = vector.load %arg6[%c0_127, %c0_128, %c0_129, %c0_130] : memref<3x3x16x32xf32, #tpu.memory_space<vmem>>, vector<1x1x16x32xf32>
    %138 = vector.shape_cast %137 : vector<1x1x16x32xf32> to vector<16x32xf32>
    %cst_131 = arith.constant dense<0.000000e+00> : vector<143x32xf32>
    %139 = tpu.matmul %136, %138, %cst_131 {dimension_numbers = #tpu.dot_dimension_numbers<[1], [0], [0], [1], [0, 0, 1, 1], [], []>} : vector<143x16xf32>, vector<16x32xf32>, vector<143x32xf32> -> vector<143x32xf32>
    %c1_132 = arith.constant 1 : index
    %c0_133 = arith.constant 0 : index
    %140 = vector.load %arg21[%c1_132, %c0_133] : memref<177x16xf32, #tpu.memory_space<vmem>>, vector<143x16xf32>
    %c0_134 = arith.constant 0 : index
    %c1_135 = arith.constant 1 : index
    %c0_136 = arith.constant 0 : index
    %c0_137 = arith.constant 0 : index
    %141 = vector.load %arg6[%c0_134, %c1_135, %c0_136, %c0_137] : memref<3x3x16x32xf32, #tpu.memory_space<vmem>>, vector<1x1x16x32xf32>
    %142 = vector.shape_cast %141 : vector<1x1x16x32xf32> to vector<16x32xf32>
    %cst_138 = arith.constant dense<0.000000e+00> : vector<143x32xf32>
    %143 = tpu.matmul %140, %142, %cst_138 {dimension_numbers = #tpu.dot_dimension_numbers<[1], [0], [0], [1], [0, 0, 1, 1], [], []>} : vector<143x16xf32>, vector<16x32xf32>, vector<143x32xf32> -> vector<143x32xf32>
    %144 = arith.addf %139, %143 : vector<143x32xf32>
    %c2_139 = arith.constant 2 : index
    %c0_140 = arith.constant 0 : index
    %145 = vector.load %arg21[%c2_139, %c0_140] : memref<177x16xf32, #tpu.memory_space<vmem>>, vector<143x16xf32>
    %c0_141 = arith.constant 0 : index
    %c2_142 = arith.constant 2 : index
    %c0_143 = arith.constant 0 : index
    %c0_144 = arith.constant 0 : index
    %146 = vector.load %arg6[%c0_141, %c2_142, %c0_143, %c0_144] : memref<3x3x16x32xf32, #tpu.memory_space<vmem>>, vector<1x1x16x32xf32>
    %147 = vector.shape_cast %146 : vector<1x1x16x32xf32> to vector<16x32xf32>
    %cst_145 = arith.constant dense<0.000000e+00> : vector<143x32xf32>
    %148 = tpu.matmul %145, %147, %cst_145 {dimension_numbers = #tpu.dot_dimension_numbers<[1], [0], [0], [1], [0, 0, 1, 1], [], []>} : vector<143x16xf32>, vector<16x32xf32>, vector<143x32xf32> -> vector<143x32xf32>
    %149 = arith.addf %144, %148 : vector<143x32xf32>
    %c13 = arith.constant 13 : index
    %c0_146 = arith.constant 0 : index
    %150 = vector.load %arg21[%c13, %c0_146] : memref<177x16xf32, #tpu.memory_space<vmem>>, vector<143x16xf32>
    %c1_147 = arith.constant 1 : index
    %c0_148 = arith.constant 0 : index
    %c0_149 = arith.constant 0 : index
    %c0_150 = arith.constant 0 : index
    %151 = vector.load %arg6[%c1_147, %c0_148, %c0_149, %c0_150] : memref<3x3x16x32xf32, #tpu.memory_space<vmem>>, vector<1x1x16x32xf32>
    %152 = vector.shape_cast %151 : vector<1x1x16x32xf32> to vector<16x32xf32>
    %cst_151 = arith.constant dense<0.000000e+00> : vector<143x32xf32>
    %153 = tpu.matmul %150, %152, %cst_151 {dimension_numbers = #tpu.dot_dimension_numbers<[1], [0], [0], [1], [0, 0, 1, 1], [], []>} : vector<143x16xf32>, vector<16x32xf32>, vector<143x32xf32> -> vector<143x32xf32>
    %154 = arith.addf %149, %153 : vector<143x32xf32>
    %c14 = arith.constant 14 : index
    %c0_152 = arith.constant 0 : index
    %155 = vector.load %arg21[%c14, %c0_152] : memref<177x16xf32, #tpu.memory_space<vmem>>, vector<143x16xf32>
    %c1_153 = arith.constant 1 : index
    %c1_154 = arith.constant 1 : index
    %c0_155 = arith.constant 0 : index
    %c0_156 = arith.constant 0 : index
    %156 = vector.load %arg6[%c1_153, %c1_154, %c0_155, %c0_156] : memref<3x3x16x32xf32, #tpu.memory_space<vmem>>, vector<1x1x16x32xf32>
    %157 = vector.shape_cast %156 : vector<1x1x16x32xf32> to vector<16x32xf32>
    %cst_157 = arith.constant dense<0.000000e+00> : vector<143x32xf32>
    %158 = tpu.matmul %155, %157, %cst_157 {dimension_numbers = #tpu.dot_dimension_numbers<[1], [0], [0], [1], [0, 0, 1, 1], [], []>} : vector<143x16xf32>, vector<16x32xf32>, vector<143x32xf32> -> vector<143x32xf32>
    %159 = arith.addf %154, %158 : vector<143x32xf32>
    %c15 = arith.constant 15 : index
    %c0_158 = arith.constant 0 : index
    %160 = vector.load %arg21[%c15, %c0_158] : memref<177x16xf32, #tpu.memory_space<vmem>>, vector<143x16xf32>
    %c1_159 = arith.constant 1 : index
    %c2_160 = arith.constant 2 : index
    %c0_161 = arith.constant 0 : index
    %c0_162 = arith.constant 0 : index
    %161 = vector.load %arg6[%c1_159, %c2_160, %c0_161, %c0_162] : memref<3x3x16x32xf32, #tpu.memory_space<vmem>>, vector<1x1x16x32xf32>
    %162 = vector.shape_cast %161 : vector<1x1x16x32xf32> to vector<16x32xf32>
    %cst_163 = arith.constant dense<0.000000e+00> : vector<143x32xf32>
    %163 = tpu.matmul %160, %162, %cst_163 {dimension_numbers = #tpu.dot_dimension_numbers<[1], [0], [0], [1], [0, 0, 1, 1], [], []>} : vector<143x16xf32>, vector<16x32xf32>, vector<143x32xf32> -> vector<143x32xf32>
    %164 = arith.addf %159, %163 : vector<143x32xf32>
    %c26 = arith.constant 26 : index
    %c0_164 = arith.constant 0 : index
    %165 = vector.load %arg21[%c26, %c0_164] : memref<177x16xf32, #tpu.memory_space<vmem>>, vector<143x16xf32>
    %c2_165 = arith.constant 2 : index
    %c0_166 = arith.constant 0 : index
    %c0_167 = arith.constant 0 : index
    %c0_168 = arith.constant 0 : index
    %166 = vector.load %arg6[%c2_165, %c0_166, %c0_167, %c0_168] : memref<3x3x16x32xf32, #tpu.memory_space<vmem>>, vector<1x1x16x32xf32>
    %167 = vector.shape_cast %166 : vector<1x1x16x32xf32> to vector<16x32xf32>
    %cst_169 = arith.constant dense<0.000000e+00> : vector<143x32xf32>
    %168 = tpu.matmul %165, %167, %cst_169 {dimension_numbers = #tpu.dot_dimension_numbers<[1], [0], [0], [1], [0, 0, 1, 1], [], []>} : vector<143x16xf32>, vector<16x32xf32>, vector<143x32xf32> -> vector<143x32xf32>
    %169 = arith.addf %164, %168 : vector<143x32xf32>
    %c27 = arith.constant 27 : index
    %c0_170 = arith.constant 0 : index
    %170 = vector.load %arg21[%c27, %c0_170] : memref<177x16xf32, #tpu.memory_space<vmem>>, vector<143x16xf32>
    %c2_171 = arith.constant 2 : index
    %c1_172 = arith.constant 1 : index
    %c0_173 = arith.constant 0 : index
    %c0_174 = arith.constant 0 : index
    %171 = vector.load %arg6[%c2_171, %c1_172, %c0_173, %c0_174] : memref<3x3x16x32xf32, #tpu.memory_space<vmem>>, vector<1x1x16x32xf32>
    %172 = vector.shape_cast %171 : vector<1x1x16x32xf32> to vector<16x32xf32>
    %cst_175 = arith.constant dense<0.000000e+00> : vector<143x32xf32>
    %173 = tpu.matmul %170, %172, %cst_175 {dimension_numbers = #tpu.dot_dimension_numbers<[1], [0], [0], [1], [0, 0, 1, 1], [], []>} : vector<143x16xf32>, vector<16x32xf32>, vector<143x32xf32> -> vector<143x32xf32>
    %174 = arith.addf %169, %173 : vector<143x32xf32>
    %c28_176 = arith.constant 28 : index
    %c0_177 = arith.constant 0 : index
    %175 = vector.load %arg21[%c28_176, %c0_177] : memref<177x16xf32, #tpu.memory_space<vmem>>, vector<143x16xf32>
    %c2_178 = arith.constant 2 : index
    %c2_179 = arith.constant 2 : index
    %c0_180 = arith.constant 0 : index
    %c0_181 = arith.constant 0 : index
    %176 = vector.load %arg6[%c2_178, %c2_179, %c0_180, %c0_181] : memref<3x3x16x32xf32, #tpu.memory_space<vmem>>, vector<1x1x16x32xf32>
    %177 = vector.shape_cast %176 : vector<1x1x16x32xf32> to vector<16x32xf32>
    %cst_182 = arith.constant dense<0.000000e+00> : vector<143x32xf32>
    %178 = tpu.matmul %175, %177, %cst_182 {dimension_numbers = #tpu.dot_dimension_numbers<[1], [0], [0], [1], [0, 0, 1, 1], [], []>} : vector<143x16xf32>, vector<16x32xf32>, vector<143x32xf32> -> vector<143x32xf32>
    %179 = arith.addf %174, %178 : vector<143x32xf32>
    %c0_183 = arith.constant 0 : index
    %c0_184 = arith.constant 0 : index
    %180 = vector.load %arg7[%c0_183, %c0_184] : memref<1x32xf32, #tpu.memory_space<vmem>>, vector<1x32xf32>
    %181 = vector.broadcast %180 : vector<1x32xf32> to vector<143x32xf32>
    %182 = arith.mulf %179, %181 : vector<143x32xf32>
    %c0_185 = arith.constant 0 : index
    %c0_186 = arith.constant 0 : index
    %183 = vector.load %arg8[%c0_185, %c0_186] : memref<1x32xf32, #tpu.memory_space<vmem>>, vector<1x32xf32>
    %184 = vector.broadcast %183 : vector<1x32xf32> to vector<143x32xf32>
    %185 = arith.addf %182, %184 : vector<143x32xf32>
    %cst_187 = arith.constant 0.000000e+00 : f32
    %186 = vector.broadcast %cst_187 : f32 to vector<143x32xf32>
    %187 = arith.maximumf %185, %186 : vector<143x32xf32>
    %c0_188 = arith.constant 0 : index
    %c0_189 = arith.constant 0 : index
    %188 = vector.load %arg22[%c0_188, %c0_189] : memref<143x32xf32, #tpu.memory_space<vmem>>, vector<143x32xf32>
    tpu.vector_store %arg22[%c0_188, %c0_189], %187 {strides = array<i32>} : memref<143x32xf32, #tpu.memory_space<vmem>>, vector<143x32xf32>,
    %cst_190 = arith.constant 0.000000e+00 : f32
    %189 = vector.broadcast %cst_190 : f32 to vector<89x32xf32>
    %c0_191 = arith.constant 0 : index
    %c0_192 = arith.constant 0 : index
    %190 = vector.load %arg23[%c0_191, %c0_192] : memref<89x32xf32, #tpu.memory_space<vmem>>, vector<89x32xf32>
    tpu.vector_store %arg23[%c0_191, %c0_192], %189 {strides = array<i32>} : memref<89x32xf32, #tpu.memory_space<vmem>>, vector<89x32xf32>,
    %c0_193 = arith.constant 0 : index
    %c0_194 = arith.constant 0 : index
    %191 = tpu.strided_load %arg22[%c0_193, %c0_194] {strides = array<i32: 2, 1>} : memref<143x32xf32, #tpu.memory_space<vmem>>, vector<5x32xf32>
    %c1_195 = arith.constant 1 : index
    %c0_196 = arith.constant 0 : index
    %192 = tpu.strided_load %arg22[%c1_195, %c0_196] {strides = array<i32: 2, 1>} : memref<143x32xf32, #tpu.memory_space<vmem>>, vector<5x32xf32>
    %c13_197 = arith.constant 13 : index
    %c0_198 = arith.constant 0 : index
    %193 = tpu.strided_load %arg22[%c13_197, %c0_198] {strides = array<i32: 2, 1>} : memref<143x32xf32, #tpu.memory_space<vmem>>, vector<5x32xf32>
    %c14_199 = arith.constant 14 : index
    %c0_200 = arith.constant 0 : index
    %194 = tpu.strided_load %arg22[%c14_199, %c0_200] {strides = array<i32: 2, 1>} : memref<143x32xf32, #tpu.memory_space<vmem>>, vector<5x32xf32>
    %195 = arith.maximumf %191, %192 : vector<5x32xf32>
    %196 = arith.maximumf %193, %194 : vector<5x32xf32>
    %197 = arith.maximumf %195, %196 : vector<5x32xf32>
    %c20_201 = arith.constant 20 : index
    %c0_202 = arith.constant 0 : index
    %198 = vector.load %arg23[%c20_201, %c0_202] : memref<89x32xf32, #tpu.memory_space<vmem>>, vector<5x32xf32>
    tpu.vector_store %arg23[%c20_201, %c0_202], %197 {strides = array<i32>} : memref<89x32xf32, #tpu.memory_space<vmem>>, vector<5x32xf32>,
    %c26_203 = arith.constant 26 : index
    %c0_204 = arith.constant 0 : index
    %199 = tpu.strided_load %arg22[%c26_203, %c0_204] {strides = array<i32: 2, 1>} : memref<143x32xf32, #tpu.memory_space<vmem>>, vector<5x32xf32>
    %c27_205 = arith.constant 27 : index
    %c0_206 = arith.constant 0 : index
    %200 = tpu.strided_load %arg22[%c27_205, %c0_206] {strides = array<i32: 2, 1>} : memref<143x32xf32, #tpu.memory_space<vmem>>, vector<5x32xf32>
    %c39 = arith.constant 39 : index
    %c0_207 = arith.constant 0 : index
    %201 = tpu.strided_load %arg22[%c39, %c0_207] {strides = array<i32: 2, 1>} : memref<143x32xf32, #tpu.memory_space<vmem>>, vector<5x32xf32>
    %c40_208 = arith.constant 40 : index
    %c0_209 = arith.constant 0 : index
    %202 = tpu.strided_load %arg22[%c40_208, %c0_209] {strides = array<i32: 2, 1>} : memref<143x32xf32, #tpu.memory_space<vmem>>, vector<5x32xf32>
    %203 = arith.maximumf %199, %200 : vector<5x32xf32>
    %204 = arith.maximumf %201, %202 : vector<5x32xf32>
    %205 = arith.maximumf %203, %204 : vector<5x32xf32>
    %c29 = arith.constant 29 : index
    %c0_210 = arith.constant 0 : index
    %206 = vector.load %arg23[%c29, %c0_210] : memref<89x32xf32, #tpu.memory_space<vmem>>, vector<5x32xf32>
    tpu.vector_store %arg23[%c29, %c0_210], %205 {strides = array<i32>} : memref<89x32xf32, #tpu.memory_space<vmem>>, vector<5x32xf32>,
    %c52 = arith.constant 52 : index
    %c0_211 = arith.constant 0 : index
    %207 = tpu.strided_load %arg22[%c52, %c0_211] {strides = array<i32: 2, 1>} : memref<143x32xf32, #tpu.memory_space<vmem>>, vector<5x32xf32>
    %c53 = arith.constant 53 : index
    %c0_212 = arith.constant 0 : index
    %208 = tpu.strided_load %arg22[%c53, %c0_212] {strides = array<i32: 2, 1>} : memref<143x32xf32, #tpu.memory_space<vmem>>, vector<5x32xf32>
    %c65 = arith.constant 65 : index
    %c0_213 = arith.constant 0 : index
    %209 = tpu.strided_load %arg22[%c65, %c0_213] {strides = array<i32: 2, 1>} : memref<143x32xf32, #tpu.memory_space<vmem>>, vector<5x32xf32>
    %c66 = arith.constant 66 : index
    %c0_214 = arith.constant 0 : index
    %210 = tpu.strided_load %arg22[%c66, %c0_214] {strides = array<i32: 2, 1>} : memref<143x32xf32, #tpu.memory_space<vmem>>, vector<5x32xf32>
    %211 = arith.maximumf %207, %208 : vector<5x32xf32>
    %212 = arith.maximumf %209, %210 : vector<5x32xf32>
    %213 = arith.maximumf %211, %212 : vector<5x32xf32>
    %c38 = arith.constant 38 : index
    %c0_215 = arith.constant 0 : index
    %214 = vector.load %arg23[%c38, %c0_215] : memref<89x32xf32, #tpu.memory_space<vmem>>, vector<5x32xf32>
    tpu.vector_store %arg23[%c38, %c0_215], %213 {strides = array<i32>} : memref<89x32xf32, #tpu.memory_space<vmem>>, vector<5x32xf32>,
    %c78 = arith.constant 78 : index
    %c0_216 = arith.constant 0 : index
    %215 = tpu.strided_load %arg22[%c78, %c0_216] {strides = array<i32: 2, 1>} : memref<143x32xf32, #tpu.memory_space<vmem>>, vector<5x32xf32>
    %c79 = arith.constant 79 : index
    %c0_217 = arith.constant 0 : index
    %216 = tpu.strided_load %arg22[%c79, %c0_217] {strides = array<i32: 2, 1>} : memref<143x32xf32, #tpu.memory_space<vmem>>, vector<5x32xf32>
    %c91 = arith.constant 91 : index
    %c0_218 = arith.constant 0 : index
    %217 = tpu.strided_load %arg22[%c91, %c0_218] {strides = array<i32: 2, 1>} : memref<143x32xf32, #tpu.memory_space<vmem>>, vector<5x32xf32>
    %c92 = arith.constant 92 : index
    %c0_219 = arith.constant 0 : index
    %218 = tpu.strided_load %arg22[%c92, %c0_219] {strides = array<i32: 2, 1>} : memref<143x32xf32, #tpu.memory_space<vmem>>, vector<5x32xf32>
    %219 = arith.maximumf %215, %216 : vector<5x32xf32>
    %220 = arith.maximumf %217, %218 : vector<5x32xf32>
    %221 = arith.maximumf %219, %220 : vector<5x32xf32>
    %c47 = arith.constant 47 : index
    %c0_220 = arith.constant 0 : index
    %222 = vector.load %arg23[%c47, %c0_220] : memref<89x32xf32, #tpu.memory_space<vmem>>, vector<5x32xf32>
    tpu.vector_store %arg23[%c47, %c0_220], %221 {strides = array<i32>} : memref<89x32xf32, #tpu.memory_space<vmem>>, vector<5x32xf32>,
    %c104 = arith.constant 104 : index
    %c0_221 = arith.constant 0 : index
    %223 = tpu.strided_load %arg22[%c104, %c0_221] {strides = array<i32: 2, 1>} : memref<143x32xf32, #tpu.memory_space<vmem>>, vector<5x32xf32>
    %c105 = arith.constant 105 : index
    %c0_222 = arith.constant 0 : index
    %224 = tpu.strided_load %arg22[%c105, %c0_222] {strides = array<i32: 2, 1>} : memref<143x32xf32, #tpu.memory_space<vmem>>, vector<5x32xf32>
    %c117 = arith.constant 117 : index
    %c0_223 = arith.constant 0 : index
    %225 = tpu.strided_load %arg22[%c117, %c0_223] {strides = array<i32: 2, 1>} : memref<143x32xf32, #tpu.memory_space<vmem>>, vector<5x32xf32>
    %c118 = arith.constant 118 : index
    %c0_224 = arith.constant 0 : index
    %226 = tpu.strided_load %arg22[%c118, %c0_224] {strides = array<i32: 2, 1>} : memref<143x32xf32, #tpu.memory_space<vmem>>, vector<5x32xf32>
    %227 = arith.maximumf %223, %224 : vector<5x32xf32>
    %228 = arith.maximumf %225, %226 : vector<5x32xf32>
    %229 = arith.maximumf %227, %228 : vector<5x32xf32>
    %c56 = arith.constant 56 : index
    %c0_225 = arith.constant 0 : index
    %230 = vector.load %arg23[%c56, %c0_225] : memref<89x32xf32, #tpu.memory_space<vmem>>, vector<5x32xf32>
    tpu.vector_store %arg23[%c56, %c0_225], %229 {strides = array<i32>} : memref<89x32xf32, #tpu.memory_space<vmem>>, vector<5x32xf32>,
    %c0_226 = arith.constant 0 : index
    %c0_227 = arith.constant 0 : index
    %231 = vector.load %arg23[%c0_226, %c0_227] : memref<89x32xf32, #tpu.memory_space<vmem>>, vector<63x32xf32>
    %c0_228 = arith.constant 0 : index
    %c0_229 = arith.constant 0 : index
    %c0_230 = arith.constant 0 : index
    %c0_231 = arith.constant 0 : index
    %232 = vector.load %arg9[%c0_228, %c0_229, %c0_230, %c0_231] : memref<3x3x32x64xf32, #tpu.memory_space<vmem>>, vector<1x1x32x64xf32>
    %233 = vector.shape_cast %232 : vector<1x1x32x64xf32> to vector<32x64xf32>
    %cst_232 = arith.constant dense<0.000000e+00> : vector<63x64xf32>
    %234 = tpu.matmul %231, %233, %cst_232 {dimension_numbers = #tpu.dot_dimension_numbers<[1], [0], [0], [1], [0, 0, 1, 1], [], []>} : vector<63x32xf32>, vector<32x64xf32>, vector<63x64xf32> -> vector<63x64xf32>
    %c1_233 = arith.constant 1 : index
    %c0_234 = arith.constant 0 : index
    %235 = vector.load %arg23[%c1_233, %c0_234] : memref<89x32xf32, #tpu.memory_space<vmem>>, vector<63x32xf32>
    %c0_235 = arith.constant 0 : index
    %c1_236 = arith.constant 1 : index
    %c0_237 = arith.constant 0 : index
    %c0_238 = arith.constant 0 : index
    %236 = vector.load %arg9[%c0_235, %c1_236, %c0_237, %c0_238] : memref<3x3x32x64xf32, #tpu.memory_space<vmem>>, vector<1x1x32x64xf32>
    %237 = vector.shape_cast %236 : vector<1x1x32x64xf32> to vector<32x64xf32>
    %cst_239 = arith.constant dense<0.000000e+00> : vector<63x64xf32>
    %238 = tpu.matmul %235, %237, %cst_239 {dimension_numbers = #tpu.dot_dimension_numbers<[1], [0], [0], [1], [0, 0, 1, 1], [], []>} : vector<63x32xf32>, vector<32x64xf32>, vector<63x64xf32> -> vector<63x64xf32>
    %239 = arith.addf %234, %238 : vector<63x64xf32>
    %c2_240 = arith.constant 2 : index
    %c0_241 = arith.constant 0 : index
    %240 = vector.load %arg23[%c2_240, %c0_241] : memref<89x32xf32, #tpu.memory_space<vmem>>, vector<63x32xf32>
    %c0_242 = arith.constant 0 : index
    %c2_243 = arith.constant 2 : index
    %c0_244 = arith.constant 0 : index
    %c0_245 = arith.constant 0 : index
    %241 = vector.load %arg9[%c0_242, %c2_243, %c0_244, %c0_245] : memref<3x3x32x64xf32, #tpu.memory_space<vmem>>, vector<1x1x32x64xf32>
    %242 = vector.shape_cast %241 : vector<1x1x32x64xf32> to vector<32x64xf32>
    %cst_246 = arith.constant dense<0.000000e+00> : vector<63x64xf32>
    %243 = tpu.matmul %240, %242, %cst_246 {dimension_numbers = #tpu.dot_dimension_numbers<[1], [0], [0], [1], [0, 0, 1, 1], [], []>} : vector<63x32xf32>, vector<32x64xf32>, vector<63x64xf32> -> vector<63x64xf32>
    %244 = arith.addf %239, %243 : vector<63x64xf32>
    %c9 = arith.constant 9 : index
    %c0_247 = arith.constant 0 : index
    %245 = vector.load %arg23[%c9, %c0_247] : memref<89x32xf32, #tpu.memory_space<vmem>>, vector<63x32xf32>
    %c1_248 = arith.constant 1 : index
    %c0_249 = arith.constant 0 : index
    %c0_250 = arith.constant 0 : index
    %c0_251 = arith.constant 0 : index
    %246 = vector.load %arg9[%c1_248, %c0_249, %c0_250, %c0_251] : memref<3x3x32x64xf32, #tpu.memory_space<vmem>>, vector<1x1x32x64xf32>
    %247 = vector.shape_cast %246 : vector<1x1x32x64xf32> to vector<32x64xf32>
    %cst_252 = arith.constant dense<0.000000e+00> : vector<63x64xf32>
    %248 = tpu.matmul %245, %247, %cst_252 {dimension_numbers = #tpu.dot_dimension_numbers<[1], [0], [0], [1], [0, 0, 1, 1], [], []>} : vector<63x32xf32>, vector<32x64xf32>, vector<63x64xf32> -> vector<63x64xf32>
    %249 = arith.addf %244, %248 : vector<63x64xf32>
    %c10 = arith.constant 10 : index
    %c0_253 = arith.constant 0 : index
    %250 = vector.load %arg23[%c10, %c0_253] : memref<89x32xf32, #tpu.memory_space<vmem>>, vector<63x32xf32>
    %c1_254 = arith.constant 1 : index
    %c1_255 = arith.constant 1 : index
    %c0_256 = arith.constant 0 : index
    %c0_257 = arith.constant 0 : index
    %251 = vector.load %arg9[%c1_254, %c1_255, %c0_256, %c0_257] : memref<3x3x32x64xf32, #tpu.memory_space<vmem>>, vector<1x1x32x64xf32>
    %252 = vector.shape_cast %251 : vector<1x1x32x64xf32> to vector<32x64xf32>
    %cst_258 = arith.constant dense<0.000000e+00> : vector<63x64xf32>
    %253 = tpu.matmul %250, %252, %cst_258 {dimension_numbers = #tpu.dot_dimension_numbers<[1], [0], [0], [1], [0, 0, 1, 1], [], []>} : vector<63x32xf32>, vector<32x64xf32>, vector<63x64xf32> -> vector<63x64xf32>
    %254 = arith.addf %249, %253 : vector<63x64xf32>
    %c11 = arith.constant 11 : index
    %c0_259 = arith.constant 0 : index
    %255 = vector.load %arg23[%c11, %c0_259] : memref<89x32xf32, #tpu.memory_space<vmem>>, vector<63x32xf32>
    %c1_260 = arith.constant 1 : index
    %c2_261 = arith.constant 2 : index
    %c0_262 = arith.constant 0 : index
    %c0_263 = arith.constant 0 : index
    %256 = vector.load %arg9[%c1_260, %c2_261, %c0_262, %c0_263] : memref<3x3x32x64xf32, #tpu.memory_space<vmem>>, vector<1x1x32x64xf32>
    %257 = vector.shape_cast %256 : vector<1x1x32x64xf32> to vector<32x64xf32>
    %cst_264 = arith.constant dense<0.000000e+00> : vector<63x64xf32>
    %258 = tpu.matmul %255, %257, %cst_264 {dimension_numbers = #tpu.dot_dimension_numbers<[1], [0], [0], [1], [0, 0, 1, 1], [], []>} : vector<63x32xf32>, vector<32x64xf32>, vector<63x64xf32> -> vector<63x64xf32>
    %259 = arith.addf %254, %258 : vector<63x64xf32>
    %c18 = arith.constant 18 : index
    %c0_265 = arith.constant 0 : index
    %260 = vector.load %arg23[%c18, %c0_265] : memref<89x32xf32, #tpu.memory_space<vmem>>, vector<63x32xf32>
    %c2_266 = arith.constant 2 : index
    %c0_267 = arith.constant 0 : index
    %c0_268 = arith.constant 0 : index
    %c0_269 = arith.constant 0 : index
    %261 = vector.load %arg9[%c2_266, %c0_267, %c0_268, %c0_269] : memref<3x3x32x64xf32, #tpu.memory_space<vmem>>, vector<1x1x32x64xf32>
    %262 = vector.shape_cast %261 : vector<1x1x32x64xf32> to vector<32x64xf32>
    %cst_270 = arith.constant dense<0.000000e+00> : vector<63x64xf32>
    %263 = tpu.matmul %260, %262, %cst_270 {dimension_numbers = #tpu.dot_dimension_numbers<[1], [0], [0], [1], [0, 0, 1, 1], [], []>} : vector<63x32xf32>, vector<32x64xf32>, vector<63x64xf32> -> vector<63x64xf32>
    %264 = arith.addf %259, %263 : vector<63x64xf32>
    %c19 = arith.constant 19 : index
    %c0_271 = arith.constant 0 : index
    %265 = vector.load %arg23[%c19, %c0_271] : memref<89x32xf32, #tpu.memory_space<vmem>>, vector<63x32xf32>
    %c2_272 = arith.constant 2 : index
    %c1_273 = arith.constant 1 : index
    %c0_274 = arith.constant 0 : index
    %c0_275 = arith.constant 0 : index
    %266 = vector.load %arg9[%c2_272, %c1_273, %c0_274, %c0_275] : memref<3x3x32x64xf32, #tpu.memory_space<vmem>>, vector<1x1x32x64xf32>
    %267 = vector.shape_cast %266 : vector<1x1x32x64xf32> to vector<32x64xf32>
    %cst_276 = arith.constant dense<0.000000e+00> : vector<63x64xf32>
    %268 = tpu.matmul %265, %267, %cst_276 {dimension_numbers = #tpu.dot_dimension_numbers<[1], [0], [0], [1], [0, 0, 1, 1], [], []>} : vector<63x32xf32>, vector<32x64xf32>, vector<63x64xf32> -> vector<63x64xf32>
    %269 = arith.addf %264, %268 : vector<63x64xf32>
    %c20_277 = arith.constant 20 : index
    %c0_278 = arith.constant 0 : index
    %270 = vector.load %arg23[%c20_277, %c0_278] : memref<89x32xf32, #tpu.memory_space<vmem>>, vector<63x32xf32>
    %c2_279 = arith.constant 2 : index
    %c2_280 = arith.constant 2 : index
    %c0_281 = arith.constant 0 : index
    %c0_282 = arith.constant 0 : index
    %271 = vector.load %arg9[%c2_279, %c2_280, %c0_281, %c0_282] : memref<3x3x32x64xf32, #tpu.memory_space<vmem>>, vector<1x1x32x64xf32>
    %272 = vector.shape_cast %271 : vector<1x1x32x64xf32> to vector<32x64xf32>
    %cst_283 = arith.constant dense<0.000000e+00> : vector<63x64xf32>
    %273 = tpu.matmul %270, %272, %cst_283 {dimension_numbers = #tpu.dot_dimension_numbers<[1], [0], [0], [1], [0, 0, 1, 1], [], []>} : vector<63x32xf32>, vector<32x64xf32>, vector<63x64xf32> -> vector<63x64xf32>
    %274 = arith.addf %269, %273 : vector<63x64xf32>
    %c0_284 = arith.constant 0 : index
    %c0_285 = arith.constant 0 : index
    %275 = vector.load %arg10[%c0_284, %c0_285] : memref<1x64xf32, #tpu.memory_space<vmem>>, vector<1x64xf32>
    %276 = vector.broadcast %275 : vector<1x64xf32> to vector<63x64xf32>
    %277 = arith.mulf %274, %276 : vector<63x64xf32>
    %c0_286 = arith.constant 0 : index
    %c0_287 = arith.constant 0 : index
    %278 = vector.load %arg11[%c0_286, %c0_287] : memref<1x64xf32, #tpu.memory_space<vmem>>, vector<1x64xf32>
    %279 = vector.broadcast %278 : vector<1x64xf32> to vector<63x64xf32>
    %280 = arith.addf %277, %279 : vector<63x64xf32>
    %cst_288 = arith.constant 0.000000e+00 : f32
    %281 = vector.broadcast %cst_288 : f32 to vector<63x64xf32>
    %282 = arith.maximumf %280, %281 : vector<63x64xf32>
    %c0_289 = arith.constant 0 : index
    %c0_290 = arith.constant 0 : index
    %283 = vector.load %arg24[%c0_289, %c0_290] : memref<63x64xf32, #tpu.memory_space<vmem>>, vector<63x64xf32>
    tpu.vector_store %arg24[%c0_289, %c0_290], %282 {strides = array<i32>} : memref<63x64xf32, #tpu.memory_space<vmem>>, vector<63x64xf32>,
    %c0_291 = arith.constant 0 : index
    %c0_292 = arith.constant 0 : index
    %c0_293 = arith.constant 0 : index
    %284 = vector.load %arg2[%c0_291, %c0_292, %c0_293] : memref<1x1x8xf32, #tpu.memory_space<vmem>>, vector<1x1x8xf32>
    %285 = vector.shape_cast %284 : vector<1x1x8xf32> to vector<1x8xf32>
    %c0_294 = arith.constant 0 : index
    %c0_295 = arith.constant 0 : index
    %286 = vector.load %arg12[%c0_294, %c0_295] : memref<8x256xf32, #tpu.memory_space<vmem>>, vector<8x256xf32>
    %cst_296 = arith.constant dense<0.000000e+00> : vector<1x256xf32>
    %287 = tpu.matmul %285, %286, %cst_296 {dimension_numbers = #tpu.dot_dimension_numbers<[1], [0], [0], [1], [0, 0, 1, 1], [], []>} : vector<1x8xf32>, vector<8x256xf32>, vector<1x256xf32> -> vector<1x256xf32>
    %c0_297 = arith.constant 0 : index
    %c0_298 = arith.constant 0 : index
    %288 = tpu.strided_load %arg24[%c0_297, %c0_298] {strides = array<i32: 2, 1>} : memref<63x64xf32, #tpu.memory_space<vmem>>, vector<3x64xf32>
    %c1_299 = arith.constant 1 : index
    %c0_300 = arith.constant 0 : index
    %289 = tpu.strided_load %arg24[%c1_299, %c0_300] {strides = array<i32: 2, 1>} : memref<63x64xf32, #tpu.memory_space<vmem>>, vector<3x64xf32>
    %c9_301 = arith.constant 9 : index
    %c0_302 = arith.constant 0 : index
    %290 = tpu.strided_load %arg24[%c9_301, %c0_302] {strides = array<i32: 2, 1>} : memref<63x64xf32, #tpu.memory_space<vmem>>, vector<3x64xf32>
    %c10_303 = arith.constant 10 : index
    %c0_304 = arith.constant 0 : index
    %291 = tpu.strided_load %arg24[%c10_303, %c0_304] {strides = array<i32: 2, 1>} : memref<63x64xf32, #tpu.memory_space<vmem>>, vector<3x64xf32>
    %292 = arith.maximumf %288, %289 : vector<3x64xf32>
    %293 = arith.maximumf %290, %291 : vector<3x64xf32>
    %294 = arith.maximumf %292, %293 : vector<3x64xf32>
    %295 = vector.extract_strided_slice %294 {offsets = [0, 0], sizes = [1, 64], strides = [1, 1]} : vector<3x64xf32> to vector<1x64xf32>
    %c0_305 = arith.constant 0 : index
    %c0_306 = arith.constant 0 : index
    %c0_307 = arith.constant 0 : index
    %296 = vector.load %arg13[%c0_305, %c0_306, %c0_307] : memref<9x64x256xf32, #tpu.memory_space<vmem>>, vector<1x64x256xf32>
    %297 = vector.shape_cast %296 : vector<1x64x256xf32> to vector<64x256xf32>
    %cst_308 = arith.constant dense<0.000000e+00> : vector<1x256xf32>
    %298 = tpu.matmul %295, %297, %cst_308 {dimension_numbers = #tpu.dot_dimension_numbers<[1], [0], [0], [1], [0, 0, 1, 1], [], []>} : vector<1x64xf32>, vector<64x256xf32>, vector<1x256xf32> -> vector<1x256xf32>
    %299 = arith.addf %287, %298 : vector<1x256xf32>
    %300 = vector.extract_strided_slice %294 {offsets = [1, 0], sizes = [1, 64], strides = [1, 1]} : vector<3x64xf32> to vector<1x64xf32>
    %c1_309 = arith.constant 1 : index
    %c0_310 = arith.constant 0 : index
    %c0_311 = arith.constant 0 : index
    %301 = vector.load %arg13[%c1_309, %c0_310, %c0_311] : memref<9x64x256xf32, #tpu.memory_space<vmem>>, vector<1x64x256xf32>
    %302 = vector.shape_cast %301 : vector<1x64x256xf32> to vector<64x256xf32>
    %cst_312 = arith.constant dense<0.000000e+00> : vector<1x256xf32>
    %303 = tpu.matmul %300, %302, %cst_312 {dimension_numbers = #tpu.dot_dimension_numbers<[1], [0], [0], [1], [0, 0, 1, 1], [], []>} : vector<1x64xf32>, vector<64x256xf32>, vector<1x256xf32> -> vector<1x256xf32>
    %304 = arith.addf %299, %303 : vector<1x256xf32>
    %305 = vector.extract_strided_slice %294 {offsets = [2, 0], sizes = [1, 64], strides = [1, 1]} : vector<3x64xf32> to vector<1x64xf32>
    %c2_313 = arith.constant 2 : index
    %c0_314 = arith.constant 0 : index
    %c0_315 = arith.constant 0 : index
    %306 = vector.load %arg13[%c2_313, %c0_314, %c0_315] : memref<9x64x256xf32, #tpu.memory_space<vmem>>, vector<1x64x256xf32>
    %307 = vector.shape_cast %306 : vector<1x64x256xf32> to vector<64x256xf32>
    %cst_316 = arith.constant dense<0.000000e+00> : vector<1x256xf32>
    %308 = tpu.matmul %305, %307, %cst_316 {dimension_numbers = #tpu.dot_dimension_numbers<[1], [0], [0], [1], [0, 0, 1, 1], [], []>} : vector<1x64xf32>, vector<64x256xf32>, vector<1x256xf32> -> vector<1x256xf32>
    %309 = arith.addf %304, %308 : vector<1x256xf32>
    %c18_317 = arith.constant 18 : index
    %c0_318 = arith.constant 0 : index
    %310 = tpu.strided_load %arg24[%c18_317, %c0_318] {strides = array<i32: 2, 1>} : memref<63x64xf32, #tpu.memory_space<vmem>>, vector<3x64xf32>
    %c19_319 = arith.constant 19 : index
    %c0_320 = arith.constant 0 : index
    %311 = tpu.strided_load %arg24[%c19_319, %c0_320] {strides = array<i32: 2, 1>} : memref<63x64xf32, #tpu.memory_space<vmem>>, vector<3x64xf32>
    %c27_321 = arith.constant 27 : index
    %c0_322 = arith.constant 0 : index
    %312 = tpu.strided_load %arg24[%c27_321, %c0_322] {strides = array<i32: 2, 1>} : memref<63x64xf32, #tpu.memory_space<vmem>>, vector<3x64xf32>
    %c28_323 = arith.constant 28 : index
    %c0_324 = arith.constant 0 : index
    %313 = tpu.strided_load %arg24[%c28_323, %c0_324] {strides = array<i32: 2, 1>} : memref<63x64xf32, #tpu.memory_space<vmem>>, vector<3x64xf32>
    %314 = arith.maximumf %310, %311 : vector<3x64xf32>
    %315 = arith.maximumf %312, %313 : vector<3x64xf32>
    %316 = arith.maximumf %314, %315 : vector<3x64xf32>
    %317 = vector.extract_strided_slice %316 {offsets = [0, 0], sizes = [1, 64], strides = [1, 1]} : vector<3x64xf32> to vector<1x64xf32>
    %c3 = arith.constant 3 : index
    %c0_325 = arith.constant 0 : index
    %c0_326 = arith.constant 0 : index
    %318 = vector.load %arg13[%c3, %c0_325, %c0_326] : memref<9x64x256xf32, #tpu.memory_space<vmem>>, vector<1x64x256xf32>
    %319 = vector.shape_cast %318 : vector<1x64x256xf32> to vector<64x256xf32>
    %cst_327 = arith.constant dense<0.000000e+00> : vector<1x256xf32>
    %320 = tpu.matmul %317, %319, %cst_327 {dimension_numbers = #tpu.dot_dimension_numbers<[1], [0], [0], [1], [0, 0, 1, 1], [], []>} : vector<1x64xf32>, vector<64x256xf32>, vector<1x256xf32> -> vector<1x256xf32>
    %321 = arith.addf %309, %320 : vector<1x256xf32>
    %322 = vector.extract_strided_slice %316 {offsets = [1, 0], sizes = [1, 64], strides = [1, 1]} : vector<3x64xf32> to vector<1x64xf32>
    %c4 = arith.constant 4 : index
    %c0_328 = arith.constant 0 : index
    %c0_329 = arith.constant 0 : index
    %323 = vector.load %arg13[%c4, %c0_328, %c0_329] : memref<9x64x256xf32, #tpu.memory_space<vmem>>, vector<1x64x256xf32>
    %324 = vector.shape_cast %323 : vector<1x64x256xf32> to vector<64x256xf32>
    %cst_330 = arith.constant dense<0.000000e+00> : vector<1x256xf32>
    %325 = tpu.matmul %322, %324, %cst_330 {dimension_numbers = #tpu.dot_dimension_numbers<[1], [0], [0], [1], [0, 0, 1, 1], [], []>} : vector<1x64xf32>, vector<64x256xf32>, vector<1x256xf32> -> vector<1x256xf32>
    %326 = arith.addf %321, %325 : vector<1x256xf32>
    %327 = vector.extract_strided_slice %316 {offsets = [2, 0], sizes = [1, 64], strides = [1, 1]} : vector<3x64xf32> to vector<1x64xf32>
    %c5 = arith.constant 5 : index
    %c0_331 = arith.constant 0 : index
    %c0_332 = arith.constant 0 : index
    %328 = vector.load %arg13[%c5, %c0_331, %c0_332] : memref<9x64x256xf32, #tpu.memory_space<vmem>>, vector<1x64x256xf32>
    %329 = vector.shape_cast %328 : vector<1x64x256xf32> to vector<64x256xf32>
    %cst_333 = arith.constant dense<0.000000e+00> : vector<1x256xf32>
    %330 = tpu.matmul %327, %329, %cst_333 {dimension_numbers = #tpu.dot_dimension_numbers<[1], [0], [0], [1], [0, 0, 1, 1], [], []>} : vector<1x64xf32>, vector<64x256xf32>, vector<1x256xf32> -> vector<1x256xf32>
    %331 = arith.addf %326, %330 : vector<1x256xf32>
    %c36 = arith.constant 36 : index
    %c0_334 = arith.constant 0 : index
    %332 = tpu.strided_load %arg24[%c36, %c0_334] {strides = array<i32: 2, 1>} : memref<63x64xf32, #tpu.memory_space<vmem>>, vector<3x64xf32>
    %c37 = arith.constant 37 : index
    %c0_335 = arith.constant 0 : index
    %333 = tpu.strided_load %arg24[%c37, %c0_335] {strides = array<i32: 2, 1>} : memref<63x64xf32, #tpu.memory_space<vmem>>, vector<3x64xf32>
    %c45 = arith.constant 45 : index
    %c0_336 = arith.constant 0 : index
    %334 = tpu.strided_load %arg24[%c45, %c0_336] {strides = array<i32: 2, 1>} : memref<63x64xf32, #tpu.memory_space<vmem>>, vector<3x64xf32>
    %c46 = arith.constant 46 : index
    %c0_337 = arith.constant 0 : index
    %335 = tpu.strided_load %arg24[%c46, %c0_337] {strides = array<i32: 2, 1>} : memref<63x64xf32, #tpu.memory_space<vmem>>, vector<3x64xf32>
    %336 = arith.maximumf %332, %333 : vector<3x64xf32>
    %337 = arith.maximumf %334, %335 : vector<3x64xf32>
    %338 = arith.maximumf %336, %337 : vector<3x64xf32>
    %339 = vector.extract_strided_slice %338 {offsets = [0, 0], sizes = [1, 64], strides = [1, 1]} : vector<3x64xf32> to vector<1x64xf32>
    %c6 = arith.constant 6 : index
    %c0_338 = arith.constant 0 : index
    %c0_339 = arith.constant 0 : index
    %340 = vector.load %arg13[%c6, %c0_338, %c0_339] : memref<9x64x256xf32, #tpu.memory_space<vmem>>, vector<1x64x256xf32>
    %341 = vector.shape_cast %340 : vector<1x64x256xf32> to vector<64x256xf32>
    %cst_340 = arith.constant dense<0.000000e+00> : vector<1x256xf32>
    %342 = tpu.matmul %339, %341, %cst_340 {dimension_numbers = #tpu.dot_dimension_numbers<[1], [0], [0], [1], [0, 0, 1, 1], [], []>} : vector<1x64xf32>, vector<64x256xf32>, vector<1x256xf32> -> vector<1x256xf32>
    %343 = arith.addf %331, %342 : vector<1x256xf32>
    %344 = vector.extract_strided_slice %338 {offsets = [1, 0], sizes = [1, 64], strides = [1, 1]} : vector<3x64xf32> to vector<1x64xf32>
    %c7 = arith.constant 7 : index
    %c0_341 = arith.constant 0 : index
    %c0_342 = arith.constant 0 : index
    %345 = vector.load %arg13[%c7, %c0_341, %c0_342] : memref<9x64x256xf32, #tpu.memory_space<vmem>>, vector<1x64x256xf32>
    %346 = vector.shape_cast %345 : vector<1x64x256xf32> to vector<64x256xf32>
    %cst_343 = arith.constant dense<0.000000e+00> : vector<1x256xf32>
    %347 = tpu.matmul %344, %346, %cst_343 {dimension_numbers = #tpu.dot_dimension_numbers<[1], [0], [0], [1], [0, 0, 1, 1], [], []>} : vector<1x64xf32>, vector<64x256xf32>, vector<1x256xf32> -> vector<1x256xf32>
    %348 = arith.addf %343, %347 : vector<1x256xf32>
    %349 = vector.extract_strided_slice %338 {offsets = [2, 0], sizes = [1, 64], strides = [1, 1]} : vector<3x64xf32> to vector<1x64xf32>
    %c8 = arith.constant 8 : index
    %c0_344 = arith.constant 0 : index
    %c0_345 = arith.constant 0 : index
    %350 = vector.load %arg13[%c8, %c0_344, %c0_345] : memref<9x64x256xf32, #tpu.memory_space<vmem>>, vector<1x64x256xf32>
    %351 = vector.shape_cast %350 : vector<1x64x256xf32> to vector<64x256xf32>
    %cst_346 = arith.constant dense<0.000000e+00> : vector<1x256xf32>
    %352 = tpu.matmul %349, %351, %cst_346 {dimension_numbers = #tpu.dot_dimension_numbers<[1], [0], [0], [1], [0, 0, 1, 1], [], []>} : vector<1x64xf32>, vector<64x256xf32>, vector<1x256xf32> -> vector<1x256xf32>
    %353 = arith.addf %348, %352 : vector<1x256xf32>
    %c0_347 = arith.constant 0 : index
    %c0_348 = arith.constant 0 : index
    %354 = vector.load %arg14[%c0_347, %c0_348] : memref<1x256xf32, #tpu.memory_space<vmem>>, vector<1x256xf32>
    %355 = arith.addf %353, %354 : vector<1x256xf32>
    %cst_349 = arith.constant 0.000000e+00 : f32
    %356 = vector.broadcast %cst_349 : f32 to vector<1x256xf32>
    %357 = arith.maximumf %355, %356 : vector<1x256xf32>
    %c0_350 = arith.constant 0 : index
    %c0_351 = arith.constant 0 : index
    %358 = vector.load %arg15[%c0_350, %c0_351] : memref<256x128xf32, #tpu.memory_space<vmem>>, vector<256x128xf32>
    %cst_352 = arith.constant dense<0.000000e+00> : vector<1x128xf32>
    %359 = tpu.matmul %357, %358, %cst_352 {dimension_numbers = #tpu.dot_dimension_numbers<[1], [0], [0], [1], [0, 0, 1, 1], [], []>} : vector<1x256xf32>, vector<256x128xf32>, vector<1x128xf32> -> vector<1x128xf32>
    %c0_353 = arith.constant 0 : index
    %c0_354 = arith.constant 0 : index
    %360 = vector.load %arg16[%c0_353, %c0_354] : memref<1x128xf32, #tpu.memory_space<vmem>>, vector<1x128xf32>
    %361 = arith.addf %359, %360 : vector<1x128xf32>
    %cst_355 = arith.constant 0.000000e+00 : f32
    %362 = vector.broadcast %cst_355 : f32 to vector<1x128xf32>
    %363 = arith.maximumf %361, %362 : vector<1x128xf32>
    %c0_356 = arith.constant 0 : index
    %c0_357 = arith.constant 0 : index
    %364 = vector.load %arg17[%c0_356, %c0_357] : memref<128x5xf32, #tpu.memory_space<vmem>>, vector<128x5xf32>
    %cst_358 = arith.constant dense<0.000000e+00> : vector<1x5xf32>
    %365 = tpu.matmul %363, %364, %cst_358 {dimension_numbers = #tpu.dot_dimension_numbers<[1], [0], [0], [1], [0, 0, 1, 1], [], []>} : vector<1x128xf32>, vector<128x5xf32>, vector<1x5xf32> -> vector<1x5xf32>
    %c0_359 = arith.constant 0 : index
    %c0_360 = arith.constant 0 : index
    %366 = vector.load %arg18[%c0_359, %c0_360] : memref<1x5xf32, #tpu.memory_space<vmem>>, vector<1x5xf32>
    %367 = arith.addf %365, %366 : vector<1x5xf32>
    %c0_361 = arith.constant 0 : index
    %c0_362 = arith.constant 0 : index
    %c0_363 = arith.constant 0 : index
    %368 = vector.load %arg19[%c0_361, %c0_362, %c0_363] : memref<1x1x5xf32, #tpu.memory_space<vmem>>, vector<1x1x5xf32>
    %369 = vector.shape_cast %368 : vector<1x1x5xf32> to vector<1x5xf32>
    %370 = vector.shape_cast %367 : vector<1x5xf32> to vector<1x1x5xf32>
    tpu.vector_store %arg19[%c0_361, %c0_362, %c0_363], %370 {strides = array<i32>} : memref<1x1x5xf32, #tpu.memory_space<vmem>>, vector<1x1x5xf32>,
    return
  }
  func.func @transform_0(%arg0: i32) -> (i32, i32, i32) {
    %c0_i32 = arith.constant 0 : i32
    %c0_i32_0 = arith.constant 0 : i32
    %c0_i32_1 = arith.constant 0 : i32
    return %arg0, %c0_i32, %c0_i32_0 : i32, i32, i32
  }
  func.func @transform_1(%arg0: i32) -> (i32, i32, i32) {
    %c0_i32 = arith.constant 0 : i32
    %c0_i32_0 = arith.constant 0 : i32
    %c0_i32_1 = arith.constant 0 : i32
    return %arg0, %c0_i32, %c0_i32_0 : i32, i32, i32
  }
  func.func @transform_2(%arg0: i32) -> (i32, i32, i32, i32) {
    %c0_i32 = arith.constant 0 : i32
    %c0_i32_0 = arith.constant 0 : i32
    %c0_i32_1 = arith.constant 0 : i32
    %c0_i32_2 = arith.constant 0 : i32
    %c0_i32_3 = arith.constant 0 : i32
    return %c0_i32, %c0_i32_0, %c0_i32_1, %c0_i32_2 : i32, i32, i32, i32
  }
  func.func @transform_3(%arg0: i32) -> (i32, i32) {
    %c0_i32 = arith.constant 0 : i32
    %c0_i32_0 = arith.constant 0 : i32
    %c0_i32_1 = arith.constant 0 : i32
    return %c0_i32, %c0_i32_0 : i32, i32
  }
  func.func @transform_4(%arg0: i32) -> (i32, i32) {
    %c0_i32 = arith.constant 0 : i32
    %c0_i32_0 = arith.constant 0 : i32
    %c0_i32_1 = arith.constant 0 : i32
    return %c0_i32, %c0_i32_0 : i32, i32
  }
  func.func @transform_5(%arg0: i32) -> (i32, i32, i32, i32) {
    %c0_i32 = arith.constant 0 : i32
    %c0_i32_0 = arith.constant 0 : i32
    %c0_i32_1 = arith.constant 0 : i32
    %c0_i32_2 = arith.constant 0 : i32
    %c0_i32_3 = arith.constant 0 : i32
    return %c0_i32, %c0_i32_0, %c0_i32_1, %c0_i32_2 : i32, i32, i32, i32
  }
  func.func @transform_6(%arg0: i32) -> (i32, i32) {
    %c0_i32 = arith.constant 0 : i32
    %c0_i32_0 = arith.constant 0 : i32
    %c0_i32_1 = arith.constant 0 : i32
    return %c0_i32, %c0_i32_0 : i32, i32
  }
  func.func @transform_7(%arg0: i32) -> (i32, i32) {
    %c0_i32 = arith.constant 0 : i32
    %c0_i32_0 = arith.constant 0 : i32
    %c0_i32_1 = arith.constant 0 : i32
    return %c0_i32, %c0_i32_0 : i32, i32
  }
  func.func @transform_8(%arg0: i32) -> (i32, i32, i32, i32) {
    %c0_i32 = arith.constant 0 : i32
    %c0_i32_0 = arith.constant 0 : i32
    %c0_i32_1 = arith.constant 0 : i32
    %c0_i32_2 = arith.constant 0 : i32
    %c0_i32_3 = arith.constant 0 : i32
    return %c0_i32, %c0_i32_0, %c0_i32_1, %c0_i32_2 : i32, i32, i32, i32
  }
  func.func @transform_9(%arg0: i32) -> (i32, i32) {
    %c0_i32 = arith.constant 0 : i32
    %c0_i32_0 = arith.constant 0 : i32
    %c0_i32_1 = arith.constant 0 : i32
    return %c0_i32, %c0_i32_0 : i32, i32
  }
  func.func @transform_10(%arg0: i32) -> (i32, i32) {
    %c0_i32 = arith.constant 0 : i32
    %c0_i32_0 = arith.constant 0 : i32
    %c0_i32_1 = arith.constant 0 : i32
    return %c0_i32, %c0_i32_0 : i32, i32
  }
  func.func @transform_11(%arg0: i32) -> (i32, i32) {
    %c0_i32 = arith.constant 0 : i32
    %c0_i32_0 = arith.constant 0 : i32
    %c0_i32_1 = arith.constant 0 : i32
    return %c0_i32, %c0_i32_0 : i32, i32
  }
  func.func @transform_12(%arg0: i32) -> (i32, i32, i32) {
    %c0_i32 = arith.constant 0 : i32
    %c0_i32_0 = arith.constant 0 : i32
    %c0_i32_1 = arith.constant 0 : i32
    %c0_i32_2 = arith.constant 0 : i32
    return %c0_i32, %c0_i32_0, %c0_i32_1 : i32, i32, i32
  }
  func.func @transform_13(%arg0: i32) -> (i32, i32) {
    %c0_i32 = arith.constant 0 : i32
    %c0_i32_0 = arith.constant 0 : i32
    %c0_i32_1 = arith.constant 0 : i32
    return %c0_i32, %c0_i32_0 : i32, i32
  }
  func.func @transform_14(%arg0: i32) -> (i32, i32) {
    %c0_i32 = arith.constant 0 : i32
    %c0_i32_0 = arith.constant 0 : i32
    %c0_i32_1 = arith.constant 0 : i32
    return %c0_i32, %c0_i32_0 : i32, i32
  }
  func.func @transform_15(%arg0: i32) -> (i32, i32) {
    %c0_i32 = arith.constant 0 : i32
    %c0_i32_0 = arith.constant 0 : i32
    %c0_i32_1 = arith.constant 0 : i32
    return %c0_i32, %c0_i32_0 : i32, i32
  }
  func.func @transform_16(%arg0: i32) -> (i32, i32) {
    %c0_i32 = arith.constant 0 : i32
    %c0_i32_0 = arith.constant 0 : i32
    %c0_i32_1 = arith.constant 0 : i32
    return %c0_i32, %c0_i32_0 : i32, i32
  }
  func.func @transform_17(%arg0: i32) -> (i32, i32) {
    %c0_i32 = arith.constant 0 : i32
    %c0_i32_0 = arith.constant 0 : i32
    %c0_i32_1 = arith.constant 0 : i32
    return %c0_i32, %c0_i32_0 : i32, i32
  }
  func.func @transform_18(%arg0: i32) -> (i32, i32, i32) {
    %c0_i32 = arith.constant 0 : i32
    %c0_i32_0 = arith.constant 0 : i32
    %c0_i32_1 = arith.constant 0 : i32
    return %arg0, %c0_i32, %c0_i32_0 : i32, i32, i32
  }
}

</mosaic_0001>

<bundles_post_ra>
// kernel: actor_critic_forward.1
= control target key start
LH: loop header
LB: loop body
LE: loop exit
PB: predicated region body
PF: predicated region fallthrough
CT: control target
= control target key end

     0   :  { %s14010_s27 = smov 0   ;;  %s17985_s0 = inlined_call_operand.vmem [shape: f32[2,408,3], index: 0, kind: input, shape index: {}]   ;;  %s17986_s1 = inlined_call_operand.vmem [shape: f32[2,1,8], index: 1, kind: input, shape index: {}]   ;;  %s17987_s2 = inlined_call_operand.vmem [shape: f32[3,3,3,16], index: 2, kind: input, shape index: {}]   ;;  %s17988_s3 = inlined_call_operand.vmem [shape: f32[1,16], index: 3, kind: input, shape index: {}]   ;;  %s17989_s4 = inlined_call_operand.vmem [shape: f32[1,16], index: 4, kind: input, shape index: {}]   ;;  %s17990_s5 = inlined_call_operand.vmem [shape: f32[3,3,16,32], index: 5, kind: input, shape index: {}]   ;;  %s17991_s6 = inlined_call_operand.vmem [shape: f32[1,32], index: 6, kind: input, shape index: {}]   ;;  %s17992_s7 = inlined_call_operand.vmem [shape: f32[1,32], index: 7, kind: input, shape index: {}]   ;;  %s17993_s8 = inlined_call_operand.vmem [shape: f32[3,3,32,64], index: 8, kind: input, shape index: {}]   ;;  %s17994_s9 = inlined_call_operand.vmem [shape: f32[1,64], index: 9, kind: input, shape index: {}]   ;;  %s17995_s10 = inlined_call_operand.vmem [shape: f32[1,64], index: 10, kind: input, shape index: {}]   ;;  %s17996_s11 = inlined_call_operand.vmem [shape: f32[8,256], index: 11, kind: input, shape index: {}]   ;;  %s17997_s12 = inlined_call_operand.vmem [shape: f32[9,64,256], index: 12, kind: input, shape index: {}]   ;;  %s17998_s13 = inlined_call_operand.vmem [shape: f32[1,256], index: 13, kind: input, shape index: {}]   ;;  %s17999_s14 = inlined_call_operand.vmem [shape: f32[256,128], index: 14, kind: input, shape index: {}]   ;;  %s18000_s15 = inlined_call_operand.vmem [shape: f32[1,128], index: 15, kind: input, shape index: {}]   ;;  %s18001_s16 = inlined_call_operand.vmem [shape: f32[128,5], index: 16, kind: input, shape index: {}]   ;;  %s18002_s17 = inlined_call_operand.vmem [shape: f32[1,5], index: 17, kind: input, shape index: {}]   ;;  %s18003_s18 = inlined_call_operand.vmem [shape: f32[2,1,5], index: 18, kind: output, shape index: {}]  }
   0x1   :  { %18010 = sst [smem:[#allocation18_spill]] %s17985_s0 }
   0x2   :  { %18011 = sst [smem:[#allocation19_spill]] %s17986_s1 }
   0x3   :  { %18012 = sst [smem:[#allocation20_spill]] %s17987_s2 }
   0x4 LB: > { %s10557_s28 = sadd.s32 4294967295, %s13911_s27   ;;  %p10561_p0 = scmp.ge.s32.totalorder %s13911_s27, 1  ;;  %s13911_s27 = sphi %s14010_s27, %s28_s27  }
   0x5   : > { %p520_p1 = scmp.lt.s32.totalorder %s13911_s27, 3 }
   0x7   : > { %p521_p2 = pnand %p10561_p0, %p520_p1 }
   0x9   : > { %524 = sbr.rel (%p521_p2) target bundleno = 2520 (0x9d8), region = 92 }
   0xe   : > { %s18013_s0 = sld [smem:[#allocation20_spill]]  ;;  %vm815_vm0 = vcmask 1042432   ;;  %p575_p3 = scmp.lt.s32.totalorder %s10557_s28, 1  ;;  %v18005_v1 = vmov 0.0   ;;  %vm13914_vm1 = vmmov 0   ;;  %vm679_vm2 = vcmask 23552  }
   0xf   : > { %12167 = vmatprep.subr.mxu0 %v18005_v1  ;;  %12304 = vmatprep.subr.mxu1 %v18005_v1  ;;  %s18014_s2 = sld [smem:[#allocation18_spill]]  ;;  %vm5326_vm3 = vcmask 130048   ;;  %vm5394_vm4 = vcmask 122880   ;;  %vm7874_vm5 = vcmask 261120   ;;  %vm7917_vm6 = vcmask 258048  }
  0x10   : > { %12169 = vmatprep.mubr.msk.f32.mxu0 %vm13914_vm1, %v18005_v1  ;;  %s18040_s28 = smov (!%p575_p3, %s10557_s28), 1  ;;  %12306 = vmatprep.mubr.msk.f32.mxu1 %vm13914_vm1, %v18005_v1  ;;  %5372 = vst.msk [vmem:[#allocation3] sm:$0xff] %vm5326_vm3, %v18005_v1  ;;  %5373 = vst.msk [vmem:[#allocation3 + $0x8] sm:$0xff] %vm5326_vm3, %v18005_v1  ;;  %vm9338_vm7 = vcmask 523264   ;;  %s18038_s29 = sld [smem:[#allocation19_spill]]  ;;  %vm9451_vm8 = vcmask 64512  }
  0x11   : > { %s13894_s20 = smul.u32 408, %s18040_s28  ;;  %5374 = vst.msk [vmem:[#allocation3 + $0x10] sm:$0xff] %vm5326_vm3, %v18005_v1  ;;  %5375 = vst.msk [vmem:[#allocation3 + $0x18] sm:$0xff] %vm5326_vm3, %v18005_v1  ;;  %vm10499_vm9 = vcmask 32768  }
  0x12   : > { %5376 = vst.msk [vmem:[#allocation3 + $0x20] sm:$0xff] %vm5326_vm3, %v18005_v1  ;;  %5377 = vst.msk [vmem:[#allocation3 + $0x28] sm:$0xff] %vm5326_vm3, %v18005_v1 }
  0x13   : > { %5378 = vst.msk [vmem:[#allocation3 + $0x30] sm:$0xff] %vm5326_vm3, %v18005_v1  ;;  %5379 = vst.msk [vmem:[#allocation3 + $0x38] sm:$0xff] %vm5326_vm3, %v18005_v1 }
  0x14   : > { %v10563_v0 = vld [vmem:[%s18013_s0 + $0x4] sm:$0x7]  ;;  %v631_v2 = vld [vmem:[%s18013_s0] sm:$0x7]  ;;  %v10656_v3 = vld [vmem:[%s18013_s0 + $0x8] sm:$0x7] }
  0x15   : > { %12168 = vmatpush3.msk.msra.mxu0 %vm815_vm0, %v10563_v0  ;;  %12305 = vmatpush3.msk.msra.mxu1 %vm815_vm0, %v631_v2  ;;  %s14040_s23 = scalar_lea.vmem %s18014_s2, %s13894_s20  ;;  %v10703_v30 = vld [vmem:[%s18013_s0 + $0xc] sm:$0x7]  ;;  %5380 = vst.msk [vmem:[#allocation3 + $0x40] sm:$0xff] %vm5326_vm3, %v18005_v1  ;;  %5381 = vst.msk [vmem:[#allocation3 + $0x48] sm:$0xff] %vm5326_vm3, %v18005_v1 }
  0x16   : > { %12441 = vmatprep.subr.mxu0 %v18005_v1  ;;  %12578 = vmatprep.subr.mxu1 %v18005_v1  ;;  %v632_v4 = vld [vmem:[%s14040_s23 + $0x1] sm:$0xff]  ;;  %v633_v6 = vld [vmem:[%s14040_s23 + $0x9] sm:$0xff]  ;;  %v634_v8 = vld [vmem:[%s14040_s23 + $0x11] sm:$0xff]  ;;  %5382 = vst.msk [vmem:[#allocation3 + $0x50] sm:$0xff] %vm5326_vm3, %v18005_v1  ;;  %s582_s30 = scalar_lea.vmem %s18038_s29, %s18040_s28 }
  0x17   : > { %v586_v5 = vld [vmem:[%s14040_s23] sm:$0xff]  ;;  %12170 = vmatmul.mubr.msk.f32.vlgmr.msra.gmra.mxu0 %vm679_vm2, %v632_v4  ;;  %v587_v7 = vld [vmem:[%s14040_s23 + $0x8] sm:$0xff]  ;;  %v588_v9 = vld [vmem:[%s14040_s23 + $0x10] sm:$0xff]  ;;  %5383 = vst.msk [vmem:[#allocation3 + $0x58] sm:$0xff] %vm5326_vm3, %v18005_v1 }
  0x18   : > { %12307 = vmatmul.mubr.msk.f32.vlgmr.msra.gmra.mxu1 %vm679_vm2, %v586_v5  ;;  %12442 = vmatpush3.msk.msra.mxu0 %vm815_vm0, %v10656_v3  ;;  %v635_v10 = vld [vmem:[%s14040_s23 + $0x19] sm:$0xff]  ;;  %v636_v12 = vld [vmem:[%s14040_s23 + $0x21] sm:$0xff]  ;;  %v637_v14 = vld [vmem:[%s14040_s23 + $0x29] sm:$0xff]  ;;  %5384 = vst.msk [vmem:[#allocation3 + $0x60] sm:$0xff] %vm5326_vm3, %v18005_v1 }
  0x19   : > { %12172 = vmatprep.mubr.msk.f32.mxu0 %vm13914_vm1, %v18005_v1  ;;  %12309 = vmatprep.mubr.msk.f32.mxu1 %vm13914_vm1, %v18005_v1  ;;  %v589_v11 = vld [vmem:[%s14040_s23 + $0x18] sm:$0xff]  ;;  %v590_v13 = vld [vmem:[%s14040_s23 + $0x20] sm:$0xff]  ;;  %v591_v15 = vld [vmem:[%s14040_s23 + $0x28] sm:$0xff]  ;;  %5385 = vst.msk [vmem:[#allocation3 + $0x68] sm:$0xff] %vm5326_vm3, %v18005_v1 }
  0x1a   : > { %12715 = vmatprep.subr.mxu0 %v18005_v1  ;;  %v638_v16 = vld [vmem:[%s14040_s23 + $0x31] sm:$0xff]  ;;  %v639_v18 = vld [vmem:[%s14040_s23 + $0x39] sm:$0xff]  ;;  %v640_v20 = vld [vmem:[%s14040_s23 + $0x41] sm:$0xff]  ;;  %12579 = vmatpush3.msk.msra.mxu1 %vm815_vm0, %v10703_v30  ;;  %5386 = vst.msk [vmem:[#allocation3 + $0x70] sm:$0xff] %vm5326_vm3, %v18005_v1 }
  0x1b   : > { %12173 = vmatmul.mubr.msk.f32.gmra.mxu0 %vm679_vm2, %v633_v6  ;;  %v592_v17 = vld [vmem:[%s14040_s23 + $0x30] sm:$0xff]  ;;  %v593_v19 = vld [vmem:[%s14040_s23 + $0x38] sm:$0xff]  ;;  %v594_v21 = vld [vmem:[%s14040_s23 + $0x40] sm:$0xff]  ;;  %12852 = vmatprep.subr.mxu1 %v18005_v1  ;;  %5387 = vst.msk [vmem:[#allocation3 + $0x78] sm:$0xff] %vm5326_vm3, %v18005_v1 }
  0x1c   : > { %12310 = vmatmul.mubr.msk.f32.gmra.mxu1 %vm679_vm2, %v587_v7  ;;  %12175 = vmatprep.mubr.msk.f32.mxu0 %vm13914_vm1, %v18005_v1  ;;  %v641_v22 = vld [vmem:[%s14040_s23 + $0x49] sm:$0xff]  ;;  %v642_v24 = vld [vmem:[%s14040_s23 + $0x51] sm:$0xff]  ;;  %v643_v26 = vld [vmem:[%s14040_s23 + $0x59] sm:$0xff]  ;;  %5388 = vst.msk [vmem:[#allocation3 + $0x80] sm:$0xff] %vm5326_vm3, %v18005_v1 }
  0x1d   : > { %12312 = vmatprep.mubr.msk.f32.mxu1 %vm13914_vm1, %v18005_v1  ;;  %v595_v23 = vld [vmem:[%s14040_s23 + $0x48] sm:$0xff]  ;;  %v596_v25 = vld [vmem:[%s14040_s23 + $0x50] sm:$0xff]  ;;  %v597_v27 = vld [vmem:[%s14040_s23 + $0x58] sm:$0xff]  ;;  %5389 = vst.msk [vmem:[#allocation3 + $0x88] sm:$0xff] %vm5326_vm3, %v18005_v1 }
  0x1e   : > { %v644_v28 = vld [vmem:[%s14040_s23 + $0x61] sm:$0xff]  ;;  %v645_v31 = vld [vmem:[%s14040_s23 + $0x69] sm:$0xff]  ;;  %v646_v33 = vld [vmem:[%s14040_s23 + $0x71] sm:$0xff]  ;;  %5390 = vst.msk [vmem:[#allocation3 + $0x90] sm:$0xff] %vm5326_vm3, %v18005_v1 }
  0x1f   : > { %12176 = vmatmul.mubr.msk.f32.gmra.mxu0 %vm679_vm2, %v634_v8  ;;  %v598_v29 = vld [vmem:[%s14040_s23 + $0x60] sm:$0xff]  ;;  %v599_v32 = vld [vmem:[%s14040_s23 + $0x68] sm:$0xff]  ;;  %v600_v34 = vld [vmem:[%s14040_s23 + $0x70] sm:$0xff]  ;;  %5391 = vst.msk [vmem:[#allocation3 + $0x98] sm:$0xff] %vm5326_vm3, %v18005_v1 }
  0x20   : > { %12313 = vmatmul.mubr.msk.f32.gmra.mxu1 %vm679_vm2, %v588_v9  ;;  %12178 = vmatprep.mubr.msk.f32.mxu0 %vm13914_vm1, %v18005_v1  ;;  %v647_v35 = vld [vmem:[%s14040_s23 + $0x79] sm:$0xff]  ;;  %v648_v37 = vld [vmem:[%s14040_s23 + $0x81] sm:$0xff]  ;;  %v649_v39 = vld [vmem:[%s14040_s23 + $0x89] sm:$0xff]  ;;  %5392 = vst.msk [vmem:[#allocation3 + $0xa0] sm:$0xff] %vm5326_vm3, %v18005_v1 }
  0x21   : > { %12315 = vmatprep.mubr.msk.f32.mxu1 %vm13914_vm1, %v18005_v1  ;;  %v601_v36 = vld [vmem:[%s14040_s23 + $0x78] sm:$0xff]  ;;  %v602_v38 = vld [vmem:[%s14040_s23 + $0x80] sm:$0xff]  ;;  %v603_v40 = vld [vmem:[%s14040_s23 + $0x88] sm:$0xff]  ;;  %5393 = vst.msk [vmem:[#allocation3 + $0xa8] sm:$0xff] %vm5326_vm3, %v18005_v1 }
  0x22   : > { %v650_v41 = vld [vmem:[%s14040_s23 + $0x91] sm:$0xff]  ;;  %v651_v43 = vld [vmem:[%s14040_s23 + $0x99] sm:$0xff]  ;;  %v652_v45 = vld [vmem:[%s14040_s23 + $0xa1] sm:$0xff]  ;;  %7894 = vst.msk [vmem:[#allocation5] sm:$0xff] %vm7874_vm5, %v18005_v1 }
  0x23   : > { %12179 = vmatmul.mubr.msk.f32.gmra.mxu0 %vm679_vm2, %v635_v10  ;;  %v604_v42 = vld [vmem:[%s14040_s23 + $0x90] sm:$0xff]  ;;  %v605_v44 = vld [vmem:[%s14040_s23 + $0x98] sm:$0xff]  ;;  %v606_v46 = vld [vmem:[%s14040_s23 + $0xa0] sm:$0xff]  ;;  %7895 = vst.msk [vmem:[#allocation5 + $0x8] sm:$0xff] %vm7874_vm5, %v18005_v1 }
  0x24   : > { %12316 = vmatmul.mubr.msk.f32.gmra.mxu1 %vm679_vm2, %v589_v11  ;;  %12181 = vmatprep.mubr.msk.f32.mxu0 %vm13914_vm1, %v18005_v1  ;;  %v653_v47 = vld [vmem:[%s14040_s23 + $0xa9] sm:$0xff]  ;;  %v654_v49 = vld [vmem:[%s14040_s23 + $0xb1] sm:$0xff]  ;;  %v655_v51 = vld [vmem:[%s14040_s23 + $0xb9] sm:$0xff]  ;;  %7896 = vst.msk [vmem:[#allocation5 + $0x10] sm:$0xff] %vm7874_vm5, %v18005_v1 }
  0x25   : > { %12318 = vmatprep.mubr.msk.f32.mxu1 %vm13914_vm1, %v18005_v1  ;;  %v607_v48 = vld [vmem:[%s14040_s23 + $0xa8] sm:$0xff]  ;;  %v608_v50 = vld [vmem:[%s14040_s23 + $0xb0] sm:$0xff]  ;;  %v609_v52 = vld [vmem:[%s14040_s23 + $0xb8] sm:$0xff]  ;;  %7897 = vst.msk [vmem:[#allocation5 + $0x18] sm:$0xff] %vm7874_vm5, %v18005_v1 }
  0x26   : > { %v656_v53 = vld [vmem:[%s14040_s23 + $0xc1] sm:$0xff]  ;;  %v657_v55 = vld [vmem:[%s14040_s23 + $0xc9] sm:$0xff]  ;;  %v658_v57 = vld [vmem:[%s14040_s23 + $0xd1] sm:$0xff]  ;;  %7898 = vst.msk [vmem:[#allocation5 + $0x20] sm:$0xff] %vm7874_vm5, %v18005_v1 }
  0x27   : > { %12182 = vmatmul.mubr.msk.f32.gmra.mxu0 %vm679_vm2, %v636_v12  ;;  %v610_v54 = vld [vmem:[%s14040_s23 + $0xc0] sm:$0xff]  ;;  %v611_v56 = vld [vmem:[%s14040_s23 + $0xc8] sm:$0xff]  ;;  %v612_v58 = vld [vmem:[%s14040_s23 + $0xd0] sm:$0xff]  ;;  %7899 = vst.msk [vmem:[#allocation5 + $0x28] sm:$0xff] %vm7874_vm5, %v18005_v1 }
  0x28   : > { %12319 = vmatmul.mubr.msk.f32.gmra.mxu1 %vm679_vm2, %v590_v13  ;;  %12184 = vmatprep.mubr.msk.f32.mxu0 %vm13914_vm1, %v18005_v1  ;;  %v659_v59 = vld [vmem:[%s14040_s23 + $0xd9] sm:$0xff]  ;;  %v660_v61 = vld [vmem:[%s14040_s23 + $0xe1] sm:$0xff]  ;;  %v661_v63 = vld [vmem:[%s14040_s23 + $0xe9] sm:$0xff]  ;;  %7900 = vst.msk [vmem:[#allocation5 + $0x30] sm:$0xff] %vm7874_vm5, %v18005_v1 }
  0x29   : > { %12321 = vmatprep.mubr.msk.f32.mxu1 %vm13914_vm1, %v18005_v1  ;;  %v613_v60 = vld [vmem:[%s14040_s23 + $0xd8] sm:$0xff]  ;;  %v614_v62 = vld [vmem:[%s14040_s23 + $0xe0] sm:$0xff]  ;;  %v615_v0 = vld [vmem:[%s14040_s23 + $0xe8] sm:$0xff]  ;;  %7901 = vst.msk [vmem:[#allocation5 + $0x38] sm:$0xff] %vm7874_vm5, %v18005_v1 }
  0x2a   : > { %v662_v2 = vld [vmem:[%s14040_s23 + $0xf1] sm:$0xff]  ;;  %v663_v4 = vld [vmem:[%s14040_s23 + $0xf9] sm:$0xff]  ;;  %v664_v6 = vld [vmem:[%s14040_s23 + $0x101] sm:$0xff]  ;;  %7902 = vst.msk [vmem:[#allocation5 + $0x40] sm:$0xff] %vm7874_vm5, %v18005_v1 }
  0x2b   : > { %12185 = vmatmul.mubr.msk.f32.gmra.mxu0 %vm679_vm2, %v637_v14  ;;  %v616_v3 = vld [vmem:[%s14040_s23 + $0xf0] sm:$0xff]  ;;  %v617_v5 = vld [vmem:[%s14040_s23 + $0xf8] sm:$0xff]  ;;  %v618_v7 = vld [vmem:[%s14040_s23 + $0x100] sm:$0xff]  ;;  %7903 = vst.msk [vmem:[#allocation5 + $0x48] sm:$0xff] %vm7874_vm5, %v18005_v1 }
  0x2c   : > { %12322 = vmatmul.mubr.msk.f32.gmra.mxu1 %vm679_vm2, %v591_v15  ;;  %12187 = vmatprep.mubr.msk.f32.mxu0 %vm13914_vm1, %v18005_v1  ;;  %v665_v8 = vld [vmem:[%s14040_s23 + $0x109] sm:$0xff]  ;;  %v666_v10 = vld [vmem:[%s14040_s23 + $0x111] sm:$0xff]  ;;  %v667_v12 = vld [vmem:[%s14040_s23 + $0x119] sm:$0xff]  ;;  %7904 = vst.msk [vmem:[#allocation5 + $0x50] sm:$0xff] %vm7874_vm5, %v18005_v1 }
  0x2d   : > { %12324 = vmatprep.mubr.msk.f32.mxu1 %vm13914_vm1, %v18005_v1  ;;  %v619_v9 = vld [vmem:[%s14040_s23 + $0x108] sm:$0xff]  ;;  %v620_v11 = vld [vmem:[%s14040_s23 + $0x110] sm:$0xff]  ;;  %v621_v13 = vld [vmem:[%s14040_s23 + $0x118] sm:$0xff] }
  0x2e   : > { %v668_v14 = vld [vmem:[%s14040_s23 + $0x121] sm:$0xff] }
  0x2f   : > { %12188 = vmatmul.mubr.msk.f32.gmra.mxu0 %vm679_vm2, %v638_v16  ;;  %v622_v15 = vld [vmem:[%s14040_s23 + $0x120] sm:$0xff]  ;;  %v669_v16 = vld [vmem:[%s14040_s23 + $0x129] sm:$0xff] }
  0x30   : > { %12325 = vmatmul.mubr.msk.f32.gmra.mxu1 %vm679_vm2, %v592_v17  ;;  %12190 = vmatprep.mubr.msk.f32.mxu0 %vm13914_vm1, %v18005_v1  ;;  %v623_v17 = vld [vmem:[%s14040_s23 + $0x128] sm:$0xff] }
  0x31   : > { %12327 = vmatprep.mubr.msk.f32.mxu1 %vm13914_vm1, %v18005_v1  ;;  %v676_v30 = vld [vmem:[%s14040_s23 + $0x161] sm:$0xff] }
  0x33   : > { %12191 = vmatmul.mubr.msk.f32.gmra.mxu0 %vm679_vm2, %v639_v18  ;;  %v670_v18 = vld [vmem:[%s14040_s23 + $0x131] sm:$0xff] }
  0x34   : > { %12328 = vmatmul.mubr.msk.f32.gmra.mxu1 %vm679_vm2, %v593_v19  ;;  %12193 = vmatprep.mubr.msk.f32.mxu0 %vm13914_vm1, %v18005_v1  ;;  %v624_v19 = vld [vmem:[%s14040_s23 + $0x130] sm:$0xff] }
  0x35   : > { %12330 = vmatprep.mubr.msk.f32.mxu1 %vm13914_vm1, %v18005_v1 }
  0x37   : > { %12194 = vmatmul.mubr.msk.f32.gmra.mxu0 %vm679_vm2, %v640_v20  ;;  %v671_v20 = vld [vmem:[%s14040_s23 + $0x139] sm:$0xff] }
  0x38   : > { %12331 = vmatmul.mubr.msk.f32.gmra.mxu1 %vm679_vm2, %v594_v21  ;;  %12196 = vmatprep.mubr.msk.f32.mxu0 %vm13914_vm1, %v18005_v1  ;;  %v625_v21 = vld [vmem:[%s14040_s23 + $0x138] sm:$0xff] }
  0x39   : > { %12333 = vmatprep.mubr.msk.f32.mxu1 %vm13914_vm1, %v18005_v1 }
  0x3b   : > { %12197 = vmatmul.mubr.msk.f32.gmra.mxu0 %vm679_vm2, %v641_v22  ;;  %v672_v22 = vld [vmem:[%s14040_s23 + $0x141] sm:$0xff] }
  0x3c   : > { %12334 = vmatmul.mubr.msk.f32.gmra.mxu1 %vm679_vm2, %v595_v23  ;;  %12199 = vmatprep.mubr.msk.f32.mxu0 %vm13914_vm1, %v18005_v1  ;;  %v626_v23 = vld [vmem:[%s14040_s23 + $0x140] sm:$0xff] }
  0x3d   : > { %12336 = vmatprep.mubr.msk.f32.mxu1 %vm13914_vm1, %v18005_v1 }
  0x3f   : > { %12200 = vmatmul.mubr.msk.f32.gmra.mxu0 %vm679_vm2, %v642_v24  ;;  %v673_v24 = vld [vmem:[%s14040_s23 + $0x149] sm:$0xff] }
  0x40   : > { %12337 = vmatmul.mubr.msk.f32.gmra.mxu1 %vm679_vm2, %v596_v25  ;;  %12202 = vmatprep.mubr.msk.f32.mxu0 %vm13914_vm1, %v18005_v1  ;;  %v627_v25 = vld [vmem:[%s14040_s23 + $0x148] sm:$0xff] }
  0x41   : > { %12339 = vmatprep.mubr.msk.f32.mxu1 %vm13914_vm1, %v18005_v1 }
  0x43   : > { %12203 = vmatmul.mubr.msk.f32.gmra.mxu0 %vm679_vm2, %v643_v26  ;;  %v674_v26 = vld [vmem:[%s14040_s23 + $0x151] sm:$0xff] }
  0x44   : > { %12340 = vmatmul.mubr.msk.f32.gmra.mxu1 %vm679_vm2, %v597_v27  ;;  %12205 = vmatprep.mubr.msk.f32.mxu0 %vm13914_vm1, %v18005_v1  ;;  %v628_v27 = vld [vmem:[%s14040_s23 + $0x150] sm:$0xff] }
  0x45   : > { %12342 = vmatprep.mubr.msk.f32.mxu1 %vm13914_vm1, %v18005_v1 }
  0x47   : > { %12206 = vmatmul.mubr.msk.f32.gmra.mxu0 %vm679_vm2, %v644_v28  ;;  %v675_v28 = vld [vmem:[%s14040_s23 + $0x159] sm:$0xff] }
  0x48   : > { %12343 = vmatmul.mubr.msk.f32.gmra.mxu1 %vm679_vm2, %v598_v29  ;;  %12208 = vmatprep.mubr.msk.f32.mxu0 %vm13914_vm1, %v18005_v1  ;;  %v629_v29 = vld [vmem:[%s14040_s23 + $0x158] sm:$0xff] }
  0x49   : > { %12345 = vmatprep.mubr.msk.f32.mxu1 %vm13914_vm1, %v18005_v1 }
  0x4b   : > { %12209 = vmatmul.mubr.msk.f32.gmra.mxu0 %vm679_vm2, %v645_v31  ;;  %v630_v31 = vld [vmem:[%s14040_s23 + $0x160] sm:$0xff] }
  0x4c   : > { %12346 = vmatmul.mubr.msk.f32.gmra.mxu1 %vm679_vm2, %v599_v32  ;;  %12211 = vmatprep.mubr.msk.f32.mxu0 %vm13914_vm1, %v18005_v1  ;;  %v1537_v32 = vld [vmem:[%s14040_s23 + $0x2] sm:$0xff] }
  0x4d   : > { %12348 = vmatprep.mubr.msk.f32.mxu1 %vm13914_vm1, %v18005_v1 }
  0x4f   : > { %12212 = vmatmul.mubr.msk.f32.gmra.mxu0 %vm679_vm2, %v646_v33  ;;  %v2057_v33 = vld [vmem:[%s14040_s23 + $0x14] sm:$0xff] }
  0x50   : > { %12349 = vmatmul.mubr.msk.f32.gmra.mxu1 %vm679_vm2, %v600_v34  ;;  %12214 = vmatprep.mubr.msk.f32.mxu0 %vm13914_vm1, %v18005_v1  ;;  %v10750_v34 = vld [vmem:[%s18013_s0 + $0x10] sm:$0x7] }
  0x51   : > { %12351 = vmatprep.mubr.msk.f32.mxu1 %vm13914_vm1, %v18005_v1 }
  0x53   : > { %12215 = vmatmul.mubr.msk.f32.gmra.mxu0 %vm679_vm2, %v647_v35  ;;  %v1538_v35 = vld [vmem:[%s14040_s23 + $0xa] sm:$0xff] }
  0x54   : > { %12352 = vmatmul.mubr.msk.f32.gmra.mxu1 %vm679_vm2, %v601_v36  ;;  %12217 = vmatprep.mubr.msk.f32.mxu0 %vm13914_vm1, %v18005_v1  ;;  %v2058_v36 = vld [vmem:[%s14040_s23 + $0x1c] sm:$0xff] }
  0x55   : > { %12354 = vmatprep.mubr.msk.f32.mxu1 %vm13914_vm1, %v18005_v1 }
  0x57   : > { %12218 = vmatmul.mubr.msk.f32.gmra.mxu0 %vm679_vm2, %v648_v37  ;;  %v1539_v37 = vld [vmem:[%s14040_s23 + $0x12] sm:$0xff] }
  0x58   : > { %12355 = vmatmul.mubr.msk.f32.gmra.mxu1 %vm679_vm2, %v602_v38  ;;  %12220 = vmatprep.mubr.msk.f32.mxu0 %vm13914_vm1, %v18005_v1  ;;  %v2059_v38 = vld [vmem:[%s14040_s23 + $0x24] sm:$0xff] }
  0x59   : > { %12357 = vmatprep.mubr.msk.f32.mxu1 %vm13914_vm1, %v18005_v1 }
  0x5b   : > { %12221 = vmatmul.mubr.msk.f32.gmra.mxu0 %vm679_vm2, %v649_v39  ;;  %v1540_v39 = vld [vmem:[%s14040_s23 + $0x1a] sm:$0xff] }
  0x5c   : > { %12358 = vmatmul.mubr.msk.f32.gmra.mxu1 %vm679_vm2, %v603_v40  ;;  %12223 = vmatprep.mubr.msk.f32.mxu0 %vm13914_vm1, %v18005_v1  ;;  %v2060_v40 = vld [vmem:[%s14040_s23 + $0x2c] sm:$0xff] }
  0x5d   : > { %12360 = vmatprep.mubr.msk.f32.mxu1 %vm13914_vm1, %v18005_v1 }
  0x5f   : > { %12224 = vmatmul.mubr.msk.f32.gmra.mxu0 %vm679_vm2, %v650_v41 }
  0x60   : > { %12361 = vmatmul.mubr.msk.f32.gmra.mxu1 %vm679_vm2, %v604_v42  ;;  %12226 = vmatprep.mubr.msk.f32.mxu0 %vm13914_vm1, %v18005_v1 }
  0x61   : > { %12363 = vmatprep.mubr.msk.f32.mxu1 %vm13914_vm1, %v18005_v1 }
  0x63   : > { %12227 = vmatmul.mubr.msk.f32.gmra.mxu0 %vm679_vm2, %v651_v43 }
  0x64   : > { %12364 = vmatmul.mubr.msk.f32.gmra.mxu1 %vm679_vm2, %v605_v44  ;;  %12229 = vmatprep.mubr.msk.f32.mxu0 %vm13914_vm1, %v18005_v1  ;;  %v1541_v44 = vld [vmem:[%s14040_s23 + $0x22] sm:$0xff] }
  0x65   : > { %12366 = vmatprep.mubr.msk.f32.mxu1 %vm13914_vm1, %v18005_v1 }
  0x67   : > { %12230 = vmatmul.mubr.msk.f32.gmra.mxu0 %vm679_vm2, %v652_v45  ;;  %v2061_v45 = vld [vmem:[%s14040_s23 + $0x34] sm:$0xff] }
  0x68   : > { %12367 = vmatmul.mubr.msk.f32.gmra.mxu1 %vm679_vm2, %v606_v46  ;;  %12232 = vmatprep.mubr.msk.f32.mxu0 %vm13914_vm1, %v18005_v1 }
  0x69   : > { %12369 = vmatprep.mubr.msk.f32.mxu1 %vm13914_vm1, %v18005_v1 }
  0x6b   : > { %12233 = vmatmul.mubr.msk.f32.gmra.mxu0 %vm679_vm2, %v653_v47 }
  0x6c   : > { %12370 = vmatmul.mubr.msk.f32.gmra.mxu1 %vm679_vm2, %v607_v48  ;;  %12235 = vmatprep.mubr.msk.f32.mxu0 %vm13914_vm1, %v18005_v1 }
  0x6d   : > { %12372 = vmatprep.mubr.msk.f32.mxu1 %vm13914_vm1, %v18005_v1 }
  0x6f   : > { %12236 = vmatmul.mubr.msk.f32.gmra.mxu0 %vm679_vm2, %v654_v49 }
  0x70   : > { %12373 = vmatmul.mubr.msk.f32.gmra.mxu1 %vm679_vm2, %v608_v50  ;;  %12238 = vmatprep.mubr.msk.f32.mxu0 %vm13914_vm1, %v18005_v1 }
  0x71   : > { %12375 = vmatprep.mubr.msk.f32.mxu1 %vm13914_vm1, %v18005_v1 }
  0x73   : > { %12239 = vmatmul.mubr.msk.f32.gmra.mxu0 %vm679_vm2, %v655_v51  ;;  %v1542_v51 = vld [vmem:[%s14040_s23 + $0x2a] sm:$0xff] }
  0x74   : > { %12376 = vmatmul.mubr.msk.f32.gmra.mxu1 %vm679_vm2, %v609_v52  ;;  %12241 = vmatprep.mubr.msk.f32.mxu0 %vm13914_vm1, %v18005_v1  ;;  %v2062_v52 = vld [vmem:[%s14040_s23 + $0x3c] sm:$0xff] }
  0x75   : > { %12378 = vmatprep.mubr.msk.f32.mxu1 %vm13914_vm1, %v18005_v1 }
  0x77   : > { %12242 = vmatmul.mubr.msk.f32.gmra.mxu0 %vm679_vm2, %v656_v53 }
  0x78   : > { %12379 = vmatmul.mubr.msk.f32.gmra.mxu1 %vm679_vm2, %v610_v54  ;;  %12244 = vmatprep.mubr.msk.f32.mxu0 %vm13914_vm1, %v18005_v1 }
  0x79   : > { %12381 = vmatprep.mubr.msk.f32.mxu1 %vm13914_vm1, %v18005_v1 }
  0x7b   : > { %12245 = vmatmul.mubr.msk.f32.gmra.mxu0 %vm679_vm2, %v657_v55 }
  0x7c   : > { %12382 = vmatmul.mubr.msk.f32.gmra.mxu1 %vm679_vm2, %v611_v56  ;;  %12247 = vmatprep.mubr.msk.f32.mxu0 %vm13914_vm1, %v18005_v1 }
  0x7d   : > { %12384 = vmatprep.mubr.msk.f32.mxu1 %vm13914_vm1, %v18005_v1 }
  0x7f   : > { %12248 = vmatmul.mubr.msk.f32.gmra.mxu0 %vm679_vm2, %v658_v57 }
  0x80   : > { %12385 = vmatmul.mubr.msk.f32.gmra.mxu1 %vm679_vm2, %v612_v58  ;;  %12250 = vmatprep.mubr.msk.f32.mxu0 %vm13914_vm1, %v18005_v1  ;;  %v1543_v58 = vld [vmem:[%s14040_s23 + $0x32] sm:$0xff] }
  0x81   : > { %12387 = vmatprep.mubr.msk.f32.mxu1 %vm13914_vm1, %v18005_v1 }
  0x83   : > { %12251 = vmatmul.mubr.msk.f32.gmra.mxu0 %vm679_vm2, %v659_v59  ;;  %v2063_v59 = vld [vmem:[%s14040_s23 + $0x44] sm:$0xff] }
  0x84   : > { %12388 = vmatmul.mubr.msk.f32.gmra.mxu1 %vm679_vm2, %v613_v60  ;;  %12253 = vmatprep.mubr.msk.f32.mxu0 %vm13914_vm1, %v18005_v1 }
  0x85   : > { %12390 = vmatprep.mubr.msk.f32.mxu1 %vm13914_vm1, %v18005_v1 }
  0x87   : > { %12254 = vmatmul.mubr.msk.f32.gmra.mxu0 %vm679_vm2, %v660_v61 }
  0x88   : > { %12391 = vmatmul.mubr.msk.f32.gmra.mxu1 %vm679_vm2, %v614_v62  ;;  %12256 = vmatprep.mubr.msk.f32.mxu0 %vm13914_vm1, %v18005_v1 }
  0x89   : > { %12393 = vmatprep.mubr.msk.f32.mxu1 %vm13914_vm1, %v18005_v1 }
  0x8b   : > { %12257 = vmatmul.mubr.msk.f32.gmra.mxu0 %vm679_vm2, %v661_v63 }
  0x8c   : > { %12394 = vmatmul.mubr.msk.f32.gmra.mxu1 %vm679_vm2, %v615_v0  ;;  %12259 = vmatprep.mubr.msk.f32.mxu0 %vm13914_vm1, %v18005_v1 }
  0x8d   : > { %12396 = vmatprep.mubr.msk.f32.mxu1 %vm13914_vm1, %v18005_v1 }
  0x8f   : > { %12260 = vmatmul.mubr.msk.f32.gmra.mxu0 %vm679_vm2, %v662_v2  ;;  %v1544_v2 = vld [vmem:[%s14040_s23 + $0x3a] sm:$0xff] }
  0x90   : > { %12397 = vmatmul.mubr.msk.f32.gmra.mxu1 %vm679_vm2, %v616_v3  ;;  %12262 = vmatprep.mubr.msk.f32.mxu0 %vm13914_vm1, %v18005_v1  ;;  %v2064_v3 = vld [vmem:[%s14040_s23 + $0x4c] sm:$0xff] }
  0x91   : > { %12399 = vmatprep.mubr.msk.f32.mxu1 %vm13914_vm1, %v18005_v1 }
  0x93   : > { %12263 = vmatmul.mubr.msk.f32.gmra.mxu0 %vm679_vm2, %v663_v4 }
  0x94   : > { %12400 = vmatmul.mubr.msk.f32.gmra.mxu1 %vm679_vm2, %v617_v5  ;;  %12265 = vmatprep.mubr.msk.f32.mxu0 %vm13914_vm1, %v18005_v1 }
  0x95   : > { %12402 = vmatprep.mubr.msk.f32.mxu1 %vm13914_vm1, %v18005_v1 }
  0x97   : > { %12266 = vmatmul.mubr.msk.f32.gmra.mxu0 %vm679_vm2, %v664_v6 }
  0x98   : > { %12403 = vmatmul.mubr.msk.f32.gmra.mxu1 %vm679_vm2, %v618_v7  ;;  %12268 = vmatprep.mubr.msk.f32.mxu0 %vm13914_vm1, %v18005_v1 }
  0x99   : > { %12405 = vmatprep.mubr.msk.f32.mxu1 %vm13914_vm1, %v18005_v1 }
  0x9b   : > { %12269 = vmatmul.mubr.msk.f32.gmra.mxu0 %vm679_vm2, %v665_v8 }
  0x9c   : > { %12406 = vmatmul.mubr.msk.f32.gmra.mxu1 %vm679_vm2, %v619_v9  ;;  %12271 = vmatprep.mubr.msk.f32.mxu0 %vm13914_vm1, %v18005_v1  ;;  %v1545_v9 = vld [vmem:[%s14040_s23 + $0x42] sm:$0xff] }
  0x9d   : > { %12408 = vmatprep.mubr.msk.f32.mxu1 %vm13914_vm1, %v18005_v1 }
  0x9f   : > { %12272 = vmatmul.mubr.msk.f32.gmra.mxu0 %vm679_vm2, %v666_v10  ;;  %v2065_v10 = vld [vmem:[%s14040_s23 + $0x54] sm:$0xff] }
  0xa0   : > { %12409 = vmatmul.mubr.msk.f32.gmra.mxu1 %vm679_vm2, %v620_v11  ;;  %12274 = vmatprep.mubr.msk.f32.mxu0 %vm13914_vm1, %v18005_v1 }
  0xa1   : > { %12411 = vmatprep.mubr.msk.f32.mxu1 %vm13914_vm1, %v18005_v1 }
  0xa3   : > { %12275 = vmatmul.mubr.msk.f32.gmra.mxu0 %vm679_vm2, %v667_v12 }
  0xa4   : > { %12412 = vmatmul.mubr.msk.f32.gmra.mxu1 %vm679_vm2, %v621_v13  ;;  %12277 = vmatprep.mubr.msk.f32.mxu0 %vm13914_vm1, %v18005_v1 }
  0xa5   : > { %12414 = vmatprep.mubr.msk.f32.mxu1 %vm13914_vm1, %v18005_v1 }
  0xa7   : > { %12278 = vmatmul.mubr.msk.f32.gmra.mxu0 %vm679_vm2, %v668_v14 }
  0xa8   : > { %12415 = vmatmul.mubr.msk.f32.gmra.mxu1 %vm679_vm2, %v622_v15  ;;  %12280 = vmatprep.mubr.msk.f32.mxu0 %vm13914_vm1, %v18005_v1 }
  0xa9   : > { %12417 = vmatprep.mubr.msk.f32.mxu1 %vm13914_vm1, %v18005_v1 }
  0xab   : > { %12281 = vmatmul.mubr.msk.f32.gmra.mxu0 %vm679_vm2, %v669_v16  ;;  %v1546_v16 = vld [vmem:[%s14040_s23 + $0x4a] sm:$0xff] }
  0xac   : > { %12418 = vmatmul.mubr.msk.f32.gmra.mxu1 %vm679_vm2, %v623_v17  ;;  %12283 = vmatprep.mubr.msk.f32.mxu0 %vm13914_vm1, %v18005_v1  ;;  %v2066_v17 = vld [vmem:[%s14040_s23 + $0x5c] sm:$0xff] }
  0xad   : > { %12420 = vmatprep.mubr.msk.f32.mxu1 %vm13914_vm1, %v18005_v1 }
  0xaf   : > { %12284 = vmatmul.mubr.msk.f32.gmra.mxu0 %vm679_vm2, %v670_v18 }
  0xb0   : > { %12421 = vmatmul.mubr.msk.f32.gmra.mxu1 %vm679_vm2, %v624_v19  ;;  %12286 = vmatprep.mubr.msk.f32.mxu0 %vm13914_vm1, %v18005_v1 }
  0xb1   : > { %12423 = vmatprep.mubr.msk.f32.mxu1 %vm13914_vm1, %v18005_v1 }
  0xb3   : > { %12287 = vmatmul.mubr.msk.f32.gmra.mxu0 %vm679_vm2, %v671_v20 }
  0xb4   : > { %12424 = vmatmul.mubr.msk.f32.gmra.mxu1 %vm679_vm2, %v625_v21  ;;  %12289 = vmatprep.mubr.msk.f32.mxu0 %vm13914_vm1, %v18005_v1 }
  0xb5   : > { %12426 = vmatprep.mubr.msk.f32.mxu1 %vm13914_vm1, %v18005_v1 }
  0xb7   : > { %12290 = vmatmul.mubr.msk.f32.gmra.mxu0 %vm679_vm2, %v672_v22 }
  0xb8   : > { %12427 = vmatmul.mubr.msk.f32.gmra.mxu1 %vm679_vm2, %v626_v23  ;;  %12292 = vmatprep.mubr.msk.f32.mxu0 %vm13914_vm1, %v18005_v1  ;;  %v1547_v23 = vld [vmem:[%s14040_s23 + $0x52] sm:$0xff] }
  0xb9   : > { %12429 = vmatprep.mubr.msk.f32.mxu1 %vm13914_vm1, %v18005_v1 }
  0xbb   : > { %12293 = vmatmul.mubr.msk.f32.gmra.mxu0 %vm679_vm2, %v673_v24  ;;  %v2067_v24 = vld [vmem:[%s14040_s23 + $0x64] sm:$0xff] }
  0xbc   : > { %12430 = vmatmul.mubr.msk.f32.gmra.mxu1 %vm679_vm2, %v627_v25  ;;  %12295 = vmatprep.mubr.msk.f32.mxu0 %vm13914_vm1, %v18005_v1 }
  0xbd   : > { %12432 = vmatprep.mubr.msk.f32.mxu1 %vm13914_vm1, %v18005_v1 }
  0xbf   : > { %12296 = vmatmul.mubr.msk.f32.gmra.mxu0 %vm679_vm2, %v674_v26 }
  0xc0   : > { %12433 = vmatmul.mubr.msk.f32.gmra.mxu1 %vm679_vm2, %v628_v27  ;;  %12298 = vmatprep.mubr.msk.f32.mxu0 %vm13914_vm1, %v18005_v1 }
  0xc1   : > { %12435 = vmatprep.mubr.msk.f32.mxu1 %vm13914_vm1, %v18005_v1 }
  0xc3   : > { %12299 = vmatmul.mubr.msk.f32.gmra.mxu0 %vm679_vm2, %v675_v28 }
  0xc4   : > { %12436 = vmatmul.mubr.msk.f32.gmra.mxu1 %vm679_vm2, %v629_v29  ;;  %12301 = vmatprep.mubr.msk.f32.mxu0 %vm13914_vm1, %v18005_v1 }
  0xc5   : > { %12438 = vmatprep.mubr.msk.f32.mxu1 %vm13914_vm1, %v18005_v1 }
  0xc7   : > { %12302 = vmatmul.mubr.msk.f32.gmra.mxu0 %vm679_vm2, %v676_v30  ;;  %v1548_v30 = vld [vmem:[%s14040_s23 + $0x5a] sm:$0xff] }
  0xc8   : > { %12439 = vmatmul.mubr.msk.f32.gmra.mxu1 %vm679_vm2, %v630_v31  ;;  %12443 = vmatprep.mubr.msk.f32.mxu0 %vm13914_vm1, %v18005_v1  ;;  %v2068_v31 = vld [vmem:[%s14040_s23 + $0x6c] sm:$0xff] }
  0xc9   : > { %12580 = vmatprep.mubr.msk.f32.mxu1 %vm13914_vm1, %v18005_v1 }
  0xcb   : > { %12444 = vmatmul.mubr.msk.f32.vlgmr.msra.gmra.mxu0 %vm679_vm2, %v1537_v32 }
  0xcc   : > { %12581 = vmatmul.mubr.msk.f32.vlgmr.msra.gmra.mxu1 %vm679_vm2, %v2057_v33  ;;  %12716 = vmatpush3.msk.msra.mxu0 %vm815_vm0, %v10750_v34 }
  0xcd   : > { %12446 = vmatprep.mubr.msk.f32.mxu0 %vm13914_vm1, %v18005_v1  ;;  %12583 = vmatprep.mubr.msk.f32.mxu1 %vm13914_vm1, %v18005_v1 }
  0xce   : > { %12989 = vmatprep.subr.mxu0 %v18005_v1 }
  0xcf   : > { %12447 = vmatmul.mubr.msk.f32.gmra.mxu0 %vm679_vm2, %v1538_v35 }
  0xd0   : > { %12584 = vmatmul.mubr.msk.f32.gmra.mxu1 %vm679_vm2, %v2058_v36  ;;  %12449 = vmatprep.mubr.msk.f32.mxu0 %vm13914_vm1, %v18005_v1 }
  0xd1   : > { %12586 = vmatprep.mubr.msk.f32.mxu1 %vm13914_vm1, %v18005_v1 }
  0xd3   : > { %12450 = vmatmul.mubr.msk.f32.gmra.mxu0 %vm679_vm2, %v1539_v37  ;;  %v1549_v37 = vld [vmem:[%s14040_s23 + $0x62] sm:$0xff] }
  0xd4   : > { %12587 = vmatmul.mubr.msk.f32.gmra.mxu1 %vm679_vm2, %v2059_v38  ;;  %12452 = vmatprep.mubr.msk.f32.mxu0 %vm13914_vm1, %v18005_v1  ;;  %v2069_v38 = vld [vmem:[%s14040_s23 + $0x74] sm:$0xff] }
  0xd5   : > { %12589 = vmatprep.mubr.msk.f32.mxu1 %vm13914_vm1, %v18005_v1 }
  0xd7   : > { %v885_v41 = vpop.f32.mrf.mxu0  ;;  %12453 = vmatmul.mubr.msk.f32.gmra.mxu0 %vm679_vm2, %v1540_v39 }
  0xd8   : > { %v1313_v42 = vpop.f32.mrf.mxu1  ;;  %12590 = vmatmul.mubr.msk.f32.gmra.mxu1 %vm679_vm2, %v2060_v40  ;;  %12455 = vmatprep.mubr.msk.f32.mxu0 %vm13914_vm1, %v18005_v1 }
  0xd9   : > { %v14445_v43 = vadd.f32 %v1313_v42, %v885_v41  ;;  %12592 = vmatprep.mubr.msk.f32.mxu1 %vm13914_vm1, %v18005_v1  ;;  %v12171_v46 = vpop.f32.mrf.mxu0 }
  0xda   : > { %v12308_v47 = vpop.f32.mrf.mxu1  ;;  %v2070_v46 = vld [vmem:[%s14040_s23 + $0x7c] sm:$0xff] }
  0xdb   : > { %v890_v48 = vpop.f32.mrf.mxu0  ;;  %12456 = vmatmul.mubr.msk.f32.gmra.mxu0 %vm679_vm2, %v1541_v44 }
  0xdc   : > { %v1318_v49 = vpop.f32.mrf.mxu1  ;;  %12593 = vmatmul.mubr.msk.f32.gmra.mxu1 %vm679_vm2, %v2061_v45  ;;  %12458 = vmatprep.mubr.msk.f32.mxu0 %vm13914_vm1, %v18005_v1  ;;  %v1550_v45 = vld [vmem:[%s14040_s23 + $0x6a] sm:$0xff] }
  0xdd   : > { %v14455_v50 = vadd.f32 %v1318_v49, %v890_v48  ;;  %12595 = vmatprep.mubr.msk.f32.mxu1 %vm13914_vm1, %v18005_v1  ;;  %v12174_v53 = vpop.f32.mrf.mxu0  ;;  %v10797_v49 = vld [vmem:[%s18013_s0 + $0x14] sm:$0x7] }
  0xde   : > { %v12311_v54 = vpop.f32.mrf.mxu1  ;;  %12853 = vmatpush3.msk.msra.mxu1 %vm815_vm0, %v10797_v49  ;;  %v1558_v49 = vld [vmem:[%s14040_s23 + $0xaa] sm:$0xff] }
  0xdf   : > { %v895_v55 = vpop.f32.mrf.mxu0  ;;  %12459 = vmatmul.mubr.msk.f32.gmra.mxu0 %vm679_vm2, %v1542_v51  ;;  %v1551_v54 = vld [vmem:[%s14040_s23 + $0x72] sm:$0xff]  ;;  %13126 = vmatprep.subr.mxu1 %v18005_v1 }
  0xe0   : > { %v1323_v56 = vpop.f32.mrf.mxu1  ;;  %12596 = vmatmul.mubr.msk.f32.gmra.mxu1 %vm679_vm2, %v2062_v52  ;;  %12461 = vmatprep.mubr.msk.f32.mxu0 %vm13914_vm1, %v18005_v1 }
  0xe1   : > { %v14465_v57 = vadd.f32 %v1323_v56, %v895_v55  ;;  %12598 = vmatprep.mubr.msk.f32.mxu1 %vm13914_vm1, %v18005_v1  ;;  %v12177_v60 = vpop.f32.mrf.mxu0  ;;  %v2071_v55 = vld [vmem:[%s14040_s23 + $0x84] sm:$0xff] }
  0xe2   : > { %v12314_v61 = vpop.f32.mrf.mxu1 }
  0xe3   : > { %v900_v62 = vpop.f32.mrf.mxu0  ;;  %12462 = vmatmul.mubr.msk.f32.gmra.mxu0 %vm679_vm2, %v1543_v58 }
  0xe4   : > { %v1328_v63 = vpop.f32.mrf.mxu1  ;;  %12599 = vmatmul.mubr.msk.f32.gmra.mxu1 %vm679_vm2, %v2063_v59  ;;  %12464 = vmatprep.mubr.msk.f32.mxu0 %vm13914_vm1, %v18005_v1 }
  0xe5   : > { %v14475_v0 = vadd.f32 %v1328_v63, %v900_v62  ;;  %12601 = vmatprep.mubr.msk.f32.mxu1 %vm13914_vm1, %v18005_v1  ;;  %v12180_v4 = vpop.f32.mrf.mxu0  ;;  %v1552_v62 = vld [vmem:[%s14040_s23 + $0x7a] sm:$0xff]  ;;  %v2072_v63 = vld [vmem:[%s14040_s23 + $0x8c] sm:$0xff] }
  0xe6   : > { %v12317_v5 = vpop.f32.mrf.mxu1 }
  0xe7   : > { %v905_v6 = vpop.f32.mrf.mxu0  ;;  %12465 = vmatmul.mubr.msk.f32.gmra.mxu0 %vm679_vm2, %v1544_v2 }
  0xe8   : > { %v1333_v7 = vpop.f32.mrf.mxu1  ;;  %12602 = vmatmul.mubr.msk.f32.gmra.mxu1 %vm679_vm2, %v2064_v3  ;;  %12467 = vmatprep.mubr.msk.f32.mxu0 %vm13914_vm1, %v18005_v1 }
  0xe9   : > { %v14485_v8 = vadd.f32 %v1333_v7, %v905_v6  ;;  %12604 = vmatprep.mubr.msk.f32.mxu1 %vm13914_vm1, %v18005_v1  ;;  %v12183_v11 = vpop.f32.mrf.mxu0  ;;  %v1553_v7 = vld [vmem:[%s14040_s23 + $0x82] sm:$0xff] }
  0xea   : > { %v12320_v12 = vpop.f32.mrf.mxu1 }
  0xeb   : > { %v910_v13 = vpop.f32.mrf.mxu0  ;;  %12468 = vmatmul.mubr.msk.f32.gmra.mxu0 %vm679_vm2, %v1545_v9  ;;  %v2073_v9 = vld [vmem:[%s14040_s23 + $0x94] sm:$0xff] }
  0xec   : > { %v1338_v14 = vpop.f32.mrf.mxu1  ;;  %12605 = vmatmul.mubr.msk.f32.gmra.mxu1 %vm679_vm2, %v2065_v10  ;;  %12470 = vmatprep.mubr.msk.f32.mxu0 %vm13914_vm1, %v18005_v1 }
  0xed   : > { %v14495_v15 = vadd.f32 %v1338_v14, %v910_v13  ;;  %12607 = vmatprep.mubr.msk.f32.mxu1 %vm13914_vm1, %v18005_v1  ;;  %v12186_v18 = vpop.f32.mrf.mxu0 }
  0xee   : > { %v12323_v19 = vpop.f32.mrf.mxu1 }
  0xef   : > { %v915_v20 = vpop.f32.mrf.mxu0  ;;  %12471 = vmatmul.mubr.msk.f32.gmra.mxu0 %vm679_vm2, %v1546_v16  ;;  %v1554_v16 = vld [vmem:[%s14040_s23 + $0x8a] sm:$0xff] }
  0xf0   : > { %v1343_v21 = vpop.f32.mrf.mxu1  ;;  %12608 = vmatmul.mubr.msk.f32.gmra.mxu1 %vm679_vm2, %v2066_v17  ;;  %12473 = vmatprep.mubr.msk.f32.mxu0 %vm13914_vm1, %v18005_v1  ;;  %v2074_v17 = vld [vmem:[%s14040_s23 + $0x9c] sm:$0xff] }
  0xf1   : > { %v14505_v22 = vadd.f32 %v1343_v21, %v915_v20  ;;  %12610 = vmatprep.mubr.msk.f32.mxu1 %vm13914_vm1, %v18005_v1  ;;  %v12189_v25 = vpop.f32.mrf.mxu0 }
  0xf2   : > { %v12326_v26 = vpop.f32.mrf.mxu1  ;;  %v2075_v25 = vld [vmem:[%s14040_s23 + $0xa4] sm:$0xff] }
  0xf3   : > { %v920_v27 = vpop.f32.mrf.mxu0  ;;  %12474 = vmatmul.mubr.msk.f32.gmra.mxu0 %vm679_vm2, %v1547_v23 }
  0xf4   : > { %v1348_v28 = vpop.f32.mrf.mxu1  ;;  %12611 = vmatmul.mubr.msk.f32.gmra.mxu1 %vm679_vm2, %v2067_v24  ;;  %12476 = vmatprep.mubr.msk.f32.mxu0 %vm13914_vm1, %v18005_v1  ;;  %v1555_v24 = vld [vmem:[%s14040_s23 + $0x92] sm:$0xff] }
  0xf5   : > { %v14515_v29 = vadd.f32 %v1348_v28, %v920_v27  ;;  %12613 = vmatprep.mubr.msk.f32.mxu1 %vm13914_vm1, %v18005_v1  ;;  %v12192_v32 = vpop.f32.mrf.mxu0 }
  0xf6   : > { %v12329_v33 = vpop.f32.mrf.mxu1  ;;  %v1556_v32 = vld [vmem:[%s14040_s23 + $0x9a] sm:$0xff] }
  0xf7   : > { %v925_v34 = vpop.f32.mrf.mxu0  ;;  %12477 = vmatmul.mubr.msk.f32.gmra.mxu0 %vm679_vm2, %v1548_v30  ;;  %v2076_v33 = vld [vmem:[%s14040_s23 + $0xac] sm:$0xff] }
  0xf8   : > { %v1353_v35 = vpop.f32.mrf.mxu1  ;;  %12614 = vmatmul.mubr.msk.f32.gmra.mxu1 %vm679_vm2, %v2068_v31  ;;  %12479 = vmatprep.mubr.msk.f32.mxu0 %vm13914_vm1, %v18005_v1 }
  0xf9   : > { %v14525_v36 = vadd.f32 %v1353_v35, %v925_v34  ;;  %12616 = vmatprep.mubr.msk.f32.mxu1 %vm13914_vm1, %v18005_v1  ;;  %v12195_v39 = vpop.f32.mrf.mxu0 }
  0xfa   : > { %v12332_v40 = vpop.f32.mrf.mxu1 }
  0xfb   : > { %v930_v41 = vpop.f32.mrf.mxu0  ;;  %12480 = vmatmul.mubr.msk.f32.gmra.mxu0 %vm679_vm2, %v1549_v37  ;;  %v1557_v40 = vld [vmem:[%s14040_s23 + $0xa2] sm:$0xff] }
  0xfc   : > { %v1358_v42 = vpop.f32.mrf.mxu1  ;;  %12617 = vmatmul.mubr.msk.f32.gmra.mxu1 %vm679_vm2, %v2069_v38  ;;  %12482 = vmatprep.mubr.msk.f32.mxu0 %vm13914_vm1, %v18005_v1 }
  0xfd   : > { %v14535_v44 = vadd.f32 %v1358_v42, %v930_v41  ;;  %12619 = vmatprep.mubr.msk.f32.mxu1 %vm13914_vm1, %v18005_v1  ;;  %v12198_v47 = vpop.f32.mrf.mxu0  ;;  %v2077_v41 = vld [vmem:[%s14040_s23 + $0xb4] sm:$0xff] }
  0xfe   : > { %v12335_v48 = vpop.f32.mrf.mxu1 }
  0xff   : > { %v935_v51 = vpop.f32.mrf.mxu0  ;;  %12483 = vmatmul.mubr.msk.f32.gmra.mxu0 %vm679_vm2, %v1550_v45 }
 0x100   : > { %v1363_v52 = vpop.f32.mrf.mxu1  ;;  %12620 = vmatmul.mubr.msk.f32.gmra.mxu1 %vm679_vm2, %v2070_v46  ;;  %12485 = vmatprep.mubr.msk.f32.mxu0 %vm13914_vm1, %v18005_v1 }
 0x101   : > { %v14549_v53 = vadd.f32 %v1363_v52, %v935_v51  ;;  %12622 = vmatprep.mubr.msk.f32.mxu1 %vm13914_vm1, %v18005_v1  ;;  %v12201_v56 = vpop.f32.mrf.mxu0  ;;  %v2078_v51 = vld [vmem:[%s14040_s23 + $0xbc] sm:$0xff] }
 0x102   : > { %v12338_v58 = vpop.f32.mrf.mxu1 }
 0x103   : > { %v940_v59 = vpop.f32.mrf.mxu0  ;;  %12486 = vmatmul.mubr.msk.f32.gmra.mxu0 %vm679_vm2, %v1551_v54 }
 0x104   : > { %v1368_v60 = vpop.f32.mrf.mxu1  ;;  %12623 = vmatmul.mubr.msk.f32.gmra.mxu1 %vm679_vm2, %v2071_v55  ;;  %12488 = vmatprep.mubr.msk.f32.mxu0 %vm13914_vm1, %v18005_v1 }
 0x105   : > { %v14560_v61 = vadd.f32 %v1368_v60, %v940_v59  ;;  %12625 = vmatprep.mubr.msk.f32.mxu1 %vm13914_vm1, %v18005_v1  ;;  %v12204_v2 = vpop.f32.mrf.mxu0  ;;  %v1559_v59 = vld [vmem:[%s14040_s23 + $0xb2] sm:$0xff]  ;;  %v2079_v60 = vld [vmem:[%s14040_s23 + $0xc4] sm:$0xff] }
 0x106   : > { %v12341_v3 = vpop.f32.mrf.mxu1 }
 0x107   : > { %v945_v4 = vpop.f32.mrf.mxu0  ;;  %12489 = vmatmul.mubr.msk.f32.gmra.mxu0 %vm679_vm2, %v1552_v62 }
 0x108   : > { %v1373_v5 = vpop.f32.mrf.mxu1  ;;  %12626 = vmatmul.mubr.msk.f32.gmra.mxu1 %vm679_vm2, %v2072_v63  ;;  %12491 = vmatprep.mubr.msk.f32.mxu0 %vm13914_vm1, %v18005_v1 }
 0x109   : > { %v14570_v6 = vadd.f32 %v1373_v5, %v945_v4  ;;  %12628 = vmatprep.mubr.msk.f32.mxu1 %vm13914_vm1, %v18005_v1  ;;  %v12207_v10 = vpop.f32.mrf.mxu0  ;;  %v1560_v5 = vld [vmem:[%s14040_s23 + $0xba] sm:$0xff] }
 0x10a   : > { %v12344_v11 = vpop.f32.mrf.mxu1 }
 0x10b   : > { %v950_v12 = vpop.f32.mrf.mxu0  ;;  %12492 = vmatmul.mubr.msk.f32.gmra.mxu0 %vm679_vm2, %v1553_v7  ;;  %v2080_v7 = vld [vmem:[%s14040_s23 + $0xcc] sm:$0xff] }
 0x10c   : > { %v1378_v13 = vpop.f32.mrf.mxu1  ;;  %12629 = vmatmul.mubr.msk.f32.gmra.mxu1 %vm679_vm2, %v2073_v9  ;;  %12494 = vmatprep.mubr.msk.f32.mxu0 %vm13914_vm1, %v18005_v1 }
 0x10d   : > { %v14580_v14 = vadd.f32 %v1378_v13, %v950_v12  ;;  %12631 = vmatprep.mubr.msk.f32.mxu1 %vm13914_vm1, %v18005_v1  ;;  %v12210_v18 = vpop.f32.mrf.mxu0 }
 0x10e   : > { %v12347_v19 = vpop.f32.mrf.mxu1 }
 0x10f   : > { %v955_v20 = vpop.f32.mrf.mxu0  ;;  %12495 = vmatmul.mubr.msk.f32.gmra.mxu0 %vm679_vm2, %v1554_v16  ;;  %v1561_v16 = vld [vmem:[%s14040_s23 + $0xc2] sm:$0xff] }
 0x110   : > { %v1383_v21 = vpop.f32.mrf.mxu1  ;;  %12632 = vmatmul.mubr.msk.f32.gmra.mxu1 %vm679_vm2, %v2074_v17  ;;  %12497 = vmatprep.mubr.msk.f32.mxu0 %vm13914_vm1, %v18005_v1  ;;  %v2081_v17 = vld [vmem:[%s14040_s23 + $0xd4] sm:$0xff] }
 0x111   : > { %v14590_v23 = vadd.f32 %v1383_v21, %v955_v20  ;;  %12634 = vmatprep.mubr.msk.f32.mxu1 %vm13914_vm1, %v18005_v1  ;;  %v12213_v26 = vpop.f32.mrf.mxu0 }
 0x112   : > { %v12350_v27 = vpop.f32.mrf.mxu1  ;;  %v2082_v26 = vld [vmem:[%s14040_s23 + $0xdc] sm:$0xff] }
 0x113   : > { %v960_v28 = vpop.f32.mrf.mxu0  ;;  %12498 = vmatmul.mubr.msk.f32.gmra.mxu0 %vm679_vm2, %v1555_v24 }
 0x114   : > { %v1388_v30 = vpop.f32.mrf.mxu1  ;;  %12635 = vmatmul.mubr.msk.f32.gmra.mxu1 %vm679_vm2, %v2075_v25  ;;  %12500 = vmatprep.mubr.msk.f32.mxu0 %vm13914_vm1, %v18005_v1  ;;  %v1562_v25 = vld [vmem:[%s14040_s23 + $0xca] sm:$0xff] }
 0x115   : > { %v14600_v31 = vadd.f32 %v1388_v30, %v960_v28  ;;  %12637 = vmatprep.mubr.msk.f32.mxu1 %vm13914_vm1, %v18005_v1  ;;  %v12216_v34 = vpop.f32.mrf.mxu0 }
 0x116   : > { %v12353_v35 = vpop.f32.mrf.mxu1  ;;  %v1563_v34 = vld [vmem:[%s14040_s23 + $0xd2] sm:$0xff] }
 0x117   : > { %v965_v37 = vpop.f32.mrf.mxu0  ;;  %12501 = vmatmul.mubr.msk.f32.gmra.mxu0 %vm679_vm2, %v1556_v32  ;;  %v2083_v35 = vld [vmem:[%s14040_s23 + $0xe4] sm:$0xff] }
 0x118   : > { %v1393_v38 = vpop.f32.mrf.mxu1  ;;  %12638 = vmatmul.mubr.msk.f32.gmra.mxu1 %vm679_vm2, %v2076_v33  ;;  %12503 = vmatprep.mubr.msk.f32.mxu0 %vm13914_vm1, %v18005_v1 }
 0x119   : > { %v14610_v39 = vadd.f32 %v1393_v38, %v965_v37  ;;  %12640 = vmatprep.mubr.msk.f32.mxu1 %vm13914_vm1, %v18005_v1  ;;  %v12219_v42 = vpop.f32.mrf.mxu0 }
 0x11a   : > { %v12356_v45 = vpop.f32.mrf.mxu1 }
 0x11b   : > { %v970_v46 = vpop.f32.mrf.mxu0  ;;  %12504 = vmatmul.mubr.msk.f32.gmra.mxu0 %vm679_vm2, %v1557_v40  ;;  %v1564_v45 = vld [vmem:[%s14040_s23 + $0xda] sm:$0xff] }
 0x11c   : > { %v1398_v47 = vpop.f32.mrf.mxu1  ;;  %12641 = vmatmul.mubr.msk.f32.gmra.mxu1 %vm679_vm2, %v2077_v41  ;;  %12506 = vmatprep.mubr.msk.f32.mxu0 %vm13914_vm1, %v18005_v1 }
 0x11d   : > { %v14620_v48 = vadd.f32 %v1398_v47, %v970_v46  ;;  %12643 = vmatprep.mubr.msk.f32.mxu1 %vm13914_vm1, %v18005_v1  ;;  %v12222_v52 = vpop.f32.mrf.mxu0  ;;  %v2084_v46 = vld [vmem:[%s14040_s23 + $0xec] sm:$0xff] }
 0x11e   : > { %v12359_v54 = vpop.f32.mrf.mxu1 }
 0x11f   : > { %v975_v55 = vpop.f32.mrf.mxu0  ;;  %12507 = vmatmul.mubr.msk.f32.gmra.mxu0 %vm679_vm2, %v1558_v49 }
 0x120   : > { %v1403_v56 = vpop.f32.mrf.mxu1  ;;  %12644 = vmatmul.mubr.msk.f32.gmra.mxu1 %vm679_vm2, %v2078_v51  ;;  %12509 = vmatprep.mubr.msk.f32.mxu0 %vm13914_vm1, %v18005_v1 }
 0x121   : > { %v14630_v58 = vadd.f32 %v1403_v56, %v975_v55  ;;  %12646 = vmatprep.mubr.msk.f32.mxu1 %vm13914_vm1, %v18005_v1  ;;  %v12225_v62 = vpop.f32.mrf.mxu0  ;;  %v1565_v55 = vld [vmem:[%s14040_s23 + $0xe2] sm:$0xff]  ;;  %v2085_v56 = vld [vmem:[%s14040_s23 + $0xf4] sm:$0xff] }
 0x122   : > { %v12362_v63 = vpop.f32.mrf.mxu1 }
 0x123   : > { %v980_v2 = vpop.f32.mrf.mxu0  ;;  %12510 = vmatmul.mubr.msk.f32.gmra.mxu0 %vm679_vm2, %v1559_v59 }
 0x124   : > { %v1408_v3 = vpop.f32.mrf.mxu1  ;;  %12647 = vmatmul.mubr.msk.f32.gmra.mxu1 %vm679_vm2, %v2079_v60  ;;  %12512 = vmatprep.mubr.msk.f32.mxu0 %vm13914_vm1, %v18005_v1 }
 0x125   : > { %v14640_v4 = vadd.f32 %v1408_v3, %v980_v2  ;;  %12649 = vmatprep.mubr.msk.f32.mxu1 %vm13914_vm1, %v18005_v1  ;;  %v12228_v9 = vpop.f32.mrf.mxu0  ;;  %v1566_v3 = vld [vmem:[%s14040_s23 + $0xea] sm:$0xff] }
 0x126   : > { %v12365_v10 = vpop.f32.mrf.mxu1 }
 0x127   : > { %v985_v11 = vpop.f32.mrf.mxu0  ;;  %12513 = vmatmul.mubr.msk.f32.gmra.mxu0 %vm679_vm2, %v1560_v5  ;;  %v2086_v5 = vld [vmem:[%s14040_s23 + $0xfc] sm:$0xff] }
 0x128   : > { %v1413_v12 = vpop.f32.mrf.mxu1  ;;  %12650 = vmatmul.mubr.msk.f32.gmra.mxu1 %vm679_vm2, %v2080_v7  ;;  %12515 = vmatprep.mubr.msk.f32.mxu0 %vm13914_vm1, %v18005_v1 }
 0x129   : > { %v14650_v13 = vadd.f32 %v1413_v12, %v985_v11  ;;  %12652 = vmatprep.mubr.msk.f32.mxu1 %vm13914_vm1, %v18005_v1  ;;  %v12231_v18 = vpop.f32.mrf.mxu0 }
 0x12a   : > { %v12368_v19 = vpop.f32.mrf.mxu1 }
 0x12b   : > { %v990_v20 = vpop.f32.mrf.mxu0  ;;  %12516 = vmatmul.mubr.msk.f32.gmra.mxu0 %vm679_vm2, %v1561_v16  ;;  %v1567_v16 = vld [vmem:[%s14040_s23 + $0xf2] sm:$0xff] }
 0x12c   : > { %v1418_v21 = vpop.f32.mrf.mxu1  ;;  %12653 = vmatmul.mubr.msk.f32.gmra.mxu1 %vm679_vm2, %v2081_v17  ;;  %12518 = vmatprep.mubr.msk.f32.mxu0 %vm13914_vm1, %v18005_v1  ;;  %v2087_v17 = vld [vmem:[%s14040_s23 + $0x104] sm:$0xff] }
 0x12d   : > { %v14660_v24 = vadd.f32 %v1418_v21, %v990_v20  ;;  %12655 = vmatprep.mubr.msk.f32.mxu1 %vm13914_vm1, %v18005_v1  ;;  %v12234_v27 = vpop.f32.mrf.mxu0 }
 0x12e   : > { %v12371_v28 = vpop.f32.mrf.mxu1  ;;  %v2088_v27 = vld [vmem:[%s14040_s23 + $0x10c] sm:$0xff] }
 0x12f   : > { %v995_v30 = vpop.f32.mrf.mxu0  ;;  %12519 = vmatmul.mubr.msk.f32.gmra.mxu0 %vm679_vm2, %v1562_v25 }
 0x130   : > { %v1423_v32 = vpop.f32.mrf.mxu1  ;;  %12656 = vmatmul.mubr.msk.f32.gmra.mxu1 %vm679_vm2, %v2082_v26  ;;  %12521 = vmatprep.mubr.msk.f32.mxu0 %vm13914_vm1, %v18005_v1  ;;  %v1568_v26 = vld [vmem:[%s14040_s23 + $0xfa] sm:$0xff] }
 0x131   : > { %v14670_v33 = vadd.f32 %v1423_v32, %v995_v30  ;;  %12658 = vmatprep.mubr.msk.f32.mxu1 %vm13914_vm1, %v18005_v1  ;;  %v12237_v37 = vpop.f32.mrf.mxu0 }
 0x132   : > { %v12374_v38 = vpop.f32.mrf.mxu1  ;;  %v1569_v37 = vld [vmem:[%s14040_s23 + $0x102] sm:$0xff] }
 0x133   : > { %v1000_v40 = vpop.f32.mrf.mxu0  ;;  %12522 = vmatmul.mubr.msk.f32.gmra.mxu0 %vm679_vm2, %v1563_v34  ;;  %v2089_v38 = vld [vmem:[%s14040_s23 + $0x114] sm:$0xff] }
 0x134   : > { %v1428_v41 = vpop.f32.mrf.mxu1  ;;  %12659 = vmatmul.mubr.msk.f32.gmra.mxu1 %vm679_vm2, %v2083_v35  ;;  %12524 = vmatprep.mubr.msk.f32.mxu0 %vm13914_vm1, %v18005_v1 }
 0x135   : > { %v14680_v42 = vadd.f32 %v1428_v41, %v1000_v40  ;;  %12661 = vmatprep.mubr.msk.f32.mxu1 %vm13914_vm1, %v18005_v1  ;;  %v12240_v47 = vpop.f32.mrf.mxu0 }
 0x136   : > { %v12377_v49 = vpop.f32.mrf.mxu1 }
 0x137   : > { %v1005_v51 = vpop.f32.mrf.mxu0  ;;  %12525 = vmatmul.mubr.msk.f32.gmra.mxu0 %vm679_vm2, %v1564_v45  ;;  %v1570_v49 = vld [vmem:[%s14040_s23 + $0x10a] sm:$0xff] }
 0x138   : > { %v1433_v52 = vpop.f32.mrf.mxu1  ;;  %12662 = vmatmul.mubr.msk.f32.gmra.mxu1 %vm679_vm2, %v2084_v46  ;;  %12527 = vmatprep.mubr.msk.f32.mxu0 %vm13914_vm1, %v18005_v1 }
 0x139   : > { %v14690_v54 = vadd.f32 %v1433_v52, %v1005_v51  ;;  %12664 = vmatprep.mubr.msk.f32.mxu1 %vm13914_vm1, %v18005_v1  ;;  %v12243_v59 = vpop.f32.mrf.mxu0  ;;  %v2090_v51 = vld [vmem:[%s14040_s23 + $0x11c] sm:$0xff] }
 0x13a   : > { %v12380_v60 = vpop.f32.mrf.mxu1 }
 0x13b   : > { %v1010_v62 = vpop.f32.mrf.mxu0  ;;  %12528 = vmatmul.mubr.msk.f32.gmra.mxu0 %vm679_vm2, %v1565_v55 }
 0x13c   : > { %v1438_v63 = vpop.f32.mrf.mxu1  ;;  %12665 = vmatmul.mubr.msk.f32.gmra.mxu1 %vm679_vm2, %v2085_v56  ;;  %12530 = vmatprep.mubr.msk.f32.mxu0 %vm13914_vm1, %v18005_v1 }
 0x13d   : > { %v14700_v2 = vadd.f32 %v1438_v63, %v1010_v62  ;;  %12667 = vmatprep.mubr.msk.f32.mxu1 %vm13914_vm1, %v18005_v1  ;;  %v12246_v7 = vpop.f32.mrf.mxu0  ;;  %v1571_v62 = vld [vmem:[%s14040_s23 + $0x112] sm:$0xff]  ;;  %v2091_v63 = vld [vmem:[%s14040_s23 + $0x124] sm:$0xff] }
 0x13e   : > { %v12383_v9 = vpop.f32.mrf.mxu1 }
 0x13f   : > { %v1015_v10 = vpop.f32.mrf.mxu0  ;;  %12531 = vmatmul.mubr.msk.f32.gmra.mxu0 %vm679_vm2, %v1566_v3 }
 0x140   : > { %v1443_v11 = vpop.f32.mrf.mxu1  ;;  %12668 = vmatmul.mubr.msk.f32.gmra.mxu1 %vm679_vm2, %v2086_v5  ;;  %12533 = vmatprep.mubr.msk.f32.mxu0 %vm13914_vm1, %v18005_v1 }
 0x141   : > { %v14710_v12 = vadd.f32 %v1443_v11, %v1015_v10  ;;  %12670 = vmatprep.mubr.msk.f32.mxu1 %vm13914_vm1, %v18005_v1  ;;  %v12249_v18 = vpop.f32.mrf.mxu0  ;;  %v1572_v11 = vld [vmem:[%s14040_s23 + $0x11a] sm:$0xff] }
 0x142   : > { %v12386_v19 = vpop.f32.mrf.mxu1 }
 0x143   : > { %v1020_v20 = vpop.f32.mrf.mxu0  ;;  %12534 = vmatmul.mubr.msk.f32.gmra.mxu0 %vm679_vm2, %v1567_v16  ;;  %v2092_v16 = vld [vmem:[%s14040_s23 + $0x12c] sm:$0xff] }
 0x144   : > { %v1448_v21 = vpop.f32.mrf.mxu1  ;;  %12671 = vmatmul.mubr.msk.f32.gmra.mxu1 %vm679_vm2, %v2087_v17  ;;  %12536 = vmatprep.mubr.msk.f32.mxu0 %vm13914_vm1, %v18005_v1 }
 0x145   : > { %v14720_v25 = vadd.f32 %v1448_v21, %v1020_v20  ;;  %12673 = vmatprep.mubr.msk.f32.mxu1 %vm13914_vm1, %v18005_v1  ;;  %v12252_v28 = vpop.f32.mrf.mxu0 }
 0x146   : > { %v12389_v30 = vpop.f32.mrf.mxu1 }
 0x147   : > { %v1025_v32 = vpop.f32.mrf.mxu0  ;;  %12537 = vmatmul.mubr.msk.f32.gmra.mxu0 %vm679_vm2, %v1568_v26  ;;  %v1573_v26 = vld [vmem:[%s14040_s23 + $0x122] sm:$0xff] }
 0x148   : > { %v1453_v34 = vpop.f32.mrf.mxu1  ;;  %12674 = vmatmul.mubr.msk.f32.gmra.mxu1 %vm679_vm2, %v2088_v27  ;;  %12539 = vmatprep.mubr.msk.f32.mxu0 %vm13914_vm1, %v18005_v1  ;;  %v2093_v27 = vld [vmem:[%s14040_s23 + $0x134] sm:$0xff] }
 0x149   : > { %v14730_v35 = vadd.f32 %v1453_v34, %v1025_v32  ;;  %12676 = vmatprep.mubr.msk.f32.mxu1 %vm13914_vm1, %v18005_v1  ;;  %v12255_v40 = vpop.f32.mrf.mxu0 }
 0x14a   : > { %v12392_v41 = vpop.f32.mrf.mxu1  ;;  %v2094_v40 = vld [vmem:[%s14040_s23 + $0x13c] sm:$0xff] }
 0x14b   : > { %v1030_v45 = vpop.f32.mrf.mxu0  ;;  %12540 = vmatmul.mubr.msk.f32.gmra.mxu0 %vm679_vm2, %v1569_v37 }
 0x14c   : > { %v1458_v46 = vpop.f32.mrf.mxu1  ;;  %12677 = vmatmul.mubr.msk.f32.gmra.mxu1 %vm679_vm2, %v2089_v38  ;;  %12542 = vmatprep.mubr.msk.f32.mxu0 %vm13914_vm1, %v18005_v1  ;;  %v1574_v38 = vld [vmem:[%s14040_s23 + $0x12a] sm:$0xff] }
 0x14d   : > { %v14740_v47 = vadd.f32 %v1458_v46, %v1030_v45  ;;  %12679 = vmatprep.mubr.msk.f32.mxu1 %vm13914_vm1, %v18005_v1  ;;  %v12258_v52 = vpop.f32.mrf.mxu0 }
 0x14e   : > { %v12395_v55 = vpop.f32.mrf.mxu1  ;;  %v1575_v52 = vld [vmem:[%s14040_s23 + $0x132] sm:$0xff] }
 0x14f   : > { %v1035_v56 = vpop.f32.mrf.mxu0  ;;  %12543 = vmatmul.mubr.msk.f32.gmra.mxu0 %vm679_vm2, %v1570_v49  ;;  %v2095_v55 = vld [vmem:[%s14040_s23 + $0x144] sm:$0xff] }
 0x150   : > { %v1463_v59 = vpop.f32.mrf.mxu1  ;;  %12680 = vmatmul.mubr.msk.f32.gmra.mxu1 %vm679_vm2, %v2090_v51  ;;  %12545 = vmatprep.mubr.msk.f32.mxu0 %vm13914_vm1, %v18005_v1 }
 0x151   : > { %v14750_v60 = vadd.f32 %v1463_v59, %v1035_v56  ;;  %12682 = vmatprep.mubr.msk.f32.mxu1 %vm13914_vm1, %v18005_v1  ;;  %v12261_v3 = vpop.f32.mrf.mxu0 }
 0x152   : > { %v12398_v5 = vpop.f32.mrf.mxu1 }
 0x153   : > { %v1040_v7 = vpop.f32.mrf.mxu0  ;;  %12546 = vmatmul.mubr.msk.f32.gmra.mxu0 %vm679_vm2, %v1571_v62  ;;  %v1576_v5 = vld [vmem:[%s14040_s23 + $0x13a] sm:$0xff] }
 0x154   : > { %v1468_v9 = vpop.f32.mrf.mxu1  ;;  %12683 = vmatmul.mubr.msk.f32.gmra.mxu1 %vm679_vm2, %v2091_v63  ;;  %12548 = vmatprep.mubr.msk.f32.mxu0 %vm13914_vm1, %v18005_v1 }
 0x155   : > { %v14760_v10 = vadd.f32 %v1468_v9, %v1040_v7  ;;  %12685 = vmatprep.mubr.msk.f32.mxu1 %vm13914_vm1, %v18005_v1  ;;  %v12264_v17 = vpop.f32.mrf.mxu0  ;;  %v2096_v7 = vld [vmem:[%s14040_s23 + $0x14c] sm:$0xff] }
 0x156   : > { %v12401_v18 = vpop.f32.mrf.mxu1 }
 0x157   : > { %v1045_v19 = vpop.f32.mrf.mxu0  ;;  %12549 = vmatmul.mubr.msk.f32.gmra.mxu0 %vm679_vm2, %v1572_v11 }
 0x158   : > { %v1473_v20 = vpop.f32.mrf.mxu1  ;;  %12686 = vmatmul.mubr.msk.f32.gmra.mxu1 %vm679_vm2, %v2092_v16  ;;  %12551 = vmatprep.mubr.msk.f32.mxu0 %vm13914_vm1, %v18005_v1 }
 0x159   : > { %v14770_v21 = vadd.f32 %v1473_v20, %v1045_v19  ;;  %12688 = vmatprep.mubr.msk.f32.mxu1 %vm13914_vm1, %v18005_v1  ;;  %v12267_v28 = vpop.f32.mrf.mxu0  ;;  %v1577_v19 = vld [vmem:[%s14040_s23 + $0x142] sm:$0xff]  ;;  %v2097_v20 = vld [vmem:[%s14040_s23 + $0x154] sm:$0xff] }
 0x15a   : > { %v12404_v30 = vpop.f32.mrf.mxu1 }
 0x15b   : > { %v1050_v32 = vpop.f32.mrf.mxu0  ;;  %12552 = vmatmul.mubr.msk.f32.gmra.mxu0 %vm679_vm2, %v1573_v26 }
 0x15c   : > { %v1478_v34 = vpop.f32.mrf.mxu1  ;;  %12689 = vmatmul.mubr.msk.f32.gmra.mxu1 %vm679_vm2, %v2093_v27  ;;  %12554 = vmatprep.mubr.msk.f32.mxu0 %vm13914_vm1, %v18005_v1 }
 0x15d   : > { %v14780_v37 = vadd.f32 %v1478_v34, %v1050_v32  ;;  %12691 = vmatprep.mubr.msk.f32.mxu1 %vm13914_vm1, %v18005_v1  ;;  %v12270_v41 = vpop.f32.mrf.mxu0  ;;  %v1578_v34 = vld [vmem:[%s14040_s23 + $0x14a] sm:$0xff] }
 0x15e   : > { %v12407_v45 = vpop.f32.mrf.mxu1 }
 0x15f   : > { %v1055_v46 = vpop.f32.mrf.mxu0  ;;  %12555 = vmatmul.mubr.msk.f32.gmra.mxu0 %vm679_vm2, %v1574_v38  ;;  %v2098_v38 = vld [vmem:[%s14040_s23 + $0x15c] sm:$0xff] }
 0x160   : > { %v1483_v49 = vpop.f32.mrf.mxu1  ;;  %12692 = vmatmul.mubr.msk.f32.gmra.mxu1 %vm679_vm2, %v2094_v40  ;;  %12557 = vmatprep.mubr.msk.f32.mxu0 %vm13914_vm1, %v18005_v1 }
 0x161   : > { %v14790_v51 = vadd.f32 %v1483_v49, %v1055_v46  ;;  %12694 = vmatprep.mubr.msk.f32.mxu1 %vm13914_vm1, %v18005_v1  ;;  %v12273_v56 = vpop.f32.mrf.mxu0 }
 0x162   : > { %v12410_v59 = vpop.f32.mrf.mxu1 }
 0x163   : > { %v1060_v62 = vpop.f32.mrf.mxu0  ;;  %12558 = vmatmul.mubr.msk.f32.gmra.mxu0 %vm679_vm2, %v1575_v52  ;;  %v1579_v52 = vld [vmem:[%s14040_s23 + $0x152] sm:$0xff] }
 0x164   : > { %v1488_v63 = vpop.f32.mrf.mxu1  ;;  %12695 = vmatmul.mubr.msk.f32.gmra.mxu1 %vm679_vm2, %v2095_v55  ;;  %12560 = vmatprep.mubr.msk.f32.mxu0 %vm13914_vm1, %v18005_v1  ;;  %v2099_v55 = vld [vmem:[%s14040_s23 + $0x164] sm:$0xff] }
 0x165   : > { %v14800_v3 = vadd.f32 %v1488_v63, %v1060_v62  ;;  %12697 = vmatprep.mubr.msk.f32.mxu1 %vm13914_vm1, %v18005_v1  ;;  %v12276_v9 = vpop.f32.mrf.mxu0 }
 0x166   : > { %v12413_v11 = vpop.f32.mrf.mxu1  ;;  %v2100_v9 = vld [vmem:[%s14040_s23 + $0x16c] sm:$0xff] }
 0x167   : > { %v1065_v16 = vpop.f32.mrf.mxu0  ;;  %12561 = vmatmul.mubr.msk.f32.gmra.mxu0 %vm679_vm2, %v1576_v5 }
 0x168   : > { %v1493_v17 = vpop.f32.mrf.mxu1  ;;  %12698 = vmatmul.mubr.msk.f32.gmra.mxu1 %vm679_vm2, %v2096_v7  ;;  %12563 = vmatprep.mubr.msk.f32.mxu0 %vm13914_vm1, %v18005_v1  ;;  %v1580_v7 = vld [vmem:[%s14040_s23 + $0x15a] sm:$0xff] }
 0x169   : > { %v14810_v18 = vadd.f32 %v1493_v17, %v1065_v16  ;;  %12700 = vmatprep.mubr.msk.f32.mxu1 %vm13914_vm1, %v18005_v1  ;;  %v12279_v26 = vpop.f32.mrf.mxu0 }
 0x16a   : > { %v12416_v27 = vpop.f32.mrf.mxu1  ;;  %v1581_v26 = vld [vmem:[%s14040_s23 + $0x162] sm:$0xff] }
 0x16b   : > { %v1070_v28 = vpop.f32.mrf.mxu0  ;;  %12564 = vmatmul.mubr.msk.f32.gmra.mxu0 %vm679_vm2, %v1577_v19  ;;  %v2101_v27 = vld [vmem:[%s14040_s23 + $0x174] sm:$0xff] }
 0x16c   : > { %v1498_v30 = vpop.f32.mrf.mxu1  ;;  %12701 = vmatmul.mubr.msk.f32.gmra.mxu1 %vm679_vm2, %v2097_v20  ;;  %12566 = vmatprep.mubr.msk.f32.mxu0 %vm13914_vm1, %v18005_v1 }
 0x16d   : > { %v14820_v32 = vadd.f32 %v1498_v30, %v1070_v28  ;;  %12703 = vmatprep.mubr.msk.f32.mxu1 %vm13914_vm1, %v18005_v1  ;;  %v12282_v40 = vpop.f32.mrf.mxu0 }
 0x16e   : > { %v12419_v41 = vpop.f32.mrf.mxu1 }
 0x16f   : > { %v1075_v45 = vpop.f32.mrf.mxu0  ;;  %12567 = vmatmul.mubr.msk.f32.gmra.mxu0 %vm679_vm2, %v1578_v34  ;;  %v2577_v41 = vld [vmem:[%s14040_s23 + $0x15] sm:$0xff] }
 0x170   : > { %v1503_v46 = vpop.f32.mrf.mxu1  ;;  %12704 = vmatmul.mubr.msk.f32.gmra.mxu1 %vm679_vm2, %v2098_v38  ;;  %12569 = vmatprep.mubr.msk.f32.mxu0 %vm13914_vm1, %v18005_v1 }
 0x171   : > { %v14830_v49 = vadd.f32 %v1503_v46, %v1075_v45  ;;  %12706 = vmatprep.mubr.msk.f32.mxu1 %vm13914_vm1, %v18005_v1  ;;  %v12285_v56 = vpop.f32.mrf.mxu0  ;;  %v3097_v45 = vld [vmem:[%s14040_s23 + $0x16] sm:$0xff] }
 0x172   : > { %v12422_v59 = vpop.f32.mrf.mxu1 }
 0x173   : > { %v1080_v62 = vpop.f32.mrf.mxu0  ;;  %12570 = vmatmul.mubr.msk.f32.gmra.mxu0 %vm679_vm2, %v1579_v52 }
 0x174   : > { %v1508_v63 = vpop.f32.mrf.mxu1  ;;  %12707 = vmatmul.mubr.msk.f32.gmra.mxu1 %vm679_vm2, %v2099_v55  ;;  %12572 = vmatprep.mubr.msk.f32.mxu0 %vm13914_vm1, %v18005_v1  ;;  %v10844_v55 = vld [vmem:[%s18013_s0 + $0x18] sm:$0x7] }
 0x175   : > { %v14840_v5 = vadd.f32 %v1508_v63, %v1080_v62  ;;  %12709 = vmatprep.mubr.msk.f32.mxu1 %vm13914_vm1, %v18005_v1  ;;  %v12288_v11 = vpop.f32.mrf.mxu0  ;;  %v2578_v63 = vld [vmem:[%s14040_s23 + $0x1d] sm:$0xff] }
 0x176   : > { %v12425_v16 = vpop.f32.mrf.mxu1 }
 0x177   : > { %v1085_v17 = vpop.f32.mrf.mxu0  ;;  %12573 = vmatmul.mubr.msk.f32.gmra.mxu0 %vm679_vm2, %v1580_v7  ;;  %v3098_v7 = vld [vmem:[%s14040_s23 + $0x1e] sm:$0xff] }
 0x178   : > { %v1513_v19 = vpop.f32.mrf.mxu1  ;;  %12710 = vmatmul.mubr.msk.f32.gmra.mxu1 %vm679_vm2, %v2100_v9  ;;  %12575 = vmatprep.mubr.msk.f32.mxu0 %vm13914_vm1, %v18005_v1 }
 0x179   : > { %v14850_v20 = vadd.f32 %v1513_v19, %v1085_v17  ;;  %12712 = vmatprep.mubr.msk.f32.mxu1 %vm13914_vm1, %v18005_v1  ;;  %v12291_v28 = vpop.f32.mrf.mxu0 }
 0x17a   : > { %v12428_v30 = vpop.f32.mrf.mxu1 }
 0x17b   : > { %v1090_v34 = vpop.f32.mrf.mxu0  ;;  %12576 = vmatmul.mubr.msk.f32.gmra.mxu0 %vm679_vm2, %v1581_v26  ;;  %v2579_v26 = vld [vmem:[%s14040_s23 + $0x25] sm:$0xff] }
 0x17c   : > { %v1518_v38 = vpop.f32.mrf.mxu1  ;;  %12713 = vmatmul.mubr.msk.f32.gmra.mxu1 %vm679_vm2, %v2101_v27  ;;  %12717 = vmatprep.mubr.msk.f32.mxu0 %vm13914_vm1, %v18005_v1  ;;  %v3099_v27 = vld [vmem:[%s14040_s23 + $0x26] sm:$0xff] }
 0x17d   : > { %v14860_v40 = vadd.f32 %v1518_v38, %v1090_v34  ;;  %12854 = vmatprep.mubr.msk.f32.mxu1 %vm13914_vm1, %v18005_v1  ;;  %v12294_v46 = vpop.f32.mrf.mxu0 }
 0x17e   : > { %v12431_v52 = vpop.f32.mrf.mxu1  ;;  %v3100_v46 = vld [vmem:[%s14040_s23 + $0x2e] sm:$0xff] }
 0x17f   : > { %v1095_v56 = vpop.f32.mrf.mxu0  ;;  %12718 = vmatmul.mubr.msk.f32.vlgmr.msra.gmra.mxu0 %vm679_vm2, %v2577_v41 }
 0x180   : > { %v1523_v59 = vpop.f32.mrf.mxu1  ;;  %12855 = vmatmul.mubr.msk.f32.vlgmr.msra.gmra.mxu1 %vm679_vm2, %v3097_v45  ;;  %12990 = vmatpush3.msk.msra.mxu0 %vm815_vm0, %v10844_v55  ;;  %v2580_v45 = vld [vmem:[%s14040_s23 + $0x2d] sm:$0xff] }
 0x181   : > { %v14873_v62 = vadd.f32 %v1523_v59, %v1095_v56  ;;  %12720 = vmatprep.mubr.msk.f32.mxu0 %vm13914_vm1, %v18005_v1  ;;  %v12297_v9 = vpop.f32.mrf.mxu0  ;;  %12857 = vmatprep.mubr.msk.f32.mxu1 %vm13914_vm1, %v18005_v1 }
 0x182   : > { %v12434_v11 = vpop.f32.mrf.mxu1  ;;  %13263 = vmatprep.subr.mxu0 %v18005_v1  ;;  %v3101_v9 = vld [vmem:[%s14040_s23 + $0x36] sm:$0xff] }
 0x183   : > { %v1100_v16 = vpop.f32.mrf.mxu0  ;;  %12721 = vmatmul.mubr.msk.f32.gmra.mxu0 %vm679_vm2, %v2578_v63 }
 0x184   : > { %v1528_v17 = vpop.f32.mrf.mxu1  ;;  %12858 = vmatmul.mubr.msk.f32.gmra.mxu1 %vm679_vm2, %v3098_v7  ;;  %12723 = vmatprep.mubr.msk.f32.mxu0 %vm13914_vm1, %v18005_v1  ;;  %v2581_v7 = vld [vmem:[%s14040_s23 + $0x35] sm:$0xff] }
 0x185   : > { %v14885_v19 = vadd.f32 %v1528_v17, %v1100_v16  ;;  %12860 = vmatprep.mubr.msk.f32.mxu1 %vm13914_vm1, %v18005_v1  ;;  %v12300_v28 = vpop.f32.mrf.mxu0 }
 0x186   : > { %v12437_v30 = vpop.f32.mrf.mxu1  ;;  %v2582_v28 = vld [vmem:[%s14040_s23 + $0x3d] sm:$0xff] }
 0x187   : > { %v1105_v34 = vpop.f32.mrf.mxu0  ;;  %12724 = vmatmul.mubr.msk.f32.gmra.mxu0 %vm679_vm2, %v2579_v26  ;;  %v3102_v30 = vld [vmem:[%s14040_s23 + $0x3e] sm:$0xff] }
 0x188   : > { %v1533_v38 = vpop.f32.mrf.mxu1  ;;  %12861 = vmatmul.mubr.msk.f32.gmra.mxu1 %vm679_vm2, %v3099_v27  ;;  %12726 = vmatprep.mubr.msk.f32.mxu0 %vm13914_vm1, %v18005_v1 }
 0x189   : > { %v14895_v41 = vadd.f32 %v1533_v38, %v1105_v34  ;;  %12863 = vmatprep.mubr.msk.f32.mxu1 %vm13914_vm1, %v18005_v1  ;;  %v12303_v52 = vpop.f32.mrf.mxu0 }
 0x18a   : > { %v12440_v55 = vpop.f32.mrf.mxu1 }
 0x18b   : > { %v1788_v56 = vpop.f32.mrf.mxu0  ;;  %12727 = vmatmul.mubr.msk.f32.gmra.mxu0 %vm679_vm2, %v2580_v45  ;;  %v2583_v55 = vld [vmem:[%s14040_s23 + $0x45] sm:$0xff] }
 0x18c   : > { %v2308_v59 = vpop.f32.mrf.mxu1  ;;  %12864 = vmatmul.mubr.msk.f32.gmra.mxu1 %vm679_vm2, %v3100_v46  ;;  %v2012_v63 = vadd.f32 %v1788_v56, %v14445_v43  ;;  %12729 = vmatprep.mubr.msk.f32.mxu0 %vm13914_vm1, %v18005_v1  ;;  %v3103_v56 = vld [vmem:[%s14040_s23 + $0x46] sm:$0xff] }
 0x18d   : > { %12866 = vmatprep.mubr.msk.f32.mxu1 %vm13914_vm1, %v18005_v1  ;;  %v12445_v11 = vpop.f32.mrf.mxu0 }
 0x18e   : > { %v12582_v16 = vpop.f32.mrf.mxu1  ;;  %v14912_v17 = vadd.f32 %v2308_v59, %v2012_v63 }
 0x18f   : > { %v1793_v26 = vpop.f32.mrf.mxu0  ;;  %12730 = vmatmul.mubr.msk.f32.gmra.mxu0 %vm679_vm2, %v2581_v7  ;;  %v2584_v16 = vld [vmem:[%s14040_s23 + $0x4d] sm:$0xff] }
 0x190   : > { %v2313_v27 = vpop.f32.mrf.mxu1  ;;  %12867 = vmatmul.mubr.msk.f32.gmra.mxu1 %vm679_vm2, %v3101_v9  ;;  %v2013_v43 = vadd.f32 %v1793_v26, %v14455_v50  ;;  %12732 = vmatprep.mubr.msk.f32.mxu0 %vm13914_vm1, %v18005_v1  ;;  %v3104_v26 = vld [vmem:[%s14040_s23 + $0x4e] sm:$0xff] }
 0x191   : > { %12869 = vmatprep.mubr.msk.f32.mxu1 %vm13914_vm1, %v18005_v1  ;;  %v12448_v34 = vpop.f32.mrf.mxu0 }
 0x192   : > { %v12585_v38 = vpop.f32.mrf.mxu1  ;;  %v14923_v45 = vadd.f32 %v2313_v27, %v2013_v43 }
 0x193   : > { %v1798_v46 = vpop.f32.mrf.mxu0  ;;  %12733 = vmatmul.mubr.msk.f32.gmra.mxu0 %vm679_vm2, %v2582_v28  ;;  %v2585_v38 = vld [vmem:[%s14040_s23 + $0x55] sm:$0xff] }
 0x194   : > { %v2318_v52 = vpop.f32.mrf.mxu1  ;;  %12870 = vmatmul.mubr.msk.f32.gmra.mxu1 %vm679_vm2, %v3102_v30  ;;  %v2014_v50 = vadd.f32 %v1798_v46, %v14465_v57  ;;  %12735 = vmatprep.mubr.msk.f32.mxu0 %vm13914_vm1, %v18005_v1  ;;  %v3105_v46 = vld [vmem:[%s14040_s23 + $0x56] sm:$0xff] }
 0x195   : > { %12872 = vmatprep.mubr.msk.f32.mxu1 %vm13914_vm1, %v18005_v1  ;;  %v12451_v59 = vpop.f32.mrf.mxu0 }
 0x196   : > { %v12588_v63 = vpop.f32.mrf.mxu1  ;;  %v14934_v7 = vadd.f32 %v2318_v52, %v2014_v50 }
 0x197   : > { %v1803_v9 = vpop.f32.mrf.mxu0  ;;  %12736 = vmatmul.mubr.msk.f32.gmra.mxu0 %vm679_vm2, %v2583_v55  ;;  %v2586_v63 = vld [vmem:[%s14040_s23 + $0x5d] sm:$0xff] }
 0x198   : > { %v2323_v11 = vpop.f32.mrf.mxu1  ;;  %12873 = vmatmul.mubr.msk.f32.gmra.mxu1 %vm679_vm2, %v3103_v56  ;;  %v2015_v57 = vadd.f32 %v1803_v9, %v14475_v0  ;;  %12738 = vmatprep.mubr.msk.f32.mxu0 %vm13914_vm1, %v18005_v1  ;;  %v3106_v9 = vld [vmem:[%s14040_s23 + $0x5e] sm:$0xff] }
 0x199   : > { %12875 = vmatprep.mubr.msk.f32.mxu1 %vm13914_vm1, %v18005_v1  ;;  %v12454_v27 = vpop.f32.mrf.mxu0 }
 0x19a   : > { %v12591_v43 = vpop.f32.mrf.mxu1  ;;  %v14945_v28 = vadd.f32 %v2323_v11, %v2015_v57 }
 0x19b   : > { %v1808_v30 = vpop.f32.mrf.mxu0  ;;  %12739 = vmatmul.mubr.msk.f32.gmra.mxu0 %vm679_vm2, %v2584_v16  ;;  %v2587_v43 = vld [vmem:[%s14040_s23 + $0x65] sm:$0xff] }
 0x19c   : > { %v2328_v34 = vpop.f32.mrf.mxu1  ;;  %12876 = vmatmul.mubr.msk.f32.gmra.mxu1 %vm679_vm2, %v3104_v26  ;;  %v2016_v0 = vadd.f32 %v1808_v30, %v14485_v8  ;;  %12741 = vmatprep.mubr.msk.f32.mxu0 %vm13914_vm1, %v18005_v1  ;;  %v3107_v30 = vld [vmem:[%s14040_s23 + $0x66] sm:$0xff] }
 0x19d   : > { %12878 = vmatprep.mubr.msk.f32.mxu1 %vm13914_vm1, %v18005_v1  ;;  %v12457_v52 = vpop.f32.mrf.mxu0 }
 0x19e   : > { %v12594_v50 = vpop.f32.mrf.mxu1  ;;  %v14956_v55 = vadd.f32 %v2328_v34, %v2016_v0 }
 0x19f   : > { %v1813_v56 = vpop.f32.mrf.mxu0  ;;  %12742 = vmatmul.mubr.msk.f32.gmra.mxu0 %vm679_vm2, %v2585_v38  ;;  %v2588_v50 = vld [vmem:[%s14040_s23 + $0x6d] sm:$0xff] }
 0x1a0   : > { %v2333_v59 = vpop.f32.mrf.mxu1  ;;  %12879 = vmatmul.mubr.msk.f32.gmra.mxu1 %vm679_vm2, %v3105_v46  ;;  %v2017_v8 = vadd.f32 %v1813_v56, %v14495_v15  ;;  %12744 = vmatprep.mubr.msk.f32.mxu0 %vm13914_vm1, %v18005_v1  ;;  %v3108_v56 = vld [vmem:[%s14040_s23 + $0x6e] sm:$0xff] }
 0x1a1   : > { %12881 = vmatprep.mubr.msk.f32.mxu1 %vm13914_vm1, %v18005_v1  ;;  %v12460_v11 = vpop.f32.mrf.mxu0 }
 0x1a2   : > { %v12597_v57 = vpop.f32.mrf.mxu1  ;;  %v14967_v16 = vadd.f32 %v2333_v59, %v2017_v8 }
 0x1a3   : > { %v1818_v26 = vpop.f32.mrf.mxu0  ;;  %12745 = vmatmul.mubr.msk.f32.gmra.mxu0 %vm679_vm2, %v2586_v63  ;;  %v2589_v57 = vld [vmem:[%s14040_s23 + $0x75] sm:$0xff] }
 0x1a4   : > { %v2338_v27 = vpop.f32.mrf.mxu1  ;;  %12882 = vmatmul.mubr.msk.f32.gmra.mxu1 %vm679_vm2, %v3106_v9  ;;  %v2018_v15 = vadd.f32 %v1818_v26, %v14505_v22  ;;  %12747 = vmatprep.mubr.msk.f32.mxu0 %vm13914_vm1, %v18005_v1  ;;  %v3109_v26 = vld [vmem:[%s14040_s23 + $0x76] sm:$0xff] }
 0x1a5   : > { %12884 = vmatprep.mubr.msk.f32.mxu1 %vm13914_vm1, %v18005_v1  ;;  %v12463_v34 = vpop.f32.mrf.mxu0 }
 0x1a6   : > { %v12600_v0 = vpop.f32.mrf.mxu1  ;;  %v14978_v38 = vadd.f32 %v2338_v27, %v2018_v15 }
 0x1a7   : > { %v1823_v46 = vpop.f32.mrf.mxu0  ;;  %12748 = vmatmul.mubr.msk.f32.gmra.mxu0 %vm679_vm2, %v2587_v43  ;;  %v2590_v0 = vld [vmem:[%s14040_s23 + $0x7d] sm:$0xff] }
 0x1a8   : > { %v2343_v52 = vpop.f32.mrf.mxu1  ;;  %12885 = vmatmul.mubr.msk.f32.gmra.mxu1 %vm679_vm2, %v3107_v30  ;;  %v2019_v22 = vadd.f32 %v1823_v46, %v14515_v29  ;;  %12750 = vmatprep.mubr.msk.f32.mxu0 %vm13914_vm1, %v18005_v1  ;;  %v3110_v46 = vld [vmem:[%s14040_s23 + $0x7e] sm:$0xff] }
 0x1a9   : > { %12887 = vmatprep.mubr.msk.f32.mxu1 %vm13914_vm1, %v18005_v1  ;;  %v12466_v59 = vpop.f32.mrf.mxu0 }
 0x1aa   : > { %v12603_v8 = vpop.f32.mrf.mxu1  ;;  %v14989_v63 = vadd.f32 %v2343_v52, %v2019_v22 }
 0x1ab   : > { %v1828_v9 = vpop.f32.mrf.mxu0  ;;  %12751 = vmatmul.mubr.msk.f32.gmra.mxu0 %vm679_vm2, %v2588_v50 }
 0x1ac   : > { %v2348_v11 = vpop.f32.mrf.mxu1  ;;  %12888 = vmatmul.mubr.msk.f32.gmra.mxu1 %vm679_vm2, %v3108_v56  ;;  %v2020_v29 = vadd.f32 %v1828_v9, %v14525_v36  ;;  %12753 = vmatprep.mubr.msk.f32.mxu0 %vm13914_vm1, %v18005_v1  ;;  %v10891_v56 = vld [vmem:[%s18013_s0 + $0x1c] sm:$0x7]  ;;  %v2591_v9 = vld [vmem:[%s14040_s23 + $0x85] sm:$0xff] }
 0x1ad   : > { %12890 = vmatprep.mubr.msk.f32.mxu1 %vm13914_vm1, %v18005_v1  ;;  %v12469_v27 = vpop.f32.mrf.mxu0  ;;  %13127 = vmatpush3.msk.msra.mxu1 %vm815_vm0, %v10891_v56  ;;  %v2593_v56 = vld [vmem:[%s14040_s23 + $0x95] sm:$0xff] }
 0x1ae   : > { %v12606_v15 = vpop.f32.mrf.mxu1  ;;  %v15000_v43 = vadd.f32 %v2348_v11, %v2020_v29  ;;  %v3111_v11 = vld [vmem:[%s14040_s23 + $0x86] sm:$0xff] }
 0x1af   : > { %v1833_v30 = vpop.f32.mrf.mxu0  ;;  %12754 = vmatmul.mubr.msk.f32.gmra.mxu0 %vm679_vm2, %v2589_v57 }
 0x1b0   : > { %v2353_v34 = vpop.f32.mrf.mxu1  ;;  %12891 = vmatmul.mubr.msk.f32.gmra.mxu1 %vm679_vm2, %v3109_v26  ;;  %v2021_v36 = vadd.f32 %v1833_v30, %v14535_v44  ;;  %12756 = vmatprep.mubr.msk.f32.mxu0 %vm13914_vm1, %v18005_v1  ;;  %v2592_v30 = vld [vmem:[%s14040_s23 + $0x8d] sm:$0xff] }
 0x1b1   : > { %12893 = vmatprep.mubr.msk.f32.mxu1 %vm13914_vm1, %v18005_v1  ;;  %v12472_v52 = vpop.f32.mrf.mxu0 }
 0x1b2   : > { %v12609_v22 = vpop.f32.mrf.mxu1  ;;  %v15011_v50 = vadd.f32 %v2353_v34, %v2021_v36  ;;  %v3112_v34 = vld [vmem:[%s14040_s23 + $0x8e] sm:$0xff] }
 0x1b3   : > { %v1838_v59 = vpop.f32.mrf.mxu0  ;;  %12757 = vmatmul.mubr.msk.f32.gmra.mxu0 %vm679_vm2, %v2590_v0 }
 0x1b4   : > { %v2358_v44 = vpop.f32.mrf.mxu1  ;;  %12894 = vmatmul.mubr.msk.f32.gmra.mxu1 %vm679_vm2, %v3110_v46  ;;  %v2022_v8 = vadd.f32 %v1838_v59, %v14549_v53  ;;  %12759 = vmatprep.mubr.msk.f32.mxu0 %vm13914_vm1, %v18005_v1  ;;  %v3113_v59 = vld [vmem:[%s14040_s23 + $0x96] sm:$0xff] }
 0x1b5   : > { %12896 = vmatprep.mubr.msk.f32.mxu1 %vm13914_vm1, %v18005_v1  ;;  %v12475_v29 = vpop.f32.mrf.mxu0 }
 0x1b6   : > { %v12612_v57 = vpop.f32.mrf.mxu1  ;;  %v15026_v26 = vadd.f32 %v2358_v44, %v2022_v8 }
 0x1b7   : > { %v1843_v27 = vpop.f32.mrf.mxu0  ;;  %12760 = vmatmul.mubr.msk.f32.gmra.mxu0 %vm679_vm2, %v2591_v9  ;;  %v2594_v57 = vld [vmem:[%s14040_s23 + $0x9d] sm:$0xff] }
 0x1b8   : > { %v2363_v15 = vpop.f32.mrf.mxu1  ;;  %12897 = vmatmul.mubr.msk.f32.gmra.mxu1 %vm679_vm2, %v3111_v11  ;;  %v2023_v53 = vadd.f32 %v1843_v27, %v14560_v61  ;;  %12762 = vmatprep.mubr.msk.f32.mxu0 %vm13914_vm1, %v18005_v1  ;;  %v3114_v27 = vld [vmem:[%s14040_s23 + $0x9e] sm:$0xff] }
 0x1b9   : > { %12899 = vmatprep.mubr.msk.f32.mxu1 %vm13914_vm1, %v18005_v1  ;;  %v12478_v36 = vpop.f32.mrf.mxu0 }
 0x1ba   : > { %v12615_v0 = vpop.f32.mrf.mxu1  ;;  %v15037_v46 = vadd.f32 %v2363_v15, %v2023_v53 }
 0x1bb   : > { %v1848_v52 = vpop.f32.mrf.mxu0  ;;  %12763 = vmatmul.mubr.msk.f32.gmra.mxu0 %vm679_vm2, %v2592_v30  ;;  %v2595_v0 = vld [vmem:[%s14040_s23 + $0xa5] sm:$0xff] }
 0x1bc   : > { %v2368_v22 = vpop.f32.mrf.mxu1  ;;  %12900 = vmatmul.mubr.msk.f32.gmra.mxu1 %vm679_vm2, %v3112_v34  ;;  %v2024_v61 = vadd.f32 %v1848_v52, %v14570_v6  ;;  %12765 = vmatprep.mubr.msk.f32.mxu0 %vm13914_vm1, %v18005_v1  ;;  %v3115_v52 = vld [vmem:[%s14040_s23 + $0xa6] sm:$0xff] }
 0x1bd   : > { %12902 = vmatprep.mubr.msk.f32.mxu1 %vm13914_vm1, %v18005_v1  ;;  %v12481_v44 = vpop.f32.mrf.mxu0 }
 0x1be   : > { %v12618_v8 = vpop.f32.mrf.mxu1  ;;  %v15048_v9 = vadd.f32 %v2368_v22, %v2024_v61 }
 0x1bf   : > { %v1853_v11 = vpop.f32.mrf.mxu0  ;;  %12766 = vmatmul.mubr.msk.f32.gmra.mxu0 %vm679_vm2, %v2593_v56  ;;  %v2596_v8 = vld [vmem:[%s14040_s23 + $0xad] sm:$0xff] }
 0x1c0   : > { %v2373_v29 = vpop.f32.mrf.mxu1  ;;  %12903 = vmatmul.mubr.msk.f32.gmra.mxu1 %vm679_vm2, %v3113_v59  ;;  %v2025_v6 = vadd.f32 %v1853_v11, %v14580_v14  ;;  %12768 = vmatprep.mubr.msk.f32.mxu0 %vm13914_vm1, %v18005_v1  ;;  %v3116_v11 = vld [vmem:[%s14040_s23 + $0xae] sm:$0xff] }
 0x1c1   : > { %12905 = vmatprep.mubr.msk.f32.mxu1 %vm13914_vm1, %v18005_v1  ;;  %v12484_v15 = vpop.f32.mrf.mxu0 }
 0x1c2   : > { %v12621_v53 = vpop.f32.mrf.mxu1  ;;  %v15059_v30 = vadd.f32 %v2373_v29, %v2025_v6 }
 0x1c3   : > { %v1858_v34 = vpop.f32.mrf.mxu0  ;;  %12769 = vmatmul.mubr.msk.f32.gmra.mxu0 %vm679_vm2, %v2594_v57  ;;  %v2597_v53 = vld [vmem:[%s14040_s23 + $0xb5] sm:$0xff] }
 0x1c4   : > { %v2378_v36 = vpop.f32.mrf.mxu1  ;;  %12906 = vmatmul.mubr.msk.f32.gmra.mxu1 %vm679_vm2, %v3114_v27  ;;  %v2026_v14 = vadd.f32 %v1858_v34, %v14590_v23  ;;  %12771 = vmatprep.mubr.msk.f32.mxu0 %vm13914_vm1, %v18005_v1  ;;  %v3117_v34 = vld [vmem:[%s14040_s23 + $0xb6] sm:$0xff] }
 0x1c5   : > { %12908 = vmatprep.mubr.msk.f32.mxu1 %vm13914_vm1, %v18005_v1  ;;  %v12487_v22 = vpop.f32.mrf.mxu0 }
 0x1c6   : > { %v12624_v61 = vpop.f32.mrf.mxu1  ;;  %v15070_v56 = vadd.f32 %v2378_v36, %v2026_v14 }
 0x1c7   : > { %v1863_v59 = vpop.f32.mrf.mxu0  ;;  %12772 = vmatmul.mubr.msk.f32.gmra.mxu0 %vm679_vm2, %v2595_v0  ;;  %v2598_v61 = vld [vmem:[%s14040_s23 + $0xbd] sm:$0xff] }
 0x1c8   : > { %v2383_v44 = vpop.f32.mrf.mxu1  ;;  %12909 = vmatmul.mubr.msk.f32.gmra.mxu1 %vm679_vm2, %v3115_v52  ;;  %v2027_v23 = vadd.f32 %v1863_v59, %v14600_v31  ;;  %12774 = vmatprep.mubr.msk.f32.mxu0 %vm13914_vm1, %v18005_v1  ;;  %v3118_v59 = vld [vmem:[%s14040_s23 + $0xbe] sm:$0xff] }
 0x1c9   : > { %12911 = vmatprep.mubr.msk.f32.mxu1 %vm13914_vm1, %v18005_v1  ;;  %v12490_v29 = vpop.f32.mrf.mxu0 }
 0x1ca   : > { %v12627_v6 = vpop.f32.mrf.mxu1  ;;  %v15081_v57 = vadd.f32 %v2383_v44, %v2027_v23 }
 0x1cb   : > { %v1868_v27 = vpop.f32.mrf.mxu0  ;;  %12775 = vmatmul.mubr.msk.f32.gmra.mxu0 %vm679_vm2, %v2596_v8  ;;  %v2599_v6 = vld [vmem:[%s14040_s23 + $0xc5] sm:$0xff] }
 0x1cc   : > { %v2388_v15 = vpop.f32.mrf.mxu1  ;;  %12912 = vmatmul.mubr.msk.f32.gmra.mxu1 %vm679_vm2, %v3116_v11  ;;  %v2028_v31 = vadd.f32 %v1868_v27, %v14610_v39  ;;  %12777 = vmatprep.mubr.msk.f32.mxu0 %vm13914_vm1, %v18005_v1  ;;  %v3119_v27 = vld [vmem:[%s14040_s23 + $0xc6] sm:$0xff] }
 0x1cd   : > { %12914 = vmatprep.mubr.msk.f32.mxu1 %vm13914_vm1, %v18005_v1  ;;  %v12493_v36 = vpop.f32.mrf.mxu0 }
 0x1ce   : > { %v12630_v14 = vpop.f32.mrf.mxu1  ;;  %v15092_v0 = vadd.f32 %v2388_v15, %v2028_v31 }
 0x1cf   : > { %v1873_v52 = vpop.f32.mrf.mxu0  ;;  %12778 = vmatmul.mubr.msk.f32.gmra.mxu0 %vm679_vm2, %v2597_v53  ;;  %v2600_v14 = vld [vmem:[%s14040_s23 + $0xcd] sm:$0xff] }
 0x1d0   : > { %v2393_v22 = vpop.f32.mrf.mxu1  ;;  %12915 = vmatmul.mubr.msk.f32.gmra.mxu1 %vm679_vm2, %v3117_v34  ;;  %v2029_v39 = vadd.f32 %v1873_v52, %v14620_v48  ;;  %12780 = vmatprep.mubr.msk.f32.mxu0 %vm13914_vm1, %v18005_v1  ;;  %v3120_v52 = vld [vmem:[%s14040_s23 + $0xce] sm:$0xff] }
 0x1d1   : > { %12917 = vmatprep.mubr.msk.f32.mxu1 %vm13914_vm1, %v18005_v1  ;;  %v12496_v44 = vpop.f32.mrf.mxu0 }
 0x1d2   : > { %v12633_v23 = vpop.f32.mrf.mxu1  ;;  %v15103_v8 = vadd.f32 %v2393_v22, %v2029_v39 }
 0x1d3   : > { %v1878_v11 = vpop.f32.mrf.mxu0  ;;  %12781 = vmatmul.mubr.msk.f32.gmra.mxu0 %vm679_vm2, %v2598_v61  ;;  %v2601_v23 = vld [vmem:[%s14040_s23 + $0xd5] sm:$0xff] }
 0x1d4   : > { %v2398_v29 = vpop.f32.mrf.mxu1  ;;  %12918 = vmatmul.mubr.msk.f32.gmra.mxu1 %vm679_vm2, %v3118_v59  ;;  %v2030_v48 = vadd.f32 %v1878_v11, %v14630_v58  ;;  %12783 = vmatprep.mubr.msk.f32.mxu0 %vm13914_vm1, %v18005_v1  ;;  %v3121_v11 = vld [vmem:[%s14040_s23 + $0xd6] sm:$0xff] }
 0x1d5   : > { %12920 = vmatprep.mubr.msk.f32.mxu1 %vm13914_vm1, %v18005_v1  ;;  %v12499_v15 = vpop.f32.mrf.mxu0 }
 0x1d6   : > { %v12636_v31 = vpop.f32.mrf.mxu1  ;;  %v15114_v53 = vadd.f32 %v2398_v29, %v2030_v48 }
 0x1d7   : > { %v1883_v34 = vpop.f32.mrf.mxu0  ;;  %12784 = vmatmul.mubr.msk.f32.gmra.mxu0 %vm679_vm2, %v2599_v6  ;;  %v2602_v31 = vld [vmem:[%s14040_s23 + $0xdd] sm:$0xff] }
 0x1d8   : > { %v2403_v36 = vpop.f32.mrf.mxu1  ;;  %12921 = vmatmul.mubr.msk.f32.gmra.mxu1 %vm679_vm2, %v3119_v27  ;;  %v2031_v58 = vadd.f32 %v1883_v34, %v14640_v4  ;;  %12786 = vmatprep.mubr.msk.f32.mxu0 %vm13914_vm1, %v18005_v1  ;;  %v3122_v34 = vld [vmem:[%s14040_s23 + $0xde] sm:$0xff] }
 0x1d9   : > { %12923 = vmatprep.mubr.msk.f32.mxu1 %vm13914_vm1, %v18005_v1  ;;  %v12502_v22 = vpop.f32.mrf.mxu0 }
 0x1da   : > { %v12639_v39 = vpop.f32.mrf.mxu1  ;;  %v15125_v61 = vadd.f32 %v2403_v36, %v2031_v58 }
 0x1db   : > { %v1888_v59 = vpop.f32.mrf.mxu0  ;;  %12787 = vmatmul.mubr.msk.f32.gmra.mxu0 %vm679_vm2, %v2600_v14  ;;  %v2603_v39 = vld [vmem:[%s14040_s23 + $0xe5] sm:$0xff] }
 0x1dc   : > { %v2408_v44 = vpop.f32.mrf.mxu1  ;;  %12924 = vmatmul.mubr.msk.f32.gmra.mxu1 %vm679_vm2, %v3120_v52  ;;  %v2032_v4 = vadd.f32 %v1888_v59, %v14650_v13  ;;  %12789 = vmatprep.mubr.msk.f32.mxu0 %vm13914_vm1, %v18005_v1  ;;  %v3123_v59 = vld [vmem:[%s14040_s23 + $0xe6] sm:$0xff] }
 0x1dd   : > { %12926 = vmatprep.mubr.msk.f32.mxu1 %vm13914_vm1, %v18005_v1  ;;  %v12505_v29 = vpop.f32.mrf.mxu0 }
 0x1de   : > { %v12642_v48 = vpop.f32.mrf.mxu1  ;;  %v15136_v6 = vadd.f32 %v2408_v44, %v2032_v4 }
 0x1df   : > { %v1893_v27 = vpop.f32.mrf.mxu0  ;;  %12790 = vmatmul.mubr.msk.f32.gmra.mxu0 %vm679_vm2, %v2601_v23  ;;  %v2604_v48 = vld [vmem:[%s14040_s23 + $0xed] sm:$0xff] }
 0x1e0   : > { %v2413_v15 = vpop.f32.mrf.mxu1  ;;  %12927 = vmatmul.mubr.msk.f32.gmra.mxu1 %vm679_vm2, %v3121_v11  ;;  %v2033_v13 = vadd.f32 %v1893_v27, %v14660_v24  ;;  %12792 = vmatprep.mubr.msk.f32.mxu0 %vm13914_vm1, %v18005_v1  ;;  %v3124_v27 = vld [vmem:[%s14040_s23 + $0xee] sm:$0xff] }
 0x1e1   : > { %12929 = vmatprep.mubr.msk.f32.mxu1 %vm13914_vm1, %v18005_v1  ;;  %v12508_v36 = vpop.f32.mrf.mxu0 }
 0x1e2   : > { %v12645_v58 = vpop.f32.mrf.mxu1  ;;  %v15147_v14 = vadd.f32 %v2413_v15, %v2033_v13 }
 0x1e3   : > { %v1898_v52 = vpop.f32.mrf.mxu0  ;;  %12793 = vmatmul.mubr.msk.f32.gmra.mxu0 %vm679_vm2, %v2602_v31  ;;  %v2605_v58 = vld [vmem:[%s14040_s23 + $0xf5] sm:$0xff] }
 0x1e4   : > { %v2418_v22 = vpop.f32.mrf.mxu1  ;;  %12930 = vmatmul.mubr.msk.f32.gmra.mxu1 %vm679_vm2, %v3122_v34  ;;  %v2034_v24 = vadd.f32 %v1898_v52, %v14670_v33  ;;  %12795 = vmatprep.mubr.msk.f32.mxu0 %vm13914_vm1, %v18005_v1  ;;  %v3125_v52 = vld [vmem:[%s14040_s23 + $0xf6] sm:$0xff] }
 0x1e5   : > { %12932 = vmatprep.mubr.msk.f32.mxu1 %vm13914_vm1, %v18005_v1  ;;  %v12511_v44 = vpop.f32.mrf.mxu0 }
 0x1e6   : > { %v12648_v4 = vpop.f32.mrf.mxu1  ;;  %v15158_v23 = vadd.f32 %v2418_v22, %v2034_v24 }
 0x1e7   : > { %v1903_v11 = vpop.f32.mrf.mxu0  ;;  %12796 = vmatmul.mubr.msk.f32.gmra.mxu0 %vm679_vm2, %v2603_v39  ;;  %v2606_v4 = vld [vmem:[%s14040_s23 + $0xfd] sm:$0xff] }
 0x1e8   : > { %v2423_v29 = vpop.f32.mrf.mxu1  ;;  %12933 = vmatmul.mubr.msk.f32.gmra.mxu1 %vm679_vm2, %v3123_v59  ;;  %v2035_v33 = vadd.f32 %v1903_v11, %v14680_v42  ;;  %12798 = vmatprep.mubr.msk.f32.mxu0 %vm13914_vm1, %v18005_v1  ;;  %v3126_v11 = vld [vmem:[%s14040_s23 + $0xfe] sm:$0xff] }
 0x1e9   : > { %12935 = vmatprep.mubr.msk.f32.mxu1 %vm13914_vm1, %v18005_v1  ;;  %v12514_v15 = vpop.f32.mrf.mxu0 }
 0x1ea   : > { %v12651_v13 = vpop.f32.mrf.mxu1  ;;  %v15169_v31 = vadd.f32 %v2423_v29, %v2035_v33 }
 0x1eb   : > { %v1908_v34 = vpop.f32.mrf.mxu0  ;;  %12799 = vmatmul.mubr.msk.f32.gmra.mxu0 %vm679_vm2, %v2604_v48  ;;  %v2607_v13 = vld [vmem:[%s14040_s23 + $0x105] sm:$0xff] }
 0x1ec   : > { %v2428_v36 = vpop.f32.mrf.mxu1  ;;  %12936 = vmatmul.mubr.msk.f32.gmra.mxu1 %vm679_vm2, %v3124_v27  ;;  %v2036_v42 = vadd.f32 %v1908_v34, %v14690_v54  ;;  %12801 = vmatprep.mubr.msk.f32.mxu0 %vm13914_vm1, %v18005_v1  ;;  %v3127_v34 = vld [vmem:[%s14040_s23 + $0x106] sm:$0xff] }
 0x1ed   : > { %12938 = vmatprep.mubr.msk.f32.mxu1 %vm13914_vm1, %v18005_v1  ;;  %v12517_v22 = vpop.f32.mrf.mxu0 }
 0x1ee   : > { %v12654_v24 = vpop.f32.mrf.mxu1  ;;  %v15180_v39 = vadd.f32 %v2428_v36, %v2036_v42 }
 0x1ef   : > { %v1913_v59 = vpop.f32.mrf.mxu0  ;;  %12802 = vmatmul.mubr.msk.f32.gmra.mxu0 %vm679_vm2, %v2605_v58  ;;  %v2608_v24 = vld [vmem:[%s14040_s23 + $0x10d] sm:$0xff] }
 0x1f0   : > { %v2433_v44 = vpop.f32.mrf.mxu1  ;;  %12939 = vmatmul.mubr.msk.f32.gmra.mxu1 %vm679_vm2, %v3125_v52  ;;  %v2037_v54 = vadd.f32 %v1913_v59, %v14700_v2  ;;  %12804 = vmatprep.mubr.msk.f32.mxu0 %vm13914_vm1, %v18005_v1  ;;  %v3128_v59 = vld [vmem:[%s14040_s23 + $0x10e] sm:$0xff] }
 0x1f1   : > { %12941 = vmatprep.mubr.msk.f32.mxu1 %vm13914_vm1, %v18005_v1  ;;  %v12520_v29 = vpop.f32.mrf.mxu0 }
 0x1f2   : > { %v12657_v33 = vpop.f32.mrf.mxu1  ;;  %v15191_v48 = vadd.f32 %v2433_v44, %v2037_v54 }
 0x1f3   : > { %v1918_v27 = vpop.f32.mrf.mxu0  ;;  %12805 = vmatmul.mubr.msk.f32.gmra.mxu0 %vm679_vm2, %v2606_v4  ;;  %v2609_v33 = vld [vmem:[%s14040_s23 + $0x115] sm:$0xff] }
 0x1f4   : > { %v2438_v15 = vpop.f32.mrf.mxu1  ;;  %12942 = vmatmul.mubr.msk.f32.gmra.mxu1 %vm679_vm2, %v3126_v11  ;;  %v2038_v2 = vadd.f32 %v1918_v27, %v14710_v12  ;;  %12807 = vmatprep.mubr.msk.f32.mxu0 %vm13914_vm1, %v18005_v1  ;;  %v3129_v27 = vld [vmem:[%s14040_s23 + $0x116] sm:$0xff] }
 0x1f5   : > { %12944 = vmatprep.mubr.msk.f32.mxu1 %vm13914_vm1, %v18005_v1  ;;  %v12523_v36 = vpop.f32.mrf.mxu0 }
 0x1f6   : > { %v12660_v42 = vpop.f32.mrf.mxu1  ;;  %v15202_v58 = vadd.f32 %v2438_v15, %v2038_v2 }
 0x1f7   : > { %v1923_v52 = vpop.f32.mrf.mxu0  ;;  %12808 = vmatmul.mubr.msk.f32.gmra.mxu0 %vm679_vm2, %v2607_v13  ;;  %v2610_v42 = vld [vmem:[%s14040_s23 + $0x11d] sm:$0xff] }
 0x1f8   : > { %v2443_v22 = vpop.f32.mrf.mxu1  ;;  %12945 = vmatmul.mubr.msk.f32.gmra.mxu1 %vm679_vm2, %v3127_v34  ;;  %v2039_v12 = vadd.f32 %v1923_v52, %v14720_v25  ;;  %12810 = vmatprep.mubr.msk.f32.mxu0 %vm13914_vm1, %v18005_v1  ;;  %v3130_v52 = vld [vmem:[%s14040_s23 + $0x11e] sm:$0xff] }
 0x1f9   : > { %12947 = vmatprep.mubr.msk.f32.mxu1 %vm13914_vm1, %v18005_v1  ;;  %v12526_v44 = vpop.f32.mrf.mxu0 }
 0x1fa   : > { %v12663_v54 = vpop.f32.mrf.mxu1  ;;  %v15213_v4 = vadd.f32 %v2443_v22, %v2039_v12 }
 0x1fb   : > { %v1928_v11 = vpop.f32.mrf.mxu0  ;;  %12811 = vmatmul.mubr.msk.f32.gmra.mxu0 %vm679_vm2, %v2608_v24  ;;  %v2611_v54 = vld [vmem:[%s14040_s23 + $0x125] sm:$0xff] }
 0x1fc   : > { %v2448_v29 = vpop.f32.mrf.mxu1  ;;  %12948 = vmatmul.mubr.msk.f32.gmra.mxu1 %vm679_vm2, %v3128_v59  ;;  %v2040_v25 = vadd.f32 %v1928_v11, %v14730_v35  ;;  %12813 = vmatprep.mubr.msk.f32.mxu0 %vm13914_vm1, %v18005_v1  ;;  %v3131_v11 = vld [vmem:[%s14040_s23 + $0x126] sm:$0xff] }
 0x1fd   : > { %12950 = vmatprep.mubr.msk.f32.mxu1 %vm13914_vm1, %v18005_v1  ;;  %v12529_v15 = vpop.f32.mrf.mxu0 }
 0x1fe   : > { %v12666_v2 = vpop.f32.mrf.mxu1  ;;  %v15224_v13 = vadd.f32 %v2448_v29, %v2040_v25 }
 0x1ff   : > { %v1933_v34 = vpop.f32.mrf.mxu0  ;;  %12814 = vmatmul.mubr.msk.f32.gmra.mxu0 %vm679_vm2, %v2609_v33  ;;  %v2612_v2 = vld [vmem:[%s14040_s23 + $0x12d] sm:$0xff] }
 0x200   : > { %v2453_v36 = vpop.f32.mrf.mxu1  ;;  %12951 = vmatmul.mubr.msk.f32.gmra.mxu1 %vm679_vm2, %v3129_v27  ;;  %v2041_v35 = vadd.f32 %v1933_v34, %v14740_v47  ;;  %12816 = vmatprep.mubr.msk.f32.mxu0 %vm13914_vm1, %v18005_v1  ;;  %v3132_v34 = vld [vmem:[%s14040_s23 + $0x12e] sm:$0xff] }
 0x201   : > { %12953 = vmatprep.mubr.msk.f32.mxu1 %vm13914_vm1, %v18005_v1  ;;  %v12532_v22 = vpop.f32.mrf.mxu0 }
 0x202   : > { %v12669_v12 = vpop.f32.mrf.mxu1  ;;  %v15235_v24 = vadd.f32 %v2453_v36, %v2041_v35 }
 0x203   : > { %v1938_v59 = vpop.f32.mrf.mxu0  ;;  %12817 = vmatmul.mubr.msk.f32.gmra.mxu0 %vm679_vm2, %v2610_v42  ;;  %v2613_v12 = vld [vmem:[%s14040_s23 + $0x135] sm:$0xff] }
 0x204   : > { %v2458_v44 = vpop.f32.mrf.mxu1  ;;  %12954 = vmatmul.mubr.msk.f32.gmra.mxu1 %vm679_vm2, %v3130_v52  ;;  %v2042_v47 = vadd.f32 %v1938_v59, %v14750_v60  ;;  %12819 = vmatprep.mubr.msk.f32.mxu0 %vm13914_vm1, %v18005_v1  ;;  %v3133_v59 = vld [vmem:[%s14040_s23 + $0x136] sm:$0xff] }
 0x205   : > { %12956 = vmatprep.mubr.msk.f32.mxu1 %vm13914_vm1, %v18005_v1  ;;  %v12535_v29 = vpop.f32.mrf.mxu0 }
 0x206   : > { %v12672_v25 = vpop.f32.mrf.mxu1  ;;  %v15246_v33 = vadd.f32 %v2458_v44, %v2042_v47 }
 0x207   : > { %v1943_v27 = vpop.f32.mrf.mxu0  ;;  %12820 = vmatmul.mubr.msk.f32.gmra.mxu0 %vm679_vm2, %v2611_v54  ;;  %v2614_v25 = vld [vmem:[%s14040_s23 + $0x13d] sm:$0xff] }
 0x208   : > { %v2463_v15 = vpop.f32.mrf.mxu1  ;;  %12957 = vmatmul.mubr.msk.f32.gmra.mxu1 %vm679_vm2, %v3131_v11  ;;  %v2043_v60 = vadd.f32 %v1943_v27, %v14760_v10  ;;  %12822 = vmatprep.mubr.msk.f32.mxu0 %vm13914_vm1, %v18005_v1  ;;  %v3134_v27 = vld [vmem:[%s14040_s23 + $0x13e] sm:$0xff] }
 0x209   : > { %12959 = vmatprep.mubr.msk.f32.mxu1 %vm13914_vm1, %v18005_v1  ;;  %v12538_v36 = vpop.f32.mrf.mxu0 }
 0x20a   : > { %v12675_v35 = vpop.f32.mrf.mxu1  ;;  %v15257_v42 = vadd.f32 %v2463_v15, %v2043_v60 }
 0x20b   : > { %v1948_v52 = vpop.f32.mrf.mxu0  ;;  %12823 = vmatmul.mubr.msk.f32.gmra.mxu0 %vm679_vm2, %v2612_v2  ;;  %v2615_v35 = vld [vmem:[%s14040_s23 + $0x145] sm:$0xff] }
 0x20c   : > { %v2468_v22 = vpop.f32.mrf.mxu1  ;;  %12960 = vmatmul.mubr.msk.f32.gmra.mxu1 %vm679_vm2, %v3132_v34  ;;  %v2044_v10 = vadd.f32 %v1948_v52, %v14770_v21  ;;  %12825 = vmatprep.mubr.msk.f32.mxu0 %vm13914_vm1, %v18005_v1  ;;  %v3135_v52 = vld [vmem:[%s14040_s23 + $0x146] sm:$0xff] }
 0x20d   : > { %12962 = vmatprep.mubr.msk.f32.mxu1 %vm13914_vm1, %v18005_v1  ;;  %v12541_v44 = vpop.f32.mrf.mxu0 }
 0x20e   : > { %v12678_v47 = vpop.f32.mrf.mxu1  ;;  %v15268_v54 = vadd.f32 %v2468_v22, %v2044_v10 }
 0x20f   : > { %v1953_v11 = vpop.f32.mrf.mxu0  ;;  %12826 = vmatmul.mubr.msk.f32.gmra.mxu0 %vm679_vm2, %v2613_v12  ;;  %v2616_v47 = vld [vmem:[%s14040_s23 + $0x14d] sm:$0xff] }
 0x210   : > { %v2473_v29 = vpop.f32.mrf.mxu1  ;;  %12963 = vmatmul.mubr.msk.f32.gmra.mxu1 %vm679_vm2, %v3133_v59  ;;  %v2045_v21 = vadd.f32 %v1953_v11, %v14780_v37  ;;  %12828 = vmatprep.mubr.msk.f32.mxu0 %vm13914_vm1, %v18005_v1  ;;  %v3136_v11 = vld [vmem:[%s14040_s23 + $0x14e] sm:$0xff] }
 0x211   : > { %12965 = vmatprep.mubr.msk.f32.mxu1 %vm13914_vm1, %v18005_v1  ;;  %v12544_v15 = vpop.f32.mrf.mxu0 }
 0x212   : > { %v12681_v60 = vpop.f32.mrf.mxu1  ;;  %v15279_v2 = vadd.f32 %v2473_v29, %v2045_v21 }
 0x213   : > { %v1958_v34 = vpop.f32.mrf.mxu0  ;;  %12829 = vmatmul.mubr.msk.f32.gmra.mxu0 %vm679_vm2, %v2614_v25  ;;  %v2617_v60 = vld [vmem:[%s14040_s23 + $0x155] sm:$0xff] }
 0x214   : > { %v2478_v36 = vpop.f32.mrf.mxu1  ;;  %12966 = vmatmul.mubr.msk.f32.gmra.mxu1 %vm679_vm2, %v3134_v27  ;;  %v2046_v37 = vadd.f32 %v1958_v34, %v14790_v51  ;;  %12831 = vmatprep.mubr.msk.f32.mxu0 %vm13914_vm1, %v18005_v1  ;;  %v3137_v34 = vld [vmem:[%s14040_s23 + $0x156] sm:$0xff] }
 0x215   : > { %12968 = vmatprep.mubr.msk.f32.mxu1 %vm13914_vm1, %v18005_v1  ;;  %v12547_v22 = vpop.f32.mrf.mxu0 }
 0x216   : > { %v12684_v10 = vpop.f32.mrf.mxu1  ;;  %v15290_v12 = vadd.f32 %v2478_v36, %v2046_v37 }
 0x217   : > { %v1963_v59 = vpop.f32.mrf.mxu0  ;;  %12832 = vmatmul.mubr.msk.f32.gmra.mxu0 %vm679_vm2, %v2615_v35  ;;  %v2618_v10 = vld [vmem:[%s14040_s23 + $0x15d] sm:$0xff] }
 0x218   : > { %v2483_v44 = vpop.f32.mrf.mxu1  ;;  %12969 = vmatmul.mubr.msk.f32.gmra.mxu1 %vm679_vm2, %v3135_v52  ;;  %v2047_v51 = vadd.f32 %v1963_v59, %v14800_v3  ;;  %12834 = vmatprep.mubr.msk.f32.mxu0 %vm13914_vm1, %v18005_v1  ;;  %v3138_v59 = vld [vmem:[%s14040_s23 + $0x15e] sm:$0xff] }
 0x219   : > { %12971 = vmatprep.mubr.msk.f32.mxu1 %vm13914_vm1, %v18005_v1  ;;  %v12550_v29 = vpop.f32.mrf.mxu0 }
 0x21a   : > { %v12687_v21 = vpop.f32.mrf.mxu1  ;;  %v15301_v25 = vadd.f32 %v2483_v44, %v2047_v51 }
 0x21b   : > { %v1968_v27 = vpop.f32.mrf.mxu0  ;;  %12835 = vmatmul.mubr.msk.f32.gmra.mxu0 %vm679_vm2, %v2616_v47  ;;  %v2619_v21 = vld [vmem:[%s14040_s23 + $0x165] sm:$0xff] }
 0x21c   : > { %v2488_v15 = vpop.f32.mrf.mxu1  ;;  %12972 = vmatmul.mubr.msk.f32.gmra.mxu1 %vm679_vm2, %v3136_v11  ;;  %v2048_v3 = vadd.f32 %v1968_v27, %v14810_v18  ;;  %12837 = vmatprep.mubr.msk.f32.mxu0 %vm13914_vm1, %v18005_v1  ;;  %v3139_v27 = vld [vmem:[%s14040_s23 + $0x166] sm:$0xff] }
 0x21d   : > { %12974 = vmatprep.mubr.msk.f32.mxu1 %vm13914_vm1, %v18005_v1  ;;  %v12553_v36 = vpop.f32.mrf.mxu0 }
 0x21e   : > { %v12690_v37 = vpop.f32.mrf.mxu1  ;;  %v15312_v35 = vadd.f32 %v2488_v15, %v2048_v3 }
 0x21f   : > { %v1973_v52 = vpop.f32.mrf.mxu0  ;;  %12838 = vmatmul.mubr.msk.f32.gmra.mxu0 %vm679_vm2, %v2617_v60  ;;  %v2620_v37 = vld [vmem:[%s14040_s23 + $0x16d] sm:$0xff] }
 0x220   : > { %v2493_v22 = vpop.f32.mrf.mxu1  ;;  %12975 = vmatmul.mubr.msk.f32.gmra.mxu1 %vm679_vm2, %v3137_v34  ;;  %v2049_v18 = vadd.f32 %v1973_v52, %v14820_v32  ;;  %12840 = vmatprep.mubr.msk.f32.mxu0 %vm13914_vm1, %v18005_v1  ;;  %v3140_v52 = vld [vmem:[%s14040_s23 + $0x16e] sm:$0xff] }
 0x221   : > { %12977 = vmatprep.mubr.msk.f32.mxu1 %vm13914_vm1, %v18005_v1  ;;  %v12556_v44 = vpop.f32.mrf.mxu0 }
 0x222   : > { %v12693_v51 = vpop.f32.mrf.mxu1  ;;  %v15323_v47 = vadd.f32 %v2493_v22, %v2049_v18 }
 0x223   : > { %v1978_v11 = vpop.f32.mrf.mxu0  ;;  %12841 = vmatmul.mubr.msk.f32.gmra.mxu0 %vm679_vm2, %v2618_v10  ;;  %v2621_v51 = vld [vmem:[%s14040_s23 + $0x175] sm:$0xff] }
 0x224   : > { %v2498_v29 = vpop.f32.mrf.mxu1  ;;  %12978 = vmatmul.mubr.msk.f32.gmra.mxu1 %vm679_vm2, %v3138_v59  ;;  %v2050_v32 = vadd.f32 %v1978_v11, %v14830_v49  ;;  %12843 = vmatprep.mubr.msk.f32.mxu0 %vm13914_vm1, %v18005_v1  ;;  %v3141_v11 = vld [vmem:[%s14040_s23 + $0x176] sm:$0xff] }
 0x225   : > { %12980 = vmatprep.mubr.msk.f32.mxu1 %vm13914_vm1, %v18005_v1  ;;  %v12559_v15 = vpop.f32.mrf.mxu0 }
 0x226   : > { %v12696_v3 = vpop.f32.mrf.mxu1  ;;  %v15334_v60 = vadd.f32 %v2498_v29, %v2050_v32 }
 0x227   : > { %v1983_v34 = vpop.f32.mrf.mxu0  ;;  %12844 = vmatmul.mubr.msk.f32.gmra.mxu0 %vm679_vm2, %v2619_v21  ;;  %v3617_v3 = vld [vmem:[%s14040_s23 + $0x28] sm:$0xff] }
 0x228   : > { %v2503_v36 = vpop.f32.mrf.mxu1  ;;  %12981 = vmatmul.mubr.msk.f32.gmra.mxu1 %vm679_vm2, %v3139_v27  ;;  %v2051_v49 = vadd.f32 %v1983_v34, %v14840_v5  ;;  %12846 = vmatprep.mubr.msk.f32.mxu0 %vm13914_vm1, %v18005_v1  ;;  %v4137_v34 = vld [vmem:[%s14040_s23 + $0x29] sm:$0xff] }
 0x229   : > { %12983 = vmatprep.mubr.msk.f32.mxu1 %vm13914_vm1, %v18005_v1  ;;  %v12562_v22 = vpop.f32.mrf.mxu0 }
 0x22a   : > { %v12699_v18 = vpop.f32.mrf.mxu1  ;;  %v15345_v10 = vadd.f32 %v2503_v36, %v2051_v49 }
 0x22b   : > { %v1988_v59 = vpop.f32.mrf.mxu0  ;;  %12847 = vmatmul.mubr.msk.f32.gmra.mxu0 %vm679_vm2, %v2620_v37  ;;  %v10938_v37 = vld [vmem:[%s18013_s0 + $0x20] sm:$0x7] }
 0x22c   : > { %v2508_v44 = vpop.f32.mrf.mxu1  ;;  %12984 = vmatmul.mubr.msk.f32.gmra.mxu1 %vm679_vm2, %v3140_v52  ;;  %v2052_v5 = vadd.f32 %v1988_v59, %v14850_v20  ;;  %12849 = vmatprep.mubr.msk.f32.mxu0 %vm13914_vm1, %v18005_v1  ;;  %v3618_v59 = vld [vmem:[%s14040_s23 + $0x30] sm:$0xff] }
 0x22d   : > { %12986 = vmatprep.mubr.msk.f32.mxu1 %vm13914_vm1, %v18005_v1  ;;  %v12565_v29 = vpop.f32.mrf.mxu0 }
 0x22e   : > { %v12702_v32 = vpop.f32.mrf.mxu1  ;;  %v15356_v21 = vadd.f32 %v2508_v44, %v2052_v5  ;;  %v4138_v44 = vld [vmem:[%s14040_s23 + $0x31] sm:$0xff] }
 0x22f   : > { %v1993_v27 = vpop.f32.mrf.mxu0  ;;  %12850 = vmatmul.mubr.msk.f32.gmra.mxu0 %vm679_vm2, %v2621_v51 }
 0x230   : > { %v2513_v15 = vpop.f32.mrf.mxu1  ;;  %12987 = vmatmul.mubr.msk.f32.gmra.mxu1 %vm679_vm2, %v3141_v11  ;;  %v2053_v20 = vadd.f32 %v1993_v27, %v14860_v40  ;;  %12991 = vmatprep.mubr.msk.f32.mxu0 %vm13914_vm1, %v18005_v1  ;;  %v3619_v27 = vld [vmem:[%s14040_s23 + $0x38] sm:$0xff] }
 0x231   : > { %13128 = vmatprep.mubr.msk.f32.mxu1 %vm13914_vm1, %v18005_v1  ;;  %v12568_v36 = vpop.f32.mrf.mxu0 }
 0x232   : > { %v12705_v49 = vpop.f32.mrf.mxu1  ;;  %v15370_v52 = vadd.f32 %v2513_v15, %v2053_v20  ;;  %v4139_v15 = vld [vmem:[%s14040_s23 + $0x39] sm:$0xff] }
 0x233   : > { %v1998_v22 = vpop.f32.mrf.mxu0  ;;  %12992 = vmatmul.mubr.msk.f32.vlgmr.msra.gmra.mxu0 %vm679_vm2, %v3617_v3 }
 0x234   : > { %v2518_v40 = vpop.f32.mrf.mxu1  ;;  %13129 = vmatmul.mubr.msk.f32.vlgmr.msra.gmra.mxu1 %vm679_vm2, %v4137_v34  ;;  %v2054_v18 = vadd.f32 %v1998_v22, %v14873_v62  ;;  %13264 = vmatpush3.msk.msra.mxu0 %vm815_vm0, %v10938_v37  ;;  %v3620_v37 = vld [vmem:[%s14040_s23 + $0x40] sm:$0xff] }
 0x235   : > { %12994 = vmatprep.mubr.msk.f32.mxu0 %vm13914_vm1, %v18005_v1  ;;  %v12571_v5 = vpop.f32.mrf.mxu0  ;;  %13131 = vmatprep.mubr.msk.f32.mxu1 %vm13914_vm1, %v18005_v1  ;;  %v4140_v22 = vld [vmem:[%s14040_s23 + $0x41] sm:$0xff] }
 0x236   : > { %v12708_v51 = vpop.f32.mrf.mxu1  ;;  %v15382_v11 = vadd.f32 %v2518_v40, %v2054_v18 }
 0x237   : > { %v2003_v29 = vpop.f32.mrf.mxu0  ;;  %12995 = vmatmul.mubr.msk.f32.gmra.mxu0 %vm679_vm2, %v3618_v59  ;;  %v3621_v51 = vld [vmem:[%s14040_s23 + $0x48] sm:$0xff] }
 0x238   : > { %v2523_v32 = vpop.f32.mrf.mxu1  ;;  %13132 = vmatmul.mubr.msk.f32.gmra.mxu1 %vm679_vm2, %v4138_v44  ;;  %v2055_v62 = vadd.f32 %v2003_v29, %v14885_v19  ;;  %12997 = vmatprep.mubr.msk.f32.mxu0 %vm13914_vm1, %v18005_v1  ;;  %v4141_v29 = vld [vmem:[%s14040_s23 + $0x49] sm:$0xff] }
 0x239   : > { %13134 = vmatprep.mubr.msk.f32.mxu1 %vm13914_vm1, %v18005_v1  ;;  %v12574_v20 = vpop.f32.mrf.mxu0 }
 0x23a   : > { %v12711_v3 = vpop.f32.mrf.mxu1  ;;  %v15393_v34 = vadd.f32 %v2523_v32, %v2055_v62 }
 0x23b   : > { %v2008_v36 = vpop.f32.mrf.mxu0  ;;  %12998 = vmatmul.mubr.msk.f32.gmra.mxu0 %vm679_vm2, %v3619_v27  ;;  %v3622_v3 = vld [vmem:[%s14040_s23 + $0x50] sm:$0xff] }
 0x23c   : > { %v2528_v49 = vpop.f32.mrf.mxu1  ;;  %13135 = vmatmul.mubr.msk.f32.gmra.mxu1 %vm679_vm2, %v4139_v15  ;;  %v2056_v19 = vadd.f32 %v2008_v36, %v14895_v41  ;;  %13000 = vmatprep.mubr.msk.f32.mxu0 %vm13914_vm1, %v18005_v1  ;;  %v4142_v36 = vld [vmem:[%s14040_s23 + $0x51] sm:$0xff] }
 0x23d   : > { %13137 = vmatprep.mubr.msk.f32.mxu1 %vm13914_vm1, %v18005_v1  ;;  %v12577_v40 = vpop.f32.mrf.mxu0 }
 0x23e   : > { %v12714_v18 = vpop.f32.mrf.mxu1  ;;  %v15404_v59 = vadd.f32 %v2528_v49, %v2056_v19 }
 0x23f   : > { %v2828_v44 = vpop.f32.mrf.mxu0  ;;  %13001 = vmatmul.mubr.msk.f32.gmra.mxu0 %vm679_vm2, %v3620_v37  ;;  %v3623_v18 = vld [vmem:[%s14040_s23 + $0x58] sm:$0xff] }
 0x240   : > { %v3348_v5 = vpop.f32.mrf.mxu1  ;;  %13138 = vmatmul.mubr.msk.f32.gmra.mxu1 %vm679_vm2, %v4140_v22  ;;  %v3052_v41 = vadd.f32 %v2828_v44, %v14912_v17  ;;  %13003 = vmatprep.mubr.msk.f32.mxu0 %vm13914_vm1, %v18005_v1  ;;  %v4143_v44 = vld [vmem:[%s14040_s23 + $0x59] sm:$0xff] }
 0x241   : > { %13140 = vmatprep.mubr.msk.f32.mxu1 %vm13914_vm1, %v18005_v1  ;;  %v12719_v32 = vpop.f32.mrf.mxu0 }
 0x242   : > { %v12856_v62 = vpop.f32.mrf.mxu1  ;;  %v15415_v27 = vadd.f32 %v3348_v5, %v3052_v41 }
 0x243   : > { %v2833_v15 = vpop.f32.mrf.mxu0  ;;  %13004 = vmatmul.mubr.msk.f32.gmra.mxu0 %vm679_vm2, %v3621_v51  ;;  %v3624_v62 = vld [vmem:[%s14040_s23 + $0x60] sm:$0xff] }
 0x244   : > { %v3353_v20 = vpop.f32.mrf.mxu1  ;;  %13141 = vmatmul.mubr.msk.f32.gmra.mxu1 %vm679_vm2, %v4141_v29  ;;  %v3053_v17 = vadd.f32 %v2833_v15, %v14923_v45  ;;  %13006 = vmatprep.mubr.msk.f32.mxu0 %vm13914_vm1, %v18005_v1  ;;  %v4144_v15 = vld [vmem:[%s14040_s23 + $0x61] sm:$0xff] }
 0x245   : > { %13143 = vmatprep.mubr.msk.f32.mxu1 %vm13914_vm1, %v18005_v1  ;;  %v12722_v49 = vpop.f32.mrf.mxu0 }
 0x246   : > { %v12859_v19 = vpop.f32.mrf.mxu1  ;;  %v15426_v37 = vadd.f32 %v3353_v20, %v3053_v17 }
 0x247   : > { %v2838_v22 = vpop.f32.mrf.mxu0  ;;  %13007 = vmatmul.mubr.msk.f32.gmra.mxu0 %vm679_vm2, %v3622_v3  ;;  %v3625_v19 = vld [vmem:[%s14040_s23 + $0x68] sm:$0xff] }
 0x248   : > { %v3358_v40 = vpop.f32.mrf.mxu1  ;;  %13144 = vmatmul.mubr.msk.f32.gmra.mxu1 %vm679_vm2, %v4142_v36  ;;  %v3054_v45 = vadd.f32 %v2838_v22, %v14934_v7  ;;  %13009 = vmatprep.mubr.msk.f32.mxu0 %vm13914_vm1, %v18005_v1  ;;  %v4145_v22 = vld [vmem:[%s14040_s23 + $0x69] sm:$0xff] }
 0x249   : > { %13146 = vmatprep.mubr.msk.f32.mxu1 %vm13914_vm1, %v18005_v1  ;;  %v12725_v5 = vpop.f32.mrf.mxu0 }
 0x24a   : > { %v12862_v41 = vpop.f32.mrf.mxu1  ;;  %v15437_v51 = vadd.f32 %v3358_v40, %v3054_v45 }
 0x24b   : > { %v2843_v29 = vpop.f32.mrf.mxu0  ;;  %13010 = vmatmul.mubr.msk.f32.gmra.mxu0 %vm679_vm2, %v3623_v18  ;;  %v3626_v41 = vld [vmem:[%s14040_s23 + $0x70] sm:$0xff] }
 0x24c   : > { %v3363_v32 = vpop.f32.mrf.mxu1  ;;  %13147 = vmatmul.mubr.msk.f32.gmra.mxu1 %vm679_vm2, %v4143_v44  ;;  %v3055_v7 = vadd.f32 %v2843_v29, %v14945_v28  ;;  %13012 = vmatprep.mubr.msk.f32.mxu0 %vm13914_vm1, %v18005_v1  ;;  %v4146_v29 = vld [vmem:[%s14040_s23 + $0x71] sm:$0xff] }
 0x24d   : > { %13149 = vmatprep.mubr.msk.f32.mxu1 %vm13914_vm1, %v18005_v1  ;;  %v12728_v20 = vpop.f32.mrf.mxu0 }
 0x24e   : > { %v12865_v17 = vpop.f32.mrf.mxu1  ;;  %v15448_v3 = vadd.f32 %v3363_v32, %v3055_v7 }
 0x24f   : > { %v2848_v36 = vpop.f32.mrf.mxu0  ;;  %13013 = vmatmul.mubr.msk.f32.gmra.mxu0 %vm679_vm2, %v3624_v62  ;;  %v3627_v17 = vld [vmem:[%s14040_s23 + $0x78] sm:$0xff] }
 0x250   : > { %v3368_v49 = vpop.f32.mrf.mxu1  ;;  %13150 = vmatmul.mubr.msk.f32.gmra.mxu1 %vm679_vm2, %v4144_v15  ;;  %v3056_v28 = vadd.f32 %v2848_v36, %v14956_v55  ;;  %13015 = vmatprep.mubr.msk.f32.mxu0 %vm13914_vm1, %v18005_v1  ;;  %v4147_v36 = vld [vmem:[%s14040_s23 + $0x79] sm:$0xff] }
 0x251   : > { %13152 = vmatprep.mubr.msk.f32.mxu1 %vm13914_vm1, %v18005_v1  ;;  %v12731_v40 = vpop.f32.mrf.mxu0 }
 0x252   : > { %v12868_v45 = vpop.f32.mrf.mxu1  ;;  %v15459_v18 = vadd.f32 %v3368_v49, %v3056_v28 }
 0x253   : > { %v2853_v44 = vpop.f32.mrf.mxu0  ;;  %13016 = vmatmul.mubr.msk.f32.gmra.mxu0 %vm679_vm2, %v3625_v19  ;;  %v3628_v45 = vld [vmem:[%s14040_s23 + $0x80] sm:$0xff] }
 0x254   : > { %v3373_v5 = vpop.f32.mrf.mxu1  ;;  %13153 = vmatmul.mubr.msk.f32.gmra.mxu1 %vm679_vm2, %v4145_v22  ;;  %v3057_v55 = vadd.f32 %v2853_v44, %v14967_v16  ;;  %13018 = vmatprep.mubr.msk.f32.mxu0 %vm13914_vm1, %v18005_v1  ;;  %v4148_v44 = vld [vmem:[%s14040_s23 + $0x81] sm:$0xff] }
 0x255   : > { %13155 = vmatprep.mubr.msk.f32.mxu1 %vm13914_vm1, %v18005_v1  ;;  %v12734_v32 = vpop.f32.mrf.mxu0 }
 0x256   : > { %v12871_v7 = vpop.f32.mrf.mxu1  ;;  %v15470_v62 = vadd.f32 %v3373_v5, %v3057_v55 }
 0x257   : > { %v2858_v15 = vpop.f32.mrf.mxu0  ;;  %13019 = vmatmul.mubr.msk.f32.gmra.mxu0 %vm679_vm2, %v3626_v41  ;;  %v3629_v7 = vld [vmem:[%s14040_s23 + $0x88] sm:$0xff] }
 0x258   : > { %v3378_v20 = vpop.f32.mrf.mxu1  ;;  %13156 = vmatmul.mubr.msk.f32.gmra.mxu1 %vm679_vm2, %v4146_v29  ;;  %v3058_v16 = vadd.f32 %v2858_v15, %v14978_v38  ;;  %13021 = vmatprep.mubr.msk.f32.mxu0 %vm13914_vm1, %v18005_v1  ;;  %v4149_v15 = vld [vmem:[%s14040_s23 + $0x89] sm:$0xff] }
 0x259   : > { %13158 = vmatprep.mubr.msk.f32.mxu1 %vm13914_vm1, %v18005_v1  ;;  %v12737_v49 = vpop.f32.mrf.mxu0 }
 0x25a   : > { %v12874_v28 = vpop.f32.mrf.mxu1  ;;  %v15481_v19 = vadd.f32 %v3378_v20, %v3058_v16 }
 0x25b   : > { %v2863_v22 = vpop.f32.mrf.mxu0  ;;  %13022 = vmatmul.mubr.msk.f32.gmra.mxu0 %vm679_vm2, %v3627_v17  ;;  %v3630_v28 = vld [vmem:[%s14040_s23 + $0x90] sm:$0xff] }
 0x25c   : > { %v3383_v40 = vpop.f32.mrf.mxu1  ;;  %13159 = vmatmul.mubr.msk.f32.gmra.mxu1 %vm679_vm2, %v4147_v36  ;;  %v3059_v38 = vadd.f32 %v2863_v22, %v14989_v63  ;;  %13024 = vmatprep.mubr.msk.f32.mxu0 %vm13914_vm1, %v18005_v1  ;;  %v4150_v22 = vld [vmem:[%s14040_s23 + $0x91] sm:$0xff] }
 0x25d   : > { %13161 = vmatprep.mubr.msk.f32.mxu1 %vm13914_vm1, %v18005_v1  ;;  %v12740_v5 = vpop.f32.mrf.mxu0 }
 0x25e   : > { %v12877_v55 = vpop.f32.mrf.mxu1  ;;  %v15492_v41 = vadd.f32 %v3383_v40, %v3059_v38 }
 0x25f   : > { %v2868_v29 = vpop.f32.mrf.mxu0  ;;  %13025 = vmatmul.mubr.msk.f32.gmra.mxu0 %vm679_vm2, %v3628_v45  ;;  %v3631_v55 = vld [vmem:[%s14040_s23 + $0x98] sm:$0xff] }
 0x260   : > { %v3388_v32 = vpop.f32.mrf.mxu1  ;;  %13162 = vmatmul.mubr.msk.f32.gmra.mxu1 %vm679_vm2, %v4148_v44  ;;  %v3060_v63 = vadd.f32 %v2868_v29, %v15000_v43  ;;  %13027 = vmatprep.mubr.msk.f32.mxu0 %vm13914_vm1, %v18005_v1  ;;  %v4151_v29 = vld [vmem:[%s14040_s23 + $0x99] sm:$0xff] }
 0x261   : > { %13164 = vmatprep.mubr.msk.f32.mxu1 %vm13914_vm1, %v18005_v1  ;;  %v12743_v20 = vpop.f32.mrf.mxu0 }
 0x262   : > { %v12880_v16 = vpop.f32.mrf.mxu1  ;;  %v15503_v17 = vadd.f32 %v3388_v32, %v3060_v63 }
 0x263   : > { %v2873_v36 = vpop.f32.mrf.mxu0  ;;  %13028 = vmatmul.mubr.msk.f32.gmra.mxu0 %vm679_vm2, %v3629_v7  ;;  %v3632_v16 = vld [vmem:[%s14040_s23 + $0xa0] sm:$0xff] }
 0x264   : > { %v3393_v49 = vpop.f32.mrf.mxu1  ;;  %13165 = vmatmul.mubr.msk.f32.gmra.mxu1 %vm679_vm2, %v4149_v15  ;;  %v3061_v43 = vadd.f32 %v2873_v36, %v15011_v50  ;;  %13030 = vmatprep.mubr.msk.f32.mxu0 %vm13914_vm1, %v18005_v1  ;;  %v4152_v36 = vld [vmem:[%s14040_s23 + $0xa1] sm:$0xff] }
 0x265   : > { %13167 = vmatprep.mubr.msk.f32.mxu1 %vm13914_vm1, %v18005_v1  ;;  %v12746_v40 = vpop.f32.mrf.mxu0 }
 0x266   : > { %v12883_v38 = vpop.f32.mrf.mxu1  ;;  %v15514_v45 = vadd.f32 %v3393_v49, %v3061_v43 }
 0x267   : > { %v2878_v44 = vpop.f32.mrf.mxu0  ;;  %13031 = vmatmul.mubr.msk.f32.gmra.mxu0 %vm679_vm2, %v3630_v28  ;;  %v3633_v38 = vld [vmem:[%s14040_s23 + $0xa8] sm:$0xff] }
 0x268   : > { %v3398_v5 = vpop.f32.mrf.mxu1  ;;  %13168 = vmatmul.mubr.msk.f32.gmra.mxu1 %vm679_vm2, %v4150_v22  ;;  %v3062_v50 = vadd.f32 %v2878_v44, %v15026_v26  ;;  %13033 = vmatprep.mubr.msk.f32.mxu0 %vm13914_vm1, %v18005_v1  ;;  %v4153_v44 = vld [vmem:[%s14040_s23 + $0xa9] sm:$0xff] }
 0x269   : > { %13170 = vmatprep.mubr.msk.f32.mxu1 %vm13914_vm1, %v18005_v1  ;;  %v12749_v32 = vpop.f32.mrf.mxu0 }
 0x26a   : > { %v12886_v63 = vpop.f32.mrf.mxu1  ;;  %v15525_v7 = vadd.f32 %v3398_v5, %v3062_v50 }
 0x26b   : > { %v2883_v15 = vpop.f32.mrf.mxu0  ;;  %13034 = vmatmul.mubr.msk.f32.gmra.mxu0 %vm679_vm2, %v3631_v55  ;;  %v3634_v63 = vld [vmem:[%s14040_s23 + $0xb0] sm:$0xff] }
 0x26c   : > { %v3403_v20 = vpop.f32.mrf.mxu1  ;;  %13171 = vmatmul.mubr.msk.f32.gmra.mxu1 %vm679_vm2, %v4151_v29  ;;  %v3063_v26 = vadd.f32 %v2883_v15, %v15037_v46  ;;  %13036 = vmatprep.mubr.msk.f32.mxu0 %vm13914_vm1, %v18005_v1  ;;  %v4154_v15 = vld [vmem:[%s14040_s23 + $0xb1] sm:$0xff] }
 0x26d   : > { %13173 = vmatprep.mubr.msk.f32.mxu1 %vm13914_vm1, %v18005_v1  ;;  %v12752_v49 = vpop.f32.mrf.mxu0 }
 0x26e   : > { %v12889_v43 = vpop.f32.mrf.mxu1  ;;  %v15536_v28 = vadd.f32 %v3403_v20, %v3063_v26 }
 0x26f   : > { %v2888_v22 = vpop.f32.mrf.mxu0  ;;  %13037 = vmatmul.mubr.msk.f32.gmra.mxu0 %vm679_vm2, %v3632_v16  ;;  %v3635_v43 = vld [vmem:[%s14040_s23 + $0xb8] sm:$0xff] }
 0x270   : > { %v3408_v40 = vpop.f32.mrf.mxu1  ;;  %13174 = vmatmul.mubr.msk.f32.gmra.mxu1 %vm679_vm2, %v4152_v36  ;;  %v3064_v46 = vadd.f32 %v2888_v22, %v15048_v9  ;;  %13039 = vmatprep.mubr.msk.f32.mxu0 %vm13914_vm1, %v18005_v1  ;;  %v4155_v22 = vld [vmem:[%s14040_s23 + $0xb9] sm:$0xff] }
 0x271   : > { %13176 = vmatprep.mubr.msk.f32.mxu1 %vm13914_vm1, %v18005_v1  ;;  %v12755_v5 = vpop.f32.mrf.mxu0 }
 0x272   : > { %v12892_v50 = vpop.f32.mrf.mxu1  ;;  %v15547_v55 = vadd.f32 %v3408_v40, %v3064_v46 }
 0x273   : > { %v2893_v29 = vpop.f32.mrf.mxu0  ;;  %13040 = vmatmul.mubr.msk.f32.gmra.mxu0 %vm679_vm2, %v3633_v38  ;;  %v3636_v50 = vld [vmem:[%s14040_s23 + $0xc0] sm:$0xff] }
 0x274   : > { %v3413_v32 = vpop.f32.mrf.mxu1  ;;  %13177 = vmatmul.mubr.msk.f32.gmra.mxu1 %vm679_vm2, %v4153_v44  ;;  %v3065_v9 = vadd.f32 %v2893_v29, %v15059_v30  ;;  %13042 = vmatprep.mubr.msk.f32.mxu0 %vm13914_vm1, %v18005_v1  ;;  %v4156_v29 = vld [vmem:[%s14040_s23 + $0xc1] sm:$0xff] }
 0x275   : > { %13179 = vmatprep.mubr.msk.f32.mxu1 %vm13914_vm1, %v18005_v1  ;;  %v12758_v20 = vpop.f32.mrf.mxu0 }
 0x276   : > { %v12895_v26 = vpop.f32.mrf.mxu1  ;;  %v15558_v16 = vadd.f32 %v3413_v32, %v3065_v9 }
 0x277   : > { %v2898_v36 = vpop.f32.mrf.mxu0  ;;  %13043 = vmatmul.mubr.msk.f32.gmra.mxu0 %vm679_vm2, %v3634_v63  ;;  %v3637_v26 = vld [vmem:[%s14040_s23 + $0xc8] sm:$0xff] }
 0x278   : > { %v3418_v49 = vpop.f32.mrf.mxu1  ;;  %13180 = vmatmul.mubr.msk.f32.gmra.mxu1 %vm679_vm2, %v4154_v15  ;;  %v3066_v30 = vadd.f32 %v2898_v36, %v15070_v56  ;;  %13045 = vmatprep.mubr.msk.f32.mxu0 %vm13914_vm1, %v18005_v1  ;;  %v4157_v36 = vld [vmem:[%s14040_s23 + $0xc9] sm:$0xff] }
 0x279   : > { %13182 = vmatprep.mubr.msk.f32.mxu1 %vm13914_vm1, %v18005_v1  ;;  %v12761_v40 = vpop.f32.mrf.mxu0 }
 0x27a   : > { %v12898_v46 = vpop.f32.mrf.mxu1  ;;  %v15569_v38 = vadd.f32 %v3418_v49, %v3066_v30 }
 0x27b   : > { %v2903_v44 = vpop.f32.mrf.mxu0  ;;  %13046 = vmatmul.mubr.msk.f32.gmra.mxu0 %vm679_vm2, %v3635_v43  ;;  %v3638_v46 = vld [vmem:[%s14040_s23 + $0xd0] sm:$0xff] }
 0x27c   : > { %v3423_v5 = vpop.f32.mrf.mxu1  ;;  %13183 = vmatmul.mubr.msk.f32.gmra.mxu1 %vm679_vm2, %v4155_v22  ;;  %v3067_v56 = vadd.f32 %v2903_v44, %v15081_v57  ;;  %13048 = vmatprep.mubr.msk.f32.mxu0 %vm13914_vm1, %v18005_v1  ;;  %v4158_v44 = vld [vmem:[%s14040_s23 + $0xd1] sm:$0xff] }
 0x27d   : > { %13185 = vmatprep.mubr.msk.f32.mxu1 %vm13914_vm1, %v18005_v1  ;;  %v12764_v32 = vpop.f32.mrf.mxu0 }
 0x27e   : > { %v12901_v9 = vpop.f32.mrf.mxu1  ;;  %v15580_v63 = vadd.f32 %v3423_v5, %v3067_v56 }
 0x27f   : > { %v2908_v15 = vpop.f32.mrf.mxu0  ;;  %13049 = vmatmul.mubr.msk.f32.gmra.mxu0 %vm679_vm2, %v3636_v50  ;;  %v3639_v9 = vld [vmem:[%s14040_s23 + $0xd8] sm:$0xff] }
 0x280   : > { %v3428_v20 = vpop.f32.mrf.mxu1  ;;  %13186 = vmatmul.mubr.msk.f32.gmra.mxu1 %vm679_vm2, %v4156_v29  ;;  %v3068_v57 = vadd.f32 %v2908_v15, %v15092_v0  ;;  %13051 = vmatprep.mubr.msk.f32.mxu0 %vm13914_vm1, %v18005_v1  ;;  %v4159_v15 = vld [vmem:[%s14040_s23 + $0xd9] sm:$0xff] }
 0x281   : > { %13188 = vmatprep.mubr.msk.f32.mxu1 %vm13914_vm1, %v18005_v1  ;;  %v12767_v49 = vpop.f32.mrf.mxu0 }
 0x282   : > { %v12904_v30 = vpop.f32.mrf.mxu1  ;;  %v15591_v43 = vadd.f32 %v3428_v20, %v3068_v57 }
 0x283   : > { %v2913_v22 = vpop.f32.mrf.mxu0  ;;  %13052 = vmatmul.mubr.msk.f32.gmra.mxu0 %vm679_vm2, %v3637_v26  ;;  %v3640_v30 = vld [vmem:[%s14040_s23 + $0xe0] sm:$0xff] }
 0x284   : > { %v3433_v40 = vpop.f32.mrf.mxu1  ;;  %13189 = vmatmul.mubr.msk.f32.gmra.mxu1 %vm679_vm2, %v4157_v36  ;;  %v3069_v0 = vadd.f32 %v2913_v22, %v15103_v8  ;;  %13054 = vmatprep.mubr.msk.f32.mxu0 %vm13914_vm1, %v18005_v1  ;;  %v4160_v22 = vld [vmem:[%s14040_s23 + $0xe1] sm:$0xff] }
 0x285   : > { %13191 = vmatprep.mubr.msk.f32.mxu1 %vm13914_vm1, %v18005_v1  ;;  %v12770_v5 = vpop.f32.mrf.mxu0 }
 0x286   : > { %v12907_v56 = vpop.f32.mrf.mxu1  ;;  %v15602_v50 = vadd.f32 %v3433_v40, %v3069_v0 }
 0x287   : > { %v2918_v29 = vpop.f32.mrf.mxu0  ;;  %13055 = vmatmul.mubr.msk.f32.gmra.mxu0 %vm679_vm2, %v3638_v46  ;;  %v3641_v56 = vld [vmem:[%s14040_s23 + $0xe8] sm:$0xff] }
 0x288   : > { %v3438_v32 = vpop.f32.mrf.mxu1  ;;  %13192 = vmatmul.mubr.msk.f32.gmra.mxu1 %vm679_vm2, %v4158_v44  ;;  %v3070_v8 = vadd.f32 %v2918_v29, %v15114_v53  ;;  %13057 = vmatprep.mubr.msk.f32.mxu0 %vm13914_vm1, %v18005_v1  ;;  %v4161_v29 = vld [vmem:[%s14040_s23 + $0xe9] sm:$0xff] }
 0x289   : > { %13194 = vmatprep.mubr.msk.f32.mxu1 %vm13914_vm1, %v18005_v1  ;;  %v12773_v20 = vpop.f32.mrf.mxu0 }
 0x28a   : > { %v12910_v57 = vpop.f32.mrf.mxu1  ;;  %v15613_v26 = vadd.f32 %v3438_v32, %v3070_v8 }
 0x28b   : > { %v2923_v36 = vpop.f32.mrf.mxu0  ;;  %13058 = vmatmul.mubr.msk.f32.gmra.mxu0 %vm679_vm2, %v3639_v9  ;;  %v3642_v57 = vld [vmem:[%s14040_s23 + $0xf0] sm:$0xff] }
 0x28c   : > { %v3443_v49 = vpop.f32.mrf.mxu1  ;;  %13195 = vmatmul.mubr.msk.f32.gmra.mxu1 %vm679_vm2, %v4159_v15  ;;  %v3071_v53 = vadd.f32 %v2923_v36, %v15125_v61  ;;  %13060 = vmatprep.mubr.msk.f32.mxu0 %vm13914_vm1, %v18005_v1  ;;  %v4162_v36 = vld [vmem:[%s14040_s23 + $0xf1] sm:$0xff] }
 0x28d   : > { %13197 = vmatprep.mubr.msk.f32.mxu1 %vm13914_vm1, %v18005_v1  ;;  %v12776_v40 = vpop.f32.mrf.mxu0 }
 0x28e   : > { %v12913_v0 = vpop.f32.mrf.mxu1  ;;  %v15624_v46 = vadd.f32 %v3443_v49, %v3071_v53 }
 0x28f   : > { %v2928_v44 = vpop.f32.mrf.mxu0  ;;  %13061 = vmatmul.mubr.msk.f32.gmra.mxu0 %vm679_vm2, %v3640_v30  ;;  %v3643_v0 = vld [vmem:[%s14040_s23 + $0xf8] sm:$0xff] }
 0x290   : > { %v3448_v5 = vpop.f32.mrf.mxu1  ;;  %13198 = vmatmul.mubr.msk.f32.gmra.mxu1 %vm679_vm2, %v4160_v22  ;;  %v3072_v61 = vadd.f32 %v2928_v44, %v15136_v6  ;;  %13063 = vmatprep.mubr.msk.f32.mxu0 %vm13914_vm1, %v18005_v1  ;;  %v4163_v44 = vld [vmem:[%s14040_s23 + $0xf9] sm:$0xff] }
 0x291   : > { %13200 = vmatprep.mubr.msk.f32.mxu1 %vm13914_vm1, %v18005_v1  ;;  %v12779_v32 = vpop.f32.mrf.mxu0 }
 0x292   : > { %v12916_v8 = vpop.f32.mrf.mxu1  ;;  %v15635_v9 = vadd.f32 %v3448_v5, %v3072_v61 }
 0x293   : > { %v2933_v15 = vpop.f32.mrf.mxu0  ;;  %13064 = vmatmul.mubr.msk.f32.gmra.mxu0 %vm679_vm2, %v3641_v56  ;;  %v3644_v8 = vld [vmem:[%s14040_s23 + $0x100] sm:$0xff] }
 0x294   : > { %v3453_v20 = vpop.f32.mrf.mxu1  ;;  %13201 = vmatmul.mubr.msk.f32.gmra.mxu1 %vm679_vm2, %v4161_v29  ;;  %v3073_v6 = vadd.f32 %v2933_v15, %v15147_v14  ;;  %13066 = vmatprep.mubr.msk.f32.mxu0 %vm13914_vm1, %v18005_v1  ;;  %v4164_v15 = vld [vmem:[%s14040_s23 + $0x101] sm:$0xff] }
 0x295   : > { %13203 = vmatprep.mubr.msk.f32.mxu1 %vm13914_vm1, %v18005_v1  ;;  %v12782_v49 = vpop.f32.mrf.mxu0 }
 0x296   : > { %v12919_v53 = vpop.f32.mrf.mxu1  ;;  %v15646_v30 = vadd.f32 %v3453_v20, %v3073_v6 }
 0x297   : > { %v2938_v22 = vpop.f32.mrf.mxu0  ;;  %13067 = vmatmul.mubr.msk.f32.gmra.mxu0 %vm679_vm2, %v3642_v57  ;;  %v3645_v53 = vld [vmem:[%s14040_s23 + $0x108] sm:$0xff] }
 0x298   : > { %v3458_v40 = vpop.f32.mrf.mxu1  ;;  %13204 = vmatmul.mubr.msk.f32.gmra.mxu1 %vm679_vm2, %v4162_v36  ;;  %v3074_v14 = vadd.f32 %v2938_v22, %v15158_v23  ;;  %13069 = vmatprep.mubr.msk.f32.mxu0 %vm13914_vm1, %v18005_v1  ;;  %v4165_v22 = vld [vmem:[%s14040_s23 + $0x109] sm:$0xff] }
 0x299   : > { %13206 = vmatprep.mubr.msk.f32.mxu1 %vm13914_vm1, %v18005_v1  ;;  %v12785_v5 = vpop.f32.mrf.mxu0 }
 0x29a   : > { %v12922_v61 = vpop.f32.mrf.mxu1  ;;  %v15657_v56 = vadd.f32 %v3458_v40, %v3074_v14 }
 0x29b   : > { %v2943_v29 = vpop.f32.mrf.mxu0  ;;  %13070 = vmatmul.mubr.msk.f32.gmra.mxu0 %vm679_vm2, %v3643_v0  ;;  %v3646_v61 = vld [vmem:[%s14040_s23 + $0x110] sm:$0xff] }
 0x29c   : > { %v3463_v32 = vpop.f32.mrf.mxu1  ;;  %13207 = vmatmul.mubr.msk.f32.gmra.mxu1 %vm679_vm2, %v4163_v44  ;;  %v3075_v23 = vadd.f32 %v2943_v29, %v15169_v31  ;;  %13072 = vmatprep.mubr.msk.f32.mxu0 %vm13914_vm1, %v18005_v1  ;;  %v4166_v29 = vld [vmem:[%s14040_s23 + $0x111] sm:$0xff] }
 0x29d   : > { %13209 = vmatprep.mubr.msk.f32.mxu1 %vm13914_vm1, %v18005_v1  ;;  %v12788_v20 = vpop.f32.mrf.mxu0 }
 0x29e   : > { %v12925_v6 = vpop.f32.mrf.mxu1  ;;  %v15668_v57 = vadd.f32 %v3463_v32, %v3075_v23 }
 0x29f   : > { %v2948_v36 = vpop.f32.mrf.mxu0  ;;  %13073 = vmatmul.mubr.msk.f32.gmra.mxu0 %vm679_vm2, %v3644_v8  ;;  %v3647_v6 = vld [vmem:[%s14040_s23 + $0x118] sm:$0xff] }
 0x2a0   : > { %v3468_v49 = vpop.f32.mrf.mxu1  ;;  %13210 = vmatmul.mubr.msk.f32.gmra.mxu1 %vm679_vm2, %v4164_v15  ;;  %v3076_v31 = vadd.f32 %v2948_v36, %v15180_v39  ;;  %13075 = vmatprep.mubr.msk.f32.mxu0 %vm13914_vm1, %v18005_v1  ;;  %v4167_v36 = vld [vmem:[%s14040_s23 + $0x119] sm:$0xff] }
 0x2a1   : > { %13212 = vmatprep.mubr.msk.f32.mxu1 %vm13914_vm1, %v18005_v1  ;;  %v12791_v40 = vpop.f32.mrf.mxu0 }
 0x2a2   : > { %v12928_v14 = vpop.f32.mrf.mxu1  ;;  %v15679_v0 = vadd.f32 %v3468_v49, %v3076_v31 }
 0x2a3   : > { %v2953_v44 = vpop.f32.mrf.mxu0  ;;  %13076 = vmatmul.mubr.msk.f32.gmra.mxu0 %vm679_vm2, %v3645_v53  ;;  %v3648_v14 = vld [vmem:[%s14040_s23 + $0x120] sm:$0xff] }
 0x2a4   : > { %v3473_v5 = vpop.f32.mrf.mxu1  ;;  %13213 = vmatmul.mubr.msk.f32.gmra.mxu1 %vm679_vm2, %v4165_v22  ;;  %v3077_v39 = vadd.f32 %v2953_v44, %v15191_v48  ;;  %13078 = vmatprep.mubr.msk.f32.mxu0 %vm13914_vm1, %v18005_v1  ;;  %v4168_v44 = vld [vmem:[%s14040_s23 + $0x121] sm:$0xff] }
 0x2a5   : > { %13215 = vmatprep.mubr.msk.f32.mxu1 %vm13914_vm1, %v18005_v1  ;;  %v12794_v32 = vpop.f32.mrf.mxu0 }
 0x2a6   : > { %v12931_v23 = vpop.f32.mrf.mxu1  ;;  %v15690_v8 = vadd.f32 %v3473_v5, %v3077_v39 }
 0x2a7   : > { %v2958_v15 = vpop.f32.mrf.mxu0  ;;  %13079 = vmatmul.mubr.msk.f32.gmra.mxu0 %vm679_vm2, %v3646_v61  ;;  %v3649_v23 = vld [vmem:[%s14040_s23 + $0x128] sm:$0xff] }
 0x2a8   : > { %v3478_v20 = vpop.f32.mrf.mxu1  ;;  %13216 = vmatmul.mubr.msk.f32.gmra.mxu1 %vm679_vm2, %v4166_v29  ;;  %v3078_v48 = vadd.f32 %v2958_v15, %v15202_v58  ;;  %13081 = vmatprep.mubr.msk.f32.mxu0 %vm13914_vm1, %v18005_v1  ;;  %v4169_v15 = vld [vmem:[%s14040_s23 + $0x129] sm:$0xff] }
 0x2a9   : > { %13218 = vmatprep.mubr.msk.f32.mxu1 %vm13914_vm1, %v18005_v1  ;;  %v12797_v49 = vpop.f32.mrf.mxu0 }
 0x2aa   : > { %v12934_v31 = vpop.f32.mrf.mxu1  ;;  %v15701_v53 = vadd.f32 %v3478_v20, %v3078_v48 }
 0x2ab   : > { %v2963_v22 = vpop.f32.mrf.mxu0  ;;  %13082 = vmatmul.mubr.msk.f32.gmra.mxu0 %vm679_vm2, %v3647_v6  ;;  %v3650_v31 = vld [vmem:[%s14040_s23 + $0x130] sm:$0xff] }
 0x2ac   : > { %v3483_v40 = vpop.f32.mrf.mxu1  ;;  %13219 = vmatmul.mubr.msk.f32.gmra.mxu1 %vm679_vm2, %v4167_v36  ;;  %v3079_v58 = vadd.f32 %v2963_v22, %v15213_v4  ;;  %13084 = vmatprep.mubr.msk.f32.mxu0 %vm13914_vm1, %v18005_v1  ;;  %v4170_v22 = vld [vmem:[%s14040_s23 + $0x131] sm:$0xff] }
 0x2ad   : > { %13221 = vmatprep.mubr.msk.f32.mxu1 %vm13914_vm1, %v18005_v1  ;;  %v12800_v5 = vpop.f32.mrf.mxu0 }
 0x2ae   : > { %v12937_v39 = vpop.f32.mrf.mxu1  ;;  %v15712_v61 = vadd.f32 %v3483_v40, %v3079_v58 }
 0x2af   : > { %v2968_v29 = vpop.f32.mrf.mxu0  ;;  %13085 = vmatmul.mubr.msk.f32.gmra.mxu0 %vm679_vm2, %v3648_v14  ;;  %v3651_v39 = vld [vmem:[%s14040_s23 + $0x138] sm:$0xff] }
 0x2b0   : > { %v3488_v32 = vpop.f32.mrf.mxu1  ;;  %13222 = vmatmul.mubr.msk.f32.gmra.mxu1 %vm679_vm2, %v4168_v44  ;;  %v3080_v4 = vadd.f32 %v2968_v29, %v15224_v13  ;;  %13087 = vmatprep.mubr.msk.f32.mxu0 %vm13914_vm1, %v18005_v1  ;;  %v4171_v29 = vld [vmem:[%s14040_s23 + $0x139] sm:$0xff] }
 0x2b1   : > { %13224 = vmatprep.mubr.msk.f32.mxu1 %vm13914_vm1, %v18005_v1  ;;  %v12803_v20 = vpop.f32.mrf.mxu0 }
 0x2b2   : > { %v12940_v48 = vpop.f32.mrf.mxu1  ;;  %v15723_v6 = vadd.f32 %v3488_v32, %v3080_v4 }
 0x2b3   : > { %v2973_v36 = vpop.f32.mrf.mxu0  ;;  %13088 = vmatmul.mubr.msk.f32.gmra.mxu0 %vm679_vm2, %v3649_v23  ;;  %v3652_v48 = vld [vmem:[%s14040_s23 + $0x140] sm:$0xff] }
 0x2b4   : > { %v3493_v49 = vpop.f32.mrf.mxu1  ;;  %13225 = vmatmul.mubr.msk.f32.gmra.mxu1 %vm679_vm2, %v4169_v15  ;;  %v3081_v13 = vadd.f32 %v2973_v36, %v15235_v24  ;;  %13090 = vmatprep.mubr.msk.f32.mxu0 %vm13914_vm1, %v18005_v1  ;;  %v4172_v36 = vld [vmem:[%s14040_s23 + $0x141] sm:$0xff] }
 0x2b5   : > { %13227 = vmatprep.mubr.msk.f32.mxu1 %vm13914_vm1, %v18005_v1  ;;  %v12806_v40 = vpop.f32.mrf.mxu0 }
 0x2b6   : > { %v12943_v58 = vpop.f32.mrf.mxu1  ;;  %v15734_v14 = vadd.f32 %v3493_v49, %v3081_v13 }
 0x2b7   : > { %v2978_v44 = vpop.f32.mrf.mxu0  ;;  %13091 = vmatmul.mubr.msk.f32.gmra.mxu0 %vm679_vm2, %v3650_v31  ;;  %v3653_v58 = vld [vmem:[%s14040_s23 + $0x148] sm:$0xff] }
 0x2b8   : > { %v3498_v5 = vpop.f32.mrf.mxu1  ;;  %13228 = vmatmul.mubr.msk.f32.gmra.mxu1 %vm679_vm2, %v4170_v22  ;;  %v3082_v24 = vadd.f32 %v2978_v44, %v15246_v33  ;;  %13093 = vmatprep.mubr.msk.f32.mxu0 %vm13914_vm1, %v18005_v1  ;;  %v4173_v44 = vld [vmem:[%s14040_s23 + $0x149] sm:$0xff] }
 0x2b9   : > { %13230 = vmatprep.mubr.msk.f32.mxu1 %vm13914_vm1, %v18005_v1  ;;  %v12809_v32 = vpop.f32.mrf.mxu0 }
 0x2ba   : > { %v12946_v4 = vpop.f32.mrf.mxu1  ;;  %v15745_v23 = vadd.f32 %v3498_v5, %v3082_v24 }
 0x2bb   : > { %v2983_v15 = vpop.f32.mrf.mxu0  ;;  %13094 = vmatmul.mubr.msk.f32.gmra.mxu0 %vm679_vm2, %v3651_v39  ;;  %v3654_v4 = vld [vmem:[%s14040_s23 + $0x150] sm:$0xff] }
 0x2bc   : > { %v3503_v20 = vpop.f32.mrf.mxu1  ;;  %13231 = vmatmul.mubr.msk.f32.gmra.mxu1 %vm679_vm2, %v4171_v29  ;;  %v3083_v33 = vadd.f32 %v2983_v15, %v15257_v42  ;;  %13096 = vmatprep.mubr.msk.f32.mxu0 %vm13914_vm1, %v18005_v1  ;;  %v4174_v15 = vld [vmem:[%s14040_s23 + $0x151] sm:$0xff] }
 0x2bd   : > { %13233 = vmatprep.mubr.msk.f32.mxu1 %vm13914_vm1, %v18005_v1  ;;  %v12812_v49 = vpop.f32.mrf.mxu0 }
 0x2be   : > { %v12949_v13 = vpop.f32.mrf.mxu1  ;;  %v15756_v31 = vadd.f32 %v3503_v20, %v3083_v33 }
 0x2bf   : > { %v2988_v22 = vpop.f32.mrf.mxu0  ;;  %13097 = vmatmul.mubr.msk.f32.gmra.mxu0 %vm679_vm2, %v3652_v48  ;;  %v3655_v13 = vld [vmem:[%s14040_s23 + $0x158] sm:$0xff] }
 0x2c0   : > { %v3508_v40 = vpop.f32.mrf.mxu1  ;;  %13234 = vmatmul.mubr.msk.f32.gmra.mxu1 %vm679_vm2, %v4172_v36  ;;  %v3084_v42 = vadd.f32 %v2988_v22, %v15268_v54  ;;  %13099 = vmatprep.mubr.msk.f32.mxu0 %vm13914_vm1, %v18005_v1  ;;  %v4175_v22 = vld [vmem:[%s14040_s23 + $0x159] sm:$0xff] }
 0x2c1   : > { %13236 = vmatprep.mubr.msk.f32.mxu1 %vm13914_vm1, %v18005_v1  ;;  %v12815_v5 = vpop.f32.mrf.mxu0 }
 0x2c2   : > { %v12952_v24 = vpop.f32.mrf.mxu1  ;;  %v15767_v39 = vadd.f32 %v3508_v40, %v3084_v42 }
 0x2c3   : > { %v2993_v29 = vpop.f32.mrf.mxu0  ;;  %13100 = vmatmul.mubr.msk.f32.gmra.mxu0 %vm679_vm2, %v3653_v58  ;;  %v3656_v24 = vld [vmem:[%s14040_s23 + $0x160] sm:$0xff] }
 0x2c4   : > { %v3513_v32 = vpop.f32.mrf.mxu1  ;;  %13237 = vmatmul.mubr.msk.f32.gmra.mxu1 %vm679_vm2, %v4173_v44  ;;  %v3085_v54 = vadd.f32 %v2993_v29, %v15279_v2  ;;  %13102 = vmatprep.mubr.msk.f32.mxu0 %vm13914_vm1, %v18005_v1  ;;  %v4176_v29 = vld [vmem:[%s14040_s23 + $0x161] sm:$0xff] }
 0x2c5   : > { %13239 = vmatprep.mubr.msk.f32.mxu1 %vm13914_vm1, %v18005_v1  ;;  %v12818_v20 = vpop.f32.mrf.mxu0 }
 0x2c6   : > { %v12955_v33 = vpop.f32.mrf.mxu1  ;;  %v15778_v48 = vadd.f32 %v3513_v32, %v3085_v54 }
 0x2c7   : > { %v2998_v36 = vpop.f32.mrf.mxu0  ;;  %13103 = vmatmul.mubr.msk.f32.gmra.mxu0 %vm679_vm2, %v3654_v4  ;;  %v3657_v33 = vld [vmem:[%s14040_s23 + $0x168] sm:$0xff] }
 0x2c8   : > { %v3518_v49 = vpop.f32.mrf.mxu1  ;;  %13240 = vmatmul.mubr.msk.f32.gmra.mxu1 %vm679_vm2, %v4174_v15  ;;  %v3086_v2 = vadd.f32 %v2998_v36, %v15290_v12  ;;  %13105 = vmatprep.mubr.msk.f32.mxu0 %vm13914_vm1, %v18005_v1  ;;  %v4177_v36 = vld [vmem:[%s14040_s23 + $0x169] sm:$0xff] }
 0x2c9   : > { %13242 = vmatprep.mubr.msk.f32.mxu1 %vm13914_vm1, %v18005_v1  ;;  %v12821_v40 = vpop.f32.mrf.mxu0 }
 0x2ca   : > { %v12958_v42 = vpop.f32.mrf.mxu1  ;;  %v15789_v58 = vadd.f32 %v3518_v49, %v3086_v2 }
 0x2cb   : > { %v3003_v44 = vpop.f32.mrf.mxu0  ;;  %13106 = vmatmul.mubr.msk.f32.gmra.mxu0 %vm679_vm2, %v3655_v13  ;;  %v3658_v42 = vld [vmem:[%s14040_s23 + $0x170] sm:$0xff] }
 0x2cc   : > { %v3523_v5 = vpop.f32.mrf.mxu1  ;;  %13243 = vmatmul.mubr.msk.f32.gmra.mxu1 %vm679_vm2, %v4175_v22  ;;  %v3087_v12 = vadd.f32 %v3003_v44, %v15301_v25  ;;  %13108 = vmatprep.mubr.msk.f32.mxu0 %vm13914_vm1, %v18005_v1  ;;  %v4178_v44 = vld [vmem:[%s14040_s23 + $0x171] sm:$0xff] }
 0x2cd   : > { %13245 = vmatprep.mubr.msk.f32.mxu1 %vm13914_vm1, %v18005_v1  ;;  %v12824_v32 = vpop.f32.mrf.mxu0 }
 0x2ce   : > { %v12961_v54 = vpop.f32.mrf.mxu1  ;;  %v15800_v4 = vadd.f32 %v3523_v5, %v3087_v12 }
 0x2cf   : > { %v3008_v15 = vpop.f32.mrf.mxu0  ;;  %13109 = vmatmul.mubr.msk.f32.gmra.mxu0 %vm679_vm2, %v3656_v24  ;;  %v3659_v54 = vld [vmem:[%s14040_s23 + $0x178] sm:$0xff] }
 0x2d0   : > { %v3528_v20 = vpop.f32.mrf.mxu1  ;;  %13246 = vmatmul.mubr.msk.f32.gmra.mxu1 %vm679_vm2, %v4176_v29  ;;  %v3088_v25 = vadd.f32 %v3008_v15, %v15312_v35  ;;  %13111 = vmatprep.mubr.msk.f32.mxu0 %vm13914_vm1, %v18005_v1  ;;  %v4179_v15 = vld [vmem:[%s14040_s23 + $0x179] sm:$0xff] }
 0x2d1   : > { %13248 = vmatprep.mubr.msk.f32.mxu1 %vm13914_vm1, %v18005_v1  ;;  %v12827_v49 = vpop.f32.mrf.mxu0 }
 0x2d2   : > { %v12964_v2 = vpop.f32.mrf.mxu1  ;;  %v15811_v13 = vadd.f32 %v3528_v20, %v3088_v25 }
 0x2d3   : > { %v3013_v22 = vpop.f32.mrf.mxu0  ;;  %13112 = vmatmul.mubr.msk.f32.gmra.mxu0 %vm679_vm2, %v3657_v33  ;;  %v3660_v2 = vld [vmem:[%s14040_s23 + $0x180] sm:$0xff] }
 0x2d4   : > { %v3533_v40 = vpop.f32.mrf.mxu1  ;;  %13249 = vmatmul.mubr.msk.f32.gmra.mxu1 %vm679_vm2, %v4177_v36  ;;  %v3089_v35 = vadd.f32 %v3013_v22, %v15323_v47  ;;  %13114 = vmatprep.mubr.msk.f32.mxu0 %vm13914_vm1, %v18005_v1  ;;  %v4180_v22 = vld [vmem:[%s14040_s23 + $0x181] sm:$0xff] }
 0x2d5   : > { %13251 = vmatprep.mubr.msk.f32.mxu1 %vm13914_vm1, %v18005_v1  ;;  %v12830_v5 = vpop.f32.mrf.mxu0 }
 0x2d6   : > { %v12967_v12 = vpop.f32.mrf.mxu1  ;;  %v15822_v24 = vadd.f32 %v3533_v40, %v3089_v35 }
 0x2d7   : > { %v3018_v29 = vpop.f32.mrf.mxu0  ;;  %13115 = vmatmul.mubr.msk.f32.gmra.mxu0 %vm679_vm2, %v3658_v42  ;;  %v3661_v12 = vld [vmem:[%s14040_s23 + $0x188] sm:$0xff] }
 0x2d8   : > { %v3538_v32 = vpop.f32.mrf.mxu1  ;;  %13252 = vmatmul.mubr.msk.f32.gmra.mxu1 %vm679_vm2, %v4178_v44  ;;  %v3090_v47 = vadd.f32 %v3018_v29, %v15334_v60  ;;  %13117 = vmatprep.mubr.msk.f32.mxu0 %vm13914_vm1, %v18005_v1  ;;  %v4181_v29 = vld [vmem:[%s14040_s23 + $0x189] sm:$0xff] }
 0x2d9   : > { %13254 = vmatprep.mubr.msk.f32.mxu1 %vm13914_vm1, %v18005_v1  ;;  %v12833_v20 = vpop.f32.mrf.mxu0 }
 0x2da   : > { %v12970_v25 = vpop.f32.mrf.mxu1  ;;  %v15833_v33 = vadd.f32 %v3538_v32, %v3090_v47 }
 0x2db   : > { %v3023_v36 = vpop.f32.mrf.mxu0  ;;  %13118 = vmatmul.mubr.msk.f32.gmra.mxu0 %vm679_vm2, %v3659_v54  ;;  %v4657_v25 = vld [vmem:[%s14040_s23 + $0x2a] sm:$0xff] }
 0x2dc   : > { %v3543_v49 = vpop.f32.mrf.mxu1  ;;  %13255 = vmatmul.mubr.msk.f32.gmra.mxu1 %vm679_vm2, %v4179_v15  ;;  %v3091_v60 = vadd.f32 %v3023_v36, %v15345_v10  ;;  %13120 = vmatprep.mubr.msk.f32.mxu0 %vm13914_vm1, %v18005_v1 }
 0x2dd   : > { %13257 = vmatprep.mubr.msk.f32.mxu1 %vm13914_vm1, %v18005_v1  ;;  %v12836_v40 = vpop.f32.mrf.mxu0 }
 0x2de   : > { %v12973_v35 = vpop.f32.mrf.mxu1  ;;  %v15844_v42 = vadd.f32 %v3543_v49, %v3091_v60 }
 0x2df   : > { %v3028_v44 = vpop.f32.mrf.mxu0  ;;  %13121 = vmatmul.mubr.msk.f32.gmra.mxu0 %vm679_vm2, %v3660_v2  ;;  %v4658_v35 = vld [vmem:[%s14040_s23 + $0x32] sm:$0xff] }
 0x2e0   : > { %v3548_v5 = vpop.f32.mrf.mxu1  ;;  %13258 = vmatmul.mubr.msk.f32.gmra.mxu1 %vm679_vm2, %v4180_v22  ;;  %v3092_v10 = vadd.f32 %v3028_v44, %v15356_v21  ;;  %13123 = vmatprep.mubr.msk.f32.mxu0 %vm13914_vm1, %v18005_v1 }
 0x2e1   : > { %13260 = vmatprep.mubr.msk.f32.mxu1 %vm13914_vm1, %v18005_v1  ;;  %v12839_v32 = vpop.f32.mrf.mxu0 }
 0x2e2   : > { %v12976_v47 = vpop.f32.mrf.mxu1  ;;  %v15855_v54 = vadd.f32 %v3548_v5, %v3092_v10  ;;  %v4659_v32 = vld [vmem:[%s14040_s23 + $0x3a] sm:$0xff] }
 0x2e3   : > { %v3033_v15 = vpop.f32.mrf.mxu0  ;;  %13124 = vmatmul.mubr.msk.f32.gmra.mxu0 %vm679_vm2, %v3661_v12 }
 0x2e4   : > { %v3553_v20 = vpop.f32.mrf.mxu1  ;;  %13261 = vmatmul.mubr.msk.f32.gmra.mxu1 %vm679_vm2, %v4181_v29  ;;  %v3093_v21 = vadd.f32 %v3033_v15, %v15370_v52  ;;  %13265 = vmatprep.mubr.msk.f32.mxu0 %vm13914_vm1, %v18005_v1 }
 0x2e5   : > { %v12842_v36 = vpop.f32.mrf.mxu0 }
 0x2e6   : > { %v12979_v49 = vpop.f32.mrf.mxu1  ;;  %v15863_v60 = vadd.f32 %v3553_v20, %v3093_v21  ;;  %v4660_v36 = vld [vmem:[%s14040_s23 + $0x42] sm:$0xff] }
 0x2e7   : > { %v3038_v2 = vpop.f32.mrf.mxu0  ;;  %13266 = vmatmul.mubr.msk.f32.vlgmr.msra.gmra.mxu0 %vm679_vm2, %v4657_v25 }
 0x2e8   : > { %v3558_v22 = vpop.f32.mrf.mxu1  ;;  %v3094_v40 = vadd.f32 %v3038_v2, %v15382_v11  ;;  %13268 = vmatprep.mubr.msk.f32.mxu0 %vm13914_vm1, %v18005_v1 }
 0x2e9   : > { %v12845_v52 = vpop.f32.mrf.mxu0 }
 0x2ea   : > { %v12982_v44 = vpop.f32.mrf.mxu1  ;;  %v15870_v5 = vadd.f32 %v3558_v22, %v3094_v40  ;;  %v4661_v52 = vld [vmem:[%s14040_s23 + $0x4a] sm:$0xff] }
 0x2eb   : > { %v3043_v10 = vpop.f32.mrf.mxu0  ;;  %13269 = vmatmul.mubr.msk.f32.gmra.mxu0 %vm679_vm2, %v4658_v35 }
 0x2ec   : > { %v3563_v12 = vpop.f32.mrf.mxu1  ;;  %v3095_v29 = vadd.f32 %v3043_v10, %v15393_v34  ;;  %13271 = vmatprep.mubr.msk.f32.mxu0 %vm13914_vm1, %v18005_v1 }
 0x2ed   : > { %v12848_v11 = vpop.f32.mrf.mxu0 }
 0x2ee   : > { %v12985_v47 = vpop.f32.mrf.mxu1  ;;  %v15877_v15 = vadd.f32 %v3563_v12, %v3095_v29  ;;  %v4662_v11 = vld [vmem:[%s14040_s23 + $0x52] sm:$0xff] }
 0x2ef   : > { %v3048_v20 = vpop.f32.mrf.mxu0  ;;  %13272 = vmatmul.mubr.msk.f32.gmra.mxu0 %vm679_vm2, %v4659_v32 }
 0x2f0   : > { %v3568_v21 = vpop.f32.mrf.mxu1  ;;  %v3096_v25 = vadd.f32 %v3048_v20, %v15404_v59  ;;  %13274 = vmatprep.mubr.msk.f32.mxu0 %vm13914_vm1, %v18005_v1 }
 0x2f1   : > { %v12851_v34 = vpop.f32.mrf.mxu0 }
 0x2f2   : > { %v12988_v49 = vpop.f32.mrf.mxu1  ;;  %v15884_v2 = vadd.f32 %v3568_v21, %v3096_v25  ;;  %v4663_v34 = vld [vmem:[%s14040_s23 + $0x5a] sm:$0xff] }
 0x2f3   : > { %v3868_v22 = vpop.f32.mrf.mxu0  ;;  %13275 = vmatmul.mubr.msk.f32.gmra.mxu0 %vm679_vm2, %v4660_v36 }
 0x2f4   : > { %v4388_v40 = vpop.f32.mrf.mxu1  ;;  %v4092_v35 = vadd.f32 %v3868_v22, %v15415_v27  ;;  %13277 = vmatprep.mubr.msk.f32.mxu0 %vm13914_vm1, %v18005_v1 }
 0x2f5   : > { %v12993_v59 = vpop.f32.mrf.mxu0 }
 0x2f6   : > { %v13130_v44 = vpop.f32.mrf.mxu1  ;;  %v15891_v10 = vadd.f32 %v4388_v40, %v4092_v35  ;;  %v4664_v59 = vld [vmem:[%s14040_s23 + $0x62] sm:$0xff] }
 0x2f7   : > { %v3873_v12 = vpop.f32.mrf.mxu0  ;;  %13278 = vmatmul.mubr.msk.f32.gmra.mxu0 %vm679_vm2, %v4661_v52 }
 0x2f8   : > { %v4393_v29 = vpop.f32.mrf.mxu1  ;;  %v4093_v32 = vadd.f32 %v3873_v12, %v15426_v37  ;;  %13280 = vmatprep.mubr.msk.f32.mxu0 %vm13914_vm1, %v18005_v1 }
 0x2f9   : > { %v12996_v27 = vpop.f32.mrf.mxu0 }
 0x2fa   : > { %v13133_v47 = vpop.f32.mrf.mxu1  ;;  %v15898_v20 = vadd.f32 %v4393_v29, %v4093_v32  ;;  %v4665_v27 = vld [vmem:[%s14040_s23 + $0x6a] sm:$0xff] }
 0x2fb   : > { %v3878_v21 = vpop.f32.mrf.mxu0  ;;  %13281 = vmatmul.mubr.msk.f32.gmra.mxu0 %vm679_vm2, %v4662_v11 }
 0x2fc   : > { %v4398_v25 = vpop.f32.mrf.mxu1  ;;  %v4094_v36 = vadd.f32 %v3878_v21, %v15437_v51  ;;  %13283 = vmatprep.mubr.msk.f32.mxu0 %vm13914_vm1, %v18005_v1 }
 0x2fd   : > { %v12999_v37 = vpop.f32.mrf.mxu0 }
 0x2fe   : > { %v13136_v49 = vpop.f32.mrf.mxu1  ;;  %v15905_v22 = vadd.f32 %v4398_v25, %v4094_v36  ;;  %v4666_v37 = vld [vmem:[%s14040_s23 + $0x72] sm:$0xff] }
 0x2ff   : > { %v3883_v40 = vpop.f32.mrf.mxu0  ;;  %13284 = vmatmul.mubr.msk.f32.gmra.mxu0 %vm679_vm2, %v4663_v34 }
 0x300   : > { %v4403_v35 = vpop.f32.mrf.mxu1  ;;  %v4095_v52 = vadd.f32 %v3883_v40, %v15448_v3  ;;  %13286 = vmatprep.mubr.msk.f32.mxu0 %vm13914_vm1, %v18005_v1 }
 0x301   : > { %v13002_v51 = vpop.f32.mrf.mxu0 }
 0x302   : > { %v13139_v44 = vpop.f32.mrf.mxu1  ;;  %v15912_v12 = vadd.f32 %v4403_v35, %v4095_v52  ;;  %v4667_v51 = vld [vmem:[%s14040_s23 + $0x7a] sm:$0xff] }
 0x303   : > { %v3888_v29 = vpop.f32.mrf.mxu0  ;;  %13287 = vmatmul.mubr.msk.f32.gmra.mxu0 %vm679_vm2, %v4664_v59 }
 0x304   : > { %v4408_v32 = vpop.f32.mrf.mxu1  ;;  %v4096_v11 = vadd.f32 %v3888_v29, %v15459_v18  ;;  %13289 = vmatprep.mubr.msk.f32.mxu0 %vm13914_vm1, %v18005_v1 }
 0x305   : > { %v13005_v3 = vpop.f32.mrf.mxu0 }
 0x306   : > { %v13142_v47 = vpop.f32.mrf.mxu1  ;;  %v15919_v21 = vadd.f32 %v4408_v32, %v4096_v11  ;;  %v4668_v3 = vld [vmem:[%s14040_s23 + $0x82] sm:$0xff] }
 0x307   : > { %v3893_v25 = vpop.f32.mrf.mxu0  ;;  %13290 = vmatmul.mubr.msk.f32.gmra.mxu0 %vm679_vm2, %v4665_v27 }
 0x308   : > { %v4413_v36 = vpop.f32.mrf.mxu1  ;;  %v4097_v34 = vadd.f32 %v3893_v25, %v15470_v62  ;;  %13292 = vmatprep.mubr.msk.f32.mxu0 %vm13914_vm1, %v18005_v1 }
 0x309   : > { %v13008_v18 = vpop.f32.mrf.mxu0 }
 0x30a   : > { %v13145_v49 = vpop.f32.mrf.mxu1  ;;  %v15926_v40 = vadd.f32 %v4413_v36, %v4097_v34  ;;  %v4669_v18 = vld [vmem:[%s14040_s23 + $0x8a] sm:$0xff] }
 0x30b   : > { %v3898_v35 = vpop.f32.mrf.mxu0  ;;  %13293 = vmatmul.mubr.msk.f32.gmra.mxu0 %vm679_vm2, %v4666_v37 }
 0x30c   : > { %v4418_v52 = vpop.f32.mrf.mxu1  ;;  %v4098_v59 = vadd.f32 %v3898_v35, %v15481_v19  ;;  %13295 = vmatprep.mubr.msk.f32.mxu0 %vm13914_vm1, %v18005_v1 }
 0x30d   : > { %v13011_v62 = vpop.f32.mrf.mxu0 }
 0x30e   : > { %v13148_v44 = vpop.f32.mrf.mxu1  ;;  %v15933_v29 = vadd.f32 %v4418_v52, %v4098_v59  ;;  %v4670_v62 = vld [vmem:[%s14040_s23 + $0x92] sm:$0xff] }
 0x30f   : > { %v3903_v32 = vpop.f32.mrf.mxu0  ;;  %13296 = vmatmul.mubr.msk.f32.gmra.mxu0 %vm679_vm2, %v4667_v51 }
 0x310   : > { %v4423_v11 = vpop.f32.mrf.mxu1  ;;  %v4099_v27 = vadd.f32 %v3903_v32, %v15492_v41  ;;  %13298 = vmatprep.mubr.msk.f32.mxu0 %vm13914_vm1, %v18005_v1 }
 0x311   : > { %v13014_v19 = vpop.f32.mrf.mxu0 }
 0x312   : > { %v13151_v47 = vpop.f32.mrf.mxu1  ;;  %v15940_v25 = vadd.f32 %v4423_v11, %v4099_v27  ;;  %v4671_v19 = vld [vmem:[%s14040_s23 + $0x9a] sm:$0xff] }
 0x313   : > { %v3908_v36 = vpop.f32.mrf.mxu0  ;;  %13299 = vmatmul.mubr.msk.f32.gmra.mxu0 %vm679_vm2, %v4668_v3 }
 0x314   : > { %v4428_v34 = vpop.f32.mrf.mxu1  ;;  %v4100_v37 = vadd.f32 %v3908_v36, %v15503_v17  ;;  %13301 = vmatprep.mubr.msk.f32.mxu0 %vm13914_vm1, %v18005_v1 }
 0x315   : > { %v13017_v41 = vpop.f32.mrf.mxu0 }
 0x316   : > { %v13154_v49 = vpop.f32.mrf.mxu1  ;;  %v15947_v35 = vadd.f32 %v4428_v34, %v4100_v37  ;;  %v4672_v41 = vld [vmem:[%s14040_s23 + $0xa2] sm:$0xff] }
 0x317   : > { %v3913_v52 = vpop.f32.mrf.mxu0  ;;  %13302 = vmatmul.mubr.msk.f32.gmra.mxu0 %vm679_vm2, %v4669_v18 }
 0x318   : > { %v4433_v59 = vpop.f32.mrf.mxu1  ;;  %v4101_v51 = vadd.f32 %v3913_v52, %v15514_v45  ;;  %13304 = vmatprep.mubr.msk.f32.mxu0 %vm13914_vm1, %v18005_v1 }
 0x319   : > { %v13020_v17 = vpop.f32.mrf.mxu0 }
 0x31a   : > { %v13157_v44 = vpop.f32.mrf.mxu1  ;;  %v15954_v32 = vadd.f32 %v4433_v59, %v4101_v51  ;;  %v4673_v17 = vld [vmem:[%s14040_s23 + $0xaa] sm:$0xff] }
 0x31b   : > { %v3918_v11 = vpop.f32.mrf.mxu0  ;;  %13305 = vmatmul.mubr.msk.f32.gmra.mxu0 %vm679_vm2, %v4670_v62 }
 0x31c   : > { %v4438_v27 = vpop.f32.mrf.mxu1  ;;  %v4102_v3 = vadd.f32 %v3918_v11, %v15525_v7  ;;  %13307 = vmatprep.mubr.msk.f32.mxu0 %vm13914_vm1, %v18005_v1  ;;  %v10988_v7 = vld [vmem:[%s17990_s5 + $0x18] sm:$0xff] }
 0x31d   : > { %v13023_v45 = vpop.f32.mrf.mxu0  ;;  %13400 = vmatprep.subr.mxu1 %v10988_v7 }
 0x31e   : > { %v13160_v47 = vpop.f32.mrf.mxu1  ;;  %v15961_v36 = vadd.f32 %v4438_v27, %v4102_v3  ;;  %13401 = vmatpush3.msra.mxu1 %v10988_v7 }
 0x31f   : > { %v3923_v34 = vpop.f32.mrf.mxu0  ;;  %13308 = vmatmul.mubr.msk.f32.gmra.mxu0 %vm679_vm2, %v4671_v19  ;;  %v4674_v47 = vld [vmem:[%s14040_s23 + $0xb2] sm:$0xff] }
 0x320   : > { %v4443_v37 = vpop.f32.mrf.mxu1  ;;  %v4103_v18 = vadd.f32 %v3923_v34, %v15536_v28  ;;  %13310 = vmatprep.mubr.msk.f32.mxu0 %vm13914_vm1, %v18005_v1 }
 0x321   : > { %v13026_v49 = vpop.f32.mrf.mxu0 }
 0x322   : > { %v13163_v52 = vpop.f32.mrf.mxu1  ;;  %v15971_v59 = vadd.f32 %v4443_v37, %v4103_v18  ;;  %v4675_v49 = vld [vmem:[%s14040_s23 + $0xba] sm:$0xff] }
 0x323   : > { %v3928_v51 = vpop.f32.mrf.mxu0  ;;  %13311 = vmatmul.mubr.msk.f32.gmra.mxu0 %vm679_vm2, %v4672_v41 }
 0x324   : > { %v4448_v62 = vpop.f32.mrf.mxu1  ;;  %v4104_v28 = vadd.f32 %v3928_v51, %v15547_v55  ;;  %13313 = vmatprep.mubr.msk.f32.mxu0 %vm13914_vm1, %v18005_v1 }
 0x325   : > { %v13029_v44 = vpop.f32.mrf.mxu0 }
 0x326   : > { %v13166_v11 = vpop.f32.mrf.mxu1  ;;  %v15978_v27 = vadd.f32 %v4448_v62, %v4104_v28 }
 0x327   : > { %v3933_v3 = vpop.f32.mrf.mxu0  ;;  %13314 = vmatmul.mubr.msk.f32.gmra.mxu0 %vm679_vm2, %v4673_v17  ;;  %v4676_v17 = vld [vmem:[%s14040_s23 + $0xc2] sm:$0xff] }
 0x328   : > { %v4453_v19 = vpop.f32.mrf.mxu1  ;;  %v4105_v45 = vadd.f32 %v3933_v3, %v15558_v16  ;;  %13316 = vmatprep.mubr.msk.f32.mxu0 %vm13914_vm1, %v18005_v1 }
 0x329   : > { %v13032_v55 = vpop.f32.mrf.mxu0 }
 0x32a   : > { %v13169_v34 = vpop.f32.mrf.mxu1  ;;  %v15985_v37 = vadd.f32 %v4453_v19, %v4105_v45  ;;  %v4677_v55 = vld [vmem:[%s14040_s23 + $0xca] sm:$0xff] }
 0x32b   : > { %v3938_v18 = vpop.f32.mrf.mxu0  ;;  %13317 = vmatmul.mubr.msk.f32.gmra.mxu0 %vm679_vm2, %v4674_v47 }
 0x32c   : > { %v4458_v41 = vpop.f32.mrf.mxu1  ;;  %v4106_v7 = vadd.f32 %v3938_v18, %v15569_v38  ;;  %13319 = vmatprep.mubr.msk.f32.mxu0 %vm13914_vm1, %v18005_v1 }
 0x32d   : > { %v13035_v52 = vpop.f32.mrf.mxu0 }
 0x32e   : > { %v13172_v16 = vpop.f32.mrf.mxu1  ;;  %v15992_v51 = vadd.f32 %v4458_v41, %v4106_v7  ;;  %v4678_v52 = vld [vmem:[%s14040_s23 + $0xd2] sm:$0xff] }
 0x32f   : > { %v3943_v62 = vpop.f32.mrf.mxu0  ;;  %13320 = vmatmul.mubr.msk.f32.gmra.mxu0 %vm679_vm2, %v4675_v49 }
 0x330   : > { %v4463_v28 = vpop.f32.mrf.mxu1  ;;  %v4107_v38 = vadd.f32 %v3943_v62, %v15580_v63  ;;  %13322 = vmatprep.mubr.msk.f32.mxu0 %vm13914_vm1, %v18005_v1 }
 0x331   : > { %v13038_v44 = vpop.f32.mrf.mxu0 }
 0x332   : > { %v13175_v11 = vpop.f32.mrf.mxu1  ;;  %v16043_v3 = vadd.f32 %v4463_v28, %v4107_v38  ;;  %v4679_v44 = vld [vmem:[%s14040_s23 + $0xda] sm:$0xff] }
 0x333   : > { %v3948_v19 = vpop.f32.mrf.mxu0  ;;  %13323 = vmatmul.mubr.msk.f32.gmra.mxu0 %vm679_vm2, %v4676_v17 }
 0x334   : > { %v4468_v45 = vpop.f32.mrf.mxu1  ;;  %v4108_v47 = vadd.f32 %v3948_v19, %v15591_v43  ;;  %13325 = vmatprep.mubr.msk.f32.mxu0 %vm13914_vm1, %v18005_v1 }
 0x335   : > { %v13041_v63 = vpop.f32.mrf.mxu0 }
 0x336   : > { %v13178_v34 = vpop.f32.mrf.mxu1  ;;  %v16050_v18 = vadd.f32 %v4468_v45, %v4108_v47  ;;  %v4680_v63 = vld [vmem:[%s14040_s23 + $0xe2] sm:$0xff] }
 0x337   : > { %v3953_v41 = vpop.f32.mrf.mxu0  ;;  %13326 = vmatmul.mubr.msk.f32.gmra.mxu0 %vm679_vm2, %v4677_v55 }
 0x338   : > { %v4473_v7 = vpop.f32.mrf.mxu1  ;;  %v4109_v49 = vadd.f32 %v3953_v41, %v15602_v50  ;;  %13328 = vmatprep.mubr.msk.f32.mxu0 %vm13914_vm1, %v18005_v1 }
 0x339   : > { %v13044_v43 = vpop.f32.mrf.mxu0 }
 0x33a   : > { %v13181_v16 = vpop.f32.mrf.mxu1  ;;  %v16057_v62 = vadd.f32 %v4473_v7, %v4109_v49  ;;  %v4681_v43 = vld [vmem:[%s14040_s23 + $0xea] sm:$0xff] }
 0x33b   : > { %v3958_v28 = vpop.f32.mrf.mxu0  ;;  %13329 = vmatmul.mubr.msk.f32.gmra.mxu0 %vm679_vm2, %v4678_v52 }
 0x33c   : > { %v4478_v38 = vpop.f32.mrf.mxu1  ;;  %v4110_v17 = vadd.f32 %v3958_v28, %v15613_v26  ;;  %13331 = vmatprep.mubr.msk.f32.mxu0 %vm13914_vm1, %v18005_v1 }
 0x33d   : > { %v13047_v50 = vpop.f32.mrf.mxu0 }
 0x33e   : > { %v13184_v11 = vpop.f32.mrf.mxu1  ;;  %v16064_v19 = vadd.f32 %v4478_v38, %v4110_v17  ;;  %v4682_v50 = vld [vmem:[%s14040_s23 + $0xf2] sm:$0xff] }
 0x33f   : > { %v3963_v45 = vpop.f32.mrf.mxu0  ;;  %13332 = vmatmul.mubr.msk.f32.gmra.mxu0 %vm679_vm2, %v4679_v44 }
 0x340   : > { %v4483_v47 = vpop.f32.mrf.mxu1  ;;  %v4111_v55 = vadd.f32 %v3963_v45, %v15624_v46  ;;  %13334 = vmatprep.mubr.msk.f32.mxu0 %vm13914_vm1, %v18005_v1 }
 0x341   : > { %v13050_v26 = vpop.f32.mrf.mxu0 }
 0x342   : > { %v13187_v34 = vpop.f32.mrf.mxu1  ;;  %v16071_v41 = vadd.f32 %v4483_v47, %v4111_v55  ;;  %v4683_v26 = vld [vmem:[%s14040_s23 + $0xfa] sm:$0xff] }
 0x343   : > { %v3968_v7 = vpop.f32.mrf.mxu0  ;;  %13335 = vmatmul.mubr.msk.f32.gmra.mxu0 %vm679_vm2, %v4680_v63 }
 0x344   : > { %v4488_v49 = vpop.f32.mrf.mxu1  ;;  %v4112_v52 = vadd.f32 %v3968_v7, %v15635_v9  ;;  %13337 = vmatprep.mubr.msk.f32.mxu0 %vm13914_vm1, %v18005_v1 }
 0x345   : > { %v13053_v46 = vpop.f32.mrf.mxu0 }
 0x346   : > { %v13190_v16 = vpop.f32.mrf.mxu1  ;;  %v16078_v28 = vadd.f32 %v4488_v49, %v4112_v52  ;;  %v10987_v49 = vld [vmem:[%s17990_s5 + $0x10] sm:$0xff] }
 0x347   : > { %v3973_v38 = vpop.f32.mrf.mxu0  ;;  %13338 = vmatmul.mubr.msk.f32.gmra.mxu0 %vm679_vm2, %v4681_v43  ;;  %13402 = vmatprep.subr.mxu1 %v10987_v49  ;;  %v5631_v46 = vld [vmem:[#allocation3 + $0x1] sm:$0xff] }
 0x348   : > { %v4493_v17 = vpop.f32.mrf.mxu1  ;;  %v4113_v44 = vadd.f32 %v3973_v38, %v15646_v30  ;;  %13340 = vmatprep.mubr.msk.f32.mxu0 %vm13914_vm1, %v18005_v1  ;;  %v4684_v16 = vld [vmem:[%s14040_s23 + $0x102] sm:$0xff]  ;;  %13403 = vmatpush3.msra.mxu1 %v10987_v49  ;;  %v5632_v38 = vld [vmem:[#allocation3 + $0x9] sm:$0xff] }
 0x349   : > { %v13056_v9 = vpop.f32.mrf.mxu0  ;;  %13404 = vmatprep.mubr.msk.f32.mxu1 %vm5326_vm3, %v5631_v46 }
 0x34a   : > { %v13193_v11 = vpop.f32.mrf.mxu1  ;;  %v16085_v45 = vadd.f32 %v4493_v17, %v4113_v44  ;;  %v11086_v17 = vld [vmem:[%s17990_s5 + $0x58] sm:$0xff]  ;;  %13405 = vmatmul.mubr.msk.f32.vlgmr.msra.gmra.mxu1 %vm5326_vm3, %v5632_v38 }
 0x34b   : > { %v3978_v47 = vpop.f32.mrf.mxu0  ;;  %13341 = vmatmul.mubr.msk.f32.gmra.mxu0 %vm679_vm2, %v4682_v50  ;;  %13555 = vmatprep.subr.mxu0 %v11086_v17 }
 0x34c   : > { %v4498_v55 = vpop.f32.mrf.mxu1  ;;  %v4114_v63 = vadd.f32 %v3978_v47, %v15657_v56  ;;  %13343 = vmatprep.mubr.msk.f32.mxu0 %vm13914_vm1, %v18005_v1  ;;  %13556 = vmatpush3.msra.mxu0 %v11086_v17 }
 0x34d   : > { %v13059_v30 = vpop.f32.mrf.mxu0 }
 0x34e   : > { %v13196_v34 = vpop.f32.mrf.mxu1  ;;  %v16092_v7 = vadd.f32 %v4498_v55, %v4114_v63  ;;  %v5633_v55 = vld [vmem:[#allocation3 + $0x11] sm:$0xff] }
 0x34f   : > { %v3983_v52 = vpop.f32.mrf.mxu0  ;;  %13344 = vmatmul.mubr.msk.f32.gmra.mxu0 %vm679_vm2, %v4683_v26  ;;  %v4685_v26 = vld [vmem:[%s14040_s23 + $0x10a] sm:$0xff]  ;;  %13407 = vmatprep.mubr.msk.f32.mxu1 %vm5326_vm3, %v5633_v55 }
 0x350   : > { %v4503_v43 = vpop.f32.mrf.mxu1  ;;  %v4115_v56 = vadd.f32 %v3983_v52, %v15668_v57  ;;  %13346 = vmatprep.mubr.msk.f32.mxu0 %vm13914_vm1, %v18005_v1  ;;  %v11085_v57 = vld [vmem:[%s17990_s5 + $0x50] sm:$0xff] }
 0x351   : > { %v13062_v44 = vpop.f32.mrf.mxu0  ;;  %13557 = vmatprep.subr.mxu0 %v11085_v57 }
 0x352   : > { %v13199_v50 = vpop.f32.mrf.mxu1  ;;  %v16106_v9 = vadd.f32 %v4503_v43, %v4115_v56  ;;  %13558 = vmatpush3.msra.mxu0 %v11085_v57  ;;  %v4687_v57 = vld [vmem:[%s14040_s23 + $0x11a] sm:$0xff] }
 0x353   : > { %v3988_v11 = vpop.f32.mrf.mxu0  ;;  %13347 = vmatmul.mubr.msk.f32.gmra.mxu0 %vm679_vm2, %v4684_v16 }
 0x354   : > { %v4508_v47 = vpop.f32.mrf.mxu1  ;;  %v4116_v63 = vadd.f32 %v3988_v11, %v15679_v0  ;;  %13349 = vmatprep.mubr.msk.f32.mxu0 %vm13914_vm1, %v18005_v1  ;;  %v4686_v0 = vld [vmem:[%s14040_s23 + $0x112] sm:$0xff] }
 0x355   : > { %v13065_v30 = vpop.f32.mrf.mxu0 }
 0x356   : > { %v13202_v34 = vpop.f32.mrf.mxu1  ;;  %v16118_v49 = vadd.f32 %v4508_v47, %v4116_v63  ;;  %v4688_v30 = vld [vmem:[%s14040_s23 + $0x122] sm:$0xff] }
 0x357   : > { %v3993_v52 = vpop.f32.mrf.mxu0  ;;  %13350 = vmatmul.mubr.msk.f32.gmra.mxu0 %vm679_vm2, %v4685_v26 }
 0x358   : > { %v4513_v43 = vpop.f32.mrf.mxu1  ;;  %v4117_v46 = vadd.f32 %v3993_v52, %v15690_v8  ;;  %13352 = vmatprep.mubr.msk.f32.mxu0 %vm13914_vm1, %v18005_v1 }
 0x359   : > { %v13068_v56 = vpop.f32.mrf.mxu0 }
 0x35a   : > { %v13205_v16 = vpop.f32.mrf.mxu1  ;;  %v16125_v38 = vadd.f32 %v4513_v43, %v4117_v46  ;;  %v4689_v56 = vld [vmem:[%s14040_s23 + $0x12a] sm:$0xff] }
 0x35b   : > { %v3998_v17 = vpop.f32.mrf.mxu0  ;;  %13353 = vmatmul.mubr.msk.f32.gmra.mxu0 %vm679_vm2, %v4686_v0 }
 0x35c   : > { %v4518_v44 = vpop.f32.mrf.mxu1  ;;  %v4118_v50 = vadd.f32 %v3998_v17, %v15701_v53  ;;  %13355 = vmatprep.mubr.msk.f32.mxu0 %vm13914_vm1, %v18005_v1 }
 0x35d   : > { %v13071_v8 = vpop.f32.mrf.mxu0 }
 0x35e   : > { %v13208_v11 = vpop.f32.mrf.mxu1  ;;  %v16132_v47 = vadd.f32 %v4518_v44, %v4118_v50  ;;  %v4690_v8 = vld [vmem:[%s14040_s23 + $0x132] sm:$0xff] }
 0x35f   : > { %v4003_v55 = vpop.f32.mrf.mxu0  ;;  %13356 = vmatmul.mubr.msk.f32.gmra.mxu0 %vm679_vm2, %v4687_v57 }
 0x360   : > { %v4523_v63 = vpop.f32.mrf.mxu1  ;;  %v4119_v26 = vadd.f32 %v4003_v55, %v15712_v61  ;;  %13358 = vmatprep.mubr.msk.f32.mxu0 %vm13914_vm1, %v18005_v1 }
 0x361   : > { %v13074_v53 = vpop.f32.mrf.mxu0 }
 0x362   : > { %v13211_v34 = vpop.f32.mrf.mxu1  ;;  %v16139_v52 = vadd.f32 %v4523_v63, %v4119_v26  ;;  %v4691_v53 = vld [vmem:[%s14040_s23 + $0x13a] sm:$0xff] }
 0x363   : > { %v4008_v43 = vpop.f32.mrf.mxu0  ;;  %13359 = vmatmul.mubr.msk.f32.gmra.mxu0 %vm679_vm2, %v4688_v30 }
 0x364   : > { %v4528_v46 = vpop.f32.mrf.mxu1  ;;  %v4120_v0 = vadd.f32 %v4008_v43, %v15723_v6  ;;  %13361 = vmatprep.mubr.msk.f32.mxu0 %vm13914_vm1, %v18005_v1 }
 0x365   : > { %v13077_v61 = vpop.f32.mrf.mxu0 }
 0x366   : > { %v13214_v16 = vpop.f32.mrf.mxu1  ;;  %v16146_v17 = vadd.f32 %v4528_v46, %v4120_v0  ;;  %v4692_v61 = vld [vmem:[%s14040_s23 + $0x142] sm:$0xff] }
 0x367   : > { %v4013_v44 = vpop.f32.mrf.mxu0  ;;  %13362 = vmatmul.mubr.msk.f32.gmra.mxu0 %vm679_vm2, %v4689_v56 }
 0x368   : > { %v4533_v50 = vpop.f32.mrf.mxu1  ;;  %v4121_v57 = vadd.f32 %v4013_v44, %v15734_v14  ;;  %13364 = vmatprep.mubr.msk.f32.mxu0 %vm13914_vm1, %v18005_v1 }
 0x369   : > { %v13080_v6 = vpop.f32.mrf.mxu0 }
 0x36a   : > { %v13217_v11 = vpop.f32.mrf.mxu1  ;;  %v16153_v55 = vadd.f32 %v4533_v50, %v4121_v57  ;;  %v4693_v6 = vld [vmem:[%s14040_s23 + $0x14a] sm:$0xff] }
 0x36b   : > { %v4018_v63 = vpop.f32.mrf.mxu0  ;;  %13365 = vmatmul.mubr.msk.f32.gmra.mxu0 %vm679_vm2, %v4690_v8 }
 0x36c   : > { %v4538_v26 = vpop.f32.mrf.mxu1  ;;  %v4122_v30 = vadd.f32 %v4018_v63, %v15745_v23  ;;  %13367 = vmatprep.mubr.msk.f32.mxu0 %vm13914_vm1, %v18005_v1 }
 0x36d   : > { %v13083_v14 = vpop.f32.mrf.mxu0 }
 0x36e   : > { %v13220_v34 = vpop.f32.mrf.mxu1  ;;  %v16160_v43 = vadd.f32 %v4538_v26, %v4122_v30  ;;  %v4694_v14 = vld [vmem:[%s14040_s23 + $0x152] sm:$0xff] }
 0x36f   : > { %v4023_v46 = vpop.f32.mrf.mxu0  ;;  %13368 = vmatmul.mubr.msk.f32.gmra.mxu0 %vm679_vm2, %v4691_v53 }
 0x370   : > { %v4543_v0 = vpop.f32.mrf.mxu1  ;;  %v4123_v56 = vadd.f32 %v4023_v46, %v15756_v31  ;;  %13370 = vmatprep.mubr.msk.f32.mxu0 %vm13914_vm1, %v18005_v1 }
 0x371   : > { %v13086_v23 = vpop.f32.mrf.mxu0 }
 0x372   : > { %v13223_v16 = vpop.f32.mrf.mxu1  ;;  %v16167_v44 = vadd.f32 %v4543_v0, %v4123_v56  ;;  %v4695_v23 = vld [vmem:[%s14040_s23 + $0x15a] sm:$0xff] }
 0x373   : > { %v4028_v50 = vpop.f32.mrf.mxu0  ;;  %13371 = vmatmul.mubr.msk.f32.gmra.mxu0 %vm679_vm2, %v4692_v61 }
 0x374   : > { %v4548_v57 = vpop.f32.mrf.mxu1  ;;  %v4124_v8 = vadd.f32 %v4028_v50, %v15767_v39  ;;  %13373 = vmatprep.mubr.msk.f32.mxu0 %vm13914_vm1, %v18005_v1 }
 0x375   : > { %v13089_v31 = vpop.f32.mrf.mxu0 }
 0x376   : > { %v13226_v11 = vpop.f32.mrf.mxu1  ;;  %v16174_v63 = vadd.f32 %v4548_v57, %v4124_v8  ;;  %v4696_v31 = vld [vmem:[%s14040_s23 + $0x162] sm:$0xff] }
 0x377   : > { %v4033_v26 = vpop.f32.mrf.mxu0  ;;  %13374 = vmatmul.mubr.msk.f32.gmra.mxu0 %vm679_vm2, %v4693_v6 }
 0x378   : > { %v4553_v30 = vpop.f32.mrf.mxu1  ;;  %v4125_v53 = vadd.f32 %v4033_v26, %v15778_v48  ;;  %13376 = vmatprep.mubr.msk.f32.mxu0 %vm13914_vm1, %v18005_v1 }
 0x379   : > { %v13092_v39 = vpop.f32.mrf.mxu0 }
 0x37a   : > { %v13229_v34 = vpop.f32.mrf.mxu1  ;;  %v16181_v46 = vadd.f32 %v4553_v30, %v4125_v53  ;;  %v4697_v39 = vld [vmem:[%s14040_s23 + $0x16a] sm:$0xff] }
 0x37b   : > { %v4038_v0 = vpop.f32.mrf.mxu0  ;;  %13377 = vmatmul.mubr.msk.f32.gmra.mxu0 %vm679_vm2, %v4694_v14 }
 0x37c   : > { %v4558_v56 = vpop.f32.mrf.mxu1  ;;  %v4126_v61 = vadd.f32 %v4038_v0, %v15789_v58  ;;  %13379 = vmatprep.mubr.msk.f32.mxu0 %vm13914_vm1, %v18005_v1 }
 0x37d   : > { %v13095_v48 = vpop.f32.mrf.mxu0 }
 0x37e   : > { %v13232_v16 = vpop.f32.mrf.mxu1  ;;  %v16188_v50 = vadd.f32 %v4558_v56, %v4126_v61  ;;  %v4698_v48 = vld [vmem:[%s14040_s23 + $0x172] sm:$0xff] }
 0x37f   : > { %v4043_v57 = vpop.f32.mrf.mxu0  ;;  %13380 = vmatmul.mubr.msk.f32.gmra.mxu0 %vm679_vm2, %v4695_v23 }
 0x380   : > { %v4563_v8 = vpop.f32.mrf.mxu1  ;;  %v4127_v6 = vadd.f32 %v4043_v57, %v15800_v4  ;;  %13382 = vmatprep.mubr.msk.f32.mxu0 %vm13914_vm1, %v18005_v1 }
 0x381   : > { %v13098_v58 = vpop.f32.mrf.mxu0 }
 0x382   : > { %v13235_v11 = vpop.f32.mrf.mxu1  ;;  %v16195_v26 = vadd.f32 %v4563_v8, %v4127_v6  ;;  %v4699_v58 = vld [vmem:[%s14040_s23 + $0x17a] sm:$0xff] }
 0x383   : > { %v4048_v30 = vpop.f32.mrf.mxu0  ;;  %13383 = vmatmul.mubr.msk.f32.gmra.mxu0 %vm679_vm2, %v4696_v31 }
 0x384   : > { %v4568_v53 = vpop.f32.mrf.mxu1  ;;  %v4128_v14 = vadd.f32 %v4048_v30, %v15811_v13  ;;  %13385 = vmatprep.mubr.msk.f32.mxu0 %vm13914_vm1, %v18005_v1 }
 0x385   : > { %v13101_v4 = vpop.f32.mrf.mxu0 }
 0x386   : > { %v13238_v34 = vpop.f32.mrf.mxu1  ;;  %v16202_v0 = vadd.f32 %v4568_v53, %v4128_v14  ;;  %v4700_v4 = vld [vmem:[%s14040_s23 + $0x182] sm:$0xff] }
 0x387   : > { %v4053_v56 = vpop.f32.mrf.mxu0  ;;  %13386 = vmatmul.mubr.msk.f32.gmra.mxu0 %vm679_vm2, %v4697_v39 }
 0x388   : > { %v4573_v61 = vpop.f32.mrf.mxu1  ;;  %v4129_v23 = vadd.f32 %v4053_v56, %v15822_v24  ;;  %13388 = vmatprep.mubr.msk.f32.mxu0 %vm13914_vm1, %v18005_v1 }
 0x389   : > { %v13104_v13 = vpop.f32.mrf.mxu0 }
 0x38a   : > { %v13241_v16 = vpop.f32.mrf.mxu1  ;;  %v16209_v57 = vadd.f32 %v4573_v61, %v4129_v23  ;;  %v4701_v13 = vld [vmem:[%s14040_s23 + $0x18a] sm:$0xff] }
 0x38b   : > { %v4058_v8 = vpop.f32.mrf.mxu0  ;;  %13389 = vmatmul.mubr.msk.f32.gmra.mxu0 %vm679_vm2, %v4698_v48 }
 0x38c   : > { %v4578_v6 = vpop.f32.mrf.mxu1  ;;  %v4130_v31 = vadd.f32 %v4058_v8, %v15833_v33  ;;  %13391 = vmatprep.mubr.msk.f32.mxu0 %vm13914_vm1, %v18005_v1  ;;  %v6814_v8 = vld [vmem:[#allocation3 + $0xf] sm:$0xff] }
 0x38d   : > { %v13107_v24 = vpop.f32.mrf.mxu0 }
 0x38e   : > { %v13244_v11 = vpop.f32.mrf.mxu1  ;;  %v16216_v30 = vadd.f32 %v4578_v6, %v4130_v31 }
 0x38f   : > { %v4063_v53 = vpop.f32.mrf.mxu0  ;;  %13392 = vmatmul.mubr.msk.f32.gmra.mxu0 %vm679_vm2, %v4699_v58 }
 0x390   : > { %v4583_v14 = vpop.f32.mrf.mxu1  ;;  %v4131_v39 = vadd.f32 %v4063_v53, %v15844_v42  ;;  %13394 = vmatprep.mubr.msk.f32.mxu0 %vm13914_vm1, %v18005_v1 }
 0x391   : > { %v13110_v33 = vpop.f32.mrf.mxu0 }
 0x392   : > { %v13247_v34 = vpop.f32.mrf.mxu1  ;;  %v16223_v56 = vadd.f32 %v4583_v14, %v4131_v39 }
 0x393   : > { %v4068_v61 = vpop.f32.mrf.mxu0  ;;  %13395 = vmatmul.mubr.msk.f32.gmra.mxu0 %vm679_vm2, %v4700_v4 }
 0x394   : > { %v4588_v23 = vpop.f32.mrf.mxu1  ;;  %v4132_v48 = vadd.f32 %v4068_v61, %v15855_v54  ;;  %13397 = vmatprep.mubr.msk.f32.mxu0 %vm13914_vm1, %v18005_v1 }
 0x395   : > { %v13113_v16 = vpop.f32.mrf.mxu0 }
 0x396   : > { %v13250_v42 = vpop.f32.mrf.mxu1  ;;  %v16230_v6 = vadd.f32 %v4588_v23, %v4132_v48 }
 0x397   : > { %v4073_v31 = vpop.f32.mrf.mxu0  ;;  %13398 = vmatmul.mubr.msk.f32.gmra.mxu0 %vm679_vm2, %v4701_v13 }
 0x398   : > { %v4593_v58 = vpop.f32.mrf.mxu1  ;;  %v4133_v24 = vadd.f32 %v4073_v31, %v15863_v60  ;;  %13559 = vmatprep.mubr.msk.f32.mxu0 %vm5326_vm3, %v6814_v8 }
 0x399   : > { %v13116_v11 = vpop.f32.mrf.mxu0 }
 0x39a   : > { %v13253_v53 = vpop.f32.mrf.mxu1  ;;  %v16235_v54 = vadd.f32 %v4593_v58, %v4133_v24 }
 0x39b   : > { %v4078_v14 = vpop.f32.mrf.mxu0 }
 0x39c   : > { %v4598_v39 = vpop.f32.mrf.mxu1  ;;  %v4134_v4 = vadd.f32 %v4078_v14, %v15870_v5  ;;  %v16249_v14 = vld [vmem:[%s17988_s3] ss:$0 sm:$0xff] }
 0x39d   : > { %v13119_v33 = vpop.f32.mrf.mxu0 }
 0x39e   : > { %v13256_v34 = vpop.f32.mrf.mxu1  ;;  %v16238_v61 = vadd.f32 %v4598_v39, %v4134_v4  ;;  %v16255_v39 = vld [vmem:[%s17989_s4] ss:$0 sm:$0xff] }
 0x39f   : > { %v4083_v23 = vpop.f32.mrf.mxu0 }
 0x3a0   : > { %v4603_v48 = vpop.f32.mrf.mxu1  ;;  %v4135_v13 = vadd.f32 %v4083_v23, %v15877_v15 }
 0x3a1   : > { %v13122_v16 = vpop.f32.mrf.mxu0 }
 0x3a2   : > { %v13259_v60 = vpop.f32.mrf.mxu1  ;;  %v16241_v42 = vadd.f32 %v4603_v48, %v4135_v13 }
 0x3a3   : > { %v4088_v8 = vpop.f32.mrf.mxu0 }
 0x3a4   : > { %v4608_v31 = vpop.f32.mrf.mxu1  ;;  %v4136_v58 = vadd.f32 %v4088_v8, %v15884_v2 }
 0x3a5   : > { %v13125_v24 = vpop.f32.mrf.mxu0 }
 0x3a6   : > { %v13262_v11 = vpop.f32.mrf.mxu1  ;;  %v16244_v53 = vadd.f32 %v4608_v31, %v4136_v58 }
 0x3a7   : > { %v4908_v5 = vpop.f32.mrf.mxu0 }
 0x3a8   : > { %v5132_v15 = vadd.f32 %v4908_v5, %v15891_v10 }
 0x3a9   : > { %v13267_v4 = vpop.f32.mrf.mxu0 }
 0x3aa   : > { %v5184_v2 = vmul.f32 %v16249_v14, %v5132_v15 }
 0x3ab   : > { %v4913_v33 = vpop.f32.mrf.mxu0 }
 0x3ac   : > { %v5236_v34 = vadd.f32 %v16255_v39, %v5184_v2  ;;  %v5133_v23 = vadd.f32 %v4913_v33, %v15898_v20 }
 0x3ad   : > { %v13270_v48 = vpop.f32.mrf.mxu0 }
 0x3ae   : > { %v5281_v13 = vmax.f32 %v5236_v34, 0.0  ;;  %v5185_v16 = vmul.f32 %v16249_v14, %v5133_v23 }
 0x3af   : > { %v4918_v60 = vpop.f32.mrf.mxu0 }
 0x3b0   : > { %5327 = vst.msk [vmem:[#allocation2] sm:$0xff] %vm5326_vm3, %v5281_v13  ;;  %v5237_v10 = vadd.f32 %v16255_v39, %v5185_v16  ;;  %v5134_v8 = vadd.f32 %v4918_v60, %v15905_v22 }
 0x3b1   : > { %v13273_v31 = vpop.f32.mrf.mxu0 }
 0x3b2   : > { %v5282_v58 = vmax.f32 %v5237_v10, 0.0  ;;  %v5186_v24 = vmul.f32 %v16249_v14, %v5134_v8 }
 0x3b3   : > { %v4923_v11 = vpop.f32.mrf.mxu0 }
 0x3b4   : > { %5328 = vst.msk [vmem:[#allocation2 + $0x8] sm:$0xff] %vm5326_vm3, %v5282_v58  ;;  %v5238_v20 = vadd.f32 %v16255_v39, %v5186_v24  ;;  %v5135_v5 = vadd.f32 %v4923_v11, %v15912_v12 }
 0x3b5   : > { %v13276_v15 = vpop.f32.mrf.mxu0 }
 0x3b6   : > { %v5283_v4 = vmax.f32 %v5238_v20, 0.0  ;;  %v5187_v2 = vmul.f32 %v16249_v14, %v5135_v5 }
 0x3b7   : > { %v4928_v33 = vpop.f32.mrf.mxu0 }
 0x3b8   : > { %5329 = vst.msk [vmem:[#allocation2 + $0x10] sm:$0xff] %vm5326_vm3, %v5283_v4  ;;  %v5239_v22 = vadd.f32 %v16255_v39, %v5187_v2  ;;  %v5136_v34 = vadd.f32 %v4928_v33, %v15919_v21 }
 0x3b9   : > { %v13279_v23 = vpop.f32.mrf.mxu0 }
 0x3ba   : > { %v5284_v48 = vmax.f32 %v5239_v22, 0.0  ;;  %v5188_v13 = vmul.f32 %v16249_v14, %v5136_v34 }
 0x3bb   : > { %v4933_v16 = vpop.f32.mrf.mxu0  ;;  %v5396_v2 = vld [vmem:[#allocation2] ss:$2 sm:$0xff]  ;;  %v5400_v34 = vld [vmem:[#allocation2 + $0x1] ss:$2 sm:$0xff] }
 0x3bc   : > { %5330 = vst.msk [vmem:[#allocation2 + $0x18] sm:$0xff] %vm5326_vm3, %v5284_v48  ;;  %v5240_v12 = vadd.f32 %v16255_v39, %v5188_v13  ;;  %v5137_v60 = vadd.f32 %v4933_v16, %v15926_v40 }
 0x3bd   : > { %v13282_v10 = vpop.f32.mrf.mxu0 }
 0x3be   : > { %v5285_v8 = vmax.f32 %v5240_v12, 0.0  ;;  %v5189_v31 = vmul.f32 %v16249_v14, %v5137_v60 }
 0x3bf   : > { %v4938_v58 = vpop.f32.mrf.mxu0  ;;  %v5398_v33 = vld [vmem:[#allocation2 + $0x10] ss:$2 sm:$0x1]  ;;  %v5402_v23 = vld [vmem:[#allocation2 + $0x11] ss:$2 sm:$0x1] }
 0x3c0   : > { %5331 = vst.msk [vmem:[#allocation2 + $0x20] sm:$0xff] %vm5326_vm3, %v5285_v8  ;;  %v5241_v21 = vadd.f32 %v16255_v39, %v5189_v31  ;;  %v5138_v24 = vadd.f32 %v4938_v58, %v15933_v29  ;;  %v5412_v58 = vmax.f32 %v5398_v33, %v5402_v23 }
 0x3c1   : > { %v13285_v11 = vpop.f32.mrf.mxu0 }
 0x3c2   : > { %v5286_v20 = vmax.f32 %v5241_v21, 0.0  ;;  %v5190_v5 = vmul.f32 %v16249_v14, %v5138_v24 }
 0x3c3   : > { %v4943_v15 = vpop.f32.mrf.mxu0 }
 0x3c4   : > { %5332 = vst.msk [vmem:[#allocation2 + $0x28] sm:$0xff] %vm5326_vm3, %v5286_v20  ;;  %v5242_v40 = vadd.f32 %v16255_v39, %v5190_v5  ;;  %v5139_v4 = vadd.f32 %v4943_v15, %v15940_v25  ;;  %v5411_v25 = vmax.f32 %v5396_v2, %v5400_v34 }
 0x3c5   : > { %v13288_v22 = vpop.f32.mrf.mxu0 }
 0x3c6   : > { %v5287_v48 = vmax.f32 %v5242_v40, 0.0  ;;  %v5191_v13 = vmul.f32 %v16249_v14, %v5139_v4 }
 0x3c7   : > { %v5404_v29 = vld [vmem:[#allocation2 + $0x14] ss:$2 sm:$0xff]  ;;  %v5406_v16 = vld [vmem:[#allocation2 + $0x24] ss:$2 sm:$0x1]  ;;  %v4948_v12 = vpop.f32.mrf.mxu0 }
 0x3c8   : > { %v5408_v60 = vld [vmem:[#allocation2 + $0x15] ss:$2 sm:$0xff]  ;;  %v5410_v10 = vld [vmem:[#allocation2 + $0x25] ss:$2 sm:$0x1]  ;;  %5333 = vst.msk [vmem:[#allocation2 + $0x30] sm:$0xff] %vm5326_vm3, %v5287_v48  ;;  %v5243_v8 = vadd.f32 %v16255_v39, %v5191_v13  ;;  %v5140_v31 = vadd.f32 %v4948_v12, %v15947_v35 }
 0x3c9   : > { %v5413_v21 = vmax.f32 %v5404_v29, %v5408_v60  ;;  %v5414_v24 = vmax.f32 %v5406_v16, %v5410_v10  ;;  %v13291_v11 = vpop.f32.mrf.mxu0 }
 0x3ca   : > { %v5288_v20 = vmax.f32 %v5243_v8, 0.0  ;;  %v5192_v5 = vmul.f32 %v16249_v14, %v5140_v31 }
 0x3cb   : > { %v5415_v15 = vmax.f32 %v5411_v25, %v5413_v21  ;;  %v4953_v40 = vpop.f32.mrf.mxu0  ;;  %v5416_v4 = vmax.f32 %v5412_v58, %v5414_v24 }
 0x3cc   : > { %5334 = vst.msk [vmem:[#allocation2 + $0x38] sm:$0xff] %vm5326_vm3, %v5288_v20  ;;  %v5244_v22 = vadd.f32 %v16255_v39, %v5192_v5  ;;  %v5141_v48 = vadd.f32 %v4953_v40, %v15954_v32 }
 0x3cd   : > { %5417 = vst.msk [vmem:[#allocation3 + $0x1c] sm:$0xff] %vm5326_vm3, %v5415_v15  ;;  %v13294_v35 = vpop.f32.mrf.mxu0 }
 0x3ce   : > { %5418 = vst.msk [vmem:[#allocation3 + $0x24] sm:$0x1] %vm5394_vm4, %v5416_v4  ;;  %v5289_v2 = vmax.f32 %v5244_v22, 0.0  ;;  %v5193_v33 = vmul.f32 %v16249_v14, %v5141_v48 }
 0x3cf   : > { %v4958_v34 = vpop.f32.mrf.mxu0  ;;  %v5420_v5 = vld [vmem:[#allocation2 + $0x28] ss:$2 sm:$0xff]  ;;  %v5424_v4 = vld [vmem:[#allocation2 + $0x29] ss:$2 sm:$0xff] }
 0x3d0   : > { %5335 = vst.msk [vmem:[#allocation2 + $0x40] sm:$0xff] %vm5326_vm3, %v5289_v2  ;;  %v5245_v23 = vadd.f32 %v16255_v39, %v5193_v33  ;;  %v5142_v13 = vadd.f32 %v4958_v34, %v15961_v36 }
 0x3d1   : > { %v13297_v29 = vpop.f32.mrf.mxu0 }
 0x3d2   : > { %v5290_v16 = vmax.f32 %v5245_v23, 0.0  ;;  %v5194_v12 = vmul.f32 %v16249_v14, %v5142_v13 }
 0x3d3   : > { %v4963_v32 = vpop.f32.mrf.mxu0  ;;  %v5422_v15 = vld [vmem:[#allocation2 + $0x38] ss:$2 sm:$0x1]  ;;  %v5426_v22 = vld [vmem:[#allocation2 + $0x39] ss:$2 sm:$0x1] }
 0x3d4   : > { %5336 = vst.msk [vmem:[#allocation2 + $0x48] sm:$0xff] %vm5326_vm3, %v5290_v16  ;;  %v5246_v60 = vadd.f32 %v16255_v39, %v5194_v12  ;;  %v5143_v10 = vadd.f32 %v4963_v32, %v15971_v59  ;;  %v5634_v8 = vld [vmem:[#allocation3 + $0x19] sm:$0xff]  ;;  %v5436_v12 = vmax.f32 %v5422_v15, %v5426_v22 }
 0x3d5   : > { %v6815_v31 = vld [vmem:[#allocation3 + $0x17] sm:$0xff]  ;;  %v5635_v25 = vld [vmem:[#allocation3 + $0x21] sm:$0xff]  ;;  %13408 = vmatmul.mubr.msk.f32.gmra.mxu1 %vm5326_vm3, %v5634_v8  ;;  %v13300_v58 = vpop.f32.mrf.mxu0 }
 0x3d6   : > { %13560 = vmatmul.mubr.msk.f32.vlgmr.msra.gmra.mxu0 %vm5326_vm3, %v6815_v31  ;;  %v6816_v36 = vld [vmem:[#allocation3 + $0x1f] sm:$0xff]  ;;  %v5291_v21 = vmax.f32 %v5246_v60, 0.0  ;;  %v5195_v24 = vmul.f32 %v16249_v14, %v5143_v10  ;;  %13410 = vmatprep.mubr.msk.f32.mxu1 %vm5326_vm3, %v5635_v25 }
 0x3d7   : > { %13562 = vmatprep.mubr.msk.f32.mxu0 %vm5326_vm3, %v6816_v36  ;;  %v4968_v11 = vpop.f32.mrf.mxu0 }
 0x3d8   : > { %5337 = vst.msk [vmem:[#allocation2 + $0x50] sm:$0xff] %vm5326_vm3, %v5291_v21  ;;  %v5247_v59 = vadd.f32 %v16255_v39, %v5195_v24  ;;  %v5144_v20 = vadd.f32 %v4968_v11, %v15978_v27  ;;  %v5435_v27 = vmax.f32 %v5420_v5, %v5424_v4 }
 0x3d9   : > { %v13303_v40 = vpop.f32.mrf.mxu0 }
 0x3da   : > { %v5292_v48 = vmax.f32 %v5247_v59, 0.0  ;;  %v5196_v35 = vmul.f32 %v16249_v14, %v5144_v20 }
 0x3db   : > { %v5428_v2 = vld [vmem:[#allocation2 + $0x3c] ss:$2 sm:$0xff]  ;;  %v5430_v33 = vld [vmem:[#allocation2 + $0x4c] ss:$2 sm:$0x1]  ;;  %v4973_v34 = vpop.f32.mrf.mxu0 }
 0x3dc   : > { %v5432_v23 = vld [vmem:[#allocation2 + $0x3d] ss:$2 sm:$0xff]  ;;  %v5434_v13 = vld [vmem:[#allocation2 + $0x4d] ss:$2 sm:$0x1]  ;;  %5338 = vst.msk [vmem:[#allocation2 + $0x58] sm:$0xff] %vm5326_vm3, %v5292_v48  ;;  %v5248_v29 = vadd.f32 %v16255_v39, %v5196_v35  ;;  %v5145_v16 = vadd.f32 %v4973_v34, %v15985_v37 }
 0x3dd   : > { %v5437_v32 = vmax.f32 %v5428_v2, %v5432_v23  ;;  %v5438_v60 = vmax.f32 %v5430_v33, %v5434_v13  ;;  %v13306_v10 = vpop.f32.mrf.mxu0  ;;  %v5630_v37 = vld [vmem:[%s17990_s5 + $0x8] sm:$0xff] }
 0x3de   : > { %v5293_v8 = vmax.f32 %v5248_v29, 0.0  ;;  %v5197_v31 = vmul.f32 %v16249_v14, %v5145_v16  ;;  %13431 = vmatprep.subr.mxu1 %v5630_v37 }
 0x3df   : > { %v5439_v25 = vmax.f32 %v5435_v27, %v5437_v32  ;;  %v4978_v58 = vpop.f32.mrf.mxu0  ;;  %v5440_v36 = vmax.f32 %v5436_v12, %v5438_v60  ;;  %13432 = vmatpush3.msra.mxu1 %v5630_v37  ;;  %v5629_v60 = vld [vmem:[%s17990_s5] sm:$0xff] }
 0x3e0   : > { %5339 = vst.msk [vmem:[#allocation2 + $0x60] sm:$0xff] %vm5326_vm3, %v5293_v8  ;;  %v5249_v21 = vadd.f32 %v16255_v39, %v5197_v31  ;;  %v5146_v24 = vadd.f32 %v4978_v58, %v15992_v51  ;;  %13433 = vmatprep.subr.mxu1 %v5629_v60 }
 0x3e1   : > { %5441 = vst.msk [vmem:[#allocation3 + $0x29] sm:$0xff] %vm5326_vm3, %v5439_v25  ;;  %v13309_v11 = vpop.f32.mrf.mxu0  ;;  %13434 = vmatpush3.msra.mxu1 %v5629_v60 }
 0x3e2   : > { %5442 = vst.msk [vmem:[#allocation3 + $0x31] sm:$0x1] %vm5394_vm4, %v5440_v36  ;;  %v5294_v59 = vmax.f32 %v5249_v21, 0.0  ;;  %v5198_v20 = vmul.f32 %v16249_v14, %v5146_v24 }
 0x3e3   : > { %v4983_v5 = vpop.f32.mrf.mxu0  ;;  %v5444_v12 = vld [vmem:[#allocation2 + $0x50] ss:$2 sm:$0xff]  ;;  %v5448_v10 = vld [vmem:[#allocation2 + $0x51] ss:$2 sm:$0xff] }
 0x3e4   : > { %5340 = vst.msk [vmem:[#allocation2 + $0x68] sm:$0xff] %vm5326_vm3, %v5294_v59  ;;  %v5250_v15 = vadd.f32 %v16255_v39, %v5198_v20  ;;  %v5147_v51 = vadd.f32 %v4983_v5, %v16043_v3  ;;  %v5459_v59 = vmax.f32 %v5444_v12, %v5448_v10 }
 0x3e5   : > { %v13312_v40 = vpop.f32.mrf.mxu0 }
 0x3e6   : > { %v5295_v4 = vmax.f32 %v5250_v15, 0.0  ;;  %v5199_v22 = vmul.f32 %v16249_v14, %v5147_v51 }
 0x3e7   : > { %v4988_v48 = vpop.f32.mrf.mxu0  ;;  %v5446_v32 = vld [vmem:[#allocation2 + $0x60] ss:$2 sm:$0x1]  ;;  %v5450_v8 = vld [vmem:[#allocation2 + $0x61] ss:$2 sm:$0x1] }
 0x3e8   : > { %5341 = vst.msk [vmem:[#allocation2 + $0x70] sm:$0xff] %vm5326_vm3, %v5295_v4  ;;  %v5251_v35 = vadd.f32 %v16255_v39, %v5199_v22  ;;  %v5148_v2 = vadd.f32 %v4988_v48, %v16050_v18  ;;  %v5636_v33 = vld [vmem:[#allocation3 + $0x29] sm:$0xff]  ;;  %v5460_v20 = vmax.f32 %v5446_v32, %v5450_v8 }
 0x3e9   : > { %v6817_v34 = vld [vmem:[#allocation3 + $0x27] sm:$0xff]  ;;  %13411 = vmatmul.mubr.msk.f32.gmra.mxu1 %vm5326_vm3, %v5636_v33  ;;  %v13315_v23 = vpop.f32.mrf.mxu0  ;;  %v11126_v32 = vld [vmem:[%s17990_s5 + $0x78] sm:$0xff] }
 0x3ea   : > { %13563 = vmatmul.mubr.msk.f32.gmra.mxu0 %vm5326_vm3, %v6817_v34  ;;  %v5296_v13 = vmax.f32 %v5251_v35, 0.0  ;;  %v5200_v3 = vmul.f32 %v16249_v14, %v5148_v2  ;;  %13617 = vmatprep.subr.mxu0 %v11126_v32 }
 0x3eb   : > { %v4993_v29 = vpop.f32.mrf.mxu0  ;;  %13618 = vmatpush3.msra.mxu0 %v11126_v32 }
 0x3ec   : > { %5342 = vst.msk [vmem:[#allocation2 + $0x78] sm:$0xff] %vm5326_vm3, %v5296_v13  ;;  %v5252_v16 = vadd.f32 %v16255_v39, %v5200_v3  ;;  %v5149_v27 = vadd.f32 %v4993_v29, %v16057_v62  ;;  %v16354_v3 = vld [vmem:[%s17990_s5 + $0x28] sm:$0xff] }
 0x3ed   : > { %v13318_v18 = vpop.f32.mrf.mxu0  ;;  %13462 = vmatprep.subr.mxu1 %v16354_v3 }
 0x3ee   : > { %v5297_v31 = vmax.f32 %v5252_v16, 0.0  ;;  %v5201_v25 = vmul.f32 %v16249_v14, %v5149_v27 }
 0x3ef   : > { %v5452_v58 = vld [vmem:[#allocation2 + $0x64] ss:$2 sm:$0xff]  ;;  %v5454_v36 = vld [vmem:[#allocation2 + $0x74] ss:$2 sm:$0x1]  ;;  %v4998_v21 = vpop.f32.mrf.mxu0 }
 0x3f0   : > { %v5456_v24 = vld [vmem:[#allocation2 + $0x65] ss:$2 sm:$0xff]  ;;  %v5458_v37 = vld [vmem:[#allocation2 + $0x75] ss:$2 sm:$0x1]  ;;  %5343 = vst.msk [vmem:[#allocation2 + $0x80] sm:$0xff] %vm5326_vm3, %v5297_v31  ;;  %v5253_v62 = vadd.f32 %v16255_v39, %v5201_v25  ;;  %v5150_v11 = vadd.f32 %v4998_v21, %v16064_v19 }
 0x3f1   : > { %v5461_v5 = vmax.f32 %v5452_v58, %v5456_v24  ;;  %v5462_v15 = vmax.f32 %v5454_v36, %v5458_v37  ;;  %v13321_v51 = vpop.f32.mrf.mxu0  ;;  %v11125_v36 = vld [vmem:[%s17990_s5 + $0x70] sm:$0xff] }
 0x3f2   : > { %v5298_v40 = vmax.f32 %v5253_v62, 0.0  ;;  %v5202_v4 = vmul.f32 %v16249_v14, %v5150_v11  ;;  %13619 = vmatprep.subr.mxu0 %v11125_v36 }
 0x3f3   : > { %v5463_v22 = vmax.f32 %v5459_v59, %v5461_v5  ;;  %v5464_v48 = vmax.f32 %v5460_v20, %v5462_v15  ;;  %v5003_v35 = vpop.f32.mrf.mxu0  ;;  %13620 = vmatpush3.msra.mxu0 %v11125_v36 }
 0x3f4   : > { %5344 = vst.msk [vmem:[#allocation2 + $0x88] sm:$0xff] %vm5326_vm3, %v5298_v40  ;;  %v5254_v2 = vadd.f32 %v16255_v39, %v5202_v4  ;;  %v5151_v33 = vadd.f32 %v5003_v35, %v16071_v41 }
 0x3f5   : > { %5465 = vst.msk [vmem:[#allocation3 + $0x36] sm:$0xff] %vm5326_vm3, %v5463_v22  ;;  %v13324_v19 = vpop.f32.mrf.mxu0 }
 0x3f6   : > { %5466 = vst.msk [vmem:[#allocation3 + $0x3e] sm:$0x1] %vm5394_vm4, %v5464_v48  ;;  %v5299_v34 = vmax.f32 %v5254_v2, 0.0  ;;  %v5203_v23 = vmul.f32 %v16249_v14, %v5151_v33 }
 0x3f7   : > { %v5008_v13 = vpop.f32.mrf.mxu0  ;;  %v5468_v11 = vld [vmem:[#allocation2 + $0x78] ss:$2 sm:$0xff]  ;;  %v5472_v5 = vld [vmem:[#allocation2 + $0x79] ss:$2 sm:$0xff] }
 0x3f8   : > { %5345 = vst.msk [vmem:[#allocation2 + $0x90] sm:$0xff] %vm5326_vm3, %v5299_v34  ;;  %v5255_v29 = vadd.f32 %v16255_v39, %v5203_v23  ;;  %v5152_v41 = vadd.f32 %v5008_v13, %v16078_v28  ;;  %v5483_v19 = vmax.f32 %v5468_v11, %v5472_v5 }
 0x3f9   : > { %v13327_v16 = vpop.f32.mrf.mxu0 }
 0x3fa   : > { %v5300_v27 = vmax.f32 %v5255_v29, 0.0  ;;  %v5204_v12 = vmul.f32 %v16249_v14, %v5152_v41 }
 0x3fb   : > { %v5013_v18 = vpop.f32.mrf.mxu0  ;;  %v5470_v59 = vld [vmem:[#allocation2 + $0x88] ss:$2 sm:$0x1]  ;;  %v5474_v15 = vld [vmem:[#allocation2 + $0x89] ss:$2 sm:$0x1] }
 0x3fc   : > { %5346 = vst.msk [vmem:[#allocation2 + $0x98] sm:$0xff] %vm5326_vm3, %v5300_v27  ;;  %v5256_v60 = vadd.f32 %v16255_v39, %v5204_v12  ;;  %v5153_v10 = vadd.f32 %v5013_v18, %v16085_v45  ;;  %v5637_v8 = vld [vmem:[#allocation3 + $0x31] sm:$0xff]  ;;  %v5484_v34 = vmax.f32 %v5470_v59, %v5474_v15 }
 0x3fd   : > { %v6818_v28 = vld [vmem:[#allocation3 + $0x2f] sm:$0xff]  ;;  %v5638_v31 = vld [vmem:[#allocation3 + $0x39] sm:$0xff]  ;;  %13413 = vmatprep.mubr.msk.f32.mxu1 %vm5326_vm3, %v5637_v8  ;;  %v13330_v25 = vpop.f32.mrf.mxu0 }
 0x3fe   : > { %13565 = vmatprep.mubr.msk.f32.mxu0 %vm5326_vm3, %v6818_v28  ;;  %v6819_v58 = vld [vmem:[#allocation3 + $0x37] sm:$0xff]  ;;  %v5301_v21 = vmax.f32 %v5256_v60, 0.0  ;;  %v5205_v24 = vmul.f32 %v16249_v14, %v5153_v10  ;;  %13414 = vmatmul.mubr.msk.f32.gmra.mxu1 %vm5326_vm3, %v5638_v31 }
 0x3ff   : > { %13566 = vmatmul.mubr.msk.f32.gmra.mxu0 %vm5326_vm3, %v6819_v58  ;;  %v5018_v45 = vpop.f32.mrf.mxu0 }
 0x400   : > { %5347 = vst.msk [vmem:[#allocation2 + $0xa0] sm:$0xff] %vm5326_vm3, %v5301_v21  ;;  %v5257_v37 = vadd.f32 %v16255_v39, %v5205_v24  ;;  %v5154_v62 = vadd.f32 %v5018_v45, %v16092_v7 }
 0x401   : > { %v13333_v20 = vpop.f32.mrf.mxu0 }
 0x402   : > { %v5302_v51 = vmax.f32 %v5257_v37, 0.0  ;;  %v5206_v40 = vmul.f32 %v16249_v14, %v5154_v62 }
 0x403   : > { %v5476_v4 = vld [vmem:[#allocation2 + $0x8c] ss:$2 sm:$0xff]  ;;  %v5478_v22 = vld [vmem:[#allocation2 + $0x9c] ss:$2 sm:$0x1]  ;;  %v5023_v48 = vpop.f32.mrf.mxu0 }
 0x404   : > { %v5480_v35 = vld [vmem:[#allocation2 + $0x8d] ss:$2 sm:$0xff]  ;;  %v5482_v2 = vld [vmem:[#allocation2 + $0x9d] ss:$2 sm:$0x1]  ;;  %5348 = vst.msk [vmem:[#allocation2 + $0xa8] sm:$0xff] %vm5326_vm3, %v5302_v51  ;;  %v5258_v33 = vadd.f32 %v16255_v39, %v5206_v40  ;;  %v5155_v7 = vadd.f32 %v5023_v48, %v16106_v9 }
 0x405   : > { %v5485_v23 = vmax.f32 %v5476_v4, %v5480_v35  ;;  %v5486_v13 = vmax.f32 %v5478_v22, %v5482_v2  ;;  %v13336_v29 = vpop.f32.mrf.mxu0 }
 0x406   : > { %v5303_v41 = vmax.f32 %v5258_v33, 0.0  ;;  %v5207_v16 = vmul.f32 %v16249_v14, %v5155_v7 }
 0x407   : > { %v5487_v27 = vmax.f32 %v5483_v19, %v5485_v23  ;;  %v5488_v12 = vmax.f32 %v5484_v34, %v5486_v13  ;;  %v5028_v32 = vpop.f32.mrf.mxu0 }
 0x408   : > { %5349 = vst.msk [vmem:[#allocation2 + $0xb0] sm:$0xff] %vm5326_vm3, %v5303_v41  ;;  %v5259_v18 = vadd.f32 %v16255_v39, %v5207_v16  ;;  %v5156_v60 = vadd.f32 %v5028_v32, %v16118_v49 }
 0x409   : > { %5489 = vst.msk [vmem:[#allocation3 + $0x43] sm:$0xff] %vm5326_vm3, %v5487_v27  ;;  %v13339_v9 = vpop.f32.mrf.mxu0 }
 0x40a   : > { %5490 = vst.msk [vmem:[#allocation3 + $0x4b] sm:$0x1] %vm5394_vm4, %v5488_v12  ;;  %v5304_v10 = vmax.f32 %v5259_v18, 0.0  ;;  %v5208_v8 = vmul.f32 %v16249_v14, %v5156_v60 }
 0x40b   : > { %v5033_v28 = vpop.f32.mrf.mxu0  ;;  %v5492_v51 = vld [vmem:[#allocation2 + $0xa0] ss:$2 sm:$0xff]  ;;  %v5496_v22 = vld [vmem:[#allocation2 + $0xa1] ss:$2 sm:$0xff] }
 0x40c   : > { %5350 = vst.msk [vmem:[#allocation2 + $0xb8] sm:$0xff] %vm5326_vm3, %v5304_v10  ;;  %v5260_v31 = vadd.f32 %v16255_v39, %v5208_v8  ;;  %v5157_v25 = vadd.f32 %v5033_v28, %v16125_v38 }
 0x40d   : > { %v13342_v58 = vpop.f32.mrf.mxu0 }
 0x40e   : > { %v5305_v36 = vmax.f32 %v5260_v31, 0.0  ;;  %v5209_v21 = vmul.f32 %v16249_v14, %v5157_v25 }
 0x40f   : > { %v5038_v49 = vpop.f32.mrf.mxu0  ;;  %v5494_v40 = vld [vmem:[#allocation2 + $0xb0] ss:$2 sm:$0x1]  ;;  %v5498_v48 = vld [vmem:[#allocation2 + $0xb1] ss:$2 sm:$0x1] }
 0x410   : > { %5351 = vst.msk [vmem:[#allocation2 + $0xc0] sm:$0xff] %vm5326_vm3, %v5305_v36  ;;  %v5261_v24 = vadd.f32 %v16255_v39, %v5209_v21  ;;  %v5158_v45 = vadd.f32 %v5038_v49, %v16132_v47  ;;  %v5639_v37 = vld [vmem:[#allocation3 + $0x41] sm:$0xff]  ;;  %v5508_v41 = vmax.f32 %v5494_v40, %v5498_v48 }
 0x411   : > { %v6820_v62 = vld [vmem:[#allocation3 + $0x3f] sm:$0xff]  ;;  %v6821_v11 = vld [vmem:[#allocation3 + $0x47] sm:$0xff]  ;;  %13416 = vmatprep.mubr.msk.f32.mxu1 %vm5326_vm3, %v5639_v37  ;;  %v13345_v59 = vpop.f32.mrf.mxu0 }
 0x412   : > { %13568 = vmatprep.mubr.msk.f32.mxu0 %vm5326_vm3, %v6820_v62  ;;  %v5306_v38 = vmax.f32 %v5261_v24, 0.0  ;;  %v5210_v20 = vmul.f32 %v16249_v14, %v5158_v45 }
 0x413   : > { %13569 = vmatmul.mubr.msk.f32.gmra.mxu0 %vm5326_vm3, %v6821_v11  ;;  %v5043_v5 = vpop.f32.mrf.mxu0 }
 0x414   : > { %5352 = vst.msk [vmem:[#allocation2 + $0xc8] sm:$0xff] %vm5326_vm3, %v5306_v38  ;;  %v5262_v15 = vadd.f32 %v16255_v39, %v5210_v20  ;;  %v5159_v47 = vadd.f32 %v5043_v5, %v16139_v52  ;;  %v5507_v52 = vmax.f32 %v5492_v51, %v5496_v22 }
 0x415   : > { %v13348_v4 = vpop.f32.mrf.mxu0 }
 0x416   : > { %v5307_v35 = vmax.f32 %v5262_v15, 0.0  ;;  %v5211_v2 = vmul.f32 %v16249_v14, %v5159_v47 }
 0x417   : > { %v5500_v33 = vld [vmem:[#allocation2 + $0xb4] ss:$2 sm:$0xff]  ;;  %v5502_v7 = vld [vmem:[#allocation2 + $0xc4] ss:$2 sm:$0x1]  ;;  %v5048_v19 = vpop.f32.mrf.mxu0 }
 0x418   : > { %v5504_v34 = vld [vmem:[#allocation2 + $0xb5] ss:$2 sm:$0xff]  ;;  %v5506_v23 = vld [vmem:[#allocation2 + $0xc5] ss:$2 sm:$0x1]  ;;  %5353 = vst.msk [vmem:[#allocation2 + $0xd0] sm:$0xff] %vm5326_vm3, %v5307_v35  ;;  %v5263_v13 = vadd.f32 %v16255_v39, %v5211_v2  ;;  %v5160_v29 = vadd.f32 %v5048_v19, %v16146_v17 }
 0x419   : > { %v5509_v16 = vmax.f32 %v5500_v33, %v5504_v34  ;;  %v5510_v27 = vmax.f32 %v5502_v7, %v5506_v23  ;;  %v13351_v12 = vpop.f32.mrf.mxu0 }
 0x41a   : > { %v5308_v32 = vmax.f32 %v5263_v13, 0.0  ;;  %v5212_v18 = vmul.f32 %v16249_v14, %v5160_v29 }
 0x41b   : > { %v5511_v60 = vmax.f32 %v5507_v52, %v5509_v16  ;;  %v5053_v9 = vpop.f32.mrf.mxu0  ;;  %v5512_v10 = vmax.f32 %v5508_v41, %v5510_v27 }
 0x41c   : > { %5354 = vst.msk [vmem:[#allocation2 + $0xd8] sm:$0xff] %vm5326_vm3, %v5308_v32  ;;  %v5264_v8 = vadd.f32 %v16255_v39, %v5212_v18  ;;  %v5161_v28 = vadd.f32 %v5053_v9, %v16153_v55 }
 0x41d   : > { %5513 = vst.msk [vmem:[#allocation3 + $0x50] sm:$0xff] %vm5326_vm3, %v5511_v60  ;;  %v13354_v17 = vpop.f32.mrf.mxu0 }
 0x41e   : > { %5514 = vst.msk [vmem:[#allocation3 + $0x58] sm:$0x1] %vm5394_vm4, %v5512_v10  ;;  %v5309_v31 = vmax.f32 %v5264_v8, 0.0  ;;  %v5213_v25 = vmul.f32 %v16249_v14, %v5161_v28 }
 0x41f   : > { %v5058_v58 = vpop.f32.mrf.mxu0  ;;  %v5516_v51 = vld [vmem:[#allocation2 + $0xc8] ss:$2 sm:$0xff]  ;;  %v5520_v22 = vld [vmem:[#allocation2 + $0xc9] ss:$2 sm:$0xff] }
 0x420   : > { %5355 = vst.msk [vmem:[#allocation2 + $0xe0] sm:$0xff] %vm5326_vm3, %v5309_v31  ;;  %v5265_v36 = vadd.f32 %v16255_v39, %v5213_v25  ;;  %v5162_v21 = vadd.f32 %v5058_v58, %v16160_v43 }
 0x421   : > { %v13357_v49 = vpop.f32.mrf.mxu0 }
 0x422   : > { %v5310_v24 = vmax.f32 %v5265_v36, 0.0  ;;  %v5214_v45 = vmul.f32 %v16249_v14, %v5162_v21 }
 0x423   : > { %v5063_v55 = vpop.f32.mrf.mxu0  ;;  %v5518_v40 = vld [vmem:[#allocation2 + $0xd8] ss:$2 sm:$0x1]  ;;  %v5522_v48 = vld [vmem:[#allocation2 + $0xd9] ss:$2 sm:$0x1] }
 0x424   : > { %5356 = vst.msk [vmem:[#allocation2 + $0xe8] sm:$0xff] %vm5326_vm3, %v5310_v24  ;;  %v5266_v37 = vadd.f32 %v16255_v39, %v5214_v45  ;;  %v5163_v62 = vadd.f32 %v5063_v55, %v16167_v44  ;;  %v5640_v11 = vld [vmem:[#allocation3 + $0x49] sm:$0xff]  ;;  %v5532_v52 = vmax.f32 %v5518_v40, %v5522_v48 }
 0x425   : > { %v6822_v59 = vld [vmem:[#allocation3 + $0x4f] sm:$0xff]  ;;  %13417 = vmatmul.mubr.msk.f32.gmra.mxu1 %vm5326_vm3, %v5640_v11  ;;  %v13360_v20 = vpop.f32.mrf.mxu0 }
 0x426   : > { %v5641_v38 = vld [vmem:[#allocation3 + $0x51] sm:$0xff]  ;;  %13571 = vmatprep.mubr.msk.f32.mxu0 %vm5326_vm3, %v6822_v59  ;;  %v5311_v43 = vmax.f32 %v5266_v37, 0.0  ;;  %v5215_v5 = vmul.f32 %v16249_v14, %v5163_v62 }
 0x427   : > { %13419 = vmatprep.mubr.msk.f32.mxu1 %vm5326_vm3, %v5641_v38  ;;  %v5068_v15 = vpop.f32.mrf.mxu0 }
 0x428   : > { %5357 = vst.msk [vmem:[#allocation2 + $0xf0] sm:$0xff] %vm5326_vm3, %v5311_v43  ;;  %v5267_v47 = vadd.f32 %v16255_v39, %v5215_v5  ;;  %v5164_v44 = vadd.f32 %v5068_v15, %v16174_v63  ;;  %v5531_v63 = vmax.f32 %v5516_v51, %v5520_v22 }
 0x429   : > { %v13363_v4 = vpop.f32.mrf.mxu0 }
 0x42a   : > { %v5312_v35 = vmax.f32 %v5267_v47, 0.0  ;;  %v5216_v2 = vmul.f32 %v16249_v14, %v5164_v44 }
 0x42b   : > { %v5524_v33 = vld [vmem:[#allocation2 + $0xdc] ss:$2 sm:$0xff]  ;;  %v5526_v7 = vld [vmem:[#allocation2 + $0xec] ss:$2 sm:$0x1]  ;;  %v5073_v19 = vpop.f32.mrf.mxu0 }
 0x42c   : > { %v5528_v34 = vld [vmem:[#allocation2 + $0xdd] ss:$2 sm:$0xff]  ;;  %v5530_v23 = vld [vmem:[#allocation2 + $0xed] ss:$2 sm:$0x1]  ;;  %5358 = vst.msk [vmem:[#allocation2 + $0xf8] sm:$0xff] %vm5326_vm3, %v5312_v35  ;;  %v5268_v13 = vadd.f32 %v16255_v39, %v5216_v2  ;;  %v5165_v29 = vadd.f32 %v5073_v19, %v16181_v46 }
 0x42d   : > { %v5533_v41 = vmax.f32 %v5524_v33, %v5528_v34  ;;  %v5534_v16 = vmax.f32 %v5526_v7, %v5530_v23  ;;  %v13366_v27 = vpop.f32.mrf.mxu0 }
 0x42e   : > { %v5313_v12 = vmax.f32 %v5268_v13, 0.0  ;;  %v5217_v32 = vmul.f32 %v16249_v14, %v5165_v29 }
 0x42f   : > { %v5535_v18 = vmax.f32 %v5531_v63, %v5533_v41  ;;  %v5078_v60 = vpop.f32.mrf.mxu0  ;;  %v5536_v9 = vmax.f32 %v5532_v52, %v5534_v16 }
 0x430   : > { %5359 = vst.msk [vmem:[#allocation2 + $0x100] sm:$0xff] %vm5326_vm3, %v5313_v12  ;;  %v5269_v10 = vadd.f32 %v16255_v39, %v5217_v32  ;;  %v5166_v8 = vadd.f32 %v5078_v60, %v16188_v50 }
 0x431   : > { %5537 = vst.msk [vmem:[#allocation3 + $0x5d] sm:$0xff] %vm5326_vm3, %v5535_v18  ;;  %v13369_v46 = vpop.f32.mrf.mxu0 }
 0x432   : > { %5538 = vst.msk [vmem:[#allocation3 + $0x65] sm:$0x1] %vm5394_vm4, %v5536_v9  ;;  %v5314_v28 = vmax.f32 %v5269_v10, 0.0  ;;  %v5218_v17 = vmul.f32 %v16249_v14, %v5166_v8 }
 0x433   : > { %v5083_v31 = vpop.f32.mrf.mxu0  ;;  %v5540_v5 = vld [vmem:[#allocation2 + $0xf0] ss:$2 sm:$0xff]  ;;  %v5544_v44 = vld [vmem:[#allocation2 + $0xf1] ss:$2 sm:$0xff] }
 0x434   : > { %5360 = vst.msk [vmem:[#allocation2 + $0x108] sm:$0xff] %vm5326_vm3, %v5314_v28  ;;  %v5270_v25 = vadd.f32 %v16255_v39, %v5218_v17  ;;  %v5167_v58 = vadd.f32 %v5083_v31, %v16195_v26 }
 0x435   : > { %v13372_v36 = vpop.f32.mrf.mxu0 }
 0x436   : > { %v5315_v21 = vmax.f32 %v5270_v25, 0.0  ;;  %v5219_v49 = vmul.f32 %v16249_v14, %v5167_v58 }
 0x437   : > { %v5088_v50 = vpop.f32.mrf.mxu0  ;;  %v5542_v15 = vld [vmem:[#allocation2 + $0x100] ss:$2 sm:$0x1]  ;;  %v5546_v51 = vld [vmem:[#allocation2 + $0x101] ss:$2 sm:$0x1] }
 0x438   : > { %5361 = vst.msk [vmem:[#allocation2 + $0x110] sm:$0xff] %vm5326_vm3, %v5315_v21  ;;  %v5271_v24 = vadd.f32 %v16255_v39, %v5219_v49  ;;  %v5168_v45 = vadd.f32 %v5088_v50, %v16202_v0  ;;  %v5642_v55 = vld [vmem:[#allocation3 + $0x59] sm:$0xff]  ;;  %v5556_v34 = vmax.f32 %v5542_v15, %v5546_v51 }
 0x439   : > { %v6823_v37 = vld [vmem:[#allocation3 + $0x57] sm:$0xff]  ;;  %v5643_v62 = vld [vmem:[#allocation3 + $0x61] sm:$0xff]  ;;  %13420 = vmatmul.mubr.msk.f32.gmra.mxu1 %vm5326_vm3, %v5642_v55  ;;  %v13375_v11 = vpop.f32.mrf.mxu0 }
 0x43a   : > { %13572 = vmatmul.mubr.msk.f32.gmra.mxu0 %vm5326_vm3, %v6823_v37  ;;  %v6824_v26 = vld [vmem:[#allocation3 + $0x5f] sm:$0xff]  ;;  %v5316_v59 = vmax.f32 %v5271_v24, 0.0  ;;  %v5220_v38 = vmul.f32 %v16249_v14, %v5168_v45  ;;  %13422 = vmatprep.mubr.msk.f32.mxu1 %vm5326_vm3, %v5643_v62 }
 0x43b   : > { %13574 = vmatprep.mubr.msk.f32.mxu0 %vm5326_vm3, %v6824_v26  ;;  %v5093_v20 = vpop.f32.mrf.mxu0 }
 0x43c   : > { %5362 = vst.msk [vmem:[#allocation2 + $0x118] sm:$0xff] %vm5326_vm3, %v5316_v59  ;;  %v5272_v0 = vadd.f32 %v16255_v39, %v5220_v38  ;;  %v5169_v43 = vadd.f32 %v5093_v20, %v16209_v57  ;;  %v5555_v57 = vmax.f32 %v5540_v5, %v5544_v44 }
 0x43d   : > { %v13378_v47 = vpop.f32.mrf.mxu0 }
 0x43e   : > { %v5317_v40 = vmax.f32 %v5272_v0, 0.0  ;;  %v5221_v4 = vmul.f32 %v16249_v14, %v5169_v43 }
 0x43f   : > { %v5548_v22 = vld [vmem:[#allocation2 + $0x104] ss:$2 sm:$0xff]  ;;  %v5550_v48 = vld [vmem:[#allocation2 + $0x114] ss:$2 sm:$0x1]  ;;  %v5098_v35 = vpop.f32.mrf.mxu0 }
 0x440   : > { %v5552_v2 = vld [vmem:[#allocation2 + $0x105] ss:$2 sm:$0xff]  ;;  %v5554_v33 = vld [vmem:[#allocation2 + $0x115] ss:$2 sm:$0x1]  ;;  %5363 = vst.msk [vmem:[#allocation2 + $0x120] sm:$0xff] %vm5326_vm3, %v5317_v40  ;;  %v5273_v7 = vadd.f32 %v16255_v39, %v5221_v4  ;;  %v5170_v19 = vadd.f32 %v5098_v35, %v16216_v30 }
 0x441   : > { %v5557_v23 = vmax.f32 %v5548_v22, %v5552_v2  ;;  %v5558_v13 = vmax.f32 %v5550_v48, %v5554_v33  ;;  %v13381_v29 = vpop.f32.mrf.mxu0 }
 0x442   : > { %v5318_v63 = vmax.f32 %v5273_v7, 0.0  ;;  %v5222_v52 = vmul.f32 %v16249_v14, %v5170_v19 }
 0x443   : > { %v5559_v41 = vmax.f32 %v5555_v57, %v5557_v23  ;;  %v5103_v16 = vpop.f32.mrf.mxu0  ;;  %v5560_v27 = vmax.f32 %v5556_v34, %v5558_v13 }
 0x444   : > { %5364 = vst.msk [vmem:[#allocation2 + $0x128] sm:$0xff] %vm5326_vm3, %v5318_v63  ;;  %v5274_v12 = vadd.f32 %v16255_v39, %v5222_v52  ;;  %v5171_v32 = vadd.f32 %v5103_v16, %v16223_v56 }
 0x445   : > { %5561 = vst.msk [vmem:[#allocation3 + $0x6a] sm:$0xff] %vm5326_vm3, %v5559_v41  ;;  %v13384_v30 = vpop.f32.mrf.mxu0 }
 0x446   : > { %5562 = vst.msk [vmem:[#allocation3 + $0x72] sm:$0x1] %vm5394_vm4, %v5560_v27  ;;  %v5319_v18 = vmax.f32 %v5274_v12, 0.0  ;;  %v5223_v60 = vmul.f32 %v16249_v14, %v5171_v32 }
 0x447   : > { %v5108_v9 = vpop.f32.mrf.mxu0  ;;  %v5564_v55 = vld [vmem:[#allocation2 + $0x118] ss:$2 sm:$0xff]  ;;  %v5568_v11 = vld [vmem:[#allocation2 + $0x119] ss:$2 sm:$0xff] }
 0x448   : > { %5365 = vst.msk [vmem:[#allocation2 + $0x130] sm:$0xff] %vm5326_vm3, %v5319_v18  ;;  %v5275_v10 = vadd.f32 %v16255_v39, %v5223_v60  ;;  %v5172_v8 = vadd.f32 %v5108_v9, %v16230_v6 }
 0x449   : > { %v13387_v46 = vpop.f32.mrf.mxu0 }
 0x44a   : > { %v5320_v28 = vmax.f32 %v5275_v10, 0.0  ;;  %v5224_v17 = vmul.f32 %v16249_v14, %v5172_v8 }
 0x44b   : > { %v5113_v56 = vpop.f32.mrf.mxu0  ;;  %v5566_v37 = vld [vmem:[#allocation2 + $0x128] ss:$2 sm:$0x1]  ;;  %v5570_v26 = vld [vmem:[#allocation2 + $0x129] ss:$2 sm:$0x1] }
 0x44c   : > { %5366 = vst.msk [vmem:[#allocation2 + $0x138] sm:$0xff] %vm5326_vm3, %v5320_v28  ;;  %v5276_v31 = vadd.f32 %v16255_v39, %v5224_v17  ;;  %v5173_v25 = vadd.f32 %v5113_v56, %v16235_v54  ;;  %v5644_v58 = vld [vmem:[#allocation3 + $0x69] sm:$0xff]  ;;  %v5580_v51 = vmax.f32 %v5566_v37, %v5570_v26  ;;  %v5611_v28 = vld [vmem:[#allocation3] sm:$0xff] }
 0x44d   : > { %v6825_v36 = vld [vmem:[#allocation3 + $0x67] sm:$0xff]  ;;  %v6826_v21 = vld [vmem:[#allocation3 + $0x6f] sm:$0xff]  ;;  %13423 = vmatmul.mubr.msk.f32.gmra.mxu1 %vm5326_vm3, %v5644_v58  ;;  %v13390_v49 = vpop.f32.mrf.mxu0  ;;  %v7314_v26 = vld [vmem:[#allocation3 + $0x3b] sm:$0xff] }
 0x44e   : > { %13575 = vmatmul.mubr.msk.f32.gmra.mxu0 %vm5326_vm3, %v6825_v36  ;;  %v5321_v6 = vmax.f32 %v5276_v31, 0.0  ;;  %v5225_v50 = vmul.f32 %v16249_v14, %v5173_v25  ;;  %v6830_v17 = vld [vmem:[#allocation3 + $0x8f] sm:$0xff] }
 0x44f   : > { %13577 = vmatprep.mubr.msk.f32.mxu0 %vm5326_vm3, %v6826_v21  ;;  %v5118_v24 = vpop.f32.mrf.mxu0  ;;  %v5612_v36 = vld [vmem:[#allocation3 + $0x8] sm:$0xff]  ;;  %v6831_v21 = vld [vmem:[#allocation3 + $0x97] sm:$0x7f] }
 0x450   : > { %5367 = vst.msk [vmem:[#allocation2 + $0x140] sm:$0xff] %vm5326_vm3, %v5321_v6  ;;  %v5277_v45 = vadd.f32 %v16255_v39, %v5225_v50  ;;  %v5174_v54 = vadd.f32 %v5118_v24, %v16238_v61  ;;  %v5579_v61 = vmax.f32 %v5564_v55, %v5568_v11  ;;  %v5613_v49 = vld [vmem:[#allocation3 + $0x10] sm:$0xff]  ;;  %v11025_v6 = vld [vmem:[%s17990_s5 + $0x20] sm:$0xff]  ;;  %v5615_v55 = vld [vmem:[#allocation3 + $0x20] sm:$0xff] }
 0x451   : > { %v13393_v62 = vpop.f32.mrf.mxu0  ;;  %v7310_v50 = vld [vmem:[#allocation3 + $0x1b] sm:$0xff]  ;;  %v7312_v37 = vld [vmem:[#allocation3 + $0x2b] sm:$0xff] }
 0x452   : > { %v5322_v59 = vmax.f32 %v5277_v45, 0.0  ;;  %v5226_v38 = vmul.f32 %v16249_v14, %v5174_v54  ;;  %v5614_v24 = vld [vmem:[#allocation3 + $0x18] sm:$0xff]  ;;  %v7311_v45 = vld [vmem:[#allocation3 + $0x23] sm:$0xff]  ;;  %v16515_v54 = vld [vmem:[%s17990_s5 + $0x38] sm:$0xff] }
 0x453   : > { %v5572_v20 = vld [vmem:[#allocation2 + $0x12c] ss:$2 sm:$0xff]  ;;  %v5574_v0 = vld [vmem:[#allocation2 + $0x13c] ss:$2 sm:$0x1]  ;;  %v5123_v43 = vpop.f32.mrf.mxu0 }
 0x454   : > { %v5576_v5 = vld [vmem:[#allocation2 + $0x12d] ss:$2 sm:$0xff]  ;;  %v5578_v15 = vld [vmem:[#allocation2 + $0x13d] ss:$2 sm:$0x1]  ;;  %5368 = vst.msk [vmem:[#allocation2 + $0x148] sm:$0xff] %vm5326_vm3, %v5322_v59  ;;  %v5278_v47 = vadd.f32 %v16255_v39, %v5226_v38  ;;  %v5175_v44 = vadd.f32 %v5123_v43, %v16241_v42 }
 0x455   : > { %v5581_v40 = vmax.f32 %v5572_v20, %v5576_v5  ;;  %v5582_v4 = vmax.f32 %v5574_v0, %v5578_v15  ;;  %v13396_v22 = vpop.f32.mrf.mxu0  ;;  %v7313_v62 = vld [vmem:[#allocation3 + $0x33] sm:$0xff]  ;;  %v7315_v38 = vld [vmem:[#allocation3 + $0x43] sm:$0xff]  ;;  %v7316_v0 = vld [vmem:[#allocation3 + $0x4b] sm:$0xff] }
 0x456   : > { %v5323_v48 = vmax.f32 %v5278_v47, 0.0  ;;  %v5227_v35 = vmul.f32 %v16249_v14, %v5175_v44  ;;  %v5617_v11 = vld [vmem:[#allocation3 + $0x30] sm:$0xff]  ;;  %v5618_v59 = vld [vmem:[#allocation3 + $0x38] sm:$0xff]  ;;  %v5619_v20 = vld [vmem:[#allocation3 + $0x40] sm:$0xff] }
 0x457   : > { %v5583_v2 = vmax.f32 %v5579_v61, %v5581_v40  ;;  %v5584_v33 = vmax.f32 %v5580_v51, %v5582_v4  ;;  %v5128_v7 = vpop.f32.mrf.mxu0  ;;  %v5620_v43 = vld [vmem:[#allocation3 + $0x48] sm:$0xff]  ;;  %v7317_v5 = vld [vmem:[#allocation3 + $0x53] sm:$0xff]  ;;  %v7318_v47 = vld [vmem:[#allocation3 + $0x5b] sm:$0xff] }
 0x458   : > { %5369 = vst.msk [vmem:[#allocation2 + $0x150] sm:$0xff] %vm5326_vm3, %v5323_v48  ;;  %v5279_v19 = vadd.f32 %v16255_v39, %v5227_v35  ;;  %v5176_v57 = vadd.f32 %v5128_v7, %v16244_v53  ;;  %v5621_v15 = vld [vmem:[#allocation3 + $0x50] sm:$0xff]  ;;  %v5622_v44 = vld [vmem:[#allocation3 + $0x58] sm:$0xff]  ;;  %v7319_v61 = vld [vmem:[#allocation3 + $0x63] sm:$0xff] }
 0x459   : > { %5585 = vst.msk [vmem:[#allocation3 + $0x77] sm:$0xff] %vm5326_vm3, %v5583_v2  ;;  %v13399_v42 = vpop.f32.mrf.mxu0  ;;  %v5623_v51 = vld [vmem:[#allocation3 + $0x60] sm:$0xff]  ;;  %v7320_v40 = vld [vmem:[#allocation3 + $0x6b] sm:$0xff] }
 0x45a   : > { %5586 = vst.msk [vmem:[#allocation3 + $0x7f] sm:$0x1] %vm5394_vm4, %v5584_v33  ;;  %v5324_v34 = vmax.f32 %v5279_v19, 0.0  ;;  %v5228_v23 = vmul.f32 %v16249_v14, %v5176_v57  ;;  %v5624_v4 = vld [vmem:[#allocation3 + $0x68] sm:$0xff] }
 0x45b   : > { %v5588_v53 = vld [vmem:[#allocation2 + $0x140] ss:$2 sm:$0xff]  ;;  %v5592_v16 = vld [vmem:[#allocation2 + $0x141] ss:$2 sm:$0xff] }
 0x45c   : > { %5370 = vst.msk [vmem:[#allocation2 + $0x158] sm:$0xff] %vm5326_vm3, %v5324_v34  ;;  %v5280_v13 = vadd.f32 %v16255_v39, %v5228_v23  ;;  %v5603_v18 = vmax.f32 %v5588_v53, %v5592_v16  ;;  %v6070_v57 = vld [vmem:[#allocation3 + $0x2] sm:$0xff]  ;;  %v6071_v34 = vld [vmem:[#allocation3 + $0xa] sm:$0xff]  ;;  %v6072_v23 = vld [vmem:[#allocation3 + $0x12] sm:$0xff] }
 0x45d   : > { %v16569_v53 = vld [vmem:[#allocation3 + $0x32] sm:$0xff] }
 0x45e   : > { %v5325_v29 = vmax.f32 %v5280_v13, 0.0  ;;  %v11045_v13 = vld [vmem:[%s17990_s5 + $0x30] sm:$0xff]  ;;  %v7325_v16 = vld [vmem:[#allocation3 + $0x93] sm:$0xff] }
 0x45f   : > { %v5590_v27 = vld [vmem:[#allocation2 + $0x150] ss:$2 sm:$0x1]  ;;  %v5594_v14 = vld [vmem:[#allocation2 + $0x151] ss:$2 sm:$0x1] }
 0x460   : > { %5371 = vst.msk [vmem:[#allocation2 + $0x160] sm:$0xff] %vm5326_vm3, %v5325_v29  ;;  %v5645_v63 = vld [vmem:[#allocation3 + $0x71] sm:$0xff]  ;;  %v5604_v60 = vmax.f32 %v5590_v27, %v5594_v14  ;;  %v11066_v29 = vld [vmem:[%s17990_s5 + $0x48] sm:$0xff] }
 0x461   : > { %v6827_v52 = vld [vmem:[#allocation3 + $0x77] sm:$0xff]  ;;  %13425 = vmatprep.mubr.msk.f32.mxu1 %vm5326_vm3, %v5645_v63  ;;  %v16578_v14 = vld [vmem:[#allocation3 + $0x42] sm:$0xff] }
 0x462   : > { %v5646_v41 = vld [vmem:[#allocation3 + $0x79] sm:$0xff]  ;;  %13578 = vmatmul.mubr.msk.f32.gmra.mxu0 %vm5326_vm3, %v6827_v52  ;;  %v5625_v48 = vld [vmem:[#allocation3 + $0x70] sm:$0xff]  ;;  %v16561_v52 = vld [vmem:[#allocation3 + $0x22] sm:$0xff] }
 0x463   : > { %13426 = vmatmul.mubr.msk.f32.gmra.mxu1 %vm5326_vm3, %v5646_v41  ;;  %v7321_v22 = vld [vmem:[#allocation3 + $0x73] sm:$0xff]  ;;  %v7322_v35 = vld [vmem:[#allocation3 + $0x7b] sm:$0xff]  ;;  %v16565_v41 = vld [vmem:[#allocation3 + $0x2a] sm:$0xff] }
 0x464   : > { %v5626_v2 = vld [vmem:[#allocation3 + $0x78] sm:$0xff] }
 0x465   : > { %v16557_v63 = vld [vmem:[#allocation3 + $0x1a] sm:$0xff] }
 0x466   : > { %v16574_v27 = vld [vmem:[#allocation3 + $0x3a] sm:$0xff] }
 0x467   : > { %v5596_v12 = vld [vmem:[#allocation2 + $0x154] ss:$2 sm:$0xff]  ;;  %v5598_v32 = vld [vmem:[#allocation2 + $0x164] ss:$2 sm:$0x1] }
 0x468   : > { %v5600_v30 = vld [vmem:[#allocation2 + $0x155] ss:$2 sm:$0xff]  ;;  %v5602_v39 = vld [vmem:[#allocation2 + $0x165] ss:$2 sm:$0x1] }
 0x469   : > { %v5605_v9 = vmax.f32 %v5596_v12, %v5600_v30  ;;  %v5606_v10 = vmax.f32 %v5598_v32, %v5602_v39  ;;  %v7326_v12 = vld [vmem:[#allocation3 + $0x9b] sm:$0xff]  ;;  %v7327_v32 = vld [vmem:[#allocation3 + $0xa3] sm:$0x7f]  ;;  %v16584_v30 = vld [vmem:[#allocation3 + $0x4a] sm:$0xff] }
 0x46a   : > { %v16588_v39 = vld [vmem:[#allocation3 + $0x52] sm:$0xff] }
 0x46b   : > { %v5607_v8 = vmax.f32 %v5603_v18, %v5605_v9  ;;  %v5608_v46 = vmax.f32 %v5604_v60, %v5606_v10  ;;  %v16592_v18 = vld [vmem:[#allocation3 + $0x5a] sm:$0xff]  ;;  %v16596_v60 = vld [vmem:[#allocation3 + $0x62] sm:$0xff]  ;;  %v16600_v9 = vld [vmem:[#allocation3 + $0x6a] sm:$0xff] }
 0x46c   : > { %v16604_v10 = vld [vmem:[#allocation3 + $0x72] sm:$0xff] }
 0x46d   : > { %5609 = vst.msk [vmem:[#allocation3 + $0x84] sm:$0xff] %vm5326_vm3, %v5607_v8  ;;  %v16608_v8 = vld [vmem:[#allocation3 + $0x7a] sm:$0xff] }
 0x46e   : > { %5610 = vst.msk [vmem:[#allocation3 + $0x8c] sm:$0x1] %vm5394_vm4, %v5608_v46 }
 0x474   : > { %v5647_v56 = vld [vmem:[#allocation3 + $0x81] sm:$0xff] }
 0x475   : > { %v6828_v31 = vld [vmem:[#allocation3 + $0x7f] sm:$0xff]  ;;  %v5648_v25 = vld [vmem:[#allocation3 + $0x89] sm:$0x7f]  ;;  %13428 = vmatprep.mubr.msk.f32.mxu1 %vm5326_vm3, %v5647_v56  ;;  %v6319_v56 = vld [vmem:[#allocation3 + $0x15] sm:$0xff] }
 0x476   : > { %13580 = vmatprep.mubr.msk.f32.mxu0 %vm5326_vm3, %v6828_v31  ;;  %v6829_v58 = vld [vmem:[#allocation3 + $0x87] sm:$0xff]  ;;  %13429 = vmatmul.mubr.msk.f32.gmra.mxu1 %vm5326_vm3, %v5648_v25  ;;  %v11065_v31 = vld [vmem:[%s17990_s5 + $0x40] sm:$0xff] }
 0x477   : > { %13581 = vmatmul.mubr.msk.f32.gmra.mxu0 %vm5326_vm3, %v6829_v58  ;;  %13435 = vmatprep.mubr.msk.f32.mxu1 %vm5326_vm3, %v5611_v28  ;;  %v7323_v33 = vld [vmem:[#allocation3 + $0x83] sm:$0xff]  ;;  %v7324_v19 = vld [vmem:[#allocation3 + $0x8b] sm:$0xff] }
 0x478   : > { %13583 = vmatprep.mubr.msk.f32.mxu0 %vm5326_vm3, %v6830_v17  ;;  %v5627_v7 = vld [vmem:[#allocation3 + $0x80] sm:$0xff]  ;;  %v5628_v42 = vld [vmem:[#allocation3 + $0x88] sm:$0x7f] }
 0x479   : > { %v16612_v46 = vld [vmem:[#allocation3 + $0x82] sm:$0xff]  ;;  %v6318_v28 = vld [vmem:[#allocation3 + $0xd] sm:$0xff] }
 0x47a   : > { %13436 = vmatmul.mubr.msk.f32.vlgmr.msra.gmra.mxu1 %vm5326_vm3, %v5612_v36  ;;  %v6087_v17 = vld [vmem:[#allocation3 + $0x8a] sm:$0x7f]  ;;  %v6320_v25 = vld [vmem:[#allocation3 + $0x1d] sm:$0xff] }
 0x47b   : > { %13584 = vmatmul.mubr.msk.f32.gmra.mxu0 %vm5326_vm3, %v6831_v21  ;;  %13463 = vmatpush3.msra.mxu1 %v16354_v3  ;;  %v5616_v3 = vld [vmem:[#allocation3 + $0x28] sm:$0xff]  ;;  %v11106_v58 = vld [vmem:[%s17990_s5 + $0x68] sm:$0xff] }
 0x47c   : > { %13621 = vmatprep.mubr.msk.f32.mxu0 %vm5326_vm3, %v7310_v50  ;;  %13438 = vmatprep.mubr.msk.f32.mxu1 %vm5326_vm3, %v5613_v49  ;;  %v6321_v36 = vld [vmem:[#allocation3 + $0x25] sm:$0xff]  ;;  %v6322_v21 = vld [vmem:[#allocation3 + $0x2d] sm:$0xff]  ;;  %v6323_v49 = vld [vmem:[#allocation3 + $0x35] sm:$0xff] }
 0x47d   : > { %13464 = vmatprep.subr.mxu1 %v11025_v6  ;;  %v6325_v50 = vld [vmem:[#allocation3 + $0x45] sm:$0xff] }
 0x47e   : > { %13465 = vmatpush3.msra.mxu1 %v11025_v6  ;;  %v6324_v6 = vld [vmem:[#allocation3 + $0x3d] sm:$0xff] }
 0x47f   : > { %13439 = vmatmul.mubr.msk.f32.gmra.mxu1 %vm5326_vm3, %v5614_v24  ;;  %13622 = vmatmul.mubr.msk.f32.vlgmr.msra.gmra.mxu0 %vm5326_vm3, %v7311_v45  ;;  %v6326_v24 = vld [vmem:[#allocation3 + $0x4d] sm:$0xff]  ;;  %v6327_v45 = vld [vmem:[#allocation3 + $0x55] sm:$0xff] }
 0x480   : > { %13441 = vmatprep.mubr.msk.f32.mxu1 %vm5326_vm3, %v5615_v55  ;;  %13624 = vmatprep.mubr.msk.f32.mxu0 %vm5326_vm3, %v7312_v37  ;;  %v6329_v55 = vld [vmem:[#allocation3 + $0x65] sm:$0xff]  ;;  %v6330_v37 = vld [vmem:[#allocation3 + $0x6d] sm:$0xff] }
 0x481   : > { %13493 = vmatprep.subr.mxu1 %v16515_v54 }
 0x483   : > { %13442 = vmatmul.mubr.msk.f32.gmra.mxu1 %vm5326_vm3, %v5616_v3  ;;  %13625 = vmatmul.mubr.msk.f32.gmra.mxu0 %vm5326_vm3, %v7313_v62  ;;  %v6331_v3 = vld [vmem:[#allocation3 + $0x75] sm:$0xff]  ;;  %v6332_v62 = vld [vmem:[#allocation3 + $0x7d] sm:$0xff] }
 0x484   : > { %13444 = vmatprep.mubr.msk.f32.mxu1 %vm5326_vm3, %v5617_v11  ;;  %13627 = vmatprep.mubr.msk.f32.mxu0 %vm5326_vm3, %v7314_v26  ;;  %v6334_v11 = vld [vmem:[#allocation3 + $0x8d] sm:$0xff]  ;;  %v6333_v26 = vld [vmem:[#allocation3 + $0x85] sm:$0xff] }
 0x487   : > { %13445 = vmatmul.mubr.msk.f32.gmra.mxu1 %vm5326_vm3, %v5618_v59  ;;  %13628 = vmatmul.mubr.msk.f32.gmra.mxu0 %vm5326_vm3, %v7315_v38  ;;  %v6335_v59 = vld [vmem:[#allocation3 + $0x95] sm:$0x7f] }
 0x488   : > { %13447 = vmatprep.mubr.msk.f32.mxu1 %vm5326_vm3, %v5619_v20  ;;  %13630 = vmatprep.mubr.msk.f32.mxu0 %vm5326_vm3, %v7316_v0  ;;  %v6566_v38 = vld [vmem:[#allocation3 + $0xe] sm:$0xff]  ;;  %v6567_v20 = vld [vmem:[#allocation3 + $0x16] sm:$0xff] }
 0x489   : > { %v11105_v0 = vld [vmem:[%s17990_s5 + $0x60] sm:$0xff] }
 0x48b   : > { %13448 = vmatmul.mubr.msk.f32.gmra.mxu1 %vm5326_vm3, %v5620_v43  ;;  %13631 = vmatmul.mubr.msk.f32.gmra.mxu0 %vm5326_vm3, %v7317_v5  ;;  %v6568_v43 = vld [vmem:[#allocation3 + $0x1e] sm:$0xff] }
 0x48c   : > { %13450 = vmatprep.mubr.msk.f32.mxu1 %vm5326_vm3, %v5621_v15  ;;  %13633 = vmatprep.mubr.msk.f32.mxu0 %vm5326_vm3, %v7318_v47  ;;  %v11146_v5 = vld [vmem:[%s17990_s5 + $0x88] sm:$0xff]  ;;  %v6570_v47 = vld [vmem:[#allocation3 + $0x2e] sm:$0xff] }
 0x48d   : > { %v6569_v15 = vld [vmem:[#allocation3 + $0x26] sm:$0xff] }
 0x48f   : > { %13451 = vmatmul.mubr.msk.f32.gmra.mxu1 %vm5326_vm3, %v5622_v44  ;;  %13634 = vmatmul.mubr.msk.f32.gmra.mxu0 %vm5326_vm3, %v7319_v61  ;;  %v6571_v44 = vld [vmem:[#allocation3 + $0x36] sm:$0xff]  ;;  %v6572_v61 = vld [vmem:[#allocation3 + $0x3e] sm:$0xff] }
 0x490   : > { %13453 = vmatprep.mubr.msk.f32.mxu1 %vm5326_vm3, %v5623_v51  ;;  %13636 = vmatprep.mubr.msk.f32.mxu0 %vm5326_vm3, %v7320_v40  ;;  %v6573_v51 = vld [vmem:[#allocation3 + $0x46] sm:$0xff]  ;;  %v6574_v40 = vld [vmem:[#allocation3 + $0x4e] sm:$0xff] }
 0x493   : > { %13454 = vmatmul.mubr.msk.f32.gmra.mxu1 %vm5326_vm3, %v5624_v4  ;;  %13637 = vmatmul.mubr.msk.f32.gmra.mxu0 %vm5326_vm3, %v7321_v22  ;;  %v6575_v4 = vld [vmem:[#allocation3 + $0x56] sm:$0xff]  ;;  %v6576_v22 = vld [vmem:[#allocation3 + $0x5e] sm:$0xff] }
 0x494   : > { %13456 = vmatprep.mubr.msk.f32.mxu1 %vm5326_vm3, %v5625_v48  ;;  %13639 = vmatprep.mubr.msk.f32.mxu0 %vm5326_vm3, %v7322_v35  ;;  %v6577_v48 = vld [vmem:[#allocation3 + $0x66] sm:$0xff]  ;;  %v6578_v35 = vld [vmem:[#allocation3 + $0x6e] sm:$0xff] }
 0x497   : > { %13457 = vmatmul.mubr.msk.f32.gmra.mxu1 %vm5326_vm3, %v5626_v2  ;;  %13640 = vmatmul.mubr.msk.f32.gmra.mxu0 %vm5326_vm3, %v7323_v33  ;;  %v6579_v2 = vld [vmem:[#allocation3 + $0x76] sm:$0xff]  ;;  %v6580_v33 = vld [vmem:[#allocation3 + $0x7e] sm:$0xff] }
 0x498   : > { %13459 = vmatprep.mubr.msk.f32.mxu1 %vm5326_vm3, %v5627_v7  ;;  %13642 = vmatprep.mubr.msk.f32.mxu0 %vm5326_vm3, %v7324_v19  ;;  %v6582_v7 = vld [vmem:[#allocation3 + $0x8e] sm:$0xff]  ;;  %v6581_v19 = vld [vmem:[#allocation3 + $0x86] sm:$0xff] }
 0x49b   : > { %13460 = vmatmul.mubr.msk.f32.gmra.mxu1 %vm5326_vm3, %v5628_v42  ;;  %13643 = vmatmul.mubr.msk.f32.gmra.mxu0 %vm5326_vm3, %v7325_v16  ;;  %v16664_v42 = vpop.f32.mrf.mxu1 }
 0x49c   : > { %13466 = vmatprep.mubr.msk.f32.mxu1 %vm5326_vm3, %v6070_v57  ;;  %13645 = vmatprep.mubr.msk.f32.mxu0 %vm5326_vm3, %v7326_v12  ;;  %v6583_v57 = vld [vmem:[#allocation3 + $0x96] sm:$0x7f] }
 0x49d   : > { %v7077_v12 = vld [vmem:[#allocation3 + $0x92] sm:$0xff] }
 0x49f   : > { %13467 = vmatmul.mubr.msk.f32.vlgmr.msra.gmra.mxu1 %vm5326_vm3, %v6071_v34  ;;  %13646 = vmatmul.mubr.msk.f32.gmra.mxu0 %vm5326_vm3, %v7327_v32  ;;  %v16669_v34 = vpop.f32.mrf.mxu1 }
 0x4a0   : > { %13494 = vmatpush3.msra.mxu1 %v16515_v54  ;;  %13469 = vmatprep.mubr.msk.f32.mxu1 %vm5326_vm3, %v6072_v23  ;;  %v6328_v54 = vld [vmem:[#allocation3 + $0x5d] sm:$0xff] }
 0x4a1   : > { %13495 = vmatprep.subr.mxu1 %v11045_v13  ;;  %v11145_v23 = vld [vmem:[%s17990_s5 + $0x80] sm:$0xff] }
 0x4a2   : > { %13496 = vmatpush3.msra.mxu1 %v11045_v13  ;;  %v16678_v13 = vpop.f32.mrf.mxu1 }
 0x4a3   : > { %13470 = vmatmul.mubr.msk.f32.gmra.mxu1 %vm5326_vm3, %v16557_v63  ;;  %13524 = vmatprep.subr.mxu1 %v11066_v29 }
 0x4a4   : > { %13472 = vmatprep.mubr.msk.f32.mxu1 %vm5326_vm3, %v16561_v52 }
 0x4a7   : > { %13473 = vmatmul.mubr.msk.f32.gmra.mxu1 %vm5326_vm3, %v16565_v41 }
 0x4a8   : > { %13475 = vmatprep.mubr.msk.f32.mxu1 %vm5326_vm3, %v16569_v53 }
 0x4ab   : > { %13476 = vmatmul.mubr.msk.f32.gmra.mxu1 %vm5326_vm3, %v16574_v27 }
 0x4ac   : > { %13478 = vmatprep.mubr.msk.f32.mxu1 %vm5326_vm3, %v16578_v14 }
 0x4af   : > { %13479 = vmatmul.mubr.msk.f32.gmra.mxu1 %vm5326_vm3, %v16584_v30 }
 0x4b0   : > { %13481 = vmatprep.mubr.msk.f32.mxu1 %vm5326_vm3, %v16588_v39 }
 0x4b3   : > { %13482 = vmatmul.mubr.msk.f32.gmra.mxu1 %vm5326_vm3, %v16592_v18 }
 0x4b4   : > { %13484 = vmatprep.mubr.msk.f32.mxu1 %vm5326_vm3, %v16596_v60 }
 0x4b7   : > { %13485 = vmatmul.mubr.msk.f32.gmra.mxu1 %vm5326_vm3, %v16600_v9 }
 0x4b8   : > { %13487 = vmatprep.mubr.msk.f32.mxu1 %vm5326_vm3, %v16604_v10 }
 0x4bb   : > { %13488 = vmatmul.mubr.msk.f32.gmra.mxu1 %vm5326_vm3, %v16608_v8 }
 0x4bc   : > { %13490 = vmatprep.mubr.msk.f32.mxu1 %vm5326_vm3, %v16612_v46 }
 0x4bf   : > { %13491 = vmatmul.mubr.msk.f32.gmra.mxu1 %vm5326_vm3, %v6087_v17  ;;  %v7561_v17 = vld [vmem:[#allocation3 + $0x34] sm:$0xff] }
 0x4c0   : > { %13497 = vmatprep.mubr.msk.f32.mxu1 %vm5326_vm3, %v6318_v28 }
 0x4c3   : > { %13498 = vmatmul.mubr.msk.f32.vlgmr.msra.gmra.mxu1 %vm5326_vm3, %v6319_v56  ;;  %v7562_v56 = vld [vmem:[#allocation3 + $0x3c] sm:$0xff] }
 0x4c4   : > { %13525 = vmatpush3.msra.mxu1 %v11066_v29  ;;  %13500 = vmatprep.mubr.msk.f32.mxu1 %vm5326_vm3, %v6320_v25  ;;  %v16684_v29 = vpop.f32.mrf.mxu1  ;;  %v7563_v25 = vld [vmem:[#allocation3 + $0x44] sm:$0xff] }
 0x4c5   : > { %13526 = vmatprep.subr.mxu1 %v11065_v31 }
 0x4c6   : > { %13527 = vmatpush3.msra.mxu1 %v11065_v31 }
 0x4c7   : > { %13501 = vmatmul.mubr.msk.f32.gmra.mxu1 %vm5326_vm3, %v6321_v36  ;;  %13586 = vmatprep.subr.mxu1 %v11106_v58  ;;  %v7564_v36 = vld [vmem:[#allocation3 + $0x4c] sm:$0xff] }
 0x4c8   : > { %13503 = vmatprep.mubr.msk.f32.mxu1 %vm5326_vm3, %v6322_v21 }
 0x4cb   : > { %13504 = vmatmul.mubr.msk.f32.gmra.mxu1 %vm5326_vm3, %v6323_v49  ;;  %v7565_v49 = vld [vmem:[#allocation3 + $0x54] sm:$0xff] }
 0x4cc   : > { %13506 = vmatprep.mubr.msk.f32.mxu1 %vm5326_vm3, %v6324_v6 }
 0x4cf   : > { %13507 = vmatmul.mubr.msk.f32.gmra.mxu1 %vm5326_vm3, %v6325_v50  ;;  %v7566_v50 = vld [vmem:[#allocation3 + $0x5c] sm:$0xff] }
 0x4d0   : > { %13509 = vmatprep.mubr.msk.f32.mxu1 %vm5326_vm3, %v6326_v24 }
 0x4d3   : > { %13510 = vmatmul.mubr.msk.f32.gmra.mxu1 %vm5326_vm3, %v6327_v45  ;;  %v7567_v45 = vld [vmem:[#allocation3 + $0x64] sm:$0xff] }
 0x4d4   : > { %13512 = vmatprep.mubr.msk.f32.mxu1 %vm5326_vm3, %v6328_v54 }
 0x4d7   : > { %13513 = vmatmul.mubr.msk.f32.gmra.mxu1 %vm5326_vm3, %v6329_v55  ;;  %v7568_v55 = vld [vmem:[#allocation3 + $0x6c] sm:$0xff] }
 0x4d8   : > { %13515 = vmatprep.mubr.msk.f32.mxu1 %vm5326_vm3, %v6330_v37 }
 0x4db   : > { %13516 = vmatmul.mubr.msk.f32.gmra.mxu1 %vm5326_vm3, %v6331_v3  ;;  %v7569_v3 = vld [vmem:[#allocation3 + $0x74] sm:$0xff] }
 0x4dc   : > { %13518 = vmatprep.mubr.msk.f32.mxu1 %vm5326_vm3, %v6332_v62 }
 0x4df   : > { %13519 = vmatmul.mubr.msk.f32.gmra.mxu1 %vm5326_vm3, %v6333_v26 }
 0x4e0   : > { %13521 = vmatprep.mubr.msk.f32.mxu1 %vm5326_vm3, %v6334_v11  ;;  %v7570_v11 = vld [vmem:[#allocation3 + $0x7c] sm:$0xff] }
 0x4e3   : > { %13522 = vmatmul.mubr.msk.f32.gmra.mxu1 %vm5326_vm3, %v6335_v59  ;;  %v7571_v59 = vld [vmem:[#allocation3 + $0x84] sm:$0xff] }
 0x4e4   : > { %13528 = vmatprep.mubr.msk.f32.mxu1 %vm5326_vm3, %v6566_v38 }
 0x4e7   : > { %13529 = vmatmul.mubr.msk.f32.vlgmr.msra.gmra.mxu1 %vm5326_vm3, %v6567_v20  ;;  %v7572_v20 = vld [vmem:[#allocation3 + $0x8c] sm:$0xff] }
 0x4e8   : > { %13587 = vmatpush3.msra.mxu1 %v11106_v58  ;;  %13531 = vmatprep.mubr.msk.f32.mxu1 %vm5326_vm3, %v6568_v43 }
 0x4e9   : > { %13588 = vmatprep.subr.mxu1 %v11105_v0 }
 0x4ea   : > { %13589 = vmatpush3.msra.mxu1 %v11105_v0  ;;  %v7573_v0 = vld [vmem:[#allocation3 + $0x94] sm:$0xff] }
 0x4eb   : > { %13532 = vmatmul.mubr.msk.f32.gmra.mxu1 %vm5326_vm3, %v6569_v15  ;;  %13648 = vmatprep.subr.mxu1 %v11146_v5 }
 0x4ec   : > { %13534 = vmatprep.mubr.msk.f32.mxu1 %vm5326_vm3, %v6570_v47  ;;  %v7575_v47 = vld [vmem:[#allocation3 + $0xa4] sm:$0x7f] }
 0x4ef   : > { %13535 = vmatmul.mubr.msk.f32.gmra.mxu1 %vm5326_vm3, %v6571_v44 }
 0x4f0   : > { %13537 = vmatprep.mubr.msk.f32.mxu1 %vm5326_vm3, %v6572_v61 }
 0x4f3   : > { %13538 = vmatmul.mubr.msk.f32.gmra.mxu1 %vm5326_vm3, %v6573_v51 }
 0x4f4   : > { %13540 = vmatprep.mubr.msk.f32.mxu1 %vm5326_vm3, %v6574_v40 }
 0x4f7   : > { %13541 = vmatmul.mubr.msk.f32.gmra.mxu1 %vm5326_vm3, %v6575_v4 }
 0x4f8   : > { %13543 = vmatprep.mubr.msk.f32.mxu1 %vm5326_vm3, %v6576_v22 }
 0x4fb   : > { %13544 = vmatmul.mubr.msk.f32.gmra.mxu1 %vm5326_vm3, %v6577_v48 }
 0x4fc   : > { %13546 = vmatprep.mubr.msk.f32.mxu1 %vm5326_vm3, %v6578_v35 }
 0x4ff   : > { %13547 = vmatmul.mubr.msk.f32.gmra.mxu1 %vm5326_vm3, %v6579_v2 }
 0x500   : > { %13549 = vmatprep.mubr.msk.f32.mxu1 %vm5326_vm3, %v6580_v33 }
 0x503   : > { %13550 = vmatmul.mubr.msk.f32.gmra.mxu1 %vm5326_vm3, %v6581_v19 }
 0x504   : > { %13552 = vmatprep.mubr.msk.f32.mxu1 %vm5326_vm3, %v6582_v7 }
 0x507   : > { %13553 = vmatmul.mubr.msk.f32.gmra.mxu1 %vm5326_vm3, %v6583_v57 }
 0x508   : > { %13590 = vmatprep.mubr.msk.f32.mxu1 %vm5326_vm3, %v16557_v63  ;;  %v16686_v63 = vpop.f32.mrf.mxu1 }
 0x50b   : > { %13591 = vmatmul.mubr.msk.f32.vlgmr.msra.gmra.mxu1 %vm5326_vm3, %v16561_v52  ;;  %v16692_v52 = vpop.f32.mrf.mxu1 }
 0x50c   : > { %13649 = vmatpush3.msra.mxu1 %v11146_v5  ;;  %13593 = vmatprep.mubr.msk.f32.mxu1 %vm5326_vm3, %v16565_v41  ;;  %v7574_v5 = vld [vmem:[#allocation3 + $0x9c] sm:$0xff] }
 0x50d   : > { %13650 = vmatprep.subr.mxu1 %v11145_v23  ;;  %v16698_v41 = vpop.f32.mrf.mxu1 }
 0x50e   : > { %13651 = vmatpush3.msra.mxu1 %v11145_v23 }
 0x50f   : > { %13594 = vmatmul.mubr.msk.f32.gmra.mxu1 %vm5326_vm3, %v16569_v53  ;;  %v16704_v53 = vpop.f32.mrf.mxu1 }
 0x510   : > { %13596 = vmatprep.mubr.msk.f32.mxu1 %vm5326_vm3, %v16574_v27 }
 0x511   : > { %v16706_v16 = vpop.f32.mrf.mxu1 }
 0x513   : > { %13597 = vmatmul.mubr.msk.f32.gmra.mxu1 %vm5326_vm3, %v16578_v14  ;;  %v16712_v27 = vpop.f32.mrf.mxu1  ;;  %v7076_v14 = vld [vmem:[#allocation3 + $0x8a] sm:$0xff] }
 0x514   : > { %13599 = vmatprep.mubr.msk.f32.mxu1 %vm5326_vm3, %v16584_v30  ;;  %v7078_v30 = vld [vmem:[#allocation3 + $0x9a] sm:$0xff] }
 0x515   : > { %v16717_v32 = vpop.f32.mrf.mxu1 }
 0x517   : > { %13600 = vmatmul.mubr.msk.f32.gmra.mxu1 %vm5326_vm3, %v16588_v39  ;;  %v7079_v39 = vld [vmem:[#allocation3 + $0xa2] sm:$0x7f] }
 0x518   : > { %13602 = vmatprep.mubr.msk.f32.mxu1 %vm5326_vm3, %v16592_v18  ;;  %v16721_v18 = vpop.f32.mrf.mxu1 }
 0x51b   : > { %13603 = vmatmul.mubr.msk.f32.gmra.mxu1 %vm5326_vm3, %v16596_v60  ;;  %v16723_v60 = vpop.f32.mrf.mxu1 }
 0x51c   : > { %13605 = vmatprep.mubr.msk.f32.mxu1 %vm5326_vm3, %v16600_v9  ;;  %v7558_v9 = vld [vmem:[#allocation3 + $0x1c] sm:$0xff] }
 0x51f   : > { %13606 = vmatmul.mubr.msk.f32.gmra.mxu1 %vm5326_vm3, %v16604_v10  ;;  %v7559_v10 = vld [vmem:[#allocation3 + $0x24] sm:$0xff] }
 0x520   : > { %13608 = vmatprep.mubr.msk.f32.mxu1 %vm5326_vm3, %v16608_v8  ;;  %v16727_v8 = vpop.f32.mrf.mxu1 }
 0x523   : > { %13609 = vmatmul.mubr.msk.f32.gmra.mxu1 %vm5326_vm3, %v16612_v46  ;;  %v7560_v46 = vld [vmem:[#allocation3 + $0x2c] sm:$0xff]  ;;  %v13427_v28 = vpop.f32.mrf.mxu1 }
 0x524   : > { %13611 = vmatprep.mubr.msk.f32.mxu1 %vm5326_vm3, %v7076_v14 }
 0x525   : > { %v16733_v31 = vpop.f32.mrf.mxu1 }
 0x527   : > { %13612 = vmatmul.mubr.msk.f32.gmra.mxu1 %vm5326_vm3, %v7077_v12 }
 0x528   : > { %13614 = vmatprep.mubr.msk.f32.mxu1 %vm5326_vm3, %v7078_v30 }
 0x52b   : > { %13615 = vmatmul.mubr.msk.f32.gmra.mxu1 %vm5326_vm3, %v7079_v39 }
 0x52c   : > { %13652 = vmatprep.mubr.msk.f32.mxu1 %vm5326_vm3, %v7558_v9 }
 0x52f   : > { %13653 = vmatmul.mubr.msk.f32.vlgmr.msra.gmra.mxu1 %vm5326_vm3, %v7559_v10 }
 0x530   : > { %13655 = vmatprep.mubr.msk.f32.mxu1 %vm5326_vm3, %v7560_v46 }
 0x533   : > { %13656 = vmatmul.mubr.msk.f32.gmra.mxu1 %vm5326_vm3, %v7561_v17 }
 0x534   : > { %13658 = vmatprep.mubr.msk.f32.mxu1 %vm5326_vm3, %v7562_v56 }
 0x536   : > { %v13430_v58 = vpop.f32.mrf.mxu1 }
 0x537   : > { %13659 = vmatmul.mubr.msk.f32.gmra.mxu1 %vm5326_vm3, %v7563_v25 }
 0x538   : > { %13661 = vmatprep.mubr.msk.f32.mxu1 %vm5326_vm3, %v7564_v36  ;;  %v5852_v21 = vpop.f32.mrf.mxu1 }
 0x53a   : > { %v13437_v6 = vpop.f32.mrf.mxu1 }
 0x53b   : > { %13662 = vmatmul.mubr.msk.f32.gmra.mxu1 %vm5326_vm3, %v7565_v49  ;;  %v5987_v7 = vadd.f32 %v13437_v6, %v16664_v42 }
 0x53c   : > { %13664 = vmatprep.mubr.msk.f32.mxu1 %vm5326_vm3, %v7566_v50  ;;  %v16739_v24 = vpop.f32.mrf.mxu1 }
 0x53f   : > { %v13440_v54 = vpop.f32.mrf.mxu1  ;;  %13665 = vmatmul.mubr.msk.f32.gmra.mxu1 %vm5326_vm3, %v7567_v45 }
 0x540   : > { %13667 = vmatprep.mubr.msk.f32.mxu1 %vm5326_vm3, %v7568_v55  ;;  %v5997_v14 = vadd.f32 %v13440_v54, %v16678_v13 }
 0x541   : > { %v16743_v37 = vpop.f32.mrf.mxu1 }
 0x543   : > { %v13443_v62 = vpop.f32.mrf.mxu1  ;;  %13668 = vmatmul.mubr.msk.f32.gmra.mxu1 %vm5326_vm3, %v7569_v3 }
 0x544   : > { %13670 = vmatprep.mubr.msk.f32.mxu1 %vm5326_vm3, %v7570_v11  ;;  %v6007_v9 = vadd.f32 %v13443_v62, %v16686_v63 }
 0x545   : > { %v16747_v26 = vpop.f32.mrf.mxu1 }
 0x547   : > { %v13446_v38 = vpop.f32.mrf.mxu1  ;;  %13671 = vmatmul.mubr.msk.f32.gmra.mxu1 %vm5326_vm3, %v7571_v59 }
 0x548   : > { %13673 = vmatprep.mubr.msk.f32.mxu1 %vm5326_vm3, %v7572_v20  ;;  %v6017_v17 = vadd.f32 %v13446_v38, %v16698_v41 }
 0x549   : > { %v16751_v43 = vpop.f32.mrf.mxu1 }
 0x54b   : > { %v13449_v15 = vpop.f32.mrf.mxu1  ;;  %13674 = vmatmul.mubr.msk.f32.gmra.mxu1 %vm5326_vm3, %v7573_v0 }
 0x54c   : > { %13676 = vmatprep.mubr.msk.f32.mxu1 %vm5326_vm3, %v7574_v5  ;;  %v6027_v58 = vadd.f32 %v13449_v15, %v16706_v16  ;;  %v11170_v15 = vld [vmem:[%s17993_s8 + $0x38] sm:$0xff] }
 0x54d   : > { %v16755_v44 = vpop.f32.mrf.mxu1  ;;  %13679 = vmatprep.subr.mxu0 %v11170_v15 }
 0x54e   : > { %13680 = vmatpush3.msra.mxu0 %v11170_v15 }
 0x54f   : > { %v13452_v61 = vpop.f32.mrf.mxu1  ;;  %13677 = vmatmul.mubr.msk.f32.gmra.mxu1 %vm5326_vm3, %v7575_v47 }
 0x550   : > { %v6037_v49 = vadd.f32 %v13452_v61, %v16717_v32 }
 0x551   : > { %v16758_v51 = vpop.f32.mrf.mxu1 }
 0x553   : > { %v13455_v40 = vpop.f32.mrf.mxu1 }
 0x554   : > { %v6047_v45 = vadd.f32 %v13455_v40, %v16723_v60 }
 0x555   : > { %v16760_v4 = vpop.f32.mrf.mxu1 }
 0x557   : > { %v13458_v22 = vpop.f32.mrf.mxu1 }
 0x558   : > { %v6057_v48 = vadd.f32 %v13458_v22, %v13427_v28  ;;  %v7978_v22 = vld [vmem:[%s17993_s8 + $0x18] sm:$0xff] }
 0x559   : > { %v16762_v35 = vpop.f32.mrf.mxu1  ;;  %13699 = vmatprep.subr.mxu1 %v7978_v22 }
 0x55a   : > { %13700 = vmatpush3.msra.mxu1 %v7978_v22 }
 0x55b   : > { %v13461_v2 = vpop.f32.mrf.mxu1 }
 0x55c   : > { %v11169_v2 = vld [vmem:[%s17993_s8 + $0x30] sm:$0xff] }
 0x55d   : > { %v6061_v33 = vpop.f32.mrf.mxu1  ;;  %13681 = vmatprep.subr.mxu0 %v11169_v2 }
 0x55e   : > { %v7977_v33 = vld [vmem:[%s17993_s8 + $0x10] sm:$0xff]  ;;  %13682 = vmatpush3.msra.mxu0 %v11169_v2 }
 0x55f   : > { %v13468_v19 = vpop.f32.mrf.mxu1  ;;  %13701 = vmatprep.subr.mxu1 %v7977_v33 }
 0x560   : > { %v6301_v57 = vadd.f32 %v13468_v19, %v5987_v7  ;;  %v16839_v7 = vpop.f32.mrf.mxu0  ;;  %13702 = vmatpush3.msra.mxu1 %v7977_v33 }
 0x561   : > { %v16765_v23 = vpop.f32.mrf.mxu1 }
 0x563   : > { %v13471_v12 = vpop.f32.mrf.mxu1 }
 0x564   : > { %v6303_v30 = vadd.f32 %v13471_v12, %v5997_v14  ;;  %v11168_v14 = vld [vmem:[%s17993_s8 + $0x28] sm:$0xff] }
 0x565   : > { %v16768_v39 = vpop.f32.mrf.mxu1  ;;  %v7976_v12 = vld [vmem:[%s17993_s8 + $0x8] sm:$0xff]  ;;  %13683 = vmatprep.subr.mxu0 %v11168_v14 }
 0x566   : > { %13703 = vmatprep.subr.mxu1 %v7976_v12  ;;  %13684 = vmatpush3.msra.mxu0 %v11168_v14 }
 0x567   : > { %v13474_v10 = vpop.f32.mrf.mxu1  ;;  %13704 = vmatpush3.msra.mxu1 %v7976_v12 }
 0x568   : > { %v6305_v46 = vadd.f32 %v13474_v10, %v6007_v9  ;;  %v11167_v9 = vld [vmem:[%s17993_s8 + $0x20] sm:$0xff] }
 0x569   : > { %v16771_v28 = vpop.f32.mrf.mxu1  ;;  %v7975_v10 = vld [vmem:[%s17993_s8] sm:$0xff]  ;;  %13685 = vmatprep.subr.mxu0 %v11167_v9 }
 0x56a   : > { %13705 = vmatprep.subr.mxu1 %v7975_v10  ;;  %13686 = vmatpush3.msra.mxu0 %v11167_v9  ;;  %v11202_v9 = vld [vmem:[%s17993_s8 + $0x78] sm:$0xff] }
 0x56b   : > { %v13477_v56 = vpop.f32.mrf.mxu1  ;;  %13706 = vmatpush3.msra.mxu1 %v7975_v10 }
 0x56c   : > { %v6307_v42 = vadd.f32 %v13477_v56, %v6017_v17  ;;  %v7979_v56 = vld [vmem:[#allocation5 + $0x1] sm:$0xff]  ;;  %13739 = vmatprep.subr.mxu1 %v11202_v9 }
 0x56d   : > { %v16774_v25 = vpop.f32.mrf.mxu1  ;;  %13687 = vmatprep.mubr.msk.f32.mxu0 %vm7874_vm5, %v7979_v56 }
 0x56f   : > { %v13480_v36 = vpop.f32.mrf.mxu1 }
 0x570   : > { %v6309_v13 = vadd.f32 %v13480_v36, %v6027_v58  ;;  %v16864_v36 = vld [vmem:[#allocation5 + $0x9] sm:$0xff] }
 0x571   : > { %v16777_v21 = vpop.f32.mrf.mxu1  ;;  %18015 = vst [vmem:[#allocation7_spill] sm:$0xff] %v16864_v36  ;;  %13688 = vmatmul.mubr.msk.f32.vlgmr.msra.gmra.mxu0 %vm7874_vm5, %v16864_v36 }
 0x573   : > { %v13483_v6 = vpop.f32.mrf.mxu1 }
 0x574   : > { %v16780_v63 = vadd.f32 %v13483_v6, %v6037_v49  ;;  %v7968_v49 = vld [vmem:[#allocation5 + $0x8] sm:$0xff] }
 0x575   : > { %v16782_v50 = vpop.f32.mrf.mxu1 }
 0x577   : > { %v13486_v41 = vpop.f32.mrf.mxu1 }
 0x578   : > { %v16807_v16 = vadd.f32 %v13486_v41, %v6047_v45 }
 0x579   : > { %v16809_v32 = vpop.f32.mrf.mxu1 }
 0x57b   : > { %v13489_v60 = vpop.f32.mrf.mxu1 }
 0x57c   : > { %v16811_v54 = vadd.f32 %v13489_v60, %v6057_v48 }
 0x57d   : > { %v16813_v55 = vpop.f32.mrf.mxu1 }
 0x57f   : > { %v13492_v3 = vpop.f32.mrf.mxu1 }
 0x580   : > { %v6042_v3 = vadd.f32 %v16760_v4, %v16727_v8  ;;  %v11190_v8 = vld [vmem:[%s17993_s8 + $0x58] sm:$0xff]  ;;  %v11189_v4 = vld [vmem:[%s17993_s8 + $0x50] sm:$0xff] }
 0x581   : > { %v6291_v62 = vpop.f32.mrf.mxu1  ;;  %13719 = vmatprep.subr.mxu0 %v11190_v8 }
 0x582   : > { %13720 = vmatpush3.msra.mxu0 %v11190_v8 }
 0x583   : > { %v13499_v11 = vpop.f32.mrf.mxu1  ;;  %13721 = vmatprep.subr.mxu0 %v11189_v4 }
 0x584   : > { %v16815_v59 = vadd.f32 %v13499_v11, %v6301_v57  ;;  %13722 = vmatpush3.msra.mxu0 %v11189_v4 }
 0x585   : > { %v16817_v38 = vpop.f32.mrf.mxu1 }
 0x587   : > { %v13502_v20 = vpop.f32.mrf.mxu1 }
 0x588   : > { %v16819_v0 = vadd.f32 %v13502_v20, %v6303_v30  ;;  %v6312_v20 = vadd.f32 %v16809_v32, %v6042_v3  ;;  %v11187_v3 = vld [vmem:[%s17993_s8 + $0x40] sm:$0xff] }
 0x589   : > { %v16821_v5 = vpop.f32.mrf.mxu1 }
 0x58b   : > { %v13505_v47 = vpop.f32.mrf.mxu1 }
 0x58c   : > { %v16826_v61 = vadd.f32 %v13505_v47, %v6305_v46  ;;  %v16857_v46 = vpop.f32.mrf.mxu0 }
 0x58d   : > { %v16828_v40 = vpop.f32.mrf.mxu1 }
 0x58e   : > { %v16866_v6 = vpop.f32.mrf.mxu0 }
 0x58f   : > { %v13508_v48 = vpop.f32.mrf.mxu1 }
 0x590   : > { %v16841_v19 = vadd.f32 %v13508_v48, %v6307_v42  ;;  %v7967_v42 = vld [vmem:[#allocation5] sm:$0xff]  ;;  %v16877_v60 = vpop.f32.mrf.mxu0 }
 0x591   : > { %v16843_v57 = vpop.f32.mrf.mxu1  ;;  %13707 = vmatprep.mubr.msk.f32.mxu1 %vm7874_vm5, %v7967_v42  ;;  %v11201_v42 = vld [vmem:[%s17993_s8 + $0x70] sm:$0xff] }
 0x592   : > { %13708 = vmatmul.mubr.msk.f32.vlgmr.msra.gmra.mxu1 %vm7874_vm5, %v7968_v49  ;;  %v16881_v11 = vpop.f32.mrf.mxu0 }
 0x593   : > { %v13511_v30 = vpop.f32.mrf.mxu1  ;;  %13740 = vmatpush3.msra.mxu1 %v11202_v9 }
 0x594   : > { %v16859_v17 = vadd.f32 %v13511_v30, %v6309_v13  ;;  %v16889_v48 = vpop.f32.mrf.mxu0  ;;  %v11188_v30 = vld [vmem:[%s17993_s8 + $0x48] sm:$0xff]  ;;  %13741 = vmatprep.subr.mxu1 %v11201_v42 }
 0x595   : > { %v16861_v58 = vpop.f32.mrf.mxu1  ;;  %13723 = vmatprep.subr.mxu0 %v11188_v30  ;;  %13742 = vmatpush3.msra.mxu1 %v11201_v42 }
 0x596   : > { %13724 = vmatpush3.msra.mxu0 %v11188_v30 }
 0x597   : > { %v13514_v45 = vpop.f32.mrf.mxu1  ;;  %13725 = vmatprep.subr.mxu0 %v11187_v3 }
 0x598   : > { %v16873_v13 = vadd.f32 %v13514_v45, %v16780_v63  ;;  %13726 = vmatpush3.msra.mxu0 %v11187_v3  ;;  %v6022_v3 = vadd.f32 %v16755_v44, %v16712_v27  ;;  %v6032_v27 = vadd.f32 %v16758_v51, %v16721_v18 }
 0x599   : > { %v16875_v41 = vpop.f32.mrf.mxu1 }
 0x59b   : > { %v13517_v62 = vpop.f32.mrf.mxu1 }
 0x59c   : > { %v16885_v15 = vadd.f32 %v13517_v62, %v16807_v16  ;;  %v16902_v16 = vpop.f32.mrf.mxu0 }
 0x59d   : > { %v6519_v47 = vpop.f32.mrf.mxu1 }
 0x59e   : > { %v16887_v22 = vadd.f32 %v6519_v47, %v6312_v20  ;;  %v11199_v47 = vld [vmem:[%s17993_s8 + $0x60] sm:$0xff] }
 0x59f   : > { %v13520_v63 = vpop.f32.mrf.mxu1 }
 0x5a0   : > { %v16892_v2 = vadd.f32 %v13520_v63, %v16811_v54  ;;  %v16904_v54 = vpop.f32.mrf.mxu0 }
 0x5a1   : > { %v16900_v32 = vpop.f32.mrf.mxu1 }
 0x5a2   : > { %v16912_v10 = vpop.f32.mrf.mxu0 }
 0x5a3   : > { %v13523_v33 = vpop.f32.mrf.mxu1 }
 0x5a4   : > { %v16928_v62 = vpop.f32.mrf.mxu0  ;;  %v6012_v33 = vadd.f32 %v16751_v43, %v16704_v53 }
 0x5a5   : > { %v6539_v14 = vpop.f32.mrf.mxu1 }
 0x5a6   : > { %v16938_v8 = vpop.f32.mrf.mxu0  ;;  %v6306_v9 = vadd.f32 %v16774_v25, %v6012_v33  ;;  %v16970_v25 = vld [vmem:[%s17993_s8 + $0xb8] sm:$0xff] }
 0x5a7   : > { %v13530_v12 = vpop.f32.mrf.mxu1  ;;  %18018 = vst [vmem:[#allocation10_spill] sm:$0xff] %v16970_v25 }
 0x5a8   : > { %v16915_v56 = vadd.f32 %v13530_v12, %v16815_v59  ;;  %v11200_v59 = vld [vmem:[%s17993_s8 + $0x68] sm:$0xff]  ;;  %v16953_v30 = vpop.f32.mrf.mxu0 }
 0x5a9   : > { %v16920_v49 = vpop.f32.mrf.mxu1  ;;  %13743 = vmatprep.subr.mxu1 %v11200_v59 }
 0x5aa   : > { %13744 = vmatpush3.msra.mxu1 %v11200_v59  ;;  %v6554_v59 = vadd.f32 %v16843_v57, %v6306_v9  ;;  %v6310_v9 = vadd.f32 %v16782_v50, %v6032_v27 }
 0x5ab   : > { %v13533_v45 = vpop.f32.mrf.mxu1  ;;  %13745 = vmatprep.subr.mxu1 %v11199_v47 }
 0x5ac   : > { %v16931_v20 = vadd.f32 %v13533_v45, %v16819_v0  ;;  %13746 = vmatpush3.msra.mxu1 %v11199_v47  ;;  %v16943_v0 = vld [vmem:[%s17993_s8 + $0x98] sm:$0xff]  ;;  %v16956_v45 = vpop.f32.mrf.mxu0 }
 0x5ad   : > { %v16936_v63 = vpop.f32.mrf.mxu1  ;;  %18016 = vst [vmem:[#allocation8_spill] sm:$0xff] %v16943_v0  ;;  %13759 = vmatprep.subr.mxu0 %v16943_v0  ;;  %18017 = vst [vmem:[#allocation9_spill] sm:$0xff] %v16956_v45  ;;  %13779 = vmatprep.subr.mxu1 %v16970_v25 }
 0x5ae   : > { %v16972_v33 = vpop.f32.mrf.mxu0 }
 0x5af   : > { %v13536_v4 = vpop.f32.mrf.mxu1  ;;  %18019 = vst [vmem:[#allocation11_spill] sm:$0xff] %v16972_v33 }
 0x5b0   : > { %v16948_v14 = vadd.f32 %v13536_v4, %v16826_v61  ;;  %v6308_v61 = vadd.f32 %v16777_v21, %v6022_v3  ;;  %v16981_v57 = vpop.f32.mrf.mxu0 }
 0x5b1   : > { %v16951_v12 = vpop.f32.mrf.mxu1  ;;  %18020 = vst [vmem:[#allocation12_spill] sm:$0xff] %v16981_v57  ;;  %v5992_v57 = vadd.f32 %v16743_v37, %v16684_v29  ;;  %v7045_v29 = vadd.f32 %v16839_v7, %v16915_v56 }
 0x5b2   : > { %v6556_v44 = vadd.f32 %v16861_v58, %v6308_v61  ;;  %v16990_v51 = vpop.f32.mrf.mxu0  ;;  %v6052_v61 = vadd.f32 %v16762_v35, %v16733_v31 }
 0x5b3   : > { %v13539_v42 = vpop.f32.mrf.mxu1  ;;  %18021 = vst [vmem:[#allocation13_spill] sm:$0xff] %v16990_v51  ;;  %v6302_v45 = vadd.f32 %v16768_v39, %v5992_v57 }
 0x5b4   : > { %v16962_v53 = vadd.f32 %v13539_v42, %v16841_v19  ;;  %v13585_v27 = vpop.f32.mrf.mxu0 }
 0x5b5   : > { %v6737_v43 = vpop.f32.mrf.mxu1 }
 0x5b6   : > { %v16965_v47 = vadd.f32 %v6737_v43, %v6554_v59  ;;  %v6558_v59 = vadd.f32 %v16875_v41, %v6310_v9 }
 0x5b7   : > { %v13542_v4 = vpop.f32.mrf.mxu1 }
 0x5b8   : > { %v16978_v19 = vadd.f32 %v13542_v4, %v16859_v17 }
 0x5b9   : > { %v6747_v21 = vpop.f32.mrf.mxu1 }
 0x5ba   : > { %v16984_v42 = vadd.f32 %v6747_v21, %v6556_v44  ;;  %v6314_v44 = vadd.f32 %v16813_v55, %v6052_v61 }
 0x5bb   : > { %v13545_v3 = vpop.f32.mrf.mxu1 }
 0x5bc   : > { %v16988_v43 = vadd.f32 %v13545_v3, %v16873_v13  ;;  %v6562_v21 = vadd.f32 %v16900_v32, %v6314_v44 }
 0x5bd   : > { %v6757_v18 = vpop.f32.mrf.mxu1 }
 0x5be   : > { %v16992_v17 = vadd.f32 %v6757_v18, %v6558_v59  ;;  %v7035_v59 = vpop.f32.mrf.mxu0 }
 0x5bf   : > { %v13548_v58 = vpop.f32.mrf.mxu1 }
 0x5c0   : > { %v16997_v4 = vadd.f32 %v13548_v58, %v16885_v15  ;;  %v13623_v15 = vpop.f32.mrf.mxu0 }
 0x5c1   : > { %v6767_v50 = vpop.f32.mrf.mxu1 }
 0x5c2   : > { %18022 = vst [vmem:[#allocation14_spill] sm:$0xff] %v16997_v4  ;;  %v17001_v41 = vadd.f32 %v6767_v50, %v16887_v22  ;;  %v7451_v1 = vpop.f32.mrf.mxu0 }
 0x5c3   : > { %v13551_v13 = vpop.f32.mrf.mxu1 }
 0x5c4   : > { %18023 = vst [vmem:[#allocation15_spill] sm:$0xff] %v17001_v41  ;;  %v17005_v9 = vadd.f32 %v13551_v13, %v16892_v2  ;;  %v13626_v22 = vpop.f32.mrf.mxu0 }
 0x5c5   : > { %v6777_v3 = vpop.f32.mrf.mxu1 }
 0x5c6   : > { %18024 = vst [vmem:[#allocation16_spill] sm:$0xff] %v17005_v9  ;;  %v17007_v18 = vadd.f32 %v6777_v3, %v6562_v21  ;;  %v7461_v0 = vpop.f32.mrf.mxu0 }
 0x5c7   : > { %v13554_v31 = vpop.f32.mrf.mxu1 }
 0x5c8   : > { %18025 = vst [vmem:[#allocation17_spill] sm:$0xff] %v17007_v18  ;;  %v13629_v2 = vpop.f32.mrf.mxu0  ;;  %v5982_v31 = vadd.f32 %v16739_v24, %v16669_v34  ;;  %v6002_v24 = vadd.f32 %v16747_v26, %v16692_v52 }
 0x5c9   : > { %v6787_v35 = vpop.f32.mrf.mxu1 }
 0x5ca   : > { %v17015_v3 = vpop.f32.mrf.mxu0  ;;  %v6300_v51 = vadd.f32 %v16765_v23, %v5982_v31  ;;  %v6550_v23 = vadd.f32 %v16821_v5, %v6302_v45  ;;  %v6304_v37 = vadd.f32 %v16771_v28, %v6002_v24  ;;  %v7047_v5 = vadd.f32 %v16866_v6, %v16931_v20 }
 0x5cb   : > { %v13592_v58 = vpop.f32.mrf.mxu1 }
 0x5cc   : > { %v17023_v36 = vpop.f32.mrf.mxu0  ;;  %v6548_v9 = vadd.f32 %v16817_v38, %v6300_v51  ;;  %v6798_v39 = vadd.f32 %v16936_v63, %v6550_v23  ;;  %v7293_v57 = vadd.f32 %v13592_v58, %v7045_v29  ;;  %v6552_v52 = vadd.f32 %v16828_v40, %v6304_v37  ;;  %v17063_v40 = vld [vmem:[%s17991_s6] ss:$0 sm:$0xff] }
 0x5cd   : > { %v7203_v27 = vpop.f32.mrf.mxu1  ;;  %v7049_v63 = vadd.f32 %v16881_v11, %v16948_v14 }
 0x5ce   : > { %v17033_v41 = vpop.f32.mrf.mxu0  ;;  %v6796_v34 = vadd.f32 %v16920_v49, %v6548_v9  ;;  %v6800_v7 = vadd.f32 %v16951_v12, %v6552_v52  ;;  %v7046_v31 = vadd.f32 %v16877_v60, %v6798_v39  ;;  %v7541_v24 = vadd.f32 %v13623_v15, %v7293_v57  ;;  %v17069_v60 = vld [vmem:[%s17992_s7] ss:$0 sm:$0xff] }
 0x5cf   : > { %v13595_v55 = vpop.f32.mrf.mxu1  ;;  %v7050_v57 = vadd.f32 %v16904_v54, %v16965_v47 }
 0x5d0   : > { %v17047_v51 = vpop.f32.mrf.mxu0  ;;  %v7044_v49 = vadd.f32 %v16857_v46, %v6796_v34  ;;  %v7295_v45 = vadd.f32 %v13595_v55, %v7047_v5  ;;  %v7053_v5 = vadd.f32 %v16912_v10, %v16978_v19 }
 0x5d1   : > { %v7213_v61 = vpop.f32.mrf.mxu1 }
 0x5d2   : > { %v7292_v9 = vadd.f32 %v7203_v27, %v7044_v49  ;;  %v17055_v28 = vpop.f32.mrf.mxu0  ;;  %v7294_v58 = vadd.f32 %v7213_v61, %v7046_v31  ;;  %v7048_v27 = vadd.f32 %v16889_v48, %v6800_v7  ;;  %v7543_v34 = vadd.f32 %v13626_v22, %v7295_v45 }
 0x5d3   : > { %v13598_v50 = vpop.f32.mrf.mxu1  ;;  %v7051_v61 = vadd.f32 %v16902_v16, %v16962_v53 }
 0x5d4   : > { %v7540_v20 = vadd.f32 %v7451_v1, %v7292_v9  ;;  %v7297_v12 = vadd.f32 %v13598_v50, %v7049_v63  ;;  %v17071_v55 = vpop.f32.mrf.mxu0  ;;  %v7542_v37 = vadd.f32 %v7461_v0, %v7294_v58  ;;  %v7052_v63 = vadd.f32 %v16928_v62, %v16984_v42 }
 0x5d5   : > { %v7223_v25 = vpop.f32.mrf.mxu1  ;;  %v7054_v62 = vadd.f32 %v16953_v30, %v16992_v17 }
 0x5d6   : > { %v7296_v23 = vadd.f32 %v7223_v25, %v7048_v27  ;;  %v7545_v52 = vadd.f32 %v13629_v2, %v7297_v12 }
 0x5d7   : > { %v13601_v32 = vpop.f32.mrf.mxu1 }
 0x5d8   : > { %v7299_v39 = vadd.f32 %v13601_v32, %v7051_v61  ;;  %v7544_v32 = vadd.f32 %v17015_v3, %v7296_v23  ;;  %v18027_v61 = vld [vmem:[#allocation9_spill] sm:$0xff] }
 0x5d9   : > { %v17009_v44 = vpop.f32.mrf.mxu1 }
 0x5da   : > { %v7298_v9 = vadd.f32 %v17009_v44, %v7050_v57  ;;  %v7547_v31 = vadd.f32 %v17023_v36, %v7299_v39  ;;  %v18029_v39 = vld [vmem:[#allocation11_spill] sm:$0xff] }
 0x5db   : > { %v17011_v13 = vpop.f32.mrf.mxu1 }
 0x5dc   : > { %v7546_v58 = vadd.f32 %v17033_v41, %v7298_v9 }
 0x5dd   : > { %v17013_v21 = vpop.f32.mrf.mxu1 }
 0x5de   : > { %v7300_v27 = vadd.f32 %v17013_v21, %v7052_v63  ;;  %v18026_v21 = vld [vmem:[#allocation14_spill] sm:$0xff] }
 0x5df   : > { %v17017_v59 = vpop.f32.mrf.mxu1 }
 0x5e1   : > { %v17021_v35 = vpop.f32.mrf.mxu1 }
 0x5e2   : > { %v7302_v23 = vadd.f32 %v17021_v35, %v7054_v62  ;;  %v7548_v35 = vadd.f32 %v17055_v28, %v7300_v27 }
 0x5e3   : > { %v17026_v18 = vpop.f32.mrf.mxu1 }
 0x5e5   : > { %v17031_v33 = vpop.f32.mrf.mxu1 }
 0x5e7   : > { %v17039_v4 = vpop.f32.mrf.mxu1 }
 0x5e9   : > { %v17045_v38 = vpop.f32.mrf.mxu1 }
 0x5eb   : > { %v13616_v26 = vpop.f32.mrf.mxu1 }
 0x5ec   : > { %v17080_v26 = vpop.f32.mrf.mxu0 }
 0x5ed   : > { %v7283_v56 = vpop.f32.mrf.mxu1  ;;  %v7550_v28 = vadd.f32 %v17080_v26, %v7302_v23 }
 0x5ee   : > { %v7301_v56 = vadd.f32 %v17011_v13, %v7053_v5  ;;  %v17093_v44 = vpop.f32.mrf.mxu0  ;;  %v18030_v5 = vld [vmem:[#allocation16_spill] sm:$0xff] }
 0x5ef   : > { %v13654_v46 = vpop.f32.mrf.mxu1 }
 0x5f0   : > { %v7789_v6 = vadd.f32 %v13654_v46, %v7541_v24  ;;  %v7055_v46 = vadd.f32 %v16938_v8, %v16988_v43  ;;  %v7549_v8 = vadd.f32 %v17047_v51, %v7301_v56  ;;  %v7511_v43 = vpop.f32.mrf.mxu0 }
 0x5f1   : > { %v7699_v15 = vpop.f32.mrf.mxu1 }
 0x5f2   : > { %v7814_v11 = vmul.f32 %v17063_v40, %v7789_v6  ;;  %v7788_v14 = vadd.f32 %v7699_v15, %v7540_v20  ;;  %v7303_v15 = vadd.f32 %v17017_v59, %v7055_v46  ;;  %v7057_v59 = vadd.f32 %v18027_v61, %v18026_v21 }
 0x5f3   : > { %v13657_v1 = vpop.f32.mrf.mxu1 }
 0x5f4   : > { %v7839_v50 = vadd.f32 %v17069_v60, %v7814_v11  ;;  %v7813_v48 = vmul.f32 %v17063_v40, %v7788_v14  ;;  %v7791_v29 = vadd.f32 %v13657_v1, %v7543_v34  ;;  %v7551_v9 = vadd.f32 %v17071_v55, %v7303_v15 }
 0x5f5   : > { %v7709_v49 = vpop.f32.mrf.mxu1 }
 0x5f6   : > { %v7857_v22 = vmax.f32 %v7839_v50, 0.0  ;;  %v7838_v25 = vadd.f32 %v17069_v60, %v7813_v48  ;;  %v7816_v16 = vmul.f32 %v17063_v40, %v7791_v29  ;;  %v7790_v53 = vadd.f32 %v7709_v49, %v7542_v37  ;;  %v13644_v50 = vpop.f32.mrf.mxu0  ;;  %v18028_v37 = vld [vmem:[#allocation15_spill] sm:$0xff] }
 0x5f7   : > { %v13660_v0 = vpop.f32.mrf.mxu1  ;;  %v7305_v29 = vadd.f32 %v17026_v18, %v7057_v59  ;;  %v7056_v57 = vadd.f32 %v18029_v39, %v18028_v37 }
 0x5f8   : > { %7876 = vst.msk [vmem:[#allocation4 + $0x8] sm:$0xff] %vm7874_vm5, %v7857_v22  ;;  %v7856_v54 = vmax.f32 %v7838_v25, 0.0  ;;  %v7841_v47 = vadd.f32 %v17069_v60, %v7816_v16  ;;  %v7815_v2 = vmul.f32 %v17063_v40, %v7790_v53  ;;  %v7793_v7 = vadd.f32 %v13660_v0, %v7545_v52  ;;  %v18031_v0 = vld [vmem:[#allocation12_spill] sm:$0xff] }
 0x5f9   : > { %v7719_v45 = vpop.f32.mrf.mxu1  ;;  %v7059_v18 = vadd.f32 %v18031_v0, %v18030_v5  ;;  %v7304_v56 = vadd.f32 %v17031_v33, %v7056_v57 }
 0x5fa   : > { %7875 = vst.msk [vmem:[#allocation4] sm:$0xff] %vm7874_vm5, %v7856_v54  ;;  %v7859_v10 = vmax.f32 %v7841_v47, 0.0  ;;  %v7840_v19 = vadd.f32 %v17069_v60, %v7815_v2  ;;  %v7818_v3 = vmul.f32 %v17063_v40, %v7793_v7  ;;  %v7792_v24 = vadd.f32 %v7719_v45, %v7544_v32  ;;  %v18032_v32 = vld [vmem:[#allocation17_spill] sm:$0xff]  ;;  %v7521_v45 = vpop.f32.mrf.mxu0 }
 0x5fb   : > { %v13663_v13 = vpop.f32.mrf.mxu1  ;;  %v18033_v54 = vld [vmem:[#allocation13_spill] sm:$0xff]  ;;  %v7307_v55 = vadd.f32 %v17039_v4, %v7059_v18 }
 0x5fc   : > { %7878 = vst.msk [vmem:[#allocation4 + $0x18] sm:$0xff] %vm7874_vm5, %v7859_v10  ;;  %v7858_v36 = vmax.f32 %v7840_v19, 0.0  ;;  %v7843_v6 = vadd.f32 %v17069_v60, %v7818_v3  ;;  %v7817_v20 = vmul.f32 %v17063_v40, %v7792_v24  ;;  %v7795_v12 = vadd.f32 %v13663_v13, %v7547_v31  ;;  %v13647_v27 = vpop.f32.mrf.mxu0 }
 0x5fd   : > { %v7729_v42 = vpop.f32.mrf.mxu1  ;;  %v7058_v47 = vadd.f32 %v18033_v54, %v18032_v32 }
 0x5fe   : > { %7877 = vst.msk [vmem:[#allocation4 + $0x10] sm:$0xff] %vm7874_vm5, %v7858_v36  ;;  %v7861_v41 = vmax.f32 %v7843_v6, 0.0  ;;  %v7842_v11 = vadd.f32 %v17069_v60, %v7817_v20  ;;  %v7820_v14 = vmul.f32 %v17063_v40, %v7795_v12  ;;  %v7794_v34 = vadd.f32 %v7729_v42, %v7546_v58 }
 0x5ff   : > { %v13666_v1 = vpop.f32.mrf.mxu1  ;;  %v7553_v58 = vadd.f32 %v17093_v44, %v7305_v29  ;;  %v7306_v20 = vadd.f32 %v17045_v38, %v7058_v47 }
 0x600   : > { %7880 = vst.msk [vmem:[#allocation4 + $0x28] sm:$0xff] %vm7874_vm5, %v7861_v41  ;;  %v7860_v30 = vmax.f32 %v7842_v11, 0.0  ;;  %v7845_v17 = vadd.f32 %v17069_v60, %v7820_v14  ;;  %v7819_v51 = vmul.f32 %v17063_v40, %v7794_v34  ;;  %v7797_v48 = vadd.f32 %v13666_v1, %v7549_v8 }
 0x601   : > { %v7907_v49 = vld [vmem:[#allocation4] ss:$2 sm:$0x1f]  ;;  %v7739_v52 = vpop.f32.mrf.mxu1  ;;  %v7909_v22 = vld [vmem:[#allocation4 + $0x1] ss:$2 sm:$0x1f]  ;;  %v7552_v8 = vadd.f32 %v7511_v43, %v7304_v56  ;;  %v7555_v11 = vadd.f32 %v13644_v50, %v7307_v55 }
 0x602   : > { %7879 = vst.msk [vmem:[#allocation4 + $0x20] sm:$0xff] %vm7874_vm5, %v7860_v30  ;;  %v7863_v25 = vmax.f32 %v7845_v17, 0.0  ;;  %v7844_v16 = vadd.f32 %v17069_v60, %v7819_v51  ;;  %v7822_v53 = vmul.f32 %v17063_v40, %v7797_v48  ;;  %v7796_v2 = vadd.f32 %v7739_v52, %v7548_v35  ;;  %v7531_v17 = vpop.f32.mrf.mxu0 }
 0x603   : > { %v13669_v7 = vpop.f32.mrf.mxu1  ;;  %v7914_v3 = vmax.f32 %v7907_v49, %v7909_v22  ;;  %v7554_v30 = vadd.f32 %v7521_v45, %v7306_v20 }
 0x604   : > { %7882 = vst.msk [vmem:[#allocation4 + $0x38] sm:$0xff] %vm7874_vm5, %v7863_v25  ;;  %v7862_v31 = vmax.f32 %v7844_v16, 0.0  ;;  %v7847_v10 = vadd.f32 %v17069_v60, %v7822_v53  ;;  %v7799_v19 = vadd.f32 %v13669_v7, %v7551_v9  ;;  %v7821_v46 = vmul.f32 %v17063_v40, %v7796_v2 }
 0x605   : > { %v7911_v24 = vld [vmem:[#allocation4 + $0xd] ss:$2 sm:$0x1f]  ;;  %v7913_v63 = vld [vmem:[#allocation4 + $0xe] ss:$2 sm:$0x1f]  ;;  %v7749_v13 = vpop.f32.mrf.mxu1 }
 0x606   : > { %v7915_v26 = vmax.f32 %v7911_v24, %v7913_v63  ;;  %7881 = vst.msk [vmem:[#allocation4 + $0x30] sm:$0xff] %vm7874_vm5, %v7862_v31  ;;  %v7865_v33 = vmax.f32 %v7847_v10, 0.0  ;;  %v7824_v36 = vmul.f32 %v17063_v40, %v7799_v19  ;;  %v7798_v6 = vadd.f32 %v7749_v13, %v7550_v28 }
 0x607   : > { %v7846_v12 = vadd.f32 %v17069_v60, %v7821_v46  ;;  %v13672_v4 = vpop.f32.mrf.mxu1 }
 0x608   : > { %v7916_v15 = vmax.f32 %v7914_v3, %v7915_v26  ;;  %7884 = vst.msk [vmem:[#allocation4 + $0x48] sm:$0xff] %vm7874_vm5, %v7865_v33  ;;  %v7849_v62 = vadd.f32 %v17069_v60, %v7824_v36  ;;  %v7823_v44 = vmul.f32 %v17063_v40, %v7798_v6  ;;  %v7801_v42 = vadd.f32 %v13672_v4, %v7553_v58 }
 0x609   : > { %v7759_v41 = vpop.f32.mrf.mxu1  ;;  %v7864_v14 = vmax.f32 %v7846_v12, 0.0  ;;  %v7920_v23 = vld [vmem:[#allocation4 + $0x1a] ss:$2 sm:$0x1f] }
 0x60a   : > { %v7867_v34 = vmax.f32 %v7849_v62, 0.0  ;;  %v7848_v38 = vadd.f32 %v17069_v60, %v7823_v44  ;;  %7918 = vst.msk [vmem:[#allocation5 + $0x14] sm:$0x1f] %vm7917_vm6, %v7916_v15  ;;  %v7922_v21 = vld [vmem:[#allocation4 + $0x1b] ss:$2 sm:$0x1f]  ;;  %v7826_v61 = vmul.f32 %v17063_v40, %v7801_v42  ;;  %v7800_v59 = vadd.f32 %v7759_v41, %v7552_v8 }
 0x60b   : > { %v13675_v1 = vpop.f32.mrf.mxu1  ;;  %7883 = vst.msk [vmem:[#allocation4 + $0x40] sm:$0xff] %vm7874_vm5, %v7864_v14  ;;  %v7924_v51 = vld [vmem:[#allocation4 + $0x27] ss:$2 sm:$0x1f]  ;;  %v7927_v57 = vmax.f32 %v7920_v23, %v7922_v21  ;;  %v8250_v41 = vld [vmem:[#allocation5 + $0x2] sm:$0xff]  ;;  %v8251_v23 = vld [vmem:[#allocation5 + $0xa] sm:$0xff] }
 0x60c   : > { %7886 = vst.msk [vmem:[#allocation4 + $0x58] sm:$0xff] %vm7874_vm5, %v7867_v34  ;;  %v7866_v43 = vmax.f32 %v7848_v38, 0.0  ;;  %v7803_v50 = vadd.f32 %v13675_v1, %v7555_v11  ;;  %v7851_v29 = vadd.f32 %v17069_v60, %v7826_v61  ;;  %v7825_v37 = vmul.f32 %v17063_v40, %v7800_v59  ;;  %v18034_v38 = vld [vmem:[#allocation7_spill] sm:$0xff]  ;;  %v18035_v59 = vld [vmem:[#allocation8_spill] sm:$0xff]  ;;  %v11212_v1 = vld [vmem:[%s17993_s8 + $0x88] sm:$0xff] }
 0x60d   : > { %v7926_v48 = vld [vmem:[#allocation4 + $0x28] ss:$2 sm:$0x1f]  ;;  %v7769_v39 = vpop.f32.mrf.mxu1  ;;  %v7932_v9 = vld [vmem:[#allocation4 + $0x34] ss:$2 sm:$0x1f] }
 0x60e   : > { %v7928_v49 = vmax.f32 %v7924_v51, %v7926_v48  ;;  %7885 = vst.msk [vmem:[#allocation4 + $0x50] sm:$0xff] %vm7874_vm5, %v7866_v43  ;;  %v7828_v35 = vmul.f32 %v17063_v40, %v7803_v50  ;;  %v7802_v52 = vadd.f32 %v7769_v39, %v7554_v30  ;;  %v7869_v22 = vmax.f32 %v7851_v29, 0.0  ;;  %v7934_v5 = vld [vmem:[#allocation4 + $0x35] ss:$2 sm:$0x1f]  ;;  %v18036_v30 = vld [vmem:[#allocation10_spill] sm:$0xff] }
 0x60f   : > { %v7850_v25 = vadd.f32 %v17069_v60, %v7825_v37  ;;  %v13678_v16 = vpop.f32.mrf.mxu1  ;;  %v7939_v56 = vmax.f32 %v7932_v9, %v7934_v5  ;;  %v11213_v21 = vld [vmem:[%s17993_s8 + $0x90] sm:$0xff]  ;;  %v11211_v51 = vld [vmem:[%s17993_s8 + $0x80] sm:$0xff]  ;;  %v11224_v37 = vld [vmem:[%s17993_s8 + $0xa8] sm:$0xff] }
 0x610   : > { %v7929_v53 = vmax.f32 %v7927_v57, %v7928_v49  ;;  %v7853_v0 = vadd.f32 %v17069_v60, %v7828_v35  ;;  %v7827_v18 = vmul.f32 %v17063_v40, %v7802_v52  ;;  %7888 = vst.msk [vmem:[#allocation4 + $0x68] sm:$0xff] %vm7874_vm5, %v7869_v22  ;;  %v11225_v43 = vld [vmem:[%s17993_s8 + $0xb0] sm:$0xff]  ;;  %v11238_v49 = vld [vmem:[%s17993_s8 + $0xd8] sm:$0xff]  ;;  %v11223_v35 = vld [vmem:[%s17993_s8 + $0xa0] sm:$0xff] }
 0x611   : > { %v7868_v32 = vmax.f32 %v7850_v25, 0.0  ;;  %v7779_v54 = vpop.f32.mrf.mxu1  ;;  %v7981_v47 = vld [vmem:[#allocation5 + $0x11] sm:$0xff]  ;;  %v8407_v57 = vld [vmem:[#allocation5 + $0x41] sm:$0x7f]  ;;  %v11250_v25 = vld [vmem:[%s17993_s8 + $0xf8] sm:$0xff] }
 0x612   : > { %v7969_v2 = vld [vmem:[#allocation5 + $0x10] sm:$0xff]  ;;  %v7871_v7 = vmax.f32 %v7853_v0, 0.0  ;;  %v7852_v28 = vadd.f32 %v17069_v60, %v7827_v18  ;;  %13690 = vmatprep.mubr.msk.f32.mxu0 %vm7874_vm5, %v7981_v47  ;;  %7930 = vst.msk [vmem:[#allocation5 + $0x1d] sm:$0x1f] %vm7917_vm6, %v7929_v53  ;;  %v11237_v9 = vld [vmem:[%s17993_s8 + $0xd0] sm:$0xff]  ;;  %v11236_v0 = vld [vmem:[%s17993_s8 + $0xc8] sm:$0xff] }
 0x613   : > { %13710 = vmatprep.mubr.msk.f32.mxu1 %vm7874_vm5, %v7969_v2  ;;  %v7936_v45 = vld [vmem:[#allocation4 + $0x41] ss:$2 sm:$0x1f]  ;;  %v7938_v31 = vld [vmem:[#allocation4 + $0x42] ss:$2 sm:$0x1f] }
 0x614   : > { %7887 = vst.msk [vmem:[#allocation4 + $0x60] sm:$0xff] %vm7874_vm5, %v7868_v32  ;;  %v7940_v40 = vmax.f32 %v7936_v45, %v7938_v31  ;;  %7890 = vst.msk [vmem:[#allocation4 + $0x78] sm:$0xff] %vm7874_vm5, %v7871_v7  ;;  %v7870_v10 = vmax.f32 %v7852_v28, 0.0  ;;  %v17188_v61 = vld [vmem:[#allocation5 + $0x12] sm:$0xff]  ;;  %v11249_v32 = vld [vmem:[%s17993_s8 + $0xf0] sm:$0xff] }
 0x615   : > { %v7944_v55 = vld [vmem:[#allocation4 + $0x4e] ss:$2 sm:$0x1f]  ;;  %v7946_v60 = vld [vmem:[#allocation4 + $0x4f] ss:$2 sm:$0x1f] }
 0x616   : > { %v7941_v19 = vmax.f32 %v7939_v56, %v7940_v40  ;;  %7889 = vst.msk [vmem:[#allocation4 + $0x70] sm:$0xff] %vm7874_vm5, %v7870_v10  ;;  %v7951_v13 = vmax.f32 %v7944_v55, %v7946_v60  ;;  %v8700_v52 = vld [vmem:[#allocation5 + $0xb] sm:$0xff]  ;;  %v8701_v16 = vld [vmem:[#allocation5 + $0x13] sm:$0xff]  ;;  %v8707_v56 = vld [vmem:[#allocation5 + $0x43] sm:$0x7f] }
 0x617   : > { %v11235_v54 = vld [vmem:[%s17993_s8 + $0xc0] sm:$0xff]  ;;  %v11248_v7 = vld [vmem:[%s17993_s8 + $0xe8] sm:$0xff]  ;;  %v11262_v45 = vld [vmem:[%s17993_s8 + $0x118] sm:$0xff] }
 0x618   : > { %7942 = vst.msk [vmem:[#allocation5 + $0x26] sm:$0x1f] %vm7917_vm6, %v7941_v19  ;;  %v8557_v31 = vld [vmem:[#allocation5 + $0x42] sm:$0x7f]  ;;  %v11247_v40 = vld [vmem:[%s17993_s8 + $0xe0] sm:$0xff]  ;;  %v11260_v19 = vld [vmem:[%s17993_s8 + $0x108] sm:$0xff] }
 0x619   : > { %v7982_v3 = vld [vmem:[#allocation5 + $0x19] sm:$0xff]  ;;  %v8856_v55 = vld [vmem:[#allocation5 + $0x42] sm:$0xff]  ;;  %v11259_v60 = vld [vmem:[%s17993_s8 + $0x100] sm:$0xff] }
 0x61a   : > { %v7970_v24 = vld [vmem:[#allocation5 + $0x18] sm:$0xff]  ;;  %13691 = vmatmul.mubr.msk.f32.gmra.mxu0 %vm7874_vm5, %v7982_v3  ;;  %v11261_v10 = vld [vmem:[%s17993_s8 + $0x110] sm:$0xff] }
 0x61b   : > { %v7948_v63 = vld [vmem:[#allocation4 + $0x5b] ss:$2 sm:$0x1f]  ;;  %v7950_v46 = vld [vmem:[#allocation4 + $0x5c] ss:$2 sm:$0x1f]  ;;  %13711 = vmatmul.mubr.msk.f32.gmra.mxu1 %vm7874_vm5, %v7970_v24 }
 0x61c   : > { %v7952_v58 = vmax.f32 %v7948_v63, %v7950_v46  ;;  %v17198_v17 = vld [vmem:[#allocation5 + $0x1a] sm:$0xff]  ;;  %v8857_v24 = vld [vmem:[#allocation5 + $0x4a] sm:$0x7f] }
 0x61d   : > { %v7956_v33 = vld [vmem:[#allocation4 + $0x68] ss:$2 sm:$0x1f]  ;;  %v7958_v36 = vld [vmem:[#allocation4 + $0x69] ss:$2 sm:$0x1f] }
 0x61e   : > { %v7953_v26 = vmax.f32 %v7951_v13, %v7952_v58  ;;  %v7960_v6 = vld [vmem:[#allocation4 + $0x75] ss:$2 sm:$0x1f]  ;;  %v7962_v20 = vld [vmem:[#allocation4 + $0x76] ss:$2 sm:$0x1f]  ;;  %v7963_v12 = vmax.f32 %v7956_v33, %v7958_v36 }
 0x61f   : > { %v7964_v4 = vmax.f32 %v7960_v6, %v7962_v20  ;;  %v7983_v27 = vld [vmem:[#allocation5 + $0x21] sm:$0xff]  ;;  %v9007_v63 = vld [vmem:[#allocation5 + $0x4b] sm:$0x7f]  ;;  %v9150_v46 = vld [vmem:[#allocation5 + $0x14] sm:$0xff]  ;;  %v18037_v13 = vmov 0.0  }
 0x620   : > { %7954 = vst.msk [vmem:[#allocation5 + $0x2f] sm:$0x1f] %vm7917_vm6, %v7953_v26  ;;  %v7971_v15 = vld [vmem:[#allocation5 + $0x20] sm:$0xff]  ;;  %13693 = vmatprep.mubr.msk.f32.mxu0 %vm7874_vm5, %v7983_v27 }
 0x621   : > { %13713 = vmatprep.mubr.msk.f32.mxu1 %vm7874_vm5, %v7971_v15  ;;  %v7965_v62 = vmax.f32 %v7963_v12, %v7964_v4  ;;  %v17206_v50 = vld [vmem:[#allocation5 + $0x22] sm:$0xff]  ;;  %v9157_v12 = vld [vmem:[#allocation5 + $0x4c] sm:$0x7f] }
 0x622   : > { %v8702_v53 = vld [vmem:[#allocation5 + $0x1b] sm:$0xff]  ;;  %v8703_v5 = vld [vmem:[#allocation5 + $0x23] sm:$0xff] }
 0x623   : > { %7966 = vst.msk [vmem:[#allocation5 + $0x38] sm:$0x1f] %vm7917_vm6, %v7965_v62  ;;  %v9151_v58 = vld [vmem:[#allocation5 + $0x1c] sm:$0xff]  ;;  %v9152_v26 = vld [vmem:[#allocation5 + $0x24] sm:$0xff] }
 0x624   : > { %v9156_v6 = vld [vmem:[#allocation5 + $0x44] sm:$0xff]  ;;  %v9374_v62 = vld [vmem:[%s17997_s12 + $0x68] sm:$0xff] }
 0x625   : > { %v9376_v4 = vld [vmem:[%s17997_s12 + $0x78] sm:$0xff] }
 0x626   : > { %v11290_v15 = vld [vmem:[%s17997_s12 + $0xf8] sm:$0xff] }
 0x627   : > { %v7984_v44 = vld [vmem:[#allocation5 + $0x29] sm:$0xff] }
 0x628   : > { %v7972_v42 = vld [vmem:[#allocation5 + $0x28] sm:$0xff]  ;;  %v7973_v8 = vld [vmem:[#allocation5 + $0x30] sm:$0xff]  ;;  %13694 = vmatmul.mubr.msk.f32.gmra.mxu0 %vm7874_vm5, %v7984_v44 }
 0x629   : > { %13714 = vmatmul.mubr.msk.f32.gmra.mxu1 %vm7874_vm5, %v7972_v42  ;;  %v17214_v48 = vld [vmem:[#allocation5 + $0x2a] sm:$0xff] }
 0x62a   : > { %13716 = vmatprep.mubr.msk.f32.mxu1 %vm7874_vm5, %v7973_v8  ;;  %v7985_v11 = vld [vmem:[#allocation5 + $0x31] sm:$0xff]  ;;  %v7986_v34 = vld [vmem:[#allocation5 + $0x39] sm:$0x7f] }
 0x62b   : > { %v7974_v14 = vld [vmem:[#allocation5 + $0x38] sm:$0x7f]  ;;  %13696 = vmatprep.mubr.msk.f32.mxu0 %vm7874_vm5, %v7985_v11  ;;  %v8704_v18 = vld [vmem:[#allocation5 + $0x2b] sm:$0xff] }
 0x62c   : > { %13697 = vmatmul.mubr.msk.f32.gmra.mxu0 %vm7874_vm5, %v7986_v34  ;;  %v8406_v29 = vld [vmem:[#allocation5 + $0x39] sm:$0xff]  ;;  %v9153_v33 = vld [vmem:[#allocation5 + $0x2c] sm:$0xff] }
 0x62d   : > { %13717 = vmatmul.mubr.msk.f32.gmra.mxu1 %vm7874_vm5, %v7974_v14  ;;  %13727 = vmatprep.mubr.msk.f32.mxu0 %vm7874_vm5, %v8250_v41  ;;  %v17222_v39 = vld [vmem:[#allocation5 + $0x32] sm:$0xff]  ;;  %v8257_v22 = vld [vmem:[#allocation5 + $0x3a] sm:$0x7f]  ;;  %v9372_v41 = vld [vmem:[%s17997_s12 + $0x58] sm:$0xff] }
 0x62e   : > { %13747 = vmatprep.mubr.msk.f32.mxu1 %vm7874_vm5, %v18034_v38  ;;  %v8706_v2 = vld [vmem:[#allocation5 + $0x3b] sm:$0xff]  ;;  %v9373_v42 = vld [vmem:[%s17997_s12 + $0x60] sm:$0xff]  ;;  %v11286_v34 = vld [vmem:[%s17997_s12 + $0xd8] sm:$0xff] }
 0x62f   : > { %v8556_v28 = vld [vmem:[#allocation5 + $0x3a] sm:$0xff] }
 0x630   : > { %13728 = vmatmul.mubr.msk.f32.vlgmr.msra.gmra.mxu0 %vm7874_vm5, %v8251_v23  ;;  %v9154_v36 = vld [vmem:[#allocation5 + $0x34] sm:$0xff]  ;;  %v9155_v20 = vld [vmem:[#allocation5 + $0x3c] sm:$0xff] }
 0x631   : > { %13748 = vmatmul.mubr.msk.f32.vlgmr.msra.gmra.mxu1 %vm7874_vm5, %v7981_v47  ;;  %13760 = vmatpush3.msra.mxu0 %v18035_v59  ;;  %v8705_v47 = vld [vmem:[#allocation5 + $0x33] sm:$0xff]  ;;  %v9371_v14 = vld [vmem:[%s17997_s12 + $0x50] sm:$0xff]  ;;  %v9368_v59 = vld [vmem:[%s17997_s12 + $0x38] sm:$0xff] }
 0x632   : > { %13750 = vmatprep.mubr.msk.f32.mxu1 %vm7874_vm5, %v7982_v3  ;;  %13730 = vmatprep.mubr.msk.f32.mxu0 %vm7874_vm5, %v17188_v61  ;;  %v9006_v3 = vld [vmem:[#allocation5 + $0x43] sm:$0xff]  ;;  %v11288_v8 = vld [vmem:[%s17997_s12 + $0xe8] sm:$0xff] }
 0x633   : > { %13761 = vmatprep.subr.mxu0 %v11213_v21  ;;  %13780 = vmatpush3.msra.mxu1 %v18036_v30  ;;  %v9370_v38 = vld [vmem:[%s17997_s12 + $0x48] sm:$0xff]  ;;  %v9367_v30 = vld [vmem:[%s17997_s12 + $0x30] sm:$0xff] }
 0x634   : > { %13762 = vmatpush3.msra.mxu0 %v11213_v21  ;;  %13781 = vmatprep.subr.mxu1 %v11225_v43  ;;  %v9369_v21 = vld [vmem:[%s17997_s12 + $0x40] sm:$0xff] }
 0x635   : > { %13751 = vmatmul.mubr.msk.f32.gmra.mxu1 %vm7874_vm5, %v7983_v27  ;;  %13731 = vmatmul.mubr.msk.f32.gmra.mxu0 %vm7874_vm5, %v17198_v17  ;;  %v9375_v27 = vld [vmem:[%s17997_s12 + $0x70] sm:$0xff] }
 0x636   : > { %13753 = vmatprep.mubr.msk.f32.mxu1 %vm7874_vm5, %v7984_v44  ;;  %13733 = vmatprep.mubr.msk.f32.mxu0 %vm7874_vm5, %v17206_v50  ;;  %v11289_v44 = vld [vmem:[%s17997_s12 + $0xf0] sm:$0xff] }
 0x637   : > { %13763 = vmatprep.subr.mxu0 %v11212_v1  ;;  %13782 = vmatpush3.msra.mxu1 %v11225_v43  ;;  %v9366_v43 = vld [vmem:[%s17997_s12 + $0x28] sm:$0xff] }
 0x638   : > { %13764 = vmatpush3.msra.mxu0 %v11212_v1  ;;  %13783 = vmatprep.subr.mxu1 %v11224_v37  ;;  %v11283_v1 = vld [vmem:[%s17997_s12 + $0xc0] sm:$0xff] }
 0x639   : > { %13754 = vmatmul.mubr.msk.f32.gmra.mxu1 %vm7874_vm5, %v7985_v11  ;;  %13765 = vmatprep.subr.mxu0 %v11211_v51  ;;  %v11287_v11 = vld [vmem:[%s17997_s12 + $0xe0] sm:$0xff] }
 0x63a   : > { %13734 = vmatmul.mubr.msk.f32.gmra.mxu0 %vm7874_vm5, %v17214_v48  ;;  %13756 = vmatprep.mubr.msk.f32.mxu1 %vm7874_vm5, %v8406_v29  ;;  %v9364_v29 = vld [vmem:[%s17997_s12 + $0x18] sm:$0xff] }
 0x63b   : > { %13736 = vmatprep.mubr.msk.f32.mxu0 %vm7874_vm5, %v17222_v39  ;;  %13766 = vmatpush3.msra.mxu0 %v11211_v51  ;;  %v9365_v51 = vld [vmem:[%s17997_s12 + $0x20] sm:$0xff] }
 0x63c   : > { %13799 = vmatprep.subr.mxu0 %v11238_v49  ;;  %13784 = vmatpush3.msra.mxu1 %v11224_v37  ;;  %v11279_v37 = vld [vmem:[%s17997_s12 + $0xa0] sm:$0xff] }
 0x63d   : > { %13757 = vmatmul.mubr.msk.f32.gmra.mxu1 %vm7874_vm5, %v8407_v57  ;;  %13785 = vmatprep.subr.mxu1 %v11223_v35  ;;  %v9362_v57 = vld [vmem:[%s17997_s12 + $0x8] sm:$0xff] }
 0x63e   : > { %13737 = vmatmul.mubr.msk.f32.gmra.mxu0 %vm7874_vm5, %v8257_v22  ;;  %13787 = vmatprep.mubr.msk.f32.mxu1 %vm7874_vm5, %v8700_v52  ;;  %v11277_v52 = vld [vmem:[%s17997_s12 + $0x90] sm:$0xff]  ;;  %v9350_v22 = vld [vmem:[%s17996_s11 + $0x8] sm:$0xff] }
 0x63f   : > { %13786 = vmatpush3.msra.mxu1 %v11223_v35  ;;  %13767 = vmatprep.mubr.msk.f32.mxu0 %vm7874_vm5, %v8251_v23  ;;  %v11285_v23 = vld [vmem:[%s17997_s12 + $0xd0] sm:$0xff]  ;;  %v9361_v35 = vld [vmem:[%s17997_s12] sm:$0xff] }
 0x640   : > { %13819 = vmatprep.subr.mxu1 %v11250_v25 }
 0x641   : > { %13788 = vmatmul.mubr.msk.f32.vlgmr.msra.gmra.mxu1 %vm7874_vm5, %v8701_v16 }
 0x642   : > { %13768 = vmatmul.mubr.msk.f32.vlgmr.msra.gmra.mxu0 %vm7874_vm5, %v17188_v61  ;;  %13790 = vmatprep.mubr.msk.f32.mxu1 %vm7874_vm5, %v8702_v53 }
 0x643   : > { %13800 = vmatpush3.msra.mxu0 %v11238_v49  ;;  %13770 = vmatprep.mubr.msk.f32.mxu0 %vm7874_vm5, %v17198_v17  ;;  %v11278_v49 = vld [vmem:[%s17997_s12 + $0x98] sm:$0xff] }
 0x644   : > { %13801 = vmatprep.subr.mxu0 %v11237_v9  ;;  %13820 = vmatpush3.msra.mxu1 %v11250_v25  ;;  %v11276_v25 = vld [vmem:[%s17997_s12 + $0x88] sm:$0xff] }
 0x645   : > { %13791 = vmatmul.mubr.msk.f32.gmra.mxu1 %vm7874_vm5, %v8703_v5  ;;  %13802 = vmatpush3.msra.mxu0 %v11237_v9  ;;  %v13689_v9 = vpop.f32.mrf.mxu0 }
 0x646   : > { %13771 = vmatmul.mubr.msk.f32.gmra.mxu0 %vm7874_vm5, %v17206_v50  ;;  %13793 = vmatprep.mubr.msk.f32.mxu1 %vm7874_vm5, %v8704_v18 }
 0x647   : > { %13773 = vmatprep.mubr.msk.f32.mxu0 %vm7874_vm5, %v17214_v48  ;;  %13803 = vmatprep.subr.mxu0 %v11236_v0 }
 0x648   : > { %13804 = vmatpush3.msra.mxu0 %v11236_v0  ;;  %13821 = vmatprep.subr.mxu1 %v11249_v32  ;;  %v8082_v0 = vpop.f32.mrf.mxu0 }
 0x649   : > { %13794 = vmatmul.mubr.msk.f32.gmra.mxu1 %vm7874_vm5, %v8705_v47  ;;  %13805 = vmatprep.subr.mxu0 %v11235_v54 }
 0x64a   : > { %13774 = vmatmul.mubr.msk.f32.gmra.mxu0 %vm7874_vm5, %v17222_v39  ;;  %13796 = vmatprep.mubr.msk.f32.mxu1 %vm7874_vm5, %v8706_v2 }
 0x64b   : > { %13776 = vmatprep.mubr.msk.f32.mxu0 %vm7874_vm5, %v8556_v28  ;;  %13822 = vmatpush3.msra.mxu1 %v11249_v32 }
 0x64c   : > { %13823 = vmatprep.subr.mxu1 %v11248_v7  ;;  %13806 = vmatpush3.msra.mxu0 %v11235_v54 }
 0x64d   : > { %13797 = vmatmul.mubr.msk.f32.gmra.mxu1 %vm7874_vm5, %v8707_v56  ;;  %13839 = vmatprep.subr.mxu0 %v11262_v45 }
 0x64e   : > { %13777 = vmatmul.mubr.msk.f32.gmra.mxu0 %vm7874_vm5, %v8557_v31  ;;  %13824 = vmatpush3.msra.mxu1 %v11248_v7 }
 0x64f   : > { %13827 = vmatprep.mubr.msk.f32.mxu1 %vm7874_vm5, %v8701_v16  ;;  %13807 = vmatprep.mubr.msk.f32.mxu0 %vm7874_vm5, %v17188_v61  ;;  %v11284_v61 = vld [vmem:[%s17997_s12 + $0xc8] sm:$0xff]  ;;  %v11275_v16 = vld [vmem:[%s17997_s12 + $0x80] sm:$0xff] }
 0x650   : > { %13825 = vmatprep.subr.mxu1 %v11247_v40 }
 0x651   : > { %13826 = vmatpush3.msra.mxu1 %v11247_v40 }
 0x652   : > { %13828 = vmatmul.mubr.msk.f32.vlgmr.msra.gmra.mxu1 %vm7874_vm5, %v8702_v53  ;;  %13808 = vmatmul.mubr.msk.f32.vlgmr.msra.gmra.mxu0 %vm7874_vm5, %v17198_v17  ;;  %v11282_v17 = vld [vmem:[%s17997_s12 + $0xb8] sm:$0xff] }
 0x653   : > { %13830 = vmatprep.mubr.msk.f32.mxu1 %vm7874_vm5, %v8703_v5  ;;  %13840 = vmatpush3.msra.mxu0 %v11262_v45  ;;  %v11324_v53 = vld [vmem:[%s17997_s12 + $0x1f8] sm:$0xff]  ;;  %v13709_v5 = vpop.f32.mrf.mxu1 }
 0x654   : > { %13810 = vmatprep.mubr.msk.f32.mxu0 %vm7874_vm5, %v17206_v50  ;;  %13841 = vmatprep.subr.mxu0 %v11261_v10  ;;  %v11281_v50 = vld [vmem:[%s17997_s12 + $0xb0] sm:$0xff] }
 0x655   : > { %13842 = vmatpush3.msra.mxu0 %v11261_v10  ;;  %9396 = vmatprep.subr.mxu1 %v9376_v4 }
 0x656   : > { %13831 = vmatmul.mubr.msk.f32.gmra.mxu1 %vm7874_vm5, %v8704_v18  ;;  %13811 = vmatmul.mubr.msk.f32.gmra.mxu0 %vm7874_vm5, %v17214_v48  ;;  %v11280_v48 = vld [vmem:[%s17997_s12 + $0xa8] sm:$0xff]  ;;  %v8211_v18 = vpop.f32.mrf.mxu1 }
 0x657   : > { %13833 = vmatprep.mubr.msk.f32.mxu1 %vm7874_vm5, %v8705_v47  ;;  %13813 = vmatprep.mubr.msk.f32.mxu0 %vm7874_vm5, %v17222_v39  ;;  %v9363_v39 = vld [vmem:[%s17997_s12 + $0x10] sm:$0xff] }
 0x658   : > { %13843 = vmatprep.subr.mxu0 %v11260_v19  ;;  %9397 = vmatpush1.msra.mxu1 %v9375_v27 }
 0x659   : > { %13844 = vmatpush3.msra.mxu0 %v11260_v19  ;;  %9398 = vmatprep.subr.mxu1 %v9374_v62 }
 0x65a   : > { %13834 = vmatmul.mubr.msk.f32.gmra.mxu1 %vm7874_vm5, %v8706_v2  ;;  %13814 = vmatmul.mubr.msk.f32.gmra.mxu0 %vm7874_vm5, %v8556_v28 }
 0x65b   : > { %13816 = vmatprep.mubr.msk.f32.mxu0 %vm7874_vm5, %v8856_v55  ;;  %13845 = vmatprep.subr.mxu0 %v11259_v60 }
 0x65c   : > { %13846 = vmatpush3.msra.mxu0 %v11259_v60  ;;  %13836 = vmatprep.mubr.msk.f32.mxu1 %vm7874_vm5, %v9006_v3 }
 0x65d   : > { %9562 = vmatprep.subr.mxu0 %v11290_v15  ;;  %9399 = vmatpush1.msra.mxu1 %v9373_v42 }
 0x65e   : > { %13817 = vmatmul.mubr.msk.f32.gmra.mxu0 %vm7874_vm5, %v8857_v24  ;;  %13837 = vmatmul.mubr.msk.f32.gmra.mxu1 %vm7874_vm5, %v9007_v63 }
 0x65f   : > { %13847 = vmatprep.mubr.msk.f32.mxu0 %vm7874_vm5, %v9150_v46  ;;  %9444 = vmatprep.mubr.f32.mxu1 %v18037_v13 }
 0x660   : > { %9400 = vmatprep.subr.mxu1 %v9372_v41 }
 0x661   : > { %9401 = vmatpush1.msra.mxu1 %v9371_v14 }
 0x662   : > { %13848 = vmatmul.mubr.msk.f32.vlgmr.msra.gmra.mxu0 %vm7874_vm5, %v9151_v58  ;;  %9402 = vmatprep.subr.mxu1 %v9370_v38 }
 0x663   : > { %13850 = vmatprep.mubr.msk.f32.mxu0 %vm7874_vm5, %v9152_v26  ;;  %9563 = vmatpush1.msra.mxu0 %v11289_v44 }
 0x664   : > { %9564 = vmatprep.subr.mxu0 %v11288_v8  ;;  %9403 = vmatpush1.msra.mxu1 %v9369_v21 }
 0x665   : > { %9565 = vmatpush1.msra.mxu0 %v11287_v11  ;;  %9404 = vmatprep.subr.mxu1 %v9368_v59 }
 0x666   : > { %13851 = vmatmul.mubr.msk.f32.gmra.mxu0 %vm7874_vm5, %v9153_v33  ;;  %9566 = vmatprep.subr.mxu0 %v11286_v34 }
 0x667   : > { %13853 = vmatprep.mubr.msk.f32.mxu0 %vm7874_vm5, %v9154_v36  ;;  %9567 = vmatpush1.msra.mxu0 %v11285_v23 }
 0x668   : > { %9568 = vmatprep.subr.mxu0 %v11284_v61  ;;  %9405 = vmatpush1.msra.mxu1 %v9367_v30  ;;  %v8217_v30 = vadd.f32 %v13709_v5, %v13689_v9 }
 0x669   : > { %9569 = vmatpush1.msra.mxu0 %v11283_v1  ;;  %9406 = vmatprep.subr.mxu1 %v9366_v43 }
 0x66a   : > { %13854 = vmatmul.mubr.msk.f32.gmra.mxu0 %vm7874_vm5, %v9155_v20  ;;  %9570 = vmatprep.subr.mxu0 %v11282_v17 }
 0x66b   : > { %13856 = vmatprep.mubr.msk.f32.mxu0 %vm7874_vm5, %v9156_v6  ;;  %9571 = vmatpush1.msra.mxu0 %v11281_v50  ;;  %v8212_v50 = vadd.f32 %v8211_v18, %v8082_v0 }
 0x66c   : > { %9407 = vmatpush1.msra.mxu1 %v9365_v51  ;;  %9572 = vmatprep.subr.mxu0 %v11280_v48 }
 0x66d   : > { %9408 = vmatprep.subr.mxu1 %v9364_v29  ;;  %9573 = vmatpush1.msra.mxu0 %v11279_v37 }
 0x66e   : > { %13857 = vmatmul.mubr.msk.f32.gmra.mxu0 %vm7874_vm5, %v9157_v12  ;;  %9409 = vmatpush1.msra.mxu1 %v9363_v39 }
 0x66f   : > { %9610 = vmatprep.mubr.f32.mxu0 %v18037_v13  ;;  %9574 = vmatprep.subr.mxu0 %v11278_v49 }
 0x670   : > { %9410 = vmatprep.subr.mxu1 %v9362_v57  ;;  %9575 = vmatpush1.msra.mxu0 %v11277_v52 }
 0x671   : > { %9411 = vmatpush1.msra.mxu1 %v9361_v35  ;;  %9576 = vmatprep.subr.mxu0 %v11276_v25 }
 0x672   : > { %9485 = vmatprep.subr.mxu1 %v9350_v22  ;;  %9577 = vmatpush1.msra.mxu0 %v11275_v16 }
 0x673   : > { %9759 = vmatprep.subr.mxu0 %v11324_v53 }
 0x6da   : > { %v13692_v32 = vpop.f32.mrf.mxu0 }
 0x6db   : > { %v13712_v54 = vpop.f32.mrf.mxu1 }
 0x6dc   : > { %v8092_v47 = vpop.f32.mrf.mxu0  ;;  %v8227_v37 = vadd.f32 %v13712_v54, %v13692_v32 }
 0x6dd   : > { %v8221_v2 = vpop.f32.mrf.mxu1 }
 0x6de   : > { %v8222_v49 = vadd.f32 %v8221_v2, %v8092_v47 }
 0x6e8   : > { %v13695_v7 = vpop.f32.mrf.mxu0 }
 0x6e9   : > { %v13715_v28 = vpop.f32.mrf.mxu1 }
 0x6ea   : > { %v8102_v56 = vpop.f32.mrf.mxu0  ;;  %v8237_v25 = vadd.f32 %v13715_v28, %v13695_v7 }
 0x6eb   : > { %v8231_v45 = vpop.f32.mrf.mxu1 }
 0x6ec   : > { %v13698_v40 = vpop.f32.mrf.mxu0  ;;  %v8232_v9 = vadd.f32 %v8231_v45, %v8102_v56 }
 0x6ed   : > { %v13718_v31 = vpop.f32.mrf.mxu1 }
 0x6ee   : > { %v8112_v19 = vpop.f32.mrf.mxu0 }
 0x6ef   : > { %v8241_v10 = vpop.f32.mrf.mxu1 }
 0x6f0   : > { %v13729_v60 = vpop.f32.mrf.mxu0  ;;  %v8242_v47 = vadd.f32 %v8241_v10, %v8112_v19 }
 0x6f1   : > { %v13749_v55 = vpop.f32.mrf.mxu1  ;;  %v8393_v51 = vadd.f32 %v13729_v60, %v8217_v30 }
 0x6f2   : > { %v8353_v24 = vpop.f32.mrf.mxu0 }
 0x6f3   : > { %v8503_v3 = vpop.f32.mrf.mxu1  ;;  %v8392_v39 = vadd.f32 %v8353_v24, %v8212_v50  ;;  %v8543_v52 = vadd.f32 %v13749_v55, %v8393_v51 }
 0x6f5   : > { %v13752_v63 = vpop.f32.mrf.mxu1  ;;  %v13732_v46 = vpop.f32.mrf.mxu0  ;;  %v8542_v40 = vadd.f32 %v8503_v3, %v8392_v39 }
 0x6f6   : > { %v8395_v35 = vadd.f32 %v13732_v46, %v8227_v37 }
 0x6f7   : > { %v8513_v58 = vpop.f32.mrf.mxu1  ;;  %v8363_v26 = vpop.f32.mrf.mxu0 }
 0x6f8   : > { %v8394_v53 = vadd.f32 %v8363_v26, %v8222_v49  ;;  %v8545_v0 = vadd.f32 %v13752_v63, %v8395_v35 }
 0x6f9   : > { %v13755_v33 = vpop.f32.mrf.mxu1 }
 0x6fa   : > { %v13735_v36 = vpop.f32.mrf.mxu0  ;;  %v8544_v54 = vadd.f32 %v8513_v58, %v8394_v53 }
 0x6fb   : > { %v8523_v6 = vpop.f32.mrf.mxu1  ;;  %v8397_v5 = vadd.f32 %v13735_v36, %v8237_v25 }
 0x6fc   : > { %v8373_v20 = vpop.f32.mrf.mxu0 }
 0x6fd   : > { %v13758_v12 = vpop.f32.mrf.mxu1  ;;  %v8396_v60 = vadd.f32 %v8373_v20, %v8232_v9  ;;  %v8547_v2 = vadd.f32 %v13755_v33, %v8397_v5 }
 0x6fe   : > { %v13738_v4 = vpop.f32.mrf.mxu0 }
 0x6ff   : > { %v17421_v27 = vpop.f32.mrf.mxu1  ;;  %v8546_v56 = vadd.f32 %v8523_v6, %v8396_v60 }
 0x700   : > { %v8383_v15 = vpop.f32.mrf.mxu0 }
 0x701   : > { %v13789_v62 = vpop.f32.mrf.mxu1 }
 0x702   : > { %v13769_v44 = vpop.f32.mrf.mxu0 }
 0x703   : > { %v8803_v42 = vpop.f32.mrf.mxu1  ;;  %v8693_v31 = vadd.f32 %v13769_v44, %v8543_v52  ;;  %v8398_v44 = vadd.f32 %v8383_v15, %v8242_v47 }
 0x704   : > { %v8653_v8 = vpop.f32.mrf.mxu0 }
 0x705   : > { %v13792_v41 = vpop.f32.mrf.mxu1  ;;  %v8692_v4 = vadd.f32 %v8653_v8, %v8542_v40  ;;  %v8843_v24 = vadd.f32 %v13789_v62, %v8693_v31  ;;  %v8548_v10 = vadd.f32 %v17421_v27, %v8398_v44  ;;  %v11271_v62 = vld [vmem:[%s17994_s9] ss:$0 sm:$0xff] }
 0x706   : > { %v13772_v11 = vpop.f32.mrf.mxu0 }
 0x707   : > { %v8813_v14 = vpop.f32.mrf.mxu1  ;;  %v8695_v32 = vadd.f32 %v13772_v11, %v8545_v0  ;;  %v8842_v28 = vadd.f32 %v8803_v42, %v8692_v4 }
 0x708   : > { %v8663_v34 = vpop.f32.mrf.mxu0 }
 0x709   : > { %v13795_v38 = vpop.f32.mrf.mxu1  ;;  %v8694_v46 = vadd.f32 %v8663_v34, %v8544_v54  ;;  %v8845_v8 = vadd.f32 %v13792_v41, %v8695_v32 }
 0x70a   : > { %v13775_v23 = vpop.f32.mrf.mxu0 }
 0x70b   : > { %v8823_v21 = vpop.f32.mrf.mxu1  ;;  %v8697_v3 = vadd.f32 %v13775_v23, %v8547_v2  ;;  %v8844_v30 = vadd.f32 %v8813_v14, %v8694_v46  ;;  %v11272_v14 = vld [vmem:[%s17995_s10] ss:$0 sm:$0xff] }
 0x70c   : > { %v8673_v61 = vpop.f32.mrf.mxu0 }
 0x70d   : > { %v13798_v59 = vpop.f32.mrf.mxu1  ;;  %v8696_v63 = vadd.f32 %v8673_v61, %v8546_v56  ;;  %v8847_v19 = vadd.f32 %v13795_v38, %v8697_v3 }
 0x70e   : > { %v13778_v1 = vpop.f32.mrf.mxu0 }
 0x70f   : > { %v17423_v17 = vpop.f32.mrf.mxu1  ;;  %v8846_v41 = vadd.f32 %v8823_v21, %v8696_v63 }
 0x710   : > { %v8683_v43 = vpop.f32.mrf.mxu0 }
 0x711   : > { %v8698_v34 = vadd.f32 %v8683_v43, %v8548_v10  ;;  %v9349_v10 = vld [vmem:[%s17996_s11] sm:$0xff] }
 0x712   : > { %v13829_v48 = vpop.f32.mrf.mxu1  ;;  %v13809_v29 = vpop.f32.mrf.mxu0 }
 0x713   : > { %v8993_v7 = vadd.f32 %v13809_v29, %v8843_v24  ;;  %v8848_v43 = vadd.f32 %v17423_v17, %v8698_v34  ;;  %v11321_v34 = vld [vmem:[%s17997_s12 + $0x1e0] sm:$0xff] }
 0x714   : > { %v8953_v57 = vpop.f32.mrf.mxu0  ;;  %v9103_v22 = vpop.f32.mrf.mxu1 }
 0x715   : > { %v8992_v36 = vadd.f32 %v8953_v57, %v8842_v28  ;;  %v9143_v58 = vadd.f32 %v13829_v48, %v8993_v7 }
 0x716   : > { %v13812_v16 = vpop.f32.mrf.mxu0  ;;  %v13832_v18 = vpop.f32.mrf.mxu1 }
 0x717   : > { %v8995_v20 = vadd.f32 %v13812_v16, %v8845_v8  ;;  %v9142_v6 = vadd.f32 %v9103_v22, %v8992_v36 }
 0x718   : > { %v8963_v12 = vpop.f32.mrf.mxu0  ;;  %v9113_v26 = vpop.f32.mrf.mxu1 }
 0x719   : > { %v8994_v15 = vadd.f32 %v8963_v12, %v8844_v30  ;;  %v9145_v38 = vadd.f32 %v13832_v18, %v8995_v20 }
 0x71a   : > { %v13815_v59 = vpop.f32.mrf.mxu0  ;;  %v13835_v11 = vpop.f32.mrf.mxu1 }
 0x71b   : > { %v8997_v23 = vadd.f32 %v13815_v59, %v8847_v19  ;;  %v9144_v35 = vadd.f32 %v9113_v26, %v8994_v15  ;;  %v11307_v19 = vld [vmem:[%s17997_s12 + $0x178] sm:$0xff]  ;;  %v11322_v15 = vld [vmem:[%s17997_s12 + $0x1e8] sm:$0xff] }
 0x71c   : > { %v8973_v55 = vpop.f32.mrf.mxu0  ;;  %v9123_v50 = vpop.f32.mrf.mxu1 }
 0x71d   : > { %v8996_v48 = vadd.f32 %v8973_v55, %v8846_v41  ;;  %v9147_v52 = vadd.f32 %v13835_v11, %v8997_v23  ;;  %v11305_v23 = vld [vmem:[%s17997_s12 + $0x168] sm:$0xff]  ;;  %v11320_v41 = vld [vmem:[%s17997_s12 + $0x1d8] sm:$0xff] }
 0x71e   : > { %v13818_v45 = vpop.f32.mrf.mxu0  ;;  %v13838_v37 = vpop.f32.mrf.mxu1 }
 0x71f   : > { %v9146_v9 = vadd.f32 %v9123_v50, %v8996_v48  ;;  %v11303_v50 = vld [vmem:[%s17997_s12 + $0x158] sm:$0xff]  ;;  %v11301_v48 = vld [vmem:[%s17997_s12 + $0x148] sm:$0xff]  ;;  %v11300_v37 = vld [vmem:[%s17997_s12 + $0x140] sm:$0xff] }
 0x720   : > { %v8983_v1 = vpop.f32.mrf.mxu0  ;;  %v9133_v5 = vpop.f32.mrf.mxu1 }
 0x721   : > { %v8998_v31 = vadd.f32 %v8983_v1, %v8848_v43  ;;  %v11313_v43 = vld [vmem:[%s17997_s12 + $0x1a0] sm:$0xff] }
 0x722   : > { %v13849_v33 = vpop.f32.mrf.mxu0 }
 0x723   : > { %v9293_v42 = vadd.f32 %v13849_v33, %v9143_v58  ;;  %v9148_v24 = vadd.f32 %v9133_v5, %v8998_v31  ;;  %v11296_v31 = vld [vmem:[%s17997_s12 + $0x120] sm:$0xff]  ;;  %v11295_v5 = vld [vmem:[%s17997_s12 + $0x118] sm:$0xff] }
 0x724   : > { %v9253_v61 = vpop.f32.mrf.mxu0 }
 0x725   : > { %v9308_v51 = vmul.f32 %v11271_v62, %v9293_v42  ;;  %v9292_v27 = vadd.f32 %v9253_v61, %v9142_v6  ;;  %v9348_v42 = vld [vmem:[%s582_s30] sm:$0x1]  ;;  %v11306_v6 = vld [vmem:[%s17997_s12 + $0x170] sm:$0xff]  ;;  %s585_s30 = scalar_lea.vmem %s18003_s18, %s18040_s28 }
 0x726   : > { %v13852_v29 = vpop.f32.mrf.mxu0  ;;  %v11319_v61 = vld [vmem:[%s17997_s12 + $0x1d0] sm:$0xff] }
 0x727   : > { %v9323_v39 = vadd.f32 %v11272_v14, %v9308_v51  ;;  %v9307_v57 = vmul.f32 %v11271_v62, %v9292_v27  ;;  %v9295_v49 = vadd.f32 %v13852_v29, %v9145_v38  ;;  %v11318_v51 = vld [vmem:[%s17997_s12 + $0x1c8] sm:$0xff]  ;;  %v11302_v27 = vld [vmem:[%s17997_s12 + $0x150] sm:$0xff]  ;;  %v11317_v38 = vld [vmem:[%s17997_s12 + $0x1c0] sm:$0xff] }
 0x728   : > { %v9263_v21 = vpop.f32.mrf.mxu0  ;;  %v11316_v29 = vld [vmem:[%s17997_s12 + $0x1b8] sm:$0xff] }
 0x729   : > { %v9331_v22 = vmax.f32 %v9323_v39, 0.0  ;;  %v9322_v25 = vadd.f32 %v11272_v14, %v9307_v57  ;;  %v9310_v16 = vmul.f32 %v11271_v62, %v9295_v49  ;;  %v9294_v53 = vadd.f32 %v9263_v21, %v9144_v35  ;;  %v11315_v39 = vld [vmem:[%s17997_s12 + $0x1b0] sm:$0xff]  ;;  %v11299_v57 = vld [vmem:[%s17997_s12 + $0x138] sm:$0xff]  ;;  %v11314_v49 = vld [vmem:[%s17997_s12 + $0x1a8] sm:$0xff] }
 0x72a   : > { %v13855_v40 = vpop.f32.mrf.mxu0  ;;  %v11298_v35 = vld [vmem:[%s17997_s12 + $0x130] sm:$0xff] }
 0x72b   : > { %9340 = vst.msk [vmem:[#allocation6 + $0x8] sm:$0xff] %vm9338_vm7, %v9331_v22  ;;  %v9330_v12 = vmax.f32 %v9322_v25, 0.0  ;;  %v9325_v4 = vadd.f32 %v11272_v14, %v9310_v16  ;;  %v9309_v0 = vmul.f32 %v11271_v62, %v9294_v53  ;;  %v9297_v18 = vadd.f32 %v13855_v40, %v9147_v52  ;;  %v11297_v52 = vld [vmem:[%s17997_s12 + $0x128] sm:$0xff]  ;;  %v11312_v22 = vld [vmem:[%s17997_s12 + $0x198] sm:$0xff]  ;;  %v11311_v40 = vld [vmem:[%s17997_s12 + $0x190] sm:$0xff] }
 0x72c   : > { %v9273_v60 = vpop.f32.mrf.mxu0 }
 0x72d   : > { %9339 = vst.msk [vmem:[#allocation6] sm:$0xff] %vm9338_vm7, %v9330_v12  ;;  %v9333_v17 = vmax.f32 %v9325_v4, 0.0  ;;  %v9324_v59 = vadd.f32 %v11272_v14, %v9309_v0  ;;  %v9312_v32 = vmul.f32 %v11271_v62, %v9297_v18  ;;  %v9296_v54 = vadd.f32 %v9273_v60, %v9146_v9  ;;  %v11310_v12 = vld [vmem:[%s17997_s12 + $0x188] sm:$0xff]  ;;  %v11294_v4 = vld [vmem:[%s17997_s12 + $0x110] sm:$0xff]  ;;  %v11309_v0 = vld [vmem:[%s17997_s12 + $0x180] sm:$0xff] }
 0x72e   : > { %v13858_v47 = vpop.f32.mrf.mxu0  ;;  %v11293_v60 = vld [vmem:[%s17997_s12 + $0x108] sm:$0xff] }
 0x72f   : > { %9342 = vst.msk [vmem:[#allocation6 + $0x18] sm:$0xff] %vm9338_vm7, %v9333_v17  ;;  %v9332_v2 = vmax.f32 %v9324_v59, 0.0  ;;  %v9327_v55 = vadd.f32 %v11272_v14, %v9312_v32  ;;  %v9311_v46 = vmul.f32 %v11271_v62, %v9296_v54  ;;  %v11358_v59 = vld [vmem:[%s17997_s12 + $0x2f8] sm:$0xff]  ;;  %v11292_v32 = vld [vmem:[%s17997_s12 + $0x100] sm:$0xff]  ;;  %v11357_v54 = vld [vmem:[%s17997_s12 + $0x2f0] sm:$0xff] }
 0x730   : > { %v9283_v7 = vpop.f32.mrf.mxu0 }
 0x731   : > { %9341 = vst.msk [vmem:[#allocation6 + $0x10] sm:$0xff] %vm9338_vm7, %v9332_v2  ;;  %v9335_v28 = vmax.f32 %v9327_v55, 0.0  ;;  %v9326_v26 = vadd.f32 %v11272_v14, %v9311_v46  ;;  %v9298_v44 = vadd.f32 %v9283_v7, %v9148_v24  ;;  %v11341_v24 = vld [vmem:[%s17997_s12 + $0x278] sm:$0xff]  ;;  %v11356_v2 = vld [vmem:[%s17997_s12 + $0x2e8] sm:$0xff]  ;;  %v11340_v55 = vld [vmem:[%s17997_s12 + $0x270] sm:$0xff] }
 0x732   : > { %v9355_v3 = vld [vmem:[#allocation6 + $0x9] ss:$2 sm:$0x7]  ;;  %v9357_v56 = vld [vmem:[#allocation6 + $0xa] ss:$2 sm:$0x7] }
 0x733   : > { %9344 = vst.msk [vmem:[#allocation6 + $0x28] sm:$0xff] %vm9338_vm7, %v9335_v28  ;;  %v9334_v45 = vmax.f32 %v9326_v26, 0.0  ;;  %v9313_v36 = vmul.f32 %v11271_v62, %v9298_v44  ;;  %v9359_v30 = vmax.f32 %v9355_v3, %v9357_v56  ;;  %v11323_v62 = vld [vmem:[%s17997_s12 + $0x1f0] sm:$0xff]  ;;  %v11355_v46 = vld [vmem:[%s17997_s12 + $0x2e0] sm:$0xff]  ;;  %v11339_v7 = vld [vmem:[%s17997_s12 + $0x268] sm:$0xff] }
 0x734   : > { %v9351_v8 = vld [vmem:[#allocation6] ss:$2 sm:$0x7]  ;;  %v9353_v63 = vld [vmem:[#allocation6 + $0x1] ss:$2 sm:$0x7] }
 0x735   : > { %9343 = vst.msk [vmem:[#allocation6 + $0x20] sm:$0xff] %vm9338_vm7, %v9334_v45  ;;  %v9328_v1 = vadd.f32 %v11272_v14, %v9313_v36  ;;  %v9358_v20 = vmax.f32 %v9351_v8, %v9353_v63  ;;  %v11304_v14 = vld [vmem:[%s17997_s12 + $0x160] sm:$0xff]  ;;  %v11354_v28 = vld [vmem:[%s17997_s12 + $0x2d8] sm:$0xff]  ;;  %v11353_v44 = vld [vmem:[%s17997_s12 + $0x2d0] sm:$0xff] }
 0x736   : > { %v9717_v25 = vld [vmem:[#allocation6 + $0x1b] ss:$2 sm:$0x7]  ;;  %v11338_v26 = vld [vmem:[%s17997_s12 + $0x260] sm:$0xff]  ;;  %v11337_v3 = vld [vmem:[%s17997_s12 + $0x258] sm:$0xff] }
 0x737   : > { %v9336_v11 = vmax.f32 %v9328_v1, 0.0  ;;  %v17439_v58 = vmax.f32 %v9358_v20, %v9359_v30  ;;  %v11352_v56 = vld [vmem:[%s17997_s12 + $0x2c8] sm:$0xff]  ;;  %v11336_v45 = vld [vmem:[%s17997_s12 + $0x250] sm:$0xff]  ;;  %v11351_v36 = vld [vmem:[%s17997_s12 + $0x2c0] sm:$0xff] }
 0x738   : > { %v9713_v16 = vld [vmem:[#allocation6 + $0x12] ss:$2 sm:$0x7]  ;;  %v9715_v53 = vld [vmem:[#allocation6 + $0x13] ss:$2 sm:$0x7] }
 0x739   : > { %9345 = vst.msk [vmem:[#allocation6 + $0x30] sm:$0xff] %vm9338_vm7, %v9336_v11  ;;  %11273 = vmatmul.mubr.msk.f32.vlgmr.msra.gmra.mxu1 %vm9338_vm7, %v17439_v58  ;;  %v9543_v33 = vrot.slane %v17439_v58, 1  ;;  %v9720_v18 = vmax.f32 %v9713_v16, %v9715_v53  ;;  %v9636_v47 = vrot.slane %v17439_v58, 2  ;;  %v11335_v8 = vld [vmem:[%s17997_s12 + $0x248] sm:$0xff]  ;;  %v11350_v63 = vld [vmem:[%s17997_s12 + $0x2b8] sm:$0xff]  ;;  %v11334_v1 = vld [vmem:[%s17997_s12 + $0x240] sm:$0xff] }
 0x73a   : > { %9486 = vmatpush1.msra.mxu1 %v9349_v10  ;;  %9519 = vmatprep.mubr.f32.mxu1 %v18037_v13  ;;  %v11349_v20 = vld [vmem:[%s17997_s12 + $0x2b0] sm:$0xff]  ;;  %v11333_v30 = vld [vmem:[%s17997_s12 + $0x238] sm:$0xff]  ;;  %v11348_v11 = vld [vmem:[%s17997_s12 + $0x2a8] sm:$0xff] }
 0x73b   : > { %11291 = vmatmul.mubr.msk.f32.vlgmr.msra.gmra.mxu0 %vm9338_vm7, %v9543_v33  ;;  %9655 = vmatprep.subr.mxu1 %v11307_v19  ;;  %v11332_v58 = vld [vmem:[%s17997_s12 + $0x230] sm:$0xff]  ;;  %v11347_v10 = vld [vmem:[%s17997_s12 + $0x2a0] sm:$0xff]  ;;  %v11331_v19 = vld [vmem:[%s17997_s12 + $0x228] sm:$0xff] }
 0x73c   : > { %9760 = vmatpush1.msra.mxu0 %v11323_v62  ;;  %9807 = vmatprep.mubr.f32.mxu0 %v18037_v13  ;;  %v9719_v21 = vld [vmem:[#allocation6 + $0x1c] ss:$2 sm:$0x7]  ;;  %v11346_v33 = vld [vmem:[%s17997_s12 + $0x298] sm:$0xff]  ;;  %v11330_v62 = vld [vmem:[%s17997_s12 + $0x220] sm:$0xff] }
 0x73d   : > { %9761 = vmatprep.subr.mxu0 %v11322_v15  ;;  %11274 = vmatmul.mubr.msk.f32.vlgmr.msra.gmra.mxu1 %vm9451_vm8, %v9348_v42  ;;  %v9721_v9 = vmax.f32 %v9717_v25, %v9719_v21  ;;  %v11345_v15 = vld [vmem:[%s17997_s12 + $0x290] sm:$0xff]  ;;  %v11329_v42 = vld [vmem:[%s17997_s12 + $0x218] sm:$0xff]  ;;  %v11386_v21 = vld [vmem:[%s17997_s12 + $0x3c8] sm:$0xff] }
 0x73e   : > { %9656 = vmatpush1.msra.mxu1 %v11306_v6  ;;  %9762 = vmatpush1.msra.mxu0 %v11321_v34  ;;  %v11344_v6 = vld [vmem:[%s17997_s12 + $0x288] sm:$0xff]  ;;  %v11328_v34 = vld [vmem:[%s17997_s12 + $0x210] sm:$0xff] }
 0x73f   : > { %9657 = vmatprep.subr.mxu1 %v11305_v23  ;;  %9763 = vmatprep.subr.mxu0 %v11320_v41  ;;  %v17545_v17 = vmax.f32 %v9720_v18, %v9721_v9  ;;  %v11343_v23 = vld [vmem:[%s17997_s12 + $0x280] sm:$0xff]  ;;  %v11327_v41 = vld [vmem:[%s17997_s12 + $0x208] sm:$0xff]  ;;  %v10003_v9 = vld [vmem:[#allocation6 + $0x24] ss:$2 sm:$0x7] }
 0x740   : > { %9658 = vmatpush1.msra.mxu1 %v11304_v14  ;;  %9764 = vmatpush1.msra.mxu0 %v11319_v61  ;;  %v11392_v61 = vld [vmem:[%s17997_s12 + $0x3f8] sm:$0xff]  ;;  %v11369_v53 = vld [vmem:[%s17997_s12 + $0x348] sm:$0xff] }
 0x741   : > { %9659 = vmatprep.subr.mxu1 %v11303_v50  ;;  %9765 = vmatprep.subr.mxu0 %v11318_v51  ;;  %v9926_v14 = vrot.slane %v17545_v17, 2  ;;  %v11326_v50 = vld [vmem:[%s17997_s12 + $0x200] sm:$0xff]  ;;  %v11391_v51 = vld [vmem:[%s17997_s12 + $0x3f0] sm:$0xff]  ;;  %v11382_v18 = vld [vmem:[%s17997_s12 + $0x3a8] sm:$0xff] }
 0x742   : > { %9660 = vmatpush1.msra.mxu1 %v11302_v27  ;;  %9766 = vmatpush1.msra.mxu0 %v11317_v38  ;;  %v11375_v27 = vld [vmem:[%s17997_s12 + $0x378] sm:$0xff]  ;;  %v9833_v38 = vrot.slane %v17545_v17, 1 }
 0x743   : > { %9661 = vmatprep.subr.mxu1 %v11301_v48  ;;  %9767 = vmatprep.subr.mxu0 %v11316_v29  ;;  %v11390_v48 = vld [vmem:[%s17997_s12 + $0x3e8] sm:$0xff]  ;;  %v11374_v29 = vld [vmem:[%s17997_s12 + $0x370] sm:$0xff]  ;;  %v10007_v25 = vld [vmem:[#allocation6 + $0x2d] ss:$2 sm:$0x7] }
 0x744   : > { %9662 = vmatpush1.msra.mxu1 %v11300_v37  ;;  %9768 = vmatpush1.msra.mxu0 %v11315_v39  ;;  %v11389_v37 = vld [vmem:[%s17997_s12 + $0x3e0] sm:$0xff]  ;;  %v11373_v39 = vld [vmem:[%s17997_s12 + $0x368] sm:$0xff] }
 0x745   : > { %9663 = vmatprep.subr.mxu1 %v11299_v57  ;;  %9769 = vmatprep.subr.mxu0 %v11314_v49  ;;  %v11388_v57 = vld [vmem:[%s17997_s12 + $0x3d8] sm:$0xff]  ;;  %v11372_v49 = vld [vmem:[%s17997_s12 + $0x360] sm:$0xff] }
 0x746   : > { %9664 = vmatpush1.msra.mxu1 %v11298_v35  ;;  %9770 = vmatpush1.msra.mxu0 %v11313_v43  ;;  %v11387_v35 = vld [vmem:[%s17997_s12 + $0x3d0] sm:$0xff]  ;;  %v11371_v43 = vld [vmem:[%s17997_s12 + $0x358] sm:$0xff] }
 0x747   : > { %9665 = vmatprep.subr.mxu1 %v11297_v52  ;;  %9771 = vmatprep.subr.mxu0 %v11312_v22  ;;  %v11370_v52 = vld [vmem:[%s17997_s12 + $0x350] sm:$0xff]  ;;  %v11385_v22 = vld [vmem:[%s17997_s12 + $0x3c0] sm:$0xff] }
 0x748   : > { %9666 = vmatpush1.msra.mxu1 %v11296_v31  ;;  %9772 = vmatpush1.msra.mxu0 %v11311_v40  ;;  %v10009_v16 = vld [vmem:[#allocation6 + $0x2e] ss:$2 sm:$0x7] }
 0x749   : > { %9667 = vmatprep.subr.mxu1 %v11295_v5  ;;  %9773 = vmatprep.subr.mxu0 %v11310_v12  ;;  %v11384_v31 = vld [vmem:[%s17997_s12 + $0x3b8] sm:$0xff]  ;;  %v11368_v40 = vld [vmem:[%s17997_s12 + $0x340] sm:$0xff]  ;;  %v11383_v12 = vld [vmem:[%s17997_s12 + $0x3b0] sm:$0xff] }
 0x74a   : > { %9668 = vmatpush1.msra.mxu1 %v11294_v4  ;;  %9774 = vmatpush1.msra.mxu0 %v11309_v0  ;;  %v10005_v5 = vld [vmem:[#allocation6 + $0x25] ss:$2 sm:$0x7]  ;;  %v10011_v0 = vmax.f32 %v10007_v25, %v10009_v16  ;;  %v10329_v25 = vld [vmem:[%s17999_s14 + $0xa8] sm:$0xff] }
 0x74b   : > { %9669 = vmatprep.subr.mxu1 %v11293_v60  ;;  %11325 = vmatmul.mubr.msk.f32.vlgmr.msra.gmra.mxu0 %vm9338_vm7, %v17545_v17  ;;  %v11367_v4 = vld [vmem:[%s17997_s12 + $0x338] sm:$0xff]  ;;  %v11366_v60 = vld [vmem:[%s17997_s12 + $0x330] sm:$0xff]  ;;  %v11381_v17 = vld [vmem:[%s17997_s12 + $0x3a0] sm:$0xff] }
 0x74c   : > { %9945 = vmatprep.subr.mxu0 %v11358_v59  ;;  %9670 = vmatpush1.msra.mxu1 %v11292_v32  ;;  %v11365_v59 = vld [vmem:[%s17997_s12 + $0x328] sm:$0xff]  ;;  %v10010_v32 = vmax.f32 %v10003_v9, %v10005_v5  ;;  %v10311_v9 = vld [vmem:[%s17999_s14 + $0x18] sm:$0xff]  ;;  %v10326_v5 = vld [vmem:[%s17999_s14 + $0x90] sm:$0xff] }
 0x74d   : > { %9703 = vmatprep.mubr.f32.mxu1 %v18037_v13  ;;  %9946 = vmatpush1.msra.mxu0 %v11357_v54  ;;  %v11380_v54 = vld [vmem:[%s17997_s12 + $0x398] sm:$0xff]  ;;  %v10313_v16 = vld [vmem:[%s17999_s14 + $0x28] sm:$0xff] }
 0x74e   : > { %11308 = vmatmul.mubr.msk.f32.vlgmr.msra.gmra.mxu1 %vm9338_vm7, %v9636_v47  ;;  %9852 = vmatprep.subr.mxu1 %v11341_v24  ;;  %v11364_v24 = vld [vmem:[%s17997_s12 + $0x320] sm:$0xff]  ;;  %v11379_v47 = vld [vmem:[%s17997_s12 + $0x390] sm:$0xff] }
 0x74f   : > { %9947 = vmatprep.subr.mxu0 %v11356_v2  ;;  %9853 = vmatpush1.msra.mxu1 %v11340_v55  ;;  %v11363_v2 = vld [vmem:[%s17997_s12 + $0x318] sm:$0xff]  ;;  %v10012_v55 = vmax.f32 %v10010_v32, %v10011_v0  ;;  %v10309_v0 = vld [vmem:[%s17999_s14 + $0x8] sm:$0xff] }
 0x750   : > { %9948 = vmatpush1.msra.mxu0 %v11355_v46  ;;  %9854 = vmatprep.subr.mxu1 %v11339_v7  ;;  %v11378_v46 = vld [vmem:[%s17997_s12 + $0x388] sm:$0xff]  ;;  %v11362_v7 = vld [vmem:[%s17997_s12 + $0x310] sm:$0xff] }
 0x751   : > { %9949 = vmatprep.subr.mxu0 %v11354_v28  ;;  %9855 = vmatpush1.msra.mxu1 %v11338_v26  ;;  %v11377_v28 = vld [vmem:[%s17997_s12 + $0x380] sm:$0xff]  ;;  %v11361_v26 = vld [vmem:[%s17997_s12 + $0x308] sm:$0xff] }
 0x752   : > { %9950 = vmatpush1.msra.mxu0 %v11353_v44  ;;  %9856 = vmatprep.subr.mxu1 %v11337_v3  ;;  %v10123_v44 = vrot.slane %v10012_v55, 1  ;;  %v11360_v3 = vld [vmem:[%s17997_s12 + $0x300] sm:$0xff]  ;;  %v10425_v32 = vld [vmem:[%s18001_s16 + $0x68] sm:$0xff] }
 0x753   : > { %9951 = vmatprep.subr.mxu0 %v11352_v56  ;;  %9857 = vmatpush1.msra.mxu1 %v11336_v45  ;;  %v11409_v56 = vld [vmem:[%s17997_s12 + $0x478] sm:$0xff]  ;;  %v11408_v45 = vld [vmem:[%s17997_s12 + $0x470] sm:$0xff] }
 0x754   : > { %9952 = vmatpush1.msra.mxu0 %v11351_v36  ;;  %9858 = vmatprep.subr.mxu1 %v11335_v8  ;;  %v11407_v36 = vld [vmem:[%s17997_s12 + $0x468] sm:$0xff]  ;;  %v11406_v8 = vld [vmem:[%s17997_s12 + $0x460] sm:$0xff] }
 0x755   : > { %9953 = vmatprep.subr.mxu0 %v11350_v63  ;;  %9859 = vmatpush1.msra.mxu1 %v11334_v1  ;;  %v11405_v63 = vld [vmem:[%s17997_s12 + $0x458] sm:$0xff]  ;;  %v11404_v1 = vld [vmem:[%s17997_s12 + $0x450] sm:$0xff] }
 0x756   : > { %9954 = vmatpush1.msra.mxu0 %v11349_v20  ;;  %9860 = vmatprep.subr.mxu1 %v11333_v30  ;;  %v11403_v20 = vld [vmem:[%s17997_s12 + $0x448] sm:$0xff]  ;;  %v11402_v30 = vld [vmem:[%s17997_s12 + $0x440] sm:$0xff] }
 0x757   : > { %9955 = vmatprep.subr.mxu0 %v11348_v11  ;;  %9861 = vmatpush1.msra.mxu1 %v11332_v58  ;;  %v11401_v11 = vld [vmem:[%s17997_s12 + $0x438] sm:$0xff]  ;;  %v11400_v58 = vld [vmem:[%s17997_s12 + $0x430] sm:$0xff] }
 0x758   : > { %9956 = vmatpush1.msra.mxu0 %v11347_v10  ;;  %9862 = vmatprep.subr.mxu1 %v11331_v19  ;;  %v11399_v10 = vld [vmem:[%s17997_s12 + $0x428] sm:$0xff]  ;;  %v11398_v19 = vld [vmem:[%s17997_s12 + $0x420] sm:$0xff] }
 0x759   : > { %9957 = vmatprep.subr.mxu0 %v11346_v33  ;;  %9863 = vmatpush1.msra.mxu1 %v11330_v62  ;;  %v11397_v33 = vld [vmem:[%s17997_s12 + $0x418] sm:$0xff]  ;;  %v11396_v62 = vld [vmem:[%s17997_s12 + $0x410] sm:$0xff] }
 0x75a   : > { %9958 = vmatpush1.msra.mxu0 %v11345_v15  ;;  %9864 = vmatprep.subr.mxu1 %v11329_v42  ;;  %v11395_v15 = vld [vmem:[%s17997_s12 + $0x408] sm:$0xff]  ;;  %v11394_v42 = vld [vmem:[%s17997_s12 + $0x400] sm:$0xff] }
 0x75b   : > { %9959 = vmatprep.subr.mxu0 %v11344_v6  ;;  %9865 = vmatpush1.msra.mxu1 %v11328_v34  ;;  %v10216_v6 = vrot.slane %v10012_v55, 2  ;;  %v10339_v34 = vld [vmem:[%s17999_s14 + $0xf8] sm:$0xff] }
 0x75c   : > { %9960 = vmatpush1.msra.mxu0 %v11343_v23  ;;  %9993 = vmatprep.mubr.f32.mxu0 %v18037_v13  ;;  %v10323_v23 = vld [vmem:[%s17999_s14 + $0x78] sm:$0xff] }
 0x75d   : > { %9866 = vmatprep.subr.mxu1 %v11327_v41  ;;  %11359 = vmatmul.mubr.msk.f32.vlgmr.msra.gmra.mxu0 %vm9338_vm7, %v9926_v14  ;;  %v10338_v41 = vld [vmem:[%s17999_s14 + $0xf0] sm:$0xff] }
 0x75e   : > { %10142 = vmatprep.subr.mxu0 %v11392_v61  ;;  %9867 = vmatpush1.msra.mxu1 %v11326_v50  ;;  %v10322_v14 = vld [vmem:[%s17999_s14 + $0x70] sm:$0xff]  ;;  %v10337_v61 = vld [vmem:[%s17999_s14 + $0xe8] sm:$0xff] }
 0x75f   : > { %9900 = vmatprep.mubr.f32.mxu1 %v18037_v13  ;;  %10143 = vmatpush1.msra.mxu0 %v11391_v51  ;;  %v10321_v50 = vld [vmem:[%s17999_s14 + $0x68] sm:$0xff]  ;;  %v10336_v51 = vld [vmem:[%s17999_s14 + $0xe0] sm:$0xff] }
 0x760   : > { %11342 = vmatmul.mubr.msk.f32.vlgmr.msra.gmra.mxu1 %vm9338_vm7, %v9833_v38  ;;  %10049 = vmatprep.subr.mxu1 %v11375_v27  ;;  %v10320_v27 = vld [vmem:[%s17999_s14 + $0x60] sm:$0xff]  ;;  %v10335_v38 = vld [vmem:[%s17999_s14 + $0xd8] sm:$0xff] }
 0x761   : > { %10144 = vmatprep.subr.mxu0 %v11390_v48  ;;  %10050 = vmatpush1.msra.mxu1 %v11374_v29  ;;  %v10319_v48 = vld [vmem:[%s17999_s14 + $0x58] sm:$0xff]  ;;  %v10334_v29 = vld [vmem:[%s17999_s14 + $0xd0] sm:$0xff] }
 0x762   : > { %10145 = vmatpush1.msra.mxu0 %v11389_v37  ;;  %10051 = vmatprep.subr.mxu1 %v11373_v39  ;;  %v10318_v37 = vld [vmem:[%s17999_s14 + $0x50] sm:$0xff]  ;;  %v10333_v39 = vld [vmem:[%s17999_s14 + $0xc8] sm:$0xff] }
 0x763   : > { %10146 = vmatprep.subr.mxu0 %v11388_v57  ;;  %10052 = vmatpush1.msra.mxu1 %v11372_v49  ;;  %v10317_v57 = vld [vmem:[%s17999_s14 + $0x48] sm:$0xff]  ;;  %v10332_v49 = vld [vmem:[%s17999_s14 + $0xc0] sm:$0xff] }
 0x764   : > { %10147 = vmatpush1.msra.mxu0 %v11387_v35  ;;  %10053 = vmatprep.subr.mxu1 %v11371_v43  ;;  %v10316_v35 = vld [vmem:[%s17999_s14 + $0x40] sm:$0xff]  ;;  %v10331_v43 = vld [vmem:[%s17999_s14 + $0xb8] sm:$0xff] }
 0x765   : > { %10148 = vmatprep.subr.mxu0 %v11386_v21  ;;  %10054 = vmatpush1.msra.mxu1 %v11370_v52  ;;  %v10315_v21 = vld [vmem:[%s17999_s14 + $0x38] sm:$0xff]  ;;  %v10330_v52 = vld [vmem:[%s17999_s14 + $0xb0] sm:$0xff] }
 0x766   : > { %10149 = vmatpush1.msra.mxu0 %v11385_v22  ;;  %10055 = vmatprep.subr.mxu1 %v11369_v53  ;;  %v10314_v22 = vld [vmem:[%s17999_s14 + $0x30] sm:$0xff]  ;;  %v10328_v53 = vld [vmem:[%s17999_s14 + $0xa0] sm:$0xff] }
 0x767   : > { %10150 = vmatprep.subr.mxu0 %v11384_v31  ;;  %10056 = vmatpush1.msra.mxu1 %v11368_v40  ;;  %v10312_v31 = vld [vmem:[%s17999_s14 + $0x20] sm:$0xff]  ;;  %v10327_v40 = vld [vmem:[%s17999_s14 + $0x98] sm:$0xff] }
 0x768   : > { %10151 = vmatpush1.msra.mxu0 %v11383_v12  ;;  %10057 = vmatprep.subr.mxu1 %v11367_v4  ;;  %v10310_v12 = vld [vmem:[%s17999_s14 + $0x10] sm:$0xff]  ;;  %v10325_v4 = vld [vmem:[%s17999_s14 + $0x88] sm:$0xff] }
 0x769   : > { %10152 = vmatprep.subr.mxu0 %v11382_v18  ;;  %10058 = vmatpush1.msra.mxu1 %v11366_v60  ;;  %v10324_v18 = vld [vmem:[%s17999_s14 + $0x80] sm:$0xff] }
 0x76a   : > { %10153 = vmatpush1.msra.mxu0 %v11381_v17  ;;  %10059 = vmatprep.subr.mxu1 %v11365_v59  ;;  %v10308_v60 = vld [vmem:[%s17999_s14] sm:$0xff]  ;;  %v10427_v17 = vld [vmem:[%s18001_s16 + $0x78] sm:$0xff]  ;;  %v10426_v59 = vld [vmem:[%s18001_s16 + $0x70] sm:$0xff] }
 0x76b   : > { %10154 = vmatprep.subr.mxu0 %v11380_v54  ;;  %10060 = vmatpush1.msra.mxu1 %v11364_v24  ;;  %v10424_v54 = vld [vmem:[%s18001_s16 + $0x60] sm:$0xff]  ;;  %v10423_v24 = vld [vmem:[%s18001_s16 + $0x58] sm:$0xff] }
 0x76c   : > { %10155 = vmatpush1.msra.mxu0 %v11379_v47  ;;  %10061 = vmatprep.subr.mxu1 %v11363_v2  ;;  %v10422_v47 = vld [vmem:[%s18001_s16 + $0x50] sm:$0xff]  ;;  %v10421_v2 = vld [vmem:[%s18001_s16 + $0x48] sm:$0xff] }
 0x76d   : > { %10156 = vmatprep.subr.mxu0 %v11378_v46  ;;  %10062 = vmatpush1.msra.mxu1 %v11362_v7  ;;  %v10419_v46 = vld [vmem:[%s18001_s16 + $0x38] sm:$0xff]  ;;  %v10418_v7 = vld [vmem:[%s18001_s16 + $0x30] sm:$0xff] }
 0x76e   : > { %10157 = vmatpush1.msra.mxu0 %v11377_v28  ;;  %10190 = vmatprep.mubr.f32.mxu0 %v18037_v13  ;;  %v10417_v28 = vld [vmem:[%s18001_s16 + $0x28] sm:$0xff] }
 0x76f   : > { %10063 = vmatprep.subr.mxu1 %v11361_v26  ;;  %11393 = vmatmul.mubr.msk.f32.vlgmr.msra.gmra.mxu0 %vm9338_vm7, %v10123_v44 }
 0x770   : > { %10064 = vmatpush1.msra.mxu1 %v11360_v3  ;;  %10097 = vmatprep.mubr.f32.mxu1 %v18037_v13 }
 0x771   : > { %11376 = vmatmul.mubr.msk.f32.vlgmr.msra.gmra.mxu1 %vm9338_vm7, %v10012_v55  ;;  %10235 = vmatprep.subr.mxu1 %v11409_v56  ;;  %v10420_v55 = vld [vmem:[%s18001_s16 + $0x40] sm:$0xff] }
 0x772   : > { %10236 = vmatpush1.msra.mxu1 %v11408_v45  ;;  %10283 = vmatprep.mubr.f32.mxu1 %v18037_v13 }
 0x773   : > { %10237 = vmatprep.subr.mxu1 %v11407_v36  ;;  %12115 = vmatprep.subr.mxu0 %v10339_v34 }
 0x774   : > { %10238 = vmatpush1.msra.mxu1 %v11406_v8  ;;  %12116 = vmatpush3.msra.mxu0 %v10323_v23 }
 0x775   : > { %10239 = vmatprep.subr.mxu1 %v11405_v63  ;;  %12117 = vmatprep.subr.mxu0 %v10338_v41 }
 0x776   : > { %10240 = vmatpush1.msra.mxu1 %v11404_v1  ;;  %12118 = vmatpush3.msra.mxu0 %v10322_v14 }
 0x777   : > { %10241 = vmatprep.subr.mxu1 %v11403_v20  ;;  %12119 = vmatprep.subr.mxu0 %v10337_v61 }
 0x778   : > { %10242 = vmatpush1.msra.mxu1 %v11402_v30  ;;  %12120 = vmatpush3.msra.mxu0 %v10321_v50 }
 0x779   : > { %10243 = vmatprep.subr.mxu1 %v11401_v11  ;;  %12121 = vmatprep.subr.mxu0 %v10336_v51 }
 0x77a   : > { %10244 = vmatpush1.msra.mxu1 %v11400_v58  ;;  %12122 = vmatpush3.msra.mxu0 %v10320_v27 }
 0x77b   : > { %10245 = vmatprep.subr.mxu1 %v11399_v10  ;;  %12123 = vmatprep.subr.mxu0 %v10335_v38 }
 0x77c   : > { %10246 = vmatpush1.msra.mxu1 %v11398_v19  ;;  %12124 = vmatpush3.msra.mxu0 %v10319_v48 }
 0x77d   : > { %10247 = vmatprep.subr.mxu1 %v11397_v33  ;;  %12125 = vmatprep.subr.mxu0 %v10334_v29 }
 0x77e   : > { %10248 = vmatpush1.msra.mxu1 %v11396_v62  ;;  %12126 = vmatpush3.msra.mxu0 %v10318_v37 }
 0x77f   : > { %10249 = vmatprep.subr.mxu1 %v11395_v15  ;;  %12127 = vmatprep.subr.mxu0 %v10333_v39 }
 0x780   : > { %10250 = vmatpush1.msra.mxu1 %v11394_v42  ;;  %12128 = vmatpush3.msra.mxu0 %v10317_v57 }
 0x781   : > { %11410 = vmatmul.mubr.msk.f32.vlgmr.msra.gmra.mxu1 %vm9338_vm7, %v10216_v6  ;;  %13859 = vmatprep.subr.mxu1 %v18037_v13  ;;  %v10294_v6 = vlaneseq }
 0x782   : > { %13891 = vmatprep.mubr.msk.f32.mxu1 %vm13914_vm1, %v18037_v13  ;;  %12129 = vmatprep.subr.mxu0 %v10332_v49  ;;  %v10292_v49 = vld [vmem:[%s17998_s13] sm:$0x3] }
 0x783   : > { %12130 = vmatpush3.msra.mxu0 %v10316_v35  ;;  %13860 = vmatpush3.msra.mxu1 %v10427_v17  ;;  %v10295_v50 = vshrl.u32 %v10294_v6, 7  ;;  %v10413_v17 = vld [vmem:[%s18001_s16 + $0x8] sm:$0xff] }
 0x784   : > { %12131 = vmatprep.subr.mxu0 %v10331_v43  ;;  %13861 = vmatprep.subr.mxu1 %v18037_v13 }
 0x785   : > { %12132 = vmatpush3.msra.mxu0 %v10315_v21  ;;  %13862 = vmatpush3.msra.mxu1 %v10426_v59  ;;  %v10296_v39 = vsub.s32 0, %v10295_v50  ;;  %v10300_v35 = vsub.s32 1, %v10295_v50  ;;  %v10412_v59 = vld [vmem:[%s18001_s16] sm:$0xff] }
 0x786   : > { %12133 = vmatprep.subr.mxu0 %v10330_v52  ;;  %13863 = vmatprep.subr.mxu1 %v18037_v13 }
 0x787   : > { %12134 = vmatpush3.msra.mxu0 %v10314_v22  ;;  %13864 = vmatpush3.msra.mxu1 %v10425_v32  ;;  %v10297_v22 = vrot.slane %v10292_v49, %v10296_v39 }
 0x788   : > { %12135 = vmatprep.subr.mxu0 %v10329_v25  ;;  %13865 = vmatprep.subr.mxu1 %v18037_v13 }
 0x789   : > { %12136 = vmatpush3.msra.mxu0 %v10313_v16  ;;  %13866 = vmatpush3.msra.mxu1 %v10424_v54  ;;  %v10340_v54 = vld [vmem:[%s18000_s15] sm:$0x1] }
 0x78a   : > { %12137 = vmatprep.subr.mxu0 %v10328_v53  ;;  %13867 = vmatprep.subr.mxu1 %v18037_v13  ;;  %v10301_v53 = vrot.slane %v10292_v49, %v10300_v35 }
 0x78b   : > { %12138 = vmatpush3.msra.mxu0 %v10312_v31  ;;  %13868 = vmatpush3.msra.mxu1 %v10423_v24 }
 0x78c   : > { %12139 = vmatprep.subr.mxu0 %v10327_v40  ;;  %13869 = vmatprep.subr.mxu1 %v18037_v13 }
 0x78d   : > { %12140 = vmatpush3.msra.mxu0 %v10311_v9  ;;  %13870 = vmatpush3.msra.mxu1 %v10422_v47 }
 0x78e   : > { %12141 = vmatprep.subr.mxu0 %v10326_v5  ;;  %13871 = vmatprep.subr.mxu1 %v18037_v13 }
 0x78f   : > { %12142 = vmatpush3.msra.mxu0 %v10310_v12  ;;  %13872 = vmatpush3.msra.mxu1 %v10421_v2 }
 0x790   : > { %12143 = vmatprep.subr.mxu0 %v10325_v4  ;;  %13873 = vmatprep.subr.mxu1 %v18037_v13 }
 0x791   : > { %12144 = vmatpush3.msra.mxu0 %v10309_v0  ;;  %13874 = vmatpush3.msra.mxu1 %v10420_v55  ;;  %v10416_v0 = vld [vmem:[%s18001_s16 + $0x20] sm:$0xff] }
 0x792   : > { %12145 = vmatprep.subr.mxu0 %v10324_v18  ;;  %13875 = vmatprep.subr.mxu1 %v18037_v13  ;;  %v10415_v18 = vld [vmem:[%s18001_s16 + $0x18] sm:$0xff] }
 0x793   : > { %12146 = vmatpush3.msra.mxu0 %v10308_v60  ;;  %13876 = vmatpush3.msra.mxu1 %v10419_v46  ;;  %v10414_v60 = vld [vmem:[%s18001_s16 + $0x10] sm:$0xff]  ;;  %v10428_v46 = vld [vmem:[%s18002_s17] sm:$0x1] }
 0x794   : > { %13877 = vmatprep.subr.mxu1 %v18037_v13 }
 0x795   : > { %13878 = vmatpush3.msra.mxu1 %v10418_v7 }
 0x796   : > { %13879 = vmatprep.subr.mxu1 %v18037_v13 }
 0x797   : > { %13880 = vmatpush3.msra.mxu1 %v10417_v28 }
 0x798   : > { %13881 = vmatprep.subr.mxu1 %v18037_v13 }
 0x799   : > { %13882 = vmatpush3.msra.mxu1 %v10416_v0 }
 0x79a   : > { %13883 = vmatprep.subr.mxu1 %v18037_v13 }
 0x79b   : > { %13884 = vmatpush3.msra.mxu1 %v10415_v18 }
 0x79c   : > { %13885 = vmatprep.subr.mxu1 %v18037_v13 }
 0x79d   : > { %13886 = vmatpush3.msra.mxu1 %v10414_v60 }
 0x79e   : > { %13887 = vmatprep.subr.mxu1 %v18037_v13 }
 0x79f   : > { %13888 = vmatpush3.msra.mxu1 %v10413_v17 }
 0x7a0   : > { %13889 = vmatprep.subr.mxu1 %v18037_v13 }
 0x7a1   : > { %13890 = vmatpush3.msra.mxu1 %v10412_v59 }
 0x7f9   : > { %v9446_v26 = vpop.f32.mrf.mxu1 }
 0x7fb   : > { %v9448_v44 = vpop.f32.mrf.mxu1  ;;  %v9612_v36 = vpop.f32.mrf.mxu0 }
 0x7fd   : > { %v9521_v3 = vpop.f32.mrf.mxu1  ;;  %v9614_v20 = vpop.f32.mrf.mxu0 }
 0x7fe   : > { %v9522_v45 = vadd.f32 %v9521_v3, %v9446_v26 }
 0x7ff   : > { %v9523_v56 = vpop.f32.mrf.mxu1 }
 0x800   : > { %v9524_v63 = vadd.f32 %v9523_v56, %v9448_v44  ;;  %v9617_v1 = vadd.f32 %v9612_v36, %v9522_v45 }
 0x802   : > { %v9618_v58 = vadd.f32 %v9614_v20, %v9524_v63 }
 0x80b   : > { %v9809_v10 = vpop.f32.mrf.mxu0 }
 0x80d   : > { %v9811_v15 = vpop.f32.mrf.mxu0 }
 0x80e   : > { %v9705_v8 = vpop.f32.mrf.mxu1 }
 0x80f   : > { %v9710_v11 = vadd.f32 %v9705_v8, %v9617_v1 }
 0x810   : > { %v9707_v30 = vpop.f32.mrf.mxu1 }
 0x811   : > { %v9711_v33 = vadd.f32 %v9707_v30, %v9618_v58  ;;  %v9814_v62 = vadd.f32 %v9809_v10, %v9710_v11 }
 0x813   : > { %v9815_v23 = vadd.f32 %v9811_v15, %v9711_v33 }
 0x81d   : > { %v9995_v41 = vpop.f32.mrf.mxu0 }
 0x81f   : > { %v9997_v27 = vpop.f32.mrf.mxu0 }
 0x820   : > { %v9902_v19 = vpop.f32.mrf.mxu1 }
 0x821   : > { %v9907_v34 = vadd.f32 %v9902_v19, %v9814_v62 }
 0x822   : > { %v9904_v42 = vpop.f32.mrf.mxu1 }
 0x823   : > { %v9908_v61 = vadd.f32 %v9904_v42, %v9815_v23  ;;  %v10000_v51 = vadd.f32 %v9995_v41, %v9907_v34 }
 0x825   : > { %v10001_v29 = vadd.f32 %v9997_v27, %v9908_v61 }
 0x82f   : > { %v10192_v37 = vpop.f32.mrf.mxu0 }
 0x831   : > { %v10099_v14 = vpop.f32.mrf.mxu1  ;;  %v10194_v21 = vpop.f32.mrf.mxu0 }
 0x832   : > { %v10104_v48 = vadd.f32 %v10099_v14, %v10000_v51 }
 0x833   : > { %v10101_v38 = vpop.f32.mrf.mxu1 }
 0x834   : > { %v10105_v57 = vadd.f32 %v10101_v38, %v10001_v29  ;;  %v10197_v43 = vadd.f32 %v10192_v37, %v10104_v48 }
 0x836   : > { %v10198_v16 = vadd.f32 %v10194_v21, %v10105_v57 }
 0x841   : > { %v10285_v52 = vpop.f32.mrf.mxu1 }
 0x842   : > { %v10290_v25 = vadd.f32 %v10285_v52, %v10197_v43 }
 0x843   : > { %v10287_v31 = vpop.f32.mrf.mxu1 }
 0x844   : > { %v10291_v40 = vadd.f32 %v10287_v31, %v10198_v16  ;;  %v10304_v9 = vadd.f32 %v10297_v22, %v10290_v25 }
 0x846   : > { %v10305_v5 = vadd.f32 %v10301_v53, %v10291_v40  ;;  %v10306_v4 = vmax.f32 %v10304_v9, 0.0 }
 0x848   : > { %v10307_v12 = vmax.f32 %v10305_v5, 0.0 }
 0x84a   : > { %10405 = vmatprep.mubr.f32.mxu0 %v10307_v12 }
 0x84b   : > { %10406 = vmatmul.mubr.f32.vlgmr.msra.gmra.mxu0 %v10306_v4 }
 0x90b   : > { %v12147_v32 = vpop.f32.mrf.mxu0 }
 0x90d   : > { %v12148_v24 = vpop.f32.mrf.mxu0 }
 0x90e   : > { %v12149_v47 = vadd.f32 %v12148_v24, %v12147_v32 }
 0x910   : > { %v10408_v2 = vadd.f32 %v12149_v47, %v10340_v54 }
 0x912   : > { %v10411_v55 = vmax.f32 %v10408_v2, 0.0 }
 0x914   : > { %13892 = vmatmul.mubr.f32.vlgmr.msra.gmra.mxu1 %v10411_v55 }
 0x9d4   : > { %v10495_v13 = vpop.f32.mrf.mxu1 }
 0x9d5   : > { %v10496_v7 = vadd.f32 %v10495_v13, %v10428_v46 }
 0x9d6   : > { %v13893_v28 = vpop.f32.mrf.mxu1 }
 0x9d7   : > { %10500 = vst.msk [vmem:[%s585_s30] sm:$0x1] %vm10499_vm9, %v10496_v7 }
 0x9d8 PF: > { %s28_s27 = sadd.s32 1, %s13911_s27  }
 0x9d9   : > { %p25_p4 = scmp.ge.s32.totalorder %s28_s27, 4  }
 0x9db   :  { %27 = sbr.rel (!%p25_p4) target bundleno = 4 (0x4), region = 258 }

</bundles_post_ra>
